<compile_context>
chip_gen: v6e
topology: v6e:2x2x1
jax: 0.10.0
libtpu: 0.0.40
codegen_flags: <defaults>
</compile_context>

<pallas_src>
import jax
import jax.numpy as jnp
import numpy as np
from jax.experimental import pallas as pl
from jax.experimental.pallas import tpu as pltpu


# ----------------------------------------------------------------------------
# Fused Pallas kernel: conv1+ReLU+pool1 + conv2+ReLU+pool2 + fc1+ReLU + fc2
# (one batch element per grid step; everything VMEM-resident)
# ----------------------------------------------------------------------------
def _fused_forward_kernel(x_ref, b1t_ref, b1row_ref, s1_ref, sc_ref,
                          b2t_ref, b2row_ref, s2_ref, wf1_ref,
                          bfc1_ref, wf2_ref, bfc2_ref, out_ref):
    f32 = jnp.float32
    bf16 = jnp.bfloat16

    # ---- conv1 (1->16, 3x3, pad=1) + bias + ReLU ---------------------------
    # Block-Toeplitz form: y1 = sum_di xpad[di:di+64, :] @ B1[di].
    # Output lanes: [0:512) even columns, [512:1024) odd columns; within each
    # half, lane = 16*(w//2) + c_out.
    acc1 = None
    for di in range(3):
        a = x_ref[0, di:di + 64, :]                                 # (64, 66)
        t = jnp.dot(a, b1t_ref[di], preferred_element_type=f32)     # (64, 1024)
        acc1 = t if acc1 is None else acc1 + t
    y1 = jnp.maximum(acc1 + b1row_ref[...], 0.0)

    # ---- maxpool1 (2x2) ----------------------------------------------------
    m1 = jnp.maximum(y1[:, :512], y1[:, 512:])                      # W-pairs (64, 512)
    p1 = jnp.maximum(
        jnp.dot(s1_ref[0], m1, preferred_element_type=f32),
        jnp.dot(s1_ref[1], m1, preferred_element_type=f32))         # H-pairs (32, 512)

    # ---- conv2 (16->32, 3x3, pad=1) + bias + ReLU --------------------------
    # Vertical shift (incl. zero padding rows) via one-hot matmuls, then bf16
    # block-Toeplitz matmuls with f32 accumulation.
    acc2 = None
    for di in range(3):
        a2 = jnp.dot(sc_ref[di], p1, preferred_element_type=f32)    # (32, 512)
        t = jnp.dot(a2.astype(bf16), b2t_ref[di],
                    preferred_element_type=f32)                     # (32, 1024)
        acc2 = t if acc2 is None else acc2 + t
    y2 = jnp.maximum(acc2 + b2row_ref[...], 0.0)

    # ---- maxpool2 (2x2) ----------------------------------------------------
    m2 = jnp.maximum(y2[:, :512], y2[:, 512:])                      # (32, 512)
    p2 = jnp.maximum(
        jnp.dot(s2_ref[0], m2, preferred_element_type=f32),
        jnp.dot(s2_ref[1], m2, preferred_element_type=f32))         # (16, 512)

    # ---- fc1 (8192 -> 64) + ReLU -------------------------------------------
    # Contraction over (row, lane) of p2 done as 16 independent
    # (1,512)x(512,64) bf16 matmuls against pre-permuted blocks, tree-summed.
    parts = [
        jnp.dot(p2[i:i + 1, :].astype(bf16), wf1_ref[i],
                preferred_element_type=f32)
        for i in range(16)
    ]
    while len(parts) > 1:
        parts = [parts[j] + parts[j + 1] for j in range(0, len(parts), 2)]
    h = jnp.maximum(parts[0] + bfc1_ref[...], 0.0)                  # (1, 64)

    # ---- fc2 (64 -> 4) ------------------------------------------------------
    out = jnp.dot(h, wf2_ref[...], preferred_element_type=f32) + bfc2_ref[...]
    out_ref[0] = out                                                # (1, 4)


# ----------------------------------------------------------------------------
# Host-side (one-time) weight layout preparation
# ----------------------------------------------------------------------------
def prepare_params(p):
    """Precompute the kernel-layout weight matrices on the host (done once)."""
    w1 = np.asarray(p["w1"], np.float32)      # (16, 1, 3, 3)  OIHW
    b1 = np.asarray(p["b1"], np.float32)      # (16,)
    w2 = np.asarray(p["w2"], np.float32)      # (32, 16, 3, 3)
    b2 = np.asarray(p["b2"], np.float32)      # (32,)
    wfc1 = np.asarray(p["wfc1"], np.float32)  # (64, 8192)
    bfc1 = np.asarray(p["bfc1"], np.float32)  # (64,)
    wfc2 = np.asarray(p["wfc2"], np.float32)  # (4, 64)
    bfc2 = np.asarray(p["bfc2"], np.float32)  # (4,)

    # conv1 block-Toeplitz: B1[di, w+dj, 512*par + 16*q + c] = w1[c, 0, di, dj]
    # with output column w = 2*q + par (even/odd halves on the lane axis).
    B1 = np.zeros((3, 66, 1024), np.float32)
    for par in range(2):
        for di in range(3):
            for q in range(32):
                w = 2 * q + par
                for dj in range(3):
                    col = 512 * par + 16 * q
                    B1[di, w + dj, col:col + 16] = w1[:, 0, di, dj]
    b1row = np.tile(b1, 64)[None, :]                                # (1, 1024)

    # One-hot even/odd row selectors for the 2x2 max-pools.
    S1 = np.zeros((2, 32, 64), np.float32)
    S1[0, np.arange(32), 2 * np.arange(32)] = 1.0
    S1[1, np.arange(32), 2 * np.arange(32) + 1] = 1.0
    S2 = np.zeros((2, 16, 32), np.float32)
    S2[0, np.arange(16), 2 * np.arange(16)] = 1.0
    S2[1, np.arange(16), 2 * np.arange(16) + 1] = 1.0

    # conv2 vertical tap shift (+ zero padding rows): Sc[di, i, i+di-1] = 1.
    Sc = np.zeros((3, 32, 32), np.float32)
    for di in range(3):
        for i in range(32):
            r = i + di - 1
            if 0 <= r < 32:
                Sc[di, i, r] = 1.0

    # conv2 block-Toeplitz:
    # B2[di, 16*wp + ci, 512*par + 32*q + c2] = w2[c2, ci, di, dj]
    # with output column w = 2*q + par and input column wp = w + dj - 1.
    B2 = np.zeros((3, 512, 1024), np.float32)
    for par in range(2):
        for di in range(3):
            for q in range(16):
                w = 2 * q + par
                for dj in range(3):
                    wp = w + dj - 1
                    if 0 <= wp < 32:
                        col = 512 * par + 32 * q
                        B2[di, 16 * wp:16 * wp + 16, col:col + 32] = \
                            w2[:, :, di, dj].T
    b2row = np.tile(b2, 32)[None, :]                                # (1, 1024)

    # fc1 weight permuted to the kernel's (row i, lane = 32*q + c2) layout:
    # WF1[i, 32*q + c2, o] = wfc1[o, c2*256 + i*16 + q]   (PyTorch NCHW flatten)
    WF1 = wfc1.reshape(64, 32, 16, 16).transpose(2, 3, 1, 0).reshape(16, 512, 64)

    return {
        "B1": jnp.asarray(B1),
        "b1row": jnp.asarray(b1row),
        "S1": jnp.asarray(S1),
        "Sc": jnp.asarray(Sc),
        "B2": jnp.asarray(B2, dtype=jnp.bfloat16),        # big -> bf16 storage
        "b2row": jnp.asarray(b2row),
        "S2": jnp.asarray(S2),
        "WF1": jnp.asarray(WF1, dtype=jnp.bfloat16),      # big -> bf16 storage
        "bfc1": jnp.asarray(bfc1)[None, :],
        "WF2": jnp.asarray(wfc2.T),                       # (64, 4)
        "bfc2": jnp.asarray(bfc2)[None, :],
    }


# ----------------------------------------------------------------------------
# Forward pass wrapper (single pallas_call; only glue is a pad and a reshape)
# ----------------------------------------------------------------------------
def brain_tumor_cnn_forward(x_nchw, prep):
    n = x_nchw.shape[0]
    xpad = jnp.pad(x_nchw[:, 0, :, :], ((0, 0), (1, 1), (1, 1)))    # (N, 66, 66)

    out = pl.pallas_call(
        _fused_forward_kernel,
        out_shape=jax.ShapeDtypeStruct((n, 1, 4), jnp.float32),
        grid_spec=pltpu.PrefetchScalarGridSpec(
            num_scalar_prefetch=0,
            grid=(n,),
            in_specs=[
                pl.BlockSpec((1, 66, 66), lambda b: (b, 0, 0)),      # xpad
                pl.BlockSpec((3, 66, 1024), lambda b: (0, 0, 0)),    # B1
                pl.BlockSpec((1, 1024), lambda b: (0, 0)),           # b1row
                pl.BlockSpec((2, 32, 64), lambda b: (0, 0, 0)),      # S1
                pl.BlockSpec((3, 32, 32), lambda b: (0, 0, 0)),      # Sc
                pl.BlockSpec((3, 512, 1024), lambda b: (0, 0, 0)),   # B2 (bf16)
                pl.BlockSpec((1, 1024), lambda b: (0, 0)),           # b2row
                pl.BlockSpec((2, 16, 32), lambda b: (0, 0, 0)),      # S2
                pl.BlockSpec((16, 512, 64), lambda b: (0, 0, 0)),    # WF1 (bf16)
                pl.BlockSpec((1, 64), lambda b: (0, 0)),             # bfc1
                pl.BlockSpec((64, 4), lambda b: (0, 0)),             # WF2
                pl.BlockSpec((1, 4), lambda b: (0, 0)),              # bfc2
            ],
            out_specs=pl.BlockSpec((1, 1, 4), lambda b: (b, 0, 0)),
        ),
        compiler_params=pltpu.CompilerParams(
            dimension_semantics=("parallel",),
        ),
    )(xpad, prep["B1"], prep["b1row"], prep["S1"], prep["Sc"],
      prep["B2"], prep["b2row"], prep["S2"], prep["WF1"],
      prep["bfc1"], prep["WF2"], prep["bfc2"])
    return out.reshape(n, 4)


# ----------------------------------------------------------------------------
# Pure-JAX reference (for a correctness sanity check)
# ----------------------------------------------------------------------------
def reference_forward(x, p):
    dn = ("NCHW", "OIHW", "NCHW")
    y = jax.lax.conv_general_dilated(
        x, p["w1"], (1, 1), ((1, 1), (1, 1)), dimension_numbers=dn
    ) + p["b1"][None, :, None, None]
    y = jnp.maximum(y, 0.0)
    y = jax.lax.reduce_window(
        y, -jnp.inf, jax.lax.max, (1, 1, 2, 2), (1, 1, 2, 2), "VALID"
    )
    y = jax.lax.conv_general_dilated(
        y, p["w2"], (1, 1), ((1, 1), (1, 1)), dimension_numbers=dn
    ) + p["b2"][None, :, None, None]
    y = jnp.maximum(y, 0.0)
    y = jax.lax.reduce_window(
        y, -jnp.inf, jax.lax.max, (1, 1, 2, 2), (1, 1, 2, 2), "VALID"
    )
    f = y.reshape(y.shape[0], -1)
    h = jnp.maximum(f @ p["wfc1"].T + p["bfc1"], 0.0)
    return h @ p["wfc2"].T + p["bfc2"]


# ----------------------------------------------------------------------------
# Main
# ----------------------------------------------------------------------------
if __name__ == "__main__":
    key = jax.random.PRNGKey(0)
    ks = jax.random.split(key, 9)
    params = {
        "w1": 0.10 * jax.random.normal(ks[0], (16, 1, 3, 3), jnp.float32),
        "b1": 0.10 * jax.random.normal(ks[1], (16,), jnp.float32),
        "w2": 0.05 * jax.random.normal(ks[2], (32, 16, 3, 3), jnp.float32),
        "b2": 0.10 * jax.random.normal(ks[3], (32,), jnp.float32),
        "wfc1": 0.01 * jax.random.normal(ks[4], (64, 32 * 16 * 16), jnp.float32),
        "bfc1": 0.10 * jax.random.normal(ks[5], (64,), jnp.float32),
        "wfc2": 0.10 * jax.random.normal(ks[6], (4, 64), jnp.float32),
        "bfc2": 0.10 * jax.random.normal(ks[7], (4,), jnp.float32),
    }
    # batch=2, channels=1, spatial=64x64 (required by the 32*16*16 fc input dim)
    x = jax.random.normal(ks[8], (2, 1, 64, 64), jnp.float32)

    prep = prepare_params(params)
    fwd = jax.jit(brain_tumor_cnn_forward)
    out = jax.block_until_ready(fwd(x, prep))
    ref = jax.block_until_ready(reference_forward(x, params))

    assert out.shape == (2, 4), out.shape
    # Slightly looser than the pure-f32 check: conv2 / fc1 weights are stored
    # and multiplied as bfloat16 (f32 accumulation) per the perf review.
    np.testing.assert_allclose(np.asarray(out), np.asarray(ref),
                               rtol=3e-3, atol=3e-3)
    print("KERNEL_OK")
</pallas_src>

<mosaic_0001>
module attributes {stable_mosaic.version = 11 : i64} {
  func.func @_fused_forward_kernel(%arg0: i32, %arg1: memref<1x66x66xf32, #tpu.memory_space<vmem>>, %arg2: memref<3x66x1024xf32, #tpu.memory_space<vmem>>, %arg3: memref<1x1024xf32, #tpu.memory_space<vmem>>, %arg4: memref<2x32x64xf32, #tpu.memory_space<vmem>>, %arg5: memref<3x32x32xf32, #tpu.memory_space<vmem>>, %arg6: memref<3x512x1024xbf16, #tpu.memory_space<vmem>>, %arg7: memref<1x1024xf32, #tpu.memory_space<vmem>>, %arg8: memref<2x16x32xf32, #tpu.memory_space<vmem>>, %arg9: memref<16x512x64xbf16, #tpu.memory_space<vmem>>, %arg10: memref<1x64xf32, #tpu.memory_space<vmem>>, %arg11: memref<64x4xf32, #tpu.memory_space<vmem>>, %arg12: memref<1x4xf32, #tpu.memory_space<vmem>>, %arg13: memref<1x1x4xf32, #tpu.memory_space<vmem>>) attributes {dimension_semantics = [#tpu.dimension_semantics<parallel>], iteration_bounds = array<i64: 2>, scalar_prefetch = 0 : i64, scratch_operands = 0 : i64, tpu.core_type = #tpu.core_type<tc>, window_params = [{transform_indices = @transform_0, window_bounds = array<i64: 1, 66, 66>}, {pipeline_mode = #tpu.pipeline_mode<synchronous>, transform_indices = @transform_1, window_bounds = array<i64: 3, 66, 1024>}, {pipeline_mode = #tpu.pipeline_mode<synchronous>, transform_indices = @transform_2, window_bounds = array<i64: 1, 1024>}, {pipeline_mode = #tpu.pipeline_mode<synchronous>, transform_indices = @transform_3, window_bounds = array<i64: 2, 32, 64>}, {pipeline_mode = #tpu.pipeline_mode<synchronous>, transform_indices = @transform_4, window_bounds = array<i64: 3, 32, 32>}, {pipeline_mode = #tpu.pipeline_mode<synchronous>, transform_indices = @transform_5, window_bounds = array<i64: 3, 512, 1024>}, {pipeline_mode = #tpu.pipeline_mode<synchronous>, transform_indices = @transform_6, window_bounds = array<i64: 1, 1024>}, {pipeline_mode = #tpu.pipeline_mode<synchronous>, transform_indices = @transform_7, window_bounds = array<i64: 2, 16, 32>}, {pipeline_mode = #tpu.pipeline_mode<synchronous>, transform_indices = @transform_8, window_bounds = array<i64: 16, 512, 64>}, {pipeline_mode = #tpu.pipeline_mode<synchronous>, transform_indices = @transform_9, window_bounds = array<i64: 1, 64>}, {pipeline_mode = #tpu.pipeline_mode<synchronous>, transform_indices = @transform_10, window_bounds = array<i64: 64, 4>}, {pipeline_mode = #tpu.pipeline_mode<synchronous>, transform_indices = @transform_11, window_bounds = array<i64: 1, 4>}, {transform_indices = @transform_12, window_bounds = array<i64: 1, 1, 4>}]} {
    %c0 = arith.constant 0 : index
    %c0_0 = arith.constant 0 : index
    %c0_1 = arith.constant 0 : index
    %0 = vector.load %arg1[%c0, %c0_0, %c0_1] : memref<1x66x66xf32, #tpu.memory_space<vmem>>, vector<1x64x66xf32>
    %1 = vector.shape_cast %0 : vector<1x64x66xf32> to vector<64x66xf32>
    %c0_2 = arith.constant 0 : index
    %c0_3 = arith.constant 0 : index
    %c0_4 = arith.constant 0 : index
    %2 = vector.load %arg2[%c0_2, %c0_3, %c0_4] : memref<3x66x1024xf32, #tpu.memory_space<vmem>>, vector<1x66x1024xf32>
    %3 = vector.shape_cast %2 : vector<1x66x1024xf32> to vector<66x1024xf32>
    %cst = arith.constant dense<0.000000e+00> : vector<64x1024xf32>
    %4 = tpu.matmul %1, %3, %cst {dimension_numbers = #tpu.dot_dimension_numbers<[1], [0], [0], [1], [0, 0, 1, 1], [], []>} : vector<64x66xf32>, vector<66x1024xf32>, vector<64x1024xf32> -> vector<64x1024xf32>
    %c0_5 = arith.constant 0 : index
    %c1 = arith.constant 1 : index
    %c0_6 = arith.constant 0 : index
    %5 = vector.load %arg1[%c0_5, %c1, %c0_6] : memref<1x66x66xf32, #tpu.memory_space<vmem>>, vector<1x64x66xf32>
    %6 = vector.shape_cast %5 : vector<1x64x66xf32> to vector<64x66xf32>
    %c1_7 = arith.constant 1 : index
    %c0_8 = arith.constant 0 : index
    %c0_9 = arith.constant 0 : index
    %7 = vector.load %arg2[%c1_7, %c0_8, %c0_9] : memref<3x66x1024xf32, #tpu.memory_space<vmem>>, vector<1x66x1024xf32>
    %8 = vector.shape_cast %7 : vector<1x66x1024xf32> to vector<66x1024xf32>
    %cst_10 = arith.constant dense<0.000000e+00> : vector<64x1024xf32>
    %9 = tpu.matmul %6, %8, %cst_10 {dimension_numbers = #tpu.dot_dimension_numbers<[1], [0], [0], [1], [0, 0, 1, 1], [], []>} : vector<64x66xf32>, vector<66x1024xf32>, vector<64x1024xf32> -> vector<64x1024xf32>
    %10 = arith.addf %4, %9 : vector<64x1024xf32>
    %c0_11 = arith.constant 0 : index
    %c2 = arith.constant 2 : index
    %c0_12 = arith.constant 0 : index
    %11 = vector.load %arg1[%c0_11, %c2, %c0_12] : memref<1x66x66xf32, #tpu.memory_space<vmem>>, vector<1x64x66xf32>
    %12 = vector.shape_cast %11 : vector<1x64x66xf32> to vector<64x66xf32>
    %c2_13 = arith.constant 2 : index
    %c0_14 = arith.constant 0 : index
    %c0_15 = arith.constant 0 : index
    %13 = vector.load %arg2[%c2_13, %c0_14, %c0_15] : memref<3x66x1024xf32, #tpu.memory_space<vmem>>, vector<1x66x1024xf32>
    %14 = vector.shape_cast %13 : vector<1x66x1024xf32> to vector<66x1024xf32>
    %cst_16 = arith.constant dense<0.000000e+00> : vector<64x1024xf32>
    %15 = tpu.matmul %12, %14, %cst_16 {dimension_numbers = #tpu.dot_dimension_numbers<[1], [0], [0], [1], [0, 0, 1, 1], [], []>} : vector<64x66xf32>, vector<66x1024xf32>, vector<64x1024xf32> -> vector<64x1024xf32>
    %16 = arith.addf %10, %15 : vector<64x1024xf32>
    %c0_17 = arith.constant 0 : index
    %c0_18 = arith.constant 0 : index
    %17 = vector.load %arg3[%c0_17, %c0_18] : memref<1x1024xf32, #tpu.memory_space<vmem>>, vector<1x1024xf32>
    %18 = vector.broadcast %17 : vector<1x1024xf32> to vector<64x1024xf32>
    %19 = arith.addf %16, %18 : vector<64x1024xf32>
    %cst_19 = arith.constant 0.000000e+00 : f32
    %20 = vector.broadcast %cst_19 : f32 to vector<64x1024xf32>
    %21 = arith.maximumf %19, %20 : vector<64x1024xf32>
    %22 = vector.extract_strided_slice %21 {offsets = [0, 0], sizes = [64, 512], strides = [1, 1]} : vector<64x1024xf32> to vector<64x512xf32>
    %23 = vector.extract_strided_slice %21 {offsets = [0, 512], sizes = [64, 512], strides = [1, 1]} : vector<64x1024xf32> to vector<64x512xf32>
    %24 = arith.maximumf %22, %23 : vector<64x512xf32>
    %c0_20 = arith.constant 0 : index
    %c0_21 = arith.constant 0 : index
    %c0_22 = arith.constant 0 : index
    %25 = vector.load %arg4[%c0_20, %c0_21, %c0_22] : memref<2x32x64xf32, #tpu.memory_space<vmem>>, vector<1x32x64xf32>
    %26 = vector.shape_cast %25 : vector<1x32x64xf32> to vector<32x64xf32>
    %cst_23 = arith.constant dense<0.000000e+00> : vector<32x512xf32>
    %27 = tpu.matmul %26, %24, %cst_23 {dimension_numbers = #tpu.dot_dimension_numbers<[1], [0], [0], [1], [0, 0, 1, 1], [], []>} : vector<32x64xf32>, vector<64x512xf32>, vector<32x512xf32> -> vector<32x512xf32>
    %c1_24 = arith.constant 1 : index
    %c0_25 = arith.constant 0 : index
    %c0_26 = arith.constant 0 : index
    %28 = vector.load %arg4[%c1_24, %c0_25, %c0_26] : memref<2x32x64xf32, #tpu.memory_space<vmem>>, vector<1x32x64xf32>
    %29 = vector.shape_cast %28 : vector<1x32x64xf32> to vector<32x64xf32>
    %cst_27 = arith.constant dense<0.000000e+00> : vector<32x512xf32>
    %30 = tpu.matmul %29, %24, %cst_27 {dimension_numbers = #tpu.dot_dimension_numbers<[1], [0], [0], [1], [0, 0, 1, 1], [], []>} : vector<32x64xf32>, vector<64x512xf32>, vector<32x512xf32> -> vector<32x512xf32>
    %31 = arith.maximumf %27, %30 : vector<32x512xf32>
    %c0_28 = arith.constant 0 : index
    %c0_29 = arith.constant 0 : index
    %c0_30 = arith.constant 0 : index
    %32 = vector.load %arg5[%c0_28, %c0_29, %c0_30] : memref<3x32x32xf32, #tpu.memory_space<vmem>>, vector<1x32x32xf32>
    %33 = vector.shape_cast %32 : vector<1x32x32xf32> to vector<32x32xf32>
    %cst_31 = arith.constant dense<0.000000e+00> : vector<32x512xf32>
    %34 = tpu.matmul %33, %31, %cst_31 {dimension_numbers = #tpu.dot_dimension_numbers<[1], [0], [0], [1], [0, 0, 1, 1], [], []>} : vector<32x32xf32>, vector<32x512xf32>, vector<32x512xf32> -> vector<32x512xf32>
    %35 = arith.truncf %34 : vector<32x512xf32> to vector<32x512xbf16>
    %c0_32 = arith.constant 0 : index
    %c0_33 = arith.constant 0 : index
    %c0_34 = arith.constant 0 : index
    %36 = vector.load %arg6[%c0_32, %c0_33, %c0_34] : memref<3x512x1024xbf16, #tpu.memory_space<vmem>>, vector<1x512x1024xbf16>
    %37 = vector.shape_cast %36 : vector<1x512x1024xbf16> to vector<512x1024xbf16>
    %cst_35 = arith.constant dense<0.000000e+00> : vector<32x1024xf32>
    %38 = tpu.matmul %35, %37, %cst_35 {dimension_numbers = #tpu.dot_dimension_numbers<[1], [0], [0], [1], [0, 0, 1, 1], [], []>} : vector<32x512xbf16>, vector<512x1024xbf16>, vector<32x1024xf32> -> vector<32x1024xf32>
    %c1_36 = arith.constant 1 : index
    %c0_37 = arith.constant 0 : index
    %c0_38 = arith.constant 0 : index
    %39 = vector.load %arg5[%c1_36, %c0_37, %c0_38] : memref<3x32x32xf32, #tpu.memory_space<vmem>>, vector<1x32x32xf32>
    %40 = vector.shape_cast %39 : vector<1x32x32xf32> to vector<32x32xf32>
    %cst_39 = arith.constant dense<0.000000e+00> : vector<32x512xf32>
    %41 = tpu.matmul %40, %31, %cst_39 {dimension_numbers = #tpu.dot_dimension_numbers<[1], [0], [0], [1], [0, 0, 1, 1], [], []>} : vector<32x32xf32>, vector<32x512xf32>, vector<32x512xf32> -> vector<32x512xf32>
    %42 = arith.truncf %41 : vector<32x512xf32> to vector<32x512xbf16>
    %c1_40 = arith.constant 1 : index
    %c0_41 = arith.constant 0 : index
    %c0_42 = arith.constant 0 : index
    %43 = vector.load %arg6[%c1_40, %c0_41, %c0_42] : memref<3x512x1024xbf16, #tpu.memory_space<vmem>>, vector<1x512x1024xbf16>
    %44 = vector.shape_cast %43 : vector<1x512x1024xbf16> to vector<512x1024xbf16>
    %cst_43 = arith.constant dense<0.000000e+00> : vector<32x1024xf32>
    %45 = tpu.matmul %42, %44, %cst_43 {dimension_numbers = #tpu.dot_dimension_numbers<[1], [0], [0], [1], [0, 0, 1, 1], [], []>} : vector<32x512xbf16>, vector<512x1024xbf16>, vector<32x1024xf32> -> vector<32x1024xf32>
    %46 = arith.addf %38, %45 : vector<32x1024xf32>
    %c2_44 = arith.constant 2 : index
    %c0_45 = arith.constant 0 : index
    %c0_46 = arith.constant 0 : index
    %47 = vector.load %arg5[%c2_44, %c0_45, %c0_46] : memref<3x32x32xf32, #tpu.memory_space<vmem>>, vector<1x32x32xf32>
    %48 = vector.shape_cast %47 : vector<1x32x32xf32> to vector<32x32xf32>
    %cst_47 = arith.constant dense<0.000000e+00> : vector<32x512xf32>
    %49 = tpu.matmul %48, %31, %cst_47 {dimension_numbers = #tpu.dot_dimension_numbers<[1], [0], [0], [1], [0, 0, 1, 1], [], []>} : vector<32x32xf32>, vector<32x512xf32>, vector<32x512xf32> -> vector<32x512xf32>
    %50 = arith.truncf %49 : vector<32x512xf32> to vector<32x512xbf16>
    %c2_48 = arith.constant 2 : index
    %c0_49 = arith.constant 0 : index
    %c0_50 = arith.constant 0 : index
    %51 = vector.load %arg6[%c2_48, %c0_49, %c0_50] : memref<3x512x1024xbf16, #tpu.memory_space<vmem>>, vector<1x512x1024xbf16>
    %52 = vector.shape_cast %51 : vector<1x512x1024xbf16> to vector<512x1024xbf16>
    %cst_51 = arith.constant dense<0.000000e+00> : vector<32x1024xf32>
    %53 = tpu.matmul %50, %52, %cst_51 {dimension_numbers = #tpu.dot_dimension_numbers<[1], [0], [0], [1], [0, 0, 1, 1], [], []>} : vector<32x512xbf16>, vector<512x1024xbf16>, vector<32x1024xf32> -> vector<32x1024xf32>
    %54 = arith.addf %46, %53 : vector<32x1024xf32>
    %c0_52 = arith.constant 0 : index
    %c0_53 = arith.constant 0 : index
    %55 = vector.load %arg7[%c0_52, %c0_53] : memref<1x1024xf32, #tpu.memory_space<vmem>>, vector<1x1024xf32>
    %56 = vector.broadcast %55 : vector<1x1024xf32> to vector<32x1024xf32>
    %57 = arith.addf %54, %56 : vector<32x1024xf32>
    %cst_54 = arith.constant 0.000000e+00 : f32
    %58 = vector.broadcast %cst_54 : f32 to vector<32x1024xf32>
    %59 = arith.maximumf %57, %58 : vector<32x1024xf32>
    %60 = vector.extract_strided_slice %59 {offsets = [0, 0], sizes = [32, 512], strides = [1, 1]} : vector<32x1024xf32> to vector<32x512xf32>
    %61 = vector.extract_strided_slice %59 {offsets = [0, 512], sizes = [32, 512], strides = [1, 1]} : vector<32x1024xf32> to vector<32x512xf32>
    %62 = arith.maximumf %60, %61 : vector<32x512xf32>
    %c0_55 = arith.constant 0 : index
    %c0_56 = arith.constant 0 : index
    %c0_57 = arith.constant 0 : index
    %63 = vector.load %arg8[%c0_55, %c0_56, %c0_57] : memref<2x16x32xf32, #tpu.memory_space<vmem>>, vector<1x16x32xf32>
    %64 = vector.shape_cast %63 : vector<1x16x32xf32> to vector<16x32xf32>
    %cst_58 = arith.constant dense<0.000000e+00> : vector<16x512xf32>
    %65 = tpu.matmul %64, %62, %cst_58 {dimension_numbers = #tpu.dot_dimension_numbers<[1], [0], [0], [1], [0, 0, 1, 1], [], []>} : vector<16x32xf32>, vector<32x512xf32>, vector<16x512xf32> -> vector<16x512xf32>
    %c1_59 = arith.constant 1 : index
    %c0_60 = arith.constant 0 : index
    %c0_61 = arith.constant 0 : index
    %66 = vector.load %arg8[%c1_59, %c0_60, %c0_61] : memref<2x16x32xf32, #tpu.memory_space<vmem>>, vector<1x16x32xf32>
    %67 = vector.shape_cast %66 : vector<1x16x32xf32> to vector<16x32xf32>
    %cst_62 = arith.constant dense<0.000000e+00> : vector<16x512xf32>
    %68 = tpu.matmul %67, %62, %cst_62 {dimension_numbers = #tpu.dot_dimension_numbers<[1], [0], [0], [1], [0, 0, 1, 1], [], []>} : vector<16x32xf32>, vector<32x512xf32>, vector<16x512xf32> -> vector<16x512xf32>
    %69 = arith.maximumf %65, %68 : vector<16x512xf32>
    %70 = vector.extract_strided_slice %69 {offsets = [0, 0], sizes = [1, 512], strides = [1, 1]} : vector<16x512xf32> to vector<1x512xf32>
    %71 = arith.truncf %70 : vector<1x512xf32> to vector<1x512xbf16>
    %c0_63 = arith.constant 0 : index
    %c0_64 = arith.constant 0 : index
    %c0_65 = arith.constant 0 : index
    %72 = vector.load %arg9[%c0_63, %c0_64, %c0_65] : memref<16x512x64xbf16, #tpu.memory_space<vmem>>, vector<1x512x64xbf16>
    %73 = vector.shape_cast %72 : vector<1x512x64xbf16> to vector<512x64xbf16>
    %cst_66 = arith.constant dense<0.000000e+00> : vector<1x64xf32>
    %74 = tpu.matmul %71, %73, %cst_66 {dimension_numbers = #tpu.dot_dimension_numbers<[1], [0], [0], [1], [0, 0, 1, 1], [], []>} : vector<1x512xbf16>, vector<512x64xbf16>, vector<1x64xf32> -> vector<1x64xf32>
    %75 = vector.extract_strided_slice %69 {offsets = [1, 0], sizes = [1, 512], strides = [1, 1]} : vector<16x512xf32> to vector<1x512xf32>
    %76 = arith.truncf %75 : vector<1x512xf32> to vector<1x512xbf16>
    %c1_67 = arith.constant 1 : index
    %c0_68 = arith.constant 0 : index
    %c0_69 = arith.constant 0 : index
    %77 = vector.load %arg9[%c1_67, %c0_68, %c0_69] : memref<16x512x64xbf16, #tpu.memory_space<vmem>>, vector<1x512x64xbf16>
    %78 = vector.shape_cast %77 : vector<1x512x64xbf16> to vector<512x64xbf16>
    %cst_70 = arith.constant dense<0.000000e+00> : vector<1x64xf32>
    %79 = tpu.matmul %76, %78, %cst_70 {dimension_numbers = #tpu.dot_dimension_numbers<[1], [0], [0], [1], [0, 0, 1, 1], [], []>} : vector<1x512xbf16>, vector<512x64xbf16>, vector<1x64xf32> -> vector<1x64xf32>
    %80 = vector.extract_strided_slice %69 {offsets = [2, 0], sizes = [1, 512], strides = [1, 1]} : vector<16x512xf32> to vector<1x512xf32>
    %81 = arith.truncf %80 : vector<1x512xf32> to vector<1x512xbf16>
    %c2_71 = arith.constant 2 : index
    %c0_72 = arith.constant 0 : index
    %c0_73 = arith.constant 0 : index
    %82 = vector.load %arg9[%c2_71, %c0_72, %c0_73] : memref<16x512x64xbf16, #tpu.memory_space<vmem>>, vector<1x512x64xbf16>
    %83 = vector.shape_cast %82 : vector<1x512x64xbf16> to vector<512x64xbf16>
    %cst_74 = arith.constant dense<0.000000e+00> : vector<1x64xf32>
    %84 = tpu.matmul %81, %83, %cst_74 {dimension_numbers = #tpu.dot_dimension_numbers<[1], [0], [0], [1], [0, 0, 1, 1], [], []>} : vector<1x512xbf16>, vector<512x64xbf16>, vector<1x64xf32> -> vector<1x64xf32>
    %85 = vector.extract_strided_slice %69 {offsets = [3, 0], sizes = [1, 512], strides = [1, 1]} : vector<16x512xf32> to vector<1x512xf32>
    %86 = arith.truncf %85 : vector<1x512xf32> to vector<1x512xbf16>
    %c3 = arith.constant 3 : index
    %c0_75 = arith.constant 0 : index
    %c0_76 = arith.constant 0 : index
    %87 = vector.load %arg9[%c3, %c0_75, %c0_76] : memref<16x512x64xbf16, #tpu.memory_space<vmem>>, vector<1x512x64xbf16>
    %88 = vector.shape_cast %87 : vector<1x512x64xbf16> to vector<512x64xbf16>
    %cst_77 = arith.constant dense<0.000000e+00> : vector<1x64xf32>
    %89 = tpu.matmul %86, %88, %cst_77 {dimension_numbers = #tpu.dot_dimension_numbers<[1], [0], [0], [1], [0, 0, 1, 1], [], []>} : vector<1x512xbf16>, vector<512x64xbf16>, vector<1x64xf32> -> vector<1x64xf32>
    %90 = vector.extract_strided_slice %69 {offsets = [4, 0], sizes = [1, 512], strides = [1, 1]} : vector<16x512xf32> to vector<1x512xf32>
    %91 = arith.truncf %90 : vector<1x512xf32> to vector<1x512xbf16>
    %c4 = arith.constant 4 : index
    %c0_78 = arith.constant 0 : index
    %c0_79 = arith.constant 0 : index
    %92 = vector.load %arg9[%c4, %c0_78, %c0_79] : memref<16x512x64xbf16, #tpu.memory_space<vmem>>, vector<1x512x64xbf16>
    %93 = vector.shape_cast %92 : vector<1x512x64xbf16> to vector<512x64xbf16>
    %cst_80 = arith.constant dense<0.000000e+00> : vector<1x64xf32>
    %94 = tpu.matmul %91, %93, %cst_80 {dimension_numbers = #tpu.dot_dimension_numbers<[1], [0], [0], [1], [0, 0, 1, 1], [], []>} : vector<1x512xbf16>, vector<512x64xbf16>, vector<1x64xf32> -> vector<1x64xf32>
    %95 = vector.extract_strided_slice %69 {offsets = [5, 0], sizes = [1, 512], strides = [1, 1]} : vector<16x512xf32> to vector<1x512xf32>
    %96 = arith.truncf %95 : vector<1x512xf32> to vector<1x512xbf16>
    %c5 = arith.constant 5 : index
    %c0_81 = arith.constant 0 : index
    %c0_82 = arith.constant 0 : index
    %97 = vector.load %arg9[%c5, %c0_81, %c0_82] : memref<16x512x64xbf16, #tpu.memory_space<vmem>>, vector<1x512x64xbf16>
    %98 = vector.shape_cast %97 : vector<1x512x64xbf16> to vector<512x64xbf16>
    %cst_83 = arith.constant dense<0.000000e+00> : vector<1x64xf32>
    %99 = tpu.matmul %96, %98, %cst_83 {dimension_numbers = #tpu.dot_dimension_numbers<[1], [0], [0], [1], [0, 0, 1, 1], [], []>} : vector<1x512xbf16>, vector<512x64xbf16>, vector<1x64xf32> -> vector<1x64xf32>
    %100 = vector.extract_strided_slice %69 {offsets = [6, 0], sizes = [1, 512], strides = [1, 1]} : vector<16x512xf32> to vector<1x512xf32>
    %101 = arith.truncf %100 : vector<1x512xf32> to vector<1x512xbf16>
    %c6 = arith.constant 6 : index
    %c0_84 = arith.constant 0 : index
    %c0_85 = arith.constant 0 : index
    %102 = vector.load %arg9[%c6, %c0_84, %c0_85] : memref<16x512x64xbf16, #tpu.memory_space<vmem>>, vector<1x512x64xbf16>
    %103 = vector.shape_cast %102 : vector<1x512x64xbf16> to vector<512x64xbf16>
    %cst_86 = arith.constant dense<0.000000e+00> : vector<1x64xf32>
    %104 = tpu.matmul %101, %103, %cst_86 {dimension_numbers = #tpu.dot_dimension_numbers<[1], [0], [0], [1], [0, 0, 1, 1], [], []>} : vector<1x512xbf16>, vector<512x64xbf16>, vector<1x64xf32> -> vector<1x64xf32>
    %105 = vector.extract_strided_slice %69 {offsets = [7, 0], sizes = [1, 512], strides = [1, 1]} : vector<16x512xf32> to vector<1x512xf32>
    %106 = arith.truncf %105 : vector<1x512xf32> to vector<1x512xbf16>
    %c7 = arith.constant 7 : index
    %c0_87 = arith.constant 0 : index
    %c0_88 = arith.constant 0 : index
    %107 = vector.load %arg9[%c7, %c0_87, %c0_88] : memref<16x512x64xbf16, #tpu.memory_space<vmem>>, vector<1x512x64xbf16>
    %108 = vector.shape_cast %107 : vector<1x512x64xbf16> to vector<512x64xbf16>
    %cst_89 = arith.constant dense<0.000000e+00> : vector<1x64xf32>
    %109 = tpu.matmul %106, %108, %cst_89 {dimension_numbers = #tpu.dot_dimension_numbers<[1], [0], [0], [1], [0, 0, 1, 1], [], []>} : vector<1x512xbf16>, vector<512x64xbf16>, vector<1x64xf32> -> vector<1x64xf32>
    %110 = vector.extract_strided_slice %69 {offsets = [8, 0], sizes = [1, 512], strides = [1, 1]} : vector<16x512xf32> to vector<1x512xf32>
    %111 = arith.truncf %110 : vector<1x512xf32> to vector<1x512xbf16>
    %c8 = arith.constant 8 : index
    %c0_90 = arith.constant 0 : index
    %c0_91 = arith.constant 0 : index
    %112 = vector.load %arg9[%c8, %c0_90, %c0_91] : memref<16x512x64xbf16, #tpu.memory_space<vmem>>, vector<1x512x64xbf16>
    %113 = vector.shape_cast %112 : vector<1x512x64xbf16> to vector<512x64xbf16>
    %cst_92 = arith.constant dense<0.000000e+00> : vector<1x64xf32>
    %114 = tpu.matmul %111, %113, %cst_92 {dimension_numbers = #tpu.dot_dimension_numbers<[1], [0], [0], [1], [0, 0, 1, 1], [], []>} : vector<1x512xbf16>, vector<512x64xbf16>, vector<1x64xf32> -> vector<1x64xf32>
    %115 = vector.extract_strided_slice %69 {offsets = [9, 0], sizes = [1, 512], strides = [1, 1]} : vector<16x512xf32> to vector<1x512xf32>
    %116 = arith.truncf %115 : vector<1x512xf32> to vector<1x512xbf16>
    %c9 = arith.constant 9 : index
    %c0_93 = arith.constant 0 : index
    %c0_94 = arith.constant 0 : index
    %117 = vector.load %arg9[%c9, %c0_93, %c0_94] : memref<16x512x64xbf16, #tpu.memory_space<vmem>>, vector<1x512x64xbf16>
    %118 = vector.shape_cast %117 : vector<1x512x64xbf16> to vector<512x64xbf16>
    %cst_95 = arith.constant dense<0.000000e+00> : vector<1x64xf32>
    %119 = tpu.matmul %116, %118, %cst_95 {dimension_numbers = #tpu.dot_dimension_numbers<[1], [0], [0], [1], [0, 0, 1, 1], [], []>} : vector<1x512xbf16>, vector<512x64xbf16>, vector<1x64xf32> -> vector<1x64xf32>
    %120 = vector.extract_strided_slice %69 {offsets = [10, 0], sizes = [1, 512], strides = [1, 1]} : vector<16x512xf32> to vector<1x512xf32>
    %121 = arith.truncf %120 : vector<1x512xf32> to vector<1x512xbf16>
    %c10 = arith.constant 10 : index
    %c0_96 = arith.constant 0 : index
    %c0_97 = arith.constant 0 : index
    %122 = vector.load %arg9[%c10, %c0_96, %c0_97] : memref<16x512x64xbf16, #tpu.memory_space<vmem>>, vector<1x512x64xbf16>
    %123 = vector.shape_cast %122 : vector<1x512x64xbf16> to vector<512x64xbf16>
    %cst_98 = arith.constant dense<0.000000e+00> : vector<1x64xf32>
    %124 = tpu.matmul %121, %123, %cst_98 {dimension_numbers = #tpu.dot_dimension_numbers<[1], [0], [0], [1], [0, 0, 1, 1], [], []>} : vector<1x512xbf16>, vector<512x64xbf16>, vector<1x64xf32> -> vector<1x64xf32>
    %125 = vector.extract_strided_slice %69 {offsets = [11, 0], sizes = [1, 512], strides = [1, 1]} : vector<16x512xf32> to vector<1x512xf32>
    %126 = arith.truncf %125 : vector<1x512xf32> to vector<1x512xbf16>
    %c11 = arith.constant 11 : index
    %c0_99 = arith.constant 0 : index
    %c0_100 = arith.constant 0 : index
    %127 = vector.load %arg9[%c11, %c0_99, %c0_100] : memref<16x512x64xbf16, #tpu.memory_space<vmem>>, vector<1x512x64xbf16>
    %128 = vector.shape_cast %127 : vector<1x512x64xbf16> to vector<512x64xbf16>
    %cst_101 = arith.constant dense<0.000000e+00> : vector<1x64xf32>
    %129 = tpu.matmul %126, %128, %cst_101 {dimension_numbers = #tpu.dot_dimension_numbers<[1], [0], [0], [1], [0, 0, 1, 1], [], []>} : vector<1x512xbf16>, vector<512x64xbf16>, vector<1x64xf32> -> vector<1x64xf32>
    %130 = vector.extract_strided_slice %69 {offsets = [12, 0], sizes = [1, 512], strides = [1, 1]} : vector<16x512xf32> to vector<1x512xf32>
    %131 = arith.truncf %130 : vector<1x512xf32> to vector<1x512xbf16>
    %c12 = arith.constant 12 : index
    %c0_102 = arith.constant 0 : index
    %c0_103 = arith.constant 0 : index
    %132 = vector.load %arg9[%c12, %c0_102, %c0_103] : memref<16x512x64xbf16, #tpu.memory_space<vmem>>, vector<1x512x64xbf16>
    %133 = vector.shape_cast %132 : vector<1x512x64xbf16> to vector<512x64xbf16>
    %cst_104 = arith.constant dense<0.000000e+00> : vector<1x64xf32>
    %134 = tpu.matmul %131, %133, %cst_104 {dimension_numbers = #tpu.dot_dimension_numbers<[1], [0], [0], [1], [0, 0, 1, 1], [], []>} : vector<1x512xbf16>, vector<512x64xbf16>, vector<1x64xf32> -> vector<1x64xf32>
    %135 = vector.extract_strided_slice %69 {offsets = [13, 0], sizes = [1, 512], strides = [1, 1]} : vector<16x512xf32> to vector<1x512xf32>
    %136 = arith.truncf %135 : vector<1x512xf32> to vector<1x512xbf16>
    %c13 = arith.constant 13 : index
    %c0_105 = arith.constant 0 : index
    %c0_106 = arith.constant 0 : index
    %137 = vector.load %arg9[%c13, %c0_105, %c0_106] : memref<16x512x64xbf16, #tpu.memory_space<vmem>>, vector<1x512x64xbf16>
    %138 = vector.shape_cast %137 : vector<1x512x64xbf16> to vector<512x64xbf16>
    %cst_107 = arith.constant dense<0.000000e+00> : vector<1x64xf32>
    %139 = tpu.matmul %136, %138, %cst_107 {dimension_numbers = #tpu.dot_dimension_numbers<[1], [0], [0], [1], [0, 0, 1, 1], [], []>} : vector<1x512xbf16>, vector<512x64xbf16>, vector<1x64xf32> -> vector<1x64xf32>
    %140 = vector.extract_strided_slice %69 {offsets = [14, 0], sizes = [1, 512], strides = [1, 1]} : vector<16x512xf32> to vector<1x512xf32>
    %141 = arith.truncf %140 : vector<1x512xf32> to vector<1x512xbf16>
    %c14 = arith.constant 14 : index
    %c0_108 = arith.constant 0 : index
    %c0_109 = arith.constant 0 : index
    %142 = vector.load %arg9[%c14, %c0_108, %c0_109] : memref<16x512x64xbf16, #tpu.memory_space<vmem>>, vector<1x512x64xbf16>
    %143 = vector.shape_cast %142 : vector<1x512x64xbf16> to vector<512x64xbf16>
    %cst_110 = arith.constant dense<0.000000e+00> : vector<1x64xf32>
    %144 = tpu.matmul %141, %143, %cst_110 {dimension_numbers = #tpu.dot_dimension_numbers<[1], [0], [0], [1], [0, 0, 1, 1], [], []>} : vector<1x512xbf16>, vector<512x64xbf16>, vector<1x64xf32> -> vector<1x64xf32>
    %145 = vector.extract_strided_slice %69 {offsets = [15, 0], sizes = [1, 512], strides = [1, 1]} : vector<16x512xf32> to vector<1x512xf32>
    %146 = arith.truncf %145 : vector<1x512xf32> to vector<1x512xbf16>
    %c15 = arith.constant 15 : index
    %c0_111 = arith.constant 0 : index
    %c0_112 = arith.constant 0 : index
    %147 = vector.load %arg9[%c15, %c0_111, %c0_112] : memref<16x512x64xbf16, #tpu.memory_space<vmem>>, vector<1x512x64xbf16>
    %148 = vector.shape_cast %147 : vector<1x512x64xbf16> to vector<512x64xbf16>
    %cst_113 = arith.constant dense<0.000000e+00> : vector<1x64xf32>
    %149 = tpu.matmul %146, %148, %cst_113 {dimension_numbers = #tpu.dot_dimension_numbers<[1], [0], [0], [1], [0, 0, 1, 1], [], []>} : vector<1x512xbf16>, vector<512x64xbf16>, vector<1x64xf32> -> vector<1x64xf32>
    %150 = arith.addf %74, %79 : vector<1x64xf32>
    %151 = arith.addf %84, %89 : vector<1x64xf32>
    %152 = arith.addf %94, %99 : vector<1x64xf32>
    %153 = arith.addf %104, %109 : vector<1x64xf32>
    %154 = arith.addf %114, %119 : vector<1x64xf32>
    %155 = arith.addf %124, %129 : vector<1x64xf32>
    %156 = arith.addf %134, %139 : vector<1x64xf32>
    %157 = arith.addf %144, %149 : vector<1x64xf32>
    %158 = arith.addf %150, %151 : vector<1x64xf32>
    %159 = arith.addf %152, %153 : vector<1x64xf32>
    %160 = arith.addf %154, %155 : vector<1x64xf32>
    %161 = arith.addf %156, %157 : vector<1x64xf32>
    %162 = arith.addf %158, %159 : vector<1x64xf32>
    %163 = arith.addf %160, %161 : vector<1x64xf32>
    %164 = arith.addf %162, %163 : vector<1x64xf32>
    %c0_114 = arith.constant 0 : index
    %c0_115 = arith.constant 0 : index
    %165 = vector.load %arg10[%c0_114, %c0_115] : memref<1x64xf32, #tpu.memory_space<vmem>>, vector<1x64xf32>
    %166 = arith.addf %164, %165 : vector<1x64xf32>
    %cst_116 = arith.constant 0.000000e+00 : f32
    %167 = vector.broadcast %cst_116 : f32 to vector<1x64xf32>
    %168 = arith.maximumf %166, %167 : vector<1x64xf32>
    %c0_117 = arith.constant 0 : index
    %c0_118 = arith.constant 0 : index
    %169 = vector.load %arg11[%c0_117, %c0_118] : memref<64x4xf32, #tpu.memory_space<vmem>>, vector<64x4xf32>
    %cst_119 = arith.constant dense<0.000000e+00> : vector<1x4xf32>
    %170 = tpu.matmul %168, %169, %cst_119 {dimension_numbers = #tpu.dot_dimension_numbers<[1], [0], [0], [1], [0, 0, 1, 1], [], []>} : vector<1x64xf32>, vector<64x4xf32>, vector<1x4xf32> -> vector<1x4xf32>
    %c0_120 = arith.constant 0 : index
    %c0_121 = arith.constant 0 : index
    %171 = vector.load %arg12[%c0_120, %c0_121] : memref<1x4xf32, #tpu.memory_space<vmem>>, vector<1x4xf32>
    %172 = arith.addf %170, %171 : vector<1x4xf32>
    %c0_122 = arith.constant 0 : index
    %c0_123 = arith.constant 0 : index
    %c0_124 = arith.constant 0 : index
    %173 = vector.load %arg13[%c0_122, %c0_123, %c0_124] : memref<1x1x4xf32, #tpu.memory_space<vmem>>, vector<1x1x4xf32>
    %174 = vector.shape_cast %173 : vector<1x1x4xf32> to vector<1x4xf32>
    %175 = vector.shape_cast %172 : vector<1x4xf32> to vector<1x1x4xf32>
    tpu.vector_store %arg13[%c0_122, %c0_123, %c0_124], %175 {strides = array<i32>} : memref<1x1x4xf32, #tpu.memory_space<vmem>>, vector<1x1x4xf32>,
    return
  }
  func.func @transform_0(%arg0: i32) -> (i32, i32, i32) {
    %c0_i32 = arith.constant 0 : i32
    %c0_i32_0 = arith.constant 0 : i32
    %c0_i32_1 = arith.constant 0 : i32
    return %arg0, %c0_i32, %c0_i32_0 : i32, i32, i32
  }
  func.func @transform_1(%arg0: i32) -> (i32, i32, i32) {
    %c0_i32 = arith.constant 0 : i32
    %c0_i32_0 = arith.constant 0 : i32
    %c0_i32_1 = arith.constant 0 : i32
    %c0_i32_2 = arith.constant 0 : i32
    return %c0_i32, %c0_i32_0, %c0_i32_1 : i32, i32, i32
  }
  func.func @transform_2(%arg0: i32) -> (i32, i32) {
    %c0_i32 = arith.constant 0 : i32
    %c0_i32_0 = arith.constant 0 : i32
    %c0_i32_1 = arith.constant 0 : i32
    return %c0_i32, %c0_i32_0 : i32, i32
  }
  func.func @transform_3(%arg0: i32) -> (i32, i32, i32) {
    %c0_i32 = arith.constant 0 : i32
    %c0_i32_0 = arith.constant 0 : i32
    %c0_i32_1 = arith.constant 0 : i32
    %c0_i32_2 = arith.constant 0 : i32
    return %c0_i32, %c0_i32_0, %c0_i32_1 : i32, i32, i32
  }
  func.func @transform_4(%arg0: i32) -> (i32, i32, i32) {
    %c0_i32 = arith.constant 0 : i32
    %c0_i32_0 = arith.constant 0 : i32
    %c0_i32_1 = arith.constant 0 : i32
    %c0_i32_2 = arith.constant 0 : i32
    return %c0_i32, %c0_i32_0, %c0_i32_1 : i32, i32, i32
  }
  func.func @transform_5(%arg0: i32) -> (i32, i32, i32) {
    %c0_i32 = arith.constant 0 : i32
    %c0_i32_0 = arith.constant 0 : i32
    %c0_i32_1 = arith.constant 0 : i32
    %c0_i32_2 = arith.constant 0 : i32
    return %c0_i32, %c0_i32_0, %c0_i32_1 : i32, i32, i32
  }
  func.func @transform_6(%arg0: i32) -> (i32, i32) {
    %c0_i32 = arith.constant 0 : i32
    %c0_i32_0 = arith.constant 0 : i32
    %c0_i32_1 = arith.constant 0 : i32
    return %c0_i32, %c0_i32_0 : i32, i32
  }
  func.func @transform_7(%arg0: i32) -> (i32, i32, i32) {
    %c0_i32 = arith.constant 0 : i32
    %c0_i32_0 = arith.constant 0 : i32
    %c0_i32_1 = arith.constant 0 : i32
    %c0_i32_2 = arith.constant 0 : i32
    return %c0_i32, %c0_i32_0, %c0_i32_1 : i32, i32, i32
  }
  func.func @transform_8(%arg0: i32) -> (i32, i32, i32) {
    %c0_i32 = arith.constant 0 : i32
    %c0_i32_0 = arith.constant 0 : i32
    %c0_i32_1 = arith.constant 0 : i32
    %c0_i32_2 = arith.constant 0 : i32
    return %c0_i32, %c0_i32_0, %c0_i32_1 : i32, i32, i32
  }
  func.func @transform_9(%arg0: i32) -> (i32, i32) {
    %c0_i32 = arith.constant 0 : i32
    %c0_i32_0 = arith.constant 0 : i32
    %c0_i32_1 = arith.constant 0 : i32
    return %c0_i32, %c0_i32_0 : i32, i32
  }
  func.func @transform_10(%arg0: i32) -> (i32, i32) {
    %c0_i32 = arith.constant 0 : i32
    %c0_i32_0 = arith.constant 0 : i32
    %c0_i32_1 = arith.constant 0 : i32
    return %c0_i32, %c0_i32_0 : i32, i32
  }
  func.func @transform_11(%arg0: i32) -> (i32, i32) {
    %c0_i32 = arith.constant 0 : i32
    %c0_i32_0 = arith.constant 0 : i32
    %c0_i32_1 = arith.constant 0 : i32
    return %c0_i32, %c0_i32_0 : i32, i32
  }
  func.func @transform_12(%arg0: i32) -> (i32, i32, i32) {
    %c0_i32 = arith.constant 0 : i32
    %c0_i32_0 = arith.constant 0 : i32
    %c0_i32_1 = arith.constant 0 : i32
    return %arg0, %c0_i32, %c0_i32_0 : i32, i32, i32
  }
}

</mosaic_0001>

<bundles_post_ra>
// kernel: brain_tumor_cnn_forward.1
= control target key start
LH: loop header
LB: loop body
LE: loop exit
PB: predicated region body
PF: predicated region fallthrough
CT: control target
= control target key end

     0   :  { %s26254_s0 = inlined_call_operand.vmem [shape: f32[2,66,66], index: 0, kind: input, shape index: {}]   ;;  %s26255_s1 = inlined_call_operand.hbm [shape: f32[3,66,1024], index: 1, kind: input, shape index: {}]   ;;  %s26256_s2 = inlined_call_operand.vmem [shape: f32[1,1024], index: 2, kind: input, shape index: {}]   ;;  %s26257_s3 = inlined_call_operand.vmem [shape: f32[2,32,64], index: 3, kind: input, shape index: {}]   ;;  %s26258_s4 = inlined_call_operand.vmem [shape: f32[3,32,32], index: 4, kind: input, shape index: {}]   ;;  %s26259_s5 = inlined_call_operand.vmem [shape: bf16[3,512,1024], index: 5, kind: input, shape index: {}]   ;;  %s26260_s6 = inlined_call_operand.vmem [shape: f32[1,1024], index: 6, kind: input, shape index: {}]   ;;  %s26261_s7 = inlined_call_operand.vmem [shape: f32[2,16,32], index: 7, kind: input, shape index: {}]   ;;  %s26262_s8 = inlined_call_operand.vmem [shape: bf16[16,512,64], index: 8, kind: input, shape index: {}]   ;;  %s26263_s9 = inlined_call_operand.vmem [shape: f32[1,64], index: 9, kind: input, shape index: {}]   ;;  %s26264_s10 = inlined_call_operand.vmem [shape: f32[64,4], index: 10, kind: input, shape index: {}]   ;;  %s26265_s11 = inlined_call_operand.vmem [shape: f32[1,4], index: 11, kind: input, shape index: {}]   ;;  %s26266_s12 = inlined_call_operand.hbm [shape: f32[2,1,4], index: 12, kind: output, shape index: {}]  }
   0x1   :  { %26284 = sst [smem:[#allocation91_spill]] %s26254_s0 }
   0x2   :  { %26285 = sst [smem:[#allocation92_spill]] %s26255_s1 }
   0x3   :  { %17 = vsyncpa [#allocation3], 0 }
   0x4   :  { %18 = vsyncpa [#allocation4], 0 }
   0x5   :  { %20 = vsyncpa [#allocation4 + $0x1], 0  ;;  %s19945_s21 = smov 0   ;;  %s19947_s22 = smov 0  }
   0x6   :  { %s19949_s23 = smov 0   ;;  %s19951_s24 = smov 0  }
   0x7 LB: > { %s19966_s25 = sadd.s32 4294967295, %s19872_s24   ;;  %s15530_s26 = sadd.s32 4294967294, %s19872_s24   ;;  %s19872_s24 = sphi %s19951_s24, %s26605_s24   ;;  %s19868_s23 = sphi %s19949_s23, %s26604_s23   ;;  %s19864_s22 = sphi %s19947_s22, %s26603_s22   ;;  %s19860_s21 = sphi %s19945_s21, %s26602_s21  }
   0x8   : > { %s19970_s27 = sadd.s32 1, %s19872_s24   ;;  %s290_s28 = sadd.s32 1, %s19868_s23 }
   0x9   : > { %s287_s29 = ssub.s32 %s19872_s24, %s19970_s27  ;;  %p300_p0 = scmp.ne.s32.totalorder %s19868_s23, %s19864_s22 }
   0xa   : > { %p288_p1 = scmp.eq.s32.totalorder %s287_s29, 0  ;;  %p301_p2 = scmp.eq.s32.totalorder %s19966_s25, 1 }
   0xb   : > { %p306_p3 = scmp.ne.s32.totalorder %s19864_s22, %s19860_s21  ;;  %p307_p4 = scmp.eq.s32.totalorder %s15530_s26, 1 }
   0xc   : > { %s19981_s30 = scalar_select %p288_p1, %s19868_s23, %s290_s28  }
   0xd   : > { %p19983_p5 = por %p301_p2, %p300_p0  ;;  %p19987_p6 = por %p307_p4, %p306_p3 }
   0xe   : > { %p15531_p7 = scmp.ge.s32.totalorder %s19872_s24, 1  ;;  %p314_p8 = scmp.lt.s32.totalorder %s19872_s24, 3 }
   0xf   : > { %s26287_s14 = scalar_select %p19987_p6, 1, 0 }
  0x10   : > { %p19230_p9 = scmp.eq.s32.totalorder %s19966_s25, 0  ;;  %p19994_p10 = pnand %p15531_p7, %p314_p8 }
  0x11   : > { %s19874_s16 = smov [#allocation2]  }
  0x12   : > { %s326_s17 = sshll.u32 %s19874_s16, 4  ;;  %p19222_p11 = pneg %p19994_p10  ;;  %s327_s17 = int_to_ptr.vmem [resolvable:$true] %s326_s17 }
  0x13   : > { %s19793_s18 = scalar_lea.vmem %s327_s17, 27648  ;;  %p19801_p3 = scmp.lt.s32.totalorder %s327_s17, %s327_s17 }
  0x14   : > { %p19223_p12 = pnand %p19230_p9, %p19222_p11  ;;  %p19794_p0 = scmp.ne.s32.totalorder %s327_s17, %s19793_s18 }
  0x15   : > { %p19802_p4 = scmp.lt.s32.totalorder %s19793_s18, %s19793_s18 }
  0x16   : > { %p19784_p13 = pneg %p19223_p12 }
  0x17   : > { %p19803_p6 = por %p19802_p4, %p19801_p3 }
  0x18   : > { %p19796_p1 = pnand %p19794_p0, %p19784_p13 }
  0x1a   : > { %p19797_p2 = pneg %p19796_p1 }
  0x1c   : > { %p19804_p7 = pnand %p19803_p6, %p19797_p2 }
  0x1e   : > { %19807 = shalt.err (!%p19804_p7)
}
  0x1f   : > { %s19875_s19 = smov 1024   ;;  %s19876_s20 = smov 64  }
  0x20   : > { %s26289_s1 = sld [smem:[#allocation92_spill]] }
  0x22   : > { %380 = sbr.rel (%p19994_p10) target bundleno = 3145 (0xc49), region = 68 }
  0x26   : > { %19225 = dma.hbm_to_vmem [thread:$0]  (!%p19223_p12), %s26289_s1, 27648, %s327_s17, [#allocation3], %s19875_s19, %s19875_s19, %s19876_s20  }
  0x27   : > { %19851 = dma.done.wait (%p19230_p9), [#allocation3], 27648  }
  0x28   : > { %19853 = vsyncadd (%p19230_p9), [#allocation3], 4294939648  ;;  %v26267_v0 = vmov 0.0   ;;  %vm613_vm0 = vcmask 1041408   ;;  %v581_v1 = vld [vmem:[#allocation2 + $0x448] sm:$0x3] }
  0x29   : > { %702 = vmatprep.mubr.f32.mxu0 %v26267_v0  ;;  %815 = vmatprep.mubr.f32.mxu1 %v26267_v0  ;;  %v583_v2 = vld [vmem:[#allocation2 + $0x458] sm:$0x3]  ;;  %v580_v3 = vld [vmem:[#allocation2 + $0x440] sm:$0x3]  ;;  %v582_v4 = vld [vmem:[#allocation2 + $0x450] sm:$0x3] }
  0x2a   : > { %15537 = vmatprep.subr.msk.mxu0 %vm613_vm0, %v581_v1  ;;  %15547 = vmatprep.subr.msk.mxu1 %vm613_vm0, %v583_v2  ;;  %v573_v5 = vld [vmem:[#allocation2 + $0x408] sm:$0xff]  ;;  %v575_v6 = vld [vmem:[#allocation2 + $0x418] sm:$0xff]  ;;  %p421_p6 = scmp.lt.s32.totalorder %s19966_s25, 1  ;;  %v572_v7 = vld [vmem:[#allocation2 + $0x400] sm:$0xff]  ;;  %s26290_s0 = sld [smem:[#allocation91_spill]]  ;;  %vm588_vm1 = vcmask 539648  }
  0x2b   : > { %15538 = vmatpush1.msk.msra.mxu0 %vm613_vm0, %v580_v3  ;;  %15548 = vmatpush1.msk.msra.mxu1 %vm613_vm0, %v582_v4  ;;  %v574_v8 = vld [vmem:[#allocation2 + $0x410] sm:$0xff]  ;;  %v565_v9 = vld [vmem:[#allocation2 + $0x3c8] sm:$0xff]  ;;  %v567_v10 = vld [vmem:[#allocation2 + $0x3d8] sm:$0xff]  ;;  %vm2441_vm2 = vcmask 523264   ;;  %vm2847_vm3 = vcmask 261120   ;;  %vm19878_vm4 = vmmov 0  }
  0x2c   : > { %654 = vmatprep.subr.mxu0 %v573_v5  ;;  %767 = vmatprep.subr.mxu1 %v575_v6  ;;  %v564_v11 = vld [vmem:[#allocation2 + $0x3c0] sm:$0xff]  ;;  %v566_v12 = vld [vmem:[#allocation2 + $0x3d0] sm:$0xff]  ;;  %v557_v13 = vld [vmem:[#allocation2 + $0x388] sm:$0xff]  ;;  %s20021_s29 = scalar_select %p421_p6, %s19966_s25, 1  ;;  %vm15448_vm5 = vcmask 24576  }
  0x2d   : > { %655 = vmatpush1.msra.mxu0 %v572_v7  ;;  %768 = vmatpush1.msra.mxu1 %v574_v8  ;;  %v559_v14 = vld [vmem:[#allocation2 + $0x398] sm:$0xff]  ;;  %v556_v15 = vld [vmem:[#allocation2 + $0x380] sm:$0xff]  ;;  %v558_v16 = vld [vmem:[#allocation2 + $0x390] sm:$0xff]  ;;  %s18472_s26 = sshll.u32 %s19966_s25, 4  ;;  %s19879_s25 = smov [#allocation5]  }
  0x2e   : > { %656 = vmatprep.subr.mxu0 %v565_v9  ;;  %769 = vmatprep.subr.mxu1 %v567_v10  ;;  %v549_v17 = vld [vmem:[#allocation2 + $0x348] sm:$0xff]  ;;  %v551_v18 = vld [vmem:[#allocation2 + $0x358] sm:$0xff]  ;;  %v548_v19 = vld [vmem:[#allocation2 + $0x340] sm:$0xff]  ;;  %s19215_s15 = smul.u32 72, %s20021_s29  ;;  %s26219_s17 = scalar_lea.hbm %s26266_s12, %s18472_s26 }
  0x2f   : > { %657 = vmatpush1.msra.mxu0 %v564_v11  ;;  %770 = vmatpush1.msra.mxu1 %v566_v12  ;;  %v550_v20 = vld [vmem:[#allocation2 + $0x350] sm:$0xff]  ;;  %v541_v21 = vld [vmem:[#allocation2 + $0x308] sm:$0xff]  ;;  %v543_v22 = vld [vmem:[#allocation2 + $0x318] sm:$0xff]  ;;  %s19812_s19 = sshll.u32 %s19879_s25, 4  ;;  %s19813_s19 = int_to_ptr.vmem [resolvable:$false] %s19812_s19 }
  0x30   : > { %658 = vmatprep.subr.mxu0 %v557_v13  ;;  %771 = vmatprep.subr.mxu1 %v559_v14  ;;  %v540_v23 = vld [vmem:[#allocation2 + $0x300] sm:$0xff]  ;;  %v542_v24 = vld [vmem:[#allocation2 + $0x310] sm:$0xff]  ;;  %v533_v25 = vld [vmem:[#allocation2 + $0x2c8] sm:$0xff]  ;;  %s20027_s18 = scalar_lea.vmem %s26290_s0, %s19215_s15  ;;  %s419_s0 = sand.u32 1, %s19864_s22  }
  0x31   : > { %659 = vmatpush1.msra.mxu0 %v556_v15  ;;  %772 = vmatpush1.msra.mxu1 %v558_v16  ;;  %v535_v26 = vld [vmem:[#allocation2 + $0x2d8] sm:$0xff]  ;;  %v532_v27 = vld [vmem:[#allocation2 + $0x2c0] sm:$0xff]  ;;  %v534_v28 = vld [vmem:[#allocation2 + $0x2d0] sm:$0xff]  ;;  %s420_s28 = scalar_lea.vmem [#allocation5], %s419_s0  ;;  %s19814_s20 = scalar_lea.vmem %s19813_s19, 32 }
  0x32   : > { %660 = vmatprep.subr.mxu0 %v549_v17  ;;  %773 = vmatprep.subr.mxu1 %v551_v18  ;;  %v525_v29 = vld [vmem:[#allocation2 + $0x288] sm:$0xff]  ;;  %v527_v30 = vld [vmem:[#allocation2 + $0x298] sm:$0xff]  ;;  %v524_v31 = vld [vmem:[#allocation2 + $0x280] sm:$0xff]  ;;  %s15463_s29 = sshll.u32 %s420_s28, 4  ;;  %s15464_s29 = int_to_ptr.vmem [resolvable:$true] %s15463_s29 }
  0x33   : > { %661 = vmatpush1.msra.mxu0 %v548_v19  ;;  %774 = vmatpush1.msra.mxu1 %v550_v20  ;;  %v526_v32 = vld [vmem:[#allocation2 + $0x290] sm:$0xff]  ;;  %v517_v33 = vld [vmem:[#allocation2 + $0x248] sm:$0xff]  ;;  %v519_v34 = vld [vmem:[#allocation2 + $0x258] sm:$0xff]  ;;  %s19808_s1 = scalar_lea.vmem %s15464_s29, 16  ;;  %p19815_p11 = scmp.lt.s32.totalorder %s15464_s29, %s19813_s19 }
  0x34   : > { %662 = vmatprep.subr.mxu0 %v541_v21  ;;  %775 = vmatprep.subr.mxu1 %v543_v22  ;;  %v516_v35 = vld [vmem:[#allocation2 + $0x240] sm:$0xff]  ;;  %v518_v36 = vld [vmem:[#allocation2 + $0x250] sm:$0xff]  ;;  %v585_v38 = vld [vmem:[#allocation2 + $0x468] sm:$0x3]  ;;  %p19809_p8 = scmp.ne.s32.totalorder %s15464_s29, %s19808_s1  ;;  %p19816_p12 = scmp.lt.s32.totalorder %s19814_s20, %s19808_s1 }
  0x35   : > { %663 = vmatpush1.msra.mxu0 %v540_v23  ;;  %776 = vmatpush1.msra.mxu1 %v542_v24  ;;  %v20030_v37 = vld [vmem:[%s20027_s18 + $0x1] sm:$0xff]  ;;  %v587_v39 = vld [vmem:[#allocation2 + $0x478] sm:$0x3]  ;;  %v586_v41 = vld [vmem:[#allocation2 + $0x470] sm:$0x3] }
  0x36   : > { %664 = vmatprep.subr.mxu0 %v533_v25  ;;  %777 = vmatprep.subr.mxu1 %v535_v26  ;;  %v584_v40 = vld [vmem:[#allocation2 + $0x460] sm:$0x3]  ;;  %v20039_v42 = vld [vmem:[%s20027_s18 + $0x9] sm:$0xff]  ;;  %v579_v44 = vld [vmem:[#allocation2 + $0x438] sm:$0xff]  ;;  %p19810_p9 = pnand %p19809_p8, %p19983_p5  ;;  %p19817_p13 = por %p19816_p12, %p19815_p11 }
  0x37   : > { %665 = vmatpush1.msra.mxu0 %v532_v27  ;;  %778 = vmatpush1.msra.mxu1 %v534_v28  ;;  %v577_v43 = vld [vmem:[#allocation2 + $0x428] sm:$0xff]  ;;  %v576_v45 = vld [vmem:[#allocation2 + $0x420] sm:$0xff]  ;;  %v578_v46 = vld [vmem:[#allocation2 + $0x430] sm:$0xff] }
  0x38   : > { %666 = vmatprep.subr.mxu0 %v525_v29  ;;  %779 = vmatprep.subr.mxu1 %v527_v30  ;;  %v20052_v47 = vld [vmem:[%s20027_s18 + $0x11] sm:$0xff]  ;;  %v569_v48 = vld [vmem:[#allocation2 + $0x3e8] sm:$0xff]  ;;  %v568_v50 = vld [vmem:[#allocation2 + $0x3e0] sm:$0xff]  ;;  %p19811_p10 = pneg %p19810_p9 }
  0x39   : > { %667 = vmatpush1.msra.mxu0 %v524_v31  ;;  %780 = vmatpush1.msra.mxu1 %v526_v32  ;;  %v571_v49 = vld [vmem:[#allocation2 + $0x3f8] sm:$0xff]  ;;  %v570_v51 = vld [vmem:[#allocation2 + $0x3f0] sm:$0xff]  ;;  %v561_v53 = vld [vmem:[#allocation2 + $0x3a8] sm:$0xff] }
  0x3a   : > { %668 = vmatprep.subr.mxu0 %v517_v33  ;;  %781 = vmatprep.subr.mxu1 %v519_v34  ;;  %v20061_v52 = vld [vmem:[%s20027_s18 + $0x19] sm:$0xff]  ;;  %v562_v56 = vld [vmem:[#allocation2 + $0x3b0] sm:$0xff]  ;;  %v20070_v57 = vld [vmem:[%s20027_s18 + $0x21] sm:$0xff]  ;;  %p19818_p0 = pnand %p19817_p13, %p19811_p10 }
  0x3b   : > { %669 = vmatpush1.msra.mxu0 %v516_v35  ;;  %782 = vmatpush1.msra.mxu1 %v518_v36  ;;  %v563_v54 = vld [vmem:[#allocation2 + $0x3b8] sm:$0xff]  ;;  %v560_v55 = vld [vmem:[#allocation2 + $0x3a0] sm:$0xff]  ;;  %v553_v58 = vld [vmem:[#allocation2 + $0x368] sm:$0xff] }
  0x3c   : > { %15539 = vmatmul.mubr.msk.f32.vlgmr.msra.gmra.mxu0 %vm588_vm1, %v20030_v37  ;;  %15549 = vmatmul.mubr.msk.f32.vlgmr.msra.gmra.mxu1 %vm588_vm1, %v20030_v37  ;;  %v555_v59 = vld [vmem:[#allocation2 + $0x378] sm:$0xff]  ;;  %v552_v60 = vld [vmem:[#allocation2 + $0x360] sm:$0xff]  ;;  %v554_v61 = vld [vmem:[#allocation2 + $0x370] sm:$0xff] }
  0x3d   : > { %708 = vmatprep.mubr.f32.mxu0 %v26267_v0  ;;  %821 = vmatprep.mubr.f32.mxu1 %v26267_v0  ;;  %v20079_v62 = vld [vmem:[%s20027_s18 + $0x29] sm:$0xff]  ;;  %v547_v1 = vld [vmem:[#allocation2 + $0x338] sm:$0xff]  ;;  %v544_v2 = vld [vmem:[#allocation2 + $0x320] sm:$0xff] }
  0x3e   : > { %15557 = vmatprep.subr.msk.mxu0 %vm613_vm0, %v585_v38  ;;  %15567 = vmatprep.subr.msk.mxu1 %vm613_vm0, %v587_v39  ;;  %v545_v63 = vld [vmem:[#allocation2 + $0x328] sm:$0xff]  ;;  %v546_v3 = vld [vmem:[#allocation2 + $0x330] sm:$0xff]  ;;  %v539_v6 = vld [vmem:[#allocation2 + $0x2f8] sm:$0xff] }
  0x3f   : > { %15558 = vmatpush1.msk.msra.mxu0 %vm613_vm0, %v584_v40  ;;  %15568 = vmatpush1.msk.msra.mxu1 %vm613_vm0, %v586_v41  ;;  %v20088_v4 = vld [vmem:[%s20027_s18 + $0x31] sm:$0xff]  ;;  %v537_v5 = vld [vmem:[#allocation2 + $0x2e8] sm:$0xff]  ;;  %v536_v7 = vld [vmem:[#allocation2 + $0x2e0] sm:$0xff] }
  0x40   : > { %15540 = vmatmul.mubr.msk.f32.gmra.mxu0 %vm588_vm1, %v20039_v42  ;;  %15550 = vmatmul.mubr.msk.f32.gmra.mxu1 %vm588_vm1, %v20039_v42  ;;  %v538_v8 = vld [vmem:[#allocation2 + $0x2f0] sm:$0xff]  ;;  %v20095_v9 = vld [vmem:[%s20027_s18 + $0x39] sm:$0xff]  ;;  %v529_v10 = vld [vmem:[#allocation2 + $0x2a8] sm:$0xff] }
  0x41   : > { %714 = vmatprep.mubr.f32.mxu0 %v26267_v0  ;;  %827 = vmatprep.mubr.f32.mxu1 %v26267_v0  ;;  %v531_v11 = vld [vmem:[#allocation2 + $0x2b8] sm:$0xff]  ;;  %v528_v12 = vld [vmem:[#allocation2 + $0x2a0] sm:$0xff]  ;;  %v530_v13 = vld [vmem:[#allocation2 + $0x2b0] sm:$0xff] }
  0x42   : > { %880 = vmatprep.subr.mxu0 %v577_v43  ;;  %993 = vmatprep.subr.mxu1 %v579_v44  ;;  %v521_v14 = vld [vmem:[#allocation2 + $0x268] sm:$0xff]  ;;  %v523_v15 = vld [vmem:[#allocation2 + $0x278] sm:$0xff]  ;;  %v520_v16 = vld [vmem:[#allocation2 + $0x260] sm:$0xff] }
  0x43   : > { %881 = vmatpush1.msra.mxu0 %v576_v45  ;;  %994 = vmatpush1.msra.mxu1 %v578_v46  ;;  %v522_v17 = vld [vmem:[#allocation2 + $0x270] sm:$0xff]  ;;  %v500_v18 = vld [vmem:[#allocation2 + $0x208] sm:$0x3]  ;;  %v502_v19 = vld [vmem:[#allocation2 + $0x218] sm:$0x3] }
  0x44   : > { %15541 = vmatmul.mubr.msk.f32.gmra.mxu0 %vm588_vm1, %v20052_v47  ;;  %15551 = vmatmul.mubr.msk.f32.gmra.mxu1 %vm588_vm1, %v20052_v47  ;;  %v499_v20 = vld [vmem:[#allocation2 + $0x200] sm:$0x3]  ;;  %v501_v21 = vld [vmem:[#allocation2 + $0x210] sm:$0x3]  ;;  %v492_v22 = vld [vmem:[#allocation2 + $0x1c8] sm:$0xff] }
  0x45   : > { %720 = vmatprep.mubr.f32.mxu0 %v26267_v0  ;;  %833 = vmatprep.mubr.f32.mxu1 %v26267_v0  ;;  %v494_v23 = vld [vmem:[#allocation2 + $0x1d8] sm:$0xff]  ;;  %v491_v24 = vld [vmem:[#allocation2 + $0x1c0] sm:$0xff]  ;;  %v493_v25 = vld [vmem:[#allocation2 + $0x1d0] sm:$0xff] }
  0x46   : > { %882 = vmatprep.subr.mxu0 %v569_v48  ;;  %995 = vmatprep.subr.mxu1 %v571_v49  ;;  %v484_v26 = vld [vmem:[#allocation2 + $0x188] sm:$0xff]  ;;  %v486_v27 = vld [vmem:[#allocation2 + $0x198] sm:$0xff]  ;;  %v483_v28 = vld [vmem:[#allocation2 + $0x180] sm:$0xff] }
  0x47   : > { %883 = vmatpush1.msra.mxu0 %v568_v50  ;;  %996 = vmatpush1.msra.mxu1 %v570_v51  ;;  %v485_v29 = vld [vmem:[#allocation2 + $0x190] sm:$0xff]  ;;  %v476_v30 = vld [vmem:[#allocation2 + $0x148] sm:$0xff]  ;;  %v478_v31 = vld [vmem:[#allocation2 + $0x158] sm:$0xff] }
  0x48   : > { %15542 = vmatmul.mubr.msk.f32.gmra.mxu0 %vm588_vm1, %v20061_v52  ;;  %15552 = vmatmul.mubr.msk.f32.gmra.mxu1 %vm588_vm1, %v20061_v52  ;;  %v475_v32 = vld [vmem:[#allocation2 + $0x140] sm:$0xff]  ;;  %v477_v33 = vld [vmem:[#allocation2 + $0x150] sm:$0xff]  ;;  %v468_v34 = vld [vmem:[#allocation2 + $0x108] sm:$0xff] }
  0x49   : > { %726 = vmatprep.mubr.f32.mxu0 %v26267_v0  ;;  %839 = vmatprep.mubr.f32.mxu1 %v26267_v0  ;;  %v470_v35 = vld [vmem:[#allocation2 + $0x118] sm:$0xff]  ;;  %v467_v36 = vld [vmem:[#allocation2 + $0x100] sm:$0xff]  ;;  %v460_v38 = vld [vmem:[#allocation2 + $0xc8] sm:$0xff] }
  0x4a   : > { %884 = vmatprep.subr.mxu0 %v561_v53  ;;  %997 = vmatprep.subr.mxu1 %v563_v54  ;;  %v462_v39 = vld [vmem:[#allocation2 + $0xd8] sm:$0xff]  ;;  %v459_v40 = vld [vmem:[#allocation2 + $0xc0] sm:$0xff]  ;;  %v461_v41 = vld [vmem:[#allocation2 + $0xd0] sm:$0xff] }
  0x4b   : > { %885 = vmatpush1.msra.mxu0 %v560_v55  ;;  %998 = vmatpush1.msra.mxu1 %v562_v56  ;;  %v454_v43 = vld [vmem:[#allocation2 + $0x98] sm:$0xff]  ;;  %v451_v44 = vld [vmem:[#allocation2 + $0x80] sm:$0xff]  ;;  %v453_v45 = vld [vmem:[#allocation2 + $0x90] sm:$0xff] }
  0x4c   : > { %15543 = vmatmul.mubr.msk.f32.gmra.mxu0 %vm588_vm1, %v20070_v57  ;;  %15553 = vmatmul.mubr.msk.f32.gmra.mxu1 %vm588_vm1, %v20070_v57  ;;  %v444_v46 = vld [vmem:[#allocation2 + $0x48] sm:$0xff]  ;;  %v443_v48 = vld [vmem:[#allocation2 + $0x40] sm:$0xff]  ;;  %v445_v49 = vld [vmem:[#allocation2 + $0x50] sm:$0xff] }
  0x4d   : > { %732 = vmatprep.mubr.f32.mxu0 %v26267_v0  ;;  %845 = vmatprep.mubr.f32.mxu1 %v26267_v0  ;;  %v436_v50 = vld [vmem:[#allocation2 + $0x8] sm:$0xff]  ;;  %v438_v51 = vld [vmem:[#allocation2 + $0x18] sm:$0xff]  ;;  %v437_v53 = vld [vmem:[#allocation2 + $0x10] sm:$0xff] }
  0x4e   : > { %886 = vmatprep.subr.mxu0 %v553_v58  ;;  %999 = vmatprep.subr.mxu1 %v555_v59  ;;  %v20156_v54 = vld [vmem:[%s20027_s18] sm:$0xff]  ;;  %v504_v55 = vld [vmem:[#allocation2 + $0x228] sm:$0x3]  ;;  %v506_v56 = vld [vmem:[#allocation2 + $0x238] sm:$0x3] }
  0x4f   : > { %887 = vmatpush1.msra.mxu0 %v552_v60  ;;  %1000 = vmatpush1.msra.mxu1 %v554_v61  ;;  %v505_v58 = vld [vmem:[#allocation2 + $0x230] sm:$0x3]  ;;  %v20161_v59 = vld [vmem:[%s20027_s18 + $0x8] sm:$0xff]  ;;  %v498_v61 = vld [vmem:[#allocation2 + $0x1f8] sm:$0xff] }
  0x50   : > { %15544 = vmatmul.mubr.msk.f32.gmra.mxu0 %vm588_vm1, %v20079_v62  ;;  %15554 = vmatmul.mubr.msk.f32.gmra.mxu1 %vm588_vm1, %v20079_v62  ;;  %v496_v60 = vld [vmem:[#allocation2 + $0x1e8] sm:$0xff] }
  0x51   : > { %738 = vmatprep.mubr.f32.mxu0 %v26267_v0  ;;  %851 = vmatprep.mubr.f32.mxu1 %v26267_v0 }
  0x52   : > { %888 = vmatprep.subr.mxu0 %v545_v63  ;;  %1001 = vmatprep.subr.mxu1 %v547_v1  ;;  %v497_v63 = vld [vmem:[#allocation2 + $0x1f0] sm:$0xff] }
  0x53   : > { %889 = vmatpush1.msra.mxu0 %v544_v2  ;;  %1002 = vmatpush1.msra.mxu1 %v546_v3  ;;  %v20172_v1 = vld [vmem:[%s20027_s18 + $0x10] sm:$0xff]  ;;  %v488_v2 = vld [vmem:[#allocation2 + $0x1a8] sm:$0xff]  ;;  %v490_v3 = vld [vmem:[#allocation2 + $0x1b8] sm:$0xff] }
  0x54   : > { %15545 = vmatmul.mubr.msk.f32.gmra.mxu0 %vm588_vm1, %v20088_v4  ;;  %15555 = vmatmul.mubr.msk.f32.gmra.mxu1 %vm588_vm1, %v20088_v4 }
  0x55   : > { %890 = vmatprep.subr.mxu0 %v537_v5  ;;  %1003 = vmatprep.subr.mxu1 %v539_v6  ;;  %v489_v5 = vld [vmem:[#allocation2 + $0x1b0] sm:$0xff]  ;;  %v20183_v6 = vld [vmem:[%s20027_s18 + $0x18] sm:$0xff] }
  0x56   : > { %744 = vmatprep.mubr.f32.mxu0 %v26267_v0  ;;  %857 = vmatprep.mubr.f32.mxu1 %v26267_v0 }
  0x57   : > { %891 = vmatpush1.msra.mxu0 %v536_v7  ;;  %1004 = vmatpush1.msra.mxu1 %v538_v8  ;;  %v480_v7 = vld [vmem:[#allocation2 + $0x168] sm:$0xff]  ;;  %v482_v8 = vld [vmem:[#allocation2 + $0x178] sm:$0xff] }
  0x58   : > { %15546 = vmatmul.mubr.msk.f32.gmra.mxu0 %vm588_vm1, %v20095_v9  ;;  %15556 = vmatmul.mubr.msk.f32.gmra.mxu1 %vm588_vm1, %v20095_v9 }
  0x59   : > { %892 = vmatprep.subr.mxu0 %v529_v10  ;;  %1005 = vmatprep.subr.mxu1 %v531_v11  ;;  %v481_v10 = vld [vmem:[#allocation2 + $0x170] sm:$0xff]  ;;  %v20192_v11 = vld [vmem:[%s20027_s18 + $0x20] sm:$0xff] }
  0x5a   : > { %893 = vmatpush1.msra.mxu0 %v528_v12  ;;  %1006 = vmatpush1.msra.mxu1 %v530_v13  ;;  %v472_v12 = vld [vmem:[#allocation2 + $0x128] sm:$0xff]  ;;  %v474_v13 = vld [vmem:[#allocation2 + $0x138] sm:$0xff] }
  0x5b   : > { %894 = vmatprep.subr.mxu0 %v521_v14  ;;  %1007 = vmatprep.subr.mxu1 %v523_v15  ;;  %v471_v14 = vld [vmem:[#allocation2 + $0x120] sm:$0xff]  ;;  %v473_v15 = vld [vmem:[#allocation2 + $0x130] sm:$0xff] }
  0x5c   : > { %895 = vmatpush1.msra.mxu0 %v520_v16  ;;  %928 = vmatprep.mubr.f32.mxu0 %v26267_v0  ;;  %v20201_v16 = vld [vmem:[%s20027_s18 + $0x28] sm:$0xff] }
  0x5d   : > { %1008 = vmatpush1.msra.mxu1 %v522_v17  ;;  %1041 = vmatprep.mubr.f32.mxu1 %v26267_v0  ;;  %v464_v17 = vld [vmem:[#allocation2 + $0xe8] sm:$0xff] }
  0x5e   : > { %15559 = vmatmul.mubr.msk.f32.vlgmr.msra.gmra.mxu0 %vm588_vm1, %v20030_v37  ;;  %15569 = vmatmul.mubr.msk.f32.vlgmr.msra.gmra.mxu1 %vm588_vm1, %v20030_v37  ;;  %v469_v37 = vld [vmem:[#allocation2 + $0x110] sm:$0xff] }
  0x5f   : > { %934 = vmatprep.mubr.f32.mxu0 %v26267_v0  ;;  %1047 = vmatprep.mubr.f32.mxu1 %v26267_v0 }
  0x60   : > { %15577 = vmatprep.subr.msk.mxu0 %vm613_vm0, %v500_v18  ;;  %15587 = vmatprep.subr.msk.mxu1 %vm613_vm0, %v502_v19  ;;  %v466_v18 = vld [vmem:[#allocation2 + $0xf8] sm:$0xff]  ;;  %v463_v19 = vld [vmem:[#allocation2 + $0xe0] sm:$0xff] }
  0x61   : > { %15578 = vmatpush1.msk.msra.mxu0 %vm613_vm0, %v499_v20  ;;  %15588 = vmatpush1.msk.msra.mxu1 %vm613_vm0, %v501_v21  ;;  %v465_v20 = vld [vmem:[#allocation2 + $0xf0] sm:$0xff] }
  0x62   : > { %15560 = vmatmul.mubr.msk.f32.gmra.mxu0 %vm588_vm1, %v20039_v42  ;;  %15570 = vmatmul.mubr.msk.f32.gmra.mxu1 %vm588_vm1, %v20039_v42  ;;  %v452_v42 = vld [vmem:[#allocation2 + $0x88] sm:$0xff]  ;;  %v20210_v21 = vld [vmem:[%s20027_s18 + $0x30] sm:$0xff] }
  0x63   : > { %940 = vmatprep.mubr.f32.mxu0 %v26267_v0  ;;  %1053 = vmatprep.mubr.f32.mxu1 %v26267_v0 }
  0x64   : > { %1154 = vmatprep.subr.mxu0 %v492_v22  ;;  %1267 = vmatprep.subr.mxu1 %v494_v23  ;;  %v456_v22 = vld [vmem:[#allocation2 + $0xa8] sm:$0xff]  ;;  %v458_v23 = vld [vmem:[#allocation2 + $0xb8] sm:$0xff] }
  0x65   : > { %1155 = vmatpush1.msra.mxu0 %v491_v24  ;;  %1268 = vmatpush1.msra.mxu1 %v493_v25  ;;  %v455_v24 = vld [vmem:[#allocation2 + $0xa0] sm:$0xff]  ;;  %v457_v25 = vld [vmem:[#allocation2 + $0xb0] sm:$0xff] }
  0x66   : > { %15561 = vmatmul.mubr.msk.f32.gmra.mxu0 %vm588_vm1, %v20052_v47  ;;  %15571 = vmatmul.mubr.msk.f32.gmra.mxu1 %vm588_vm1, %v20052_v47  ;;  %v446_v47 = vld [vmem:[#allocation2 + $0x58] sm:$0xff] }
  0x67   : > { %946 = vmatprep.mubr.f32.mxu0 %v26267_v0  ;;  %1059 = vmatprep.mubr.f32.mxu1 %v26267_v0 }
  0x68   : > { %1156 = vmatprep.subr.mxu0 %v484_v26  ;;  %1269 = vmatprep.subr.mxu1 %v486_v27  ;;  %v20219_v26 = vld [vmem:[%s20027_s18 + $0x38] sm:$0xff]  ;;  %v448_v27 = vld [vmem:[#allocation2 + $0x68] sm:$0xff] }
  0x69   : > { %1157 = vmatpush1.msra.mxu0 %v483_v28  ;;  %1270 = vmatpush1.msra.mxu1 %v485_v29  ;;  %v450_v28 = vld [vmem:[#allocation2 + $0x78] sm:$0xff]  ;;  %v447_v29 = vld [vmem:[#allocation2 + $0x60] sm:$0xff] }
  0x6a   : > { %15562 = vmatmul.mubr.msk.f32.gmra.mxu0 %vm588_vm1, %v20061_v52  ;;  %15572 = vmatmul.mubr.msk.f32.gmra.mxu1 %vm588_vm1, %v20061_v52  ;;  %v435_v52 = vld [vmem:[#allocation2] sm:$0xff] }
  0x6b   : > { %952 = vmatprep.mubr.f32.mxu0 %v26267_v0  ;;  %1065 = vmatprep.mubr.f32.mxu1 %v26267_v0 }
  0x6c   : > { %1158 = vmatprep.subr.mxu0 %v476_v30  ;;  %1271 = vmatprep.subr.mxu1 %v478_v31  ;;  %v449_v30 = vld [vmem:[#allocation2 + $0x70] sm:$0xff]  ;;  %v440_v31 = vld [vmem:[#allocation2 + $0x28] sm:$0xff] }
  0x6d   : > { %1159 = vmatpush1.msra.mxu0 %v475_v32  ;;  %1272 = vmatpush1.msra.mxu1 %v477_v33  ;;  %v442_v32 = vld [vmem:[#allocation2 + $0x38] sm:$0xff]  ;;  %v439_v33 = vld [vmem:[#allocation2 + $0x20] sm:$0xff] }
  0x6e   : > { %15563 = vmatmul.mubr.msk.f32.gmra.mxu0 %vm588_vm1, %v20070_v57  ;;  %15573 = vmatmul.mubr.msk.f32.gmra.mxu1 %vm588_vm1, %v20070_v57  ;;  %v503_v57 = vld [vmem:[#allocation2 + $0x220] sm:$0x3] }
  0x6f   : > { %958 = vmatprep.mubr.f32.mxu0 %v26267_v0  ;;  %1071 = vmatprep.mubr.f32.mxu1 %v26267_v0 }
  0x70   : > { %1160 = vmatprep.subr.mxu0 %v468_v34  ;;  %1273 = vmatprep.subr.mxu1 %v470_v35  ;;  %v441_v34 = vld [vmem:[#allocation2 + $0x30] sm:$0xff]  ;;  %v1664_v35 = vld [vmem:[#allocation2 + $0x688] sm:$0x3] }
  0x71   : > { %1161 = vmatpush1.msra.mxu0 %v467_v36  ;;  %1274 = vmatpush1.msra.mxu1 %v469_v37  ;;  %v1666_v36 = vld [vmem:[#allocation2 + $0x698] sm:$0x3]  ;;  %v1663_v37 = vld [vmem:[#allocation2 + $0x680] sm:$0x3] }
  0x72   : > { %15564 = vmatmul.mubr.msk.f32.gmra.mxu0 %vm588_vm1, %v20079_v62  ;;  %15574 = vmatmul.mubr.msk.f32.gmra.mxu1 %vm588_vm1, %v20079_v62  ;;  %v495_v62 = vld [vmem:[#allocation2 + $0x1e0] sm:$0xff] }
  0x73   : > { %964 = vmatprep.mubr.f32.mxu0 %v26267_v0  ;;  %1077 = vmatprep.mubr.f32.mxu1 %v26267_v0 }
  0x74   : > { %1162 = vmatprep.subr.mxu0 %v460_v38  ;;  %1275 = vmatprep.subr.mxu1 %v462_v39  ;;  %v1665_v38 = vld [vmem:[#allocation2 + $0x690] sm:$0x3]  ;;  %v1656_v39 = vld [vmem:[#allocation2 + $0x648] sm:$0xff] }
  0x75   : > { %1163 = vmatpush1.msra.mxu0 %v459_v40  ;;  %1276 = vmatpush1.msra.mxu1 %v461_v41  ;;  %v1658_v40 = vld [vmem:[#allocation2 + $0x658] sm:$0xff]  ;;  %v1655_v41 = vld [vmem:[#allocation2 + $0x640] sm:$0xff] }
  0x76   : > { %15565 = vmatmul.mubr.msk.f32.gmra.mxu0 %vm588_vm1, %v20088_v4  ;;  %15575 = vmatmul.mubr.msk.f32.gmra.mxu1 %vm588_vm1, %v20088_v4  ;;  %v487_v4 = vld [vmem:[#allocation2 + $0x1a0] sm:$0xff] }
  0x77   : > { %1164 = vmatprep.subr.mxu0 %v452_v42  ;;  %1277 = vmatprep.subr.mxu1 %v454_v43  ;;  %v1657_v42 = vld [vmem:[#allocation2 + $0x650] sm:$0xff]  ;;  %v1648_v43 = vld [vmem:[#allocation2 + $0x608] sm:$0xff] }
  0x78   : > { %970 = vmatprep.mubr.f32.mxu0 %v26267_v0  ;;  %1083 = vmatprep.mubr.f32.mxu1 %v26267_v0 }
  0x79   : > { %1165 = vmatpush1.msra.mxu0 %v451_v44  ;;  %1278 = vmatpush1.msra.mxu1 %v453_v45  ;;  %v1650_v44 = vld [vmem:[#allocation2 + $0x618] sm:$0xff]  ;;  %v1647_v45 = vld [vmem:[#allocation2 + $0x600] sm:$0xff] }
  0x7a   : > { %15566 = vmatmul.mubr.msk.f32.gmra.mxu0 %vm588_vm1, %v20095_v9  ;;  %15576 = vmatmul.mubr.msk.f32.gmra.mxu1 %vm588_vm1, %v20095_v9  ;;  %v479_v9 = vld [vmem:[#allocation2 + $0x160] sm:$0xff] }
  0x7b   : > { %1166 = vmatprep.subr.mxu0 %v444_v46  ;;  %1279 = vmatprep.subr.mxu1 %v446_v47  ;;  %v1649_v46 = vld [vmem:[#allocation2 + $0x610] sm:$0xff]  ;;  %v1640_v47 = vld [vmem:[#allocation2 + $0x5c8] sm:$0xff] }
  0x7c   : > { %1167 = vmatpush1.msra.mxu0 %v443_v48  ;;  %1280 = vmatpush1.msra.mxu1 %v445_v49  ;;  %v1642_v48 = vld [vmem:[#allocation2 + $0x5d8] sm:$0xff]  ;;  %v1639_v49 = vld [vmem:[#allocation2 + $0x5c0] sm:$0xff] }
  0x7d   : > { %1168 = vmatprep.subr.mxu0 %v436_v50  ;;  %1281 = vmatprep.subr.mxu1 %v438_v51  ;;  %v1641_v50 = vld [vmem:[#allocation2 + $0x5d0] sm:$0xff]  ;;  %v1632_v51 = vld [vmem:[#allocation2 + $0x588] sm:$0xff] }
  0x7e   : > { %1169 = vmatpush1.msra.mxu0 %v435_v52  ;;  %1202 = vmatprep.mubr.f32.mxu0 %v26267_v0  ;;  %v1634_v52 = vld [vmem:[#allocation2 + $0x598] sm:$0xff] }
  0x7f   : > { %1282 = vmatpush1.msra.mxu1 %v437_v53  ;;  %1315 = vmatprep.mubr.f32.mxu1 %v26267_v0  ;;  %v1631_v53 = vld [vmem:[#allocation2 + $0x580] sm:$0xff] }
  0x80   : > { %15579 = vmatmul.mubr.msk.f32.vlgmr.msra.gmra.mxu0 %vm588_vm1, %v20156_v54  ;;  %15589 = vmatmul.mubr.msk.f32.vlgmr.msra.gmra.mxu1 %vm588_vm1, %v20156_v54 }
  0x81   : > { %1208 = vmatprep.mubr.f32.mxu0 %v26267_v0  ;;  %1321 = vmatprep.mubr.f32.mxu1 %v26267_v0 }
  0x82   : > { %15597 = vmatprep.subr.msk.mxu0 %vm613_vm0, %v504_v55  ;;  %15607 = vmatprep.subr.msk.mxu1 %vm613_vm0, %v506_v56  ;;  %v1624_v55 = vld [vmem:[#allocation2 + $0x548] sm:$0xff]  ;;  %v1626_v56 = vld [vmem:[#allocation2 + $0x558] sm:$0xff] }
  0x83   : > { %15598 = vmatpush1.msk.msra.mxu0 %vm613_vm0, %v503_v57  ;;  %15608 = vmatpush1.msk.msra.mxu1 %vm613_vm0, %v505_v58  ;;  %v1623_v57 = vld [vmem:[#allocation2 + $0x540] sm:$0xff]  ;;  %v1625_v58 = vld [vmem:[#allocation2 + $0x550] sm:$0xff] }
  0x84   : > { %15580 = vmatmul.mubr.msk.f32.gmra.mxu0 %vm588_vm1, %v20161_v59  ;;  %15590 = vmatmul.mubr.msk.f32.gmra.mxu1 %vm588_vm1, %v20161_v59 }
  0x85   : > { %1214 = vmatprep.mubr.f32.mxu0 %v26267_v0  ;;  %1327 = vmatprep.mubr.f32.mxu1 %v26267_v0 }
  0x86   : > { %1380 = vmatprep.subr.mxu0 %v496_v60  ;;  %1493 = vmatprep.subr.mxu1 %v498_v61  ;;  %v1618_v60 = vld [vmem:[#allocation2 + $0x518] sm:$0xff]  ;;  %v1615_v61 = vld [vmem:[#allocation2 + $0x500] sm:$0xff] }
  0x87   : > { %1381 = vmatpush1.msra.mxu0 %v495_v62  ;;  %1494 = vmatpush1.msra.mxu1 %v497_v63  ;;  %v1617_v62 = vld [vmem:[#allocation2 + $0x510] sm:$0xff]  ;;  %v1608_v63 = vld [vmem:[#allocation2 + $0x4c8] sm:$0xff] }
  0x88   : > { %15581 = vmatmul.mubr.msk.f32.gmra.mxu0 %vm588_vm1, %v20172_v1  ;;  %15591 = vmatmul.mubr.msk.f32.gmra.mxu1 %vm588_vm1, %v20172_v1 }
  0x89   : > { %1220 = vmatprep.mubr.f32.mxu0 %v26267_v0  ;;  %1333 = vmatprep.mubr.f32.mxu1 %v26267_v0 }
  0x8a   : > { %1382 = vmatprep.subr.mxu0 %v488_v2  ;;  %1495 = vmatprep.subr.mxu1 %v490_v3  ;;  %v1607_v2 = vld [vmem:[#allocation2 + $0x4c0] sm:$0xff]  ;;  %v1609_v3 = vld [vmem:[#allocation2 + $0x4d0] sm:$0xff] }
  0x8b   : > { %1383 = vmatpush1.msra.mxu0 %v487_v4  ;;  %1496 = vmatpush1.msra.mxu1 %v489_v5  ;;  %v1600_v4 = vld [vmem:[#allocation2 + $0x488] sm:$0xff]  ;;  %v1602_v5 = vld [vmem:[#allocation2 + $0x498] sm:$0xff] }
  0x8c   : > { %15582 = vmatmul.mubr.msk.f32.gmra.mxu0 %vm588_vm1, %v20183_v6  ;;  %15592 = vmatmul.mubr.msk.f32.gmra.mxu1 %vm588_vm1, %v20183_v6 }
  0x8d   : > { %1226 = vmatprep.mubr.f32.mxu0 %v26267_v0  ;;  %1339 = vmatprep.mubr.f32.mxu1 %v26267_v0 }
  0x8e   : > { %1384 = vmatprep.subr.mxu0 %v480_v7  ;;  %1497 = vmatprep.subr.mxu1 %v482_v8  ;;  %v1601_v7 = vld [vmem:[#allocation2 + $0x490] sm:$0xff]  ;;  %v20284_v8 = vld [vmem:[%s20027_s18 + $0x2] sm:$0xff] }
  0x8f   : > { %1385 = vmatpush1.msra.mxu0 %v479_v9  ;;  %1498 = vmatpush1.msra.mxu1 %v481_v10  ;;  %v1668_v9 = vld [vmem:[#allocation2 + $0x6a8] sm:$0x3]  ;;  %v1670_v10 = vld [vmem:[#allocation2 + $0x6b8] sm:$0x3] }
  0x90   : > { %15583 = vmatmul.mubr.msk.f32.gmra.mxu0 %vm588_vm1, %v20192_v11  ;;  %15593 = vmatmul.mubr.msk.f32.gmra.mxu1 %vm588_vm1, %v20192_v11 }
  0x91   : > { %1232 = vmatprep.mubr.f32.mxu0 %v26267_v0  ;;  %1345 = vmatprep.mubr.f32.mxu1 %v26267_v0 }
  0x92   : > { %1386 = vmatprep.subr.mxu0 %v472_v12  ;;  %1499 = vmatprep.subr.mxu1 %v474_v13  ;;  %v1669_v12 = vld [vmem:[#allocation2 + $0x6b0] sm:$0x3] }
  0x93   : > { %1387 = vmatpush1.msra.mxu0 %v471_v14  ;;  %1500 = vmatpush1.msra.mxu1 %v473_v15  ;;  %v20289_v13 = vld [vmem:[%s20027_s18 + $0xa] sm:$0xff]  ;;  %v1662_v15 = vld [vmem:[#allocation2 + $0x678] sm:$0xff] }
  0x94   : > { %15584 = vmatmul.mubr.msk.f32.gmra.mxu0 %vm588_vm1, %v20201_v16  ;;  %15594 = vmatmul.mubr.msk.f32.gmra.mxu1 %vm588_vm1, %v20201_v16  ;;  %v1660_v14 = vld [vmem:[#allocation2 + $0x668] sm:$0xff] }
  0x95   : > { %1238 = vmatprep.mubr.f32.mxu0 %v26267_v0  ;;  %1351 = vmatprep.mubr.f32.mxu1 %v26267_v0 }
  0x96   : > { %1388 = vmatprep.subr.mxu0 %v464_v17  ;;  %1501 = vmatprep.subr.mxu1 %v466_v18  ;;  %v1661_v17 = vld [vmem:[#allocation2 + $0x670] sm:$0xff] }
  0x97   : > { %1389 = vmatpush1.msra.mxu0 %v463_v19  ;;  %1502 = vmatpush1.msra.mxu1 %v465_v20  ;;  %v20300_v18 = vld [vmem:[%s20027_s18 + $0x12] sm:$0xff]  ;;  %v1652_v19 = vld [vmem:[#allocation2 + $0x628] sm:$0xff] }
  0x98   : > { %15585 = vmatmul.mubr.msk.f32.gmra.mxu0 %vm588_vm1, %v20210_v21  ;;  %15595 = vmatmul.mubr.msk.f32.gmra.mxu1 %vm588_vm1, %v20210_v21  ;;  %v1654_v20 = vld [vmem:[#allocation2 + $0x638] sm:$0xff] }
  0x99   : > { %1390 = vmatprep.subr.mxu0 %v456_v22  ;;  %1503 = vmatprep.subr.mxu1 %v458_v23  ;;  %v1653_v22 = vld [vmem:[#allocation2 + $0x630] sm:$0xff]  ;;  %v20311_v23 = vld [vmem:[%s20027_s18 + $0x1a] sm:$0xff] }
  0x9a   : > { %1244 = vmatprep.mubr.f32.mxu0 %v26267_v0  ;;  %1357 = vmatprep.mubr.f32.mxu1 %v26267_v0 }
  0x9b   : > { %1391 = vmatpush1.msra.mxu0 %v455_v24  ;;  %1504 = vmatpush1.msra.mxu1 %v457_v25  ;;  %v1644_v24 = vld [vmem:[#allocation2 + $0x5e8] sm:$0xff]  ;;  %v1646_v25 = vld [vmem:[#allocation2 + $0x5f8] sm:$0xff] }
  0x9c   : > { %15586 = vmatmul.mubr.msk.f32.gmra.mxu0 %vm588_vm1, %v20219_v26  ;;  %15596 = vmatmul.mubr.msk.f32.gmra.mxu1 %vm588_vm1, %v20219_v26 }
  0x9d   : > { %1392 = vmatprep.subr.mxu0 %v448_v27  ;;  %1505 = vmatprep.subr.mxu1 %v450_v28  ;;  %v1645_v27 = vld [vmem:[#allocation2 + $0x5f0] sm:$0xff]  ;;  %v20320_v28 = vld [vmem:[%s20027_s18 + $0x22] sm:$0xff] }
  0x9e   : > { %1393 = vmatpush1.msra.mxu0 %v447_v29  ;;  %1506 = vmatpush1.msra.mxu1 %v449_v30  ;;  %v1636_v29 = vld [vmem:[#allocation2 + $0x5a8] sm:$0xff]  ;;  %v1638_v30 = vld [vmem:[#allocation2 + $0x5b8] sm:$0xff] }
  0x9f   : > { %1394 = vmatprep.subr.mxu0 %v440_v31  ;;  %1507 = vmatprep.subr.mxu1 %v442_v32  ;;  %v1635_v31 = vld [vmem:[#allocation2 + $0x5a0] sm:$0xff]  ;;  %v1637_v32 = vld [vmem:[#allocation2 + $0x5b0] sm:$0xff] }
  0xa0   : > { %1395 = vmatpush1.msra.mxu0 %v439_v33  ;;  %1428 = vmatprep.mubr.f32.mxu0 %v26267_v0  ;;  %v20329_v33 = vld [vmem:[%s20027_s18 + $0x2a] sm:$0xff] }
  0xa1   : > { %1508 = vmatpush1.msra.mxu1 %v441_v34  ;;  %1541 = vmatprep.mubr.f32.mxu1 %v26267_v0  ;;  %v1628_v34 = vld [vmem:[#allocation2 + $0x568] sm:$0xff] }
  0xa2   : > { %15599 = vmatmul.mubr.msk.f32.vlgmr.msra.gmra.mxu0 %vm588_vm1, %v20156_v54  ;;  %15609 = vmatmul.mubr.msk.f32.vlgmr.msra.gmra.mxu1 %vm588_vm1, %v20156_v54  ;;  %v1633_v54 = vld [vmem:[#allocation2 + $0x590] sm:$0xff] }
  0xa3   : > { %1434 = vmatprep.mubr.f32.mxu0 %v26267_v0  ;;  %1547 = vmatprep.mubr.f32.mxu1 %v26267_v0 }
  0xa4   : > { %15617 = vmatprep.subr.msk.mxu0 %vm613_vm0, %v1664_v35  ;;  %15627 = vmatprep.subr.msk.mxu1 %vm613_vm0, %v1666_v36  ;;  %v1630_v35 = vld [vmem:[#allocation2 + $0x578] sm:$0xff]  ;;  %v1627_v36 = vld [vmem:[#allocation2 + $0x560] sm:$0xff] }
  0xa5   : > { %15618 = vmatpush1.msk.msra.mxu0 %vm613_vm0, %v1663_v37  ;;  %15628 = vmatpush1.msk.msra.mxu1 %vm613_vm0, %v1665_v38  ;;  %v1629_v37 = vld [vmem:[#allocation2 + $0x570] sm:$0xff] }
  0xa6   : > { %15600 = vmatmul.mubr.msk.f32.gmra.mxu0 %vm588_vm1, %v20161_v59  ;;  %15610 = vmatmul.mubr.msk.f32.gmra.mxu1 %vm588_vm1, %v20161_v59  ;;  %v1616_v59 = vld [vmem:[#allocation2 + $0x508] sm:$0xff]  ;;  %v20338_v38 = vld [vmem:[%s20027_s18 + $0x32] sm:$0xff] }
  0xa7   : > { %1440 = vmatprep.mubr.f32.mxu0 %v26267_v0  ;;  %1553 = vmatprep.mubr.f32.mxu1 %v26267_v0 }
  0xa8   : > { %1735 = vmatprep.subr.mxu0 %v1656_v39  ;;  %1848 = vmatprep.subr.mxu1 %v1658_v40  ;;  %v1620_v39 = vld [vmem:[#allocation2 + $0x528] sm:$0xff]  ;;  %v1622_v40 = vld [vmem:[#allocation2 + $0x538] sm:$0xff] }
  0xa9   : > { %1736 = vmatpush1.msra.mxu0 %v1655_v41  ;;  %1849 = vmatpush1.msra.mxu1 %v1657_v42  ;;  %v1619_v41 = vld [vmem:[#allocation2 + $0x520] sm:$0xff]  ;;  %v1621_v42 = vld [vmem:[#allocation2 + $0x530] sm:$0xff] }
  0xaa   : > { %15601 = vmatmul.mubr.msk.f32.gmra.mxu0 %vm588_vm1, %v20172_v1  ;;  %15611 = vmatmul.mubr.msk.f32.gmra.mxu1 %vm588_vm1, %v20172_v1  ;;  %v1610_v1 = vld [vmem:[#allocation2 + $0x4d8] sm:$0xff] }
  0xab   : > { %1446 = vmatprep.mubr.f32.mxu0 %v26267_v0  ;;  %1559 = vmatprep.mubr.f32.mxu1 %v26267_v0 }
  0xac   : > { %1737 = vmatprep.subr.mxu0 %v1648_v43  ;;  %1850 = vmatprep.subr.mxu1 %v1650_v44  ;;  %v20347_v43 = vld [vmem:[%s20027_s18 + $0x3a] sm:$0xff]  ;;  %v1612_v44 = vld [vmem:[#allocation2 + $0x4e8] sm:$0xff]  ;;  %s15451_s18 = scalar_lea.sflag [#allocation4], %s419_s0 }
  0xad   : > { %1738 = vmatpush1.msra.mxu0 %v1647_v45  ;;  %1851 = vmatpush1.msra.mxu1 %v1649_v46  ;;  %v1614_v45 = vld [vmem:[#allocation2 + $0x4f8] sm:$0xff]  ;;  %v1611_v46 = vld [vmem:[#allocation2 + $0x4e0] sm:$0xff] }
  0xae   : > { %15602 = vmatmul.mubr.msk.f32.gmra.mxu0 %vm588_vm1, %v20183_v6  ;;  %15612 = vmatmul.mubr.msk.f32.gmra.mxu1 %vm588_vm1, %v20183_v6  ;;  %v1599_v6 = vld [vmem:[#allocation2 + $0x480] sm:$0xff] }
  0xaf   : > { %1452 = vmatprep.mubr.f32.mxu0 %v26267_v0  ;;  %1565 = vmatprep.mubr.f32.mxu1 %v26267_v0 }
  0xb0   : > { %1739 = vmatprep.subr.mxu0 %v1640_v47  ;;  %1852 = vmatprep.subr.mxu1 %v1642_v48  ;;  %v1613_v47 = vld [vmem:[#allocation2 + $0x4f0] sm:$0xff]  ;;  %v1604_v48 = vld [vmem:[#allocation2 + $0x4a8] sm:$0xff] }
  0xb1   : > { %1740 = vmatpush1.msra.mxu0 %v1639_v49  ;;  %1853 = vmatpush1.msra.mxu1 %v1641_v50  ;;  %v1606_v49 = vld [vmem:[#allocation2 + $0x4b8] sm:$0xff]  ;;  %v1603_v50 = vld [vmem:[#allocation2 + $0x4a0] sm:$0xff] }
  0xb2   : > { %15603 = vmatmul.mubr.msk.f32.gmra.mxu0 %vm588_vm1, %v20192_v11  ;;  %15613 = vmatmul.mubr.msk.f32.gmra.mxu1 %vm588_vm1, %v20192_v11  ;;  %v1667_v11 = vld [vmem:[#allocation2 + $0x6a0] sm:$0x3] }
  0xb3   : > { %1458 = vmatprep.mubr.f32.mxu0 %v26267_v0  ;;  %1571 = vmatprep.mubr.f32.mxu1 %v26267_v0 }
  0xb4   : > { %1741 = vmatprep.subr.mxu0 %v1632_v51  ;;  %1854 = vmatprep.subr.mxu1 %v1634_v52  ;;  %v1605_v51 = vld [vmem:[#allocation2 + $0x4b0] sm:$0xff] }
  0xb5   : > { %1742 = vmatpush1.msra.mxu0 %v1631_v53  ;;  %1855 = vmatpush1.msra.mxu1 %v1633_v54 }
  0xb6   : > { %15604 = vmatmul.mubr.msk.f32.gmra.mxu0 %vm588_vm1, %v20201_v16  ;;  %15614 = vmatmul.mubr.msk.f32.gmra.mxu1 %vm588_vm1, %v20201_v16  ;;  %v1659_v16 = vld [vmem:[#allocation2 + $0x660] sm:$0xff] }
  0xb7   : > { %1464 = vmatprep.mubr.f32.mxu0 %v26267_v0  ;;  %1577 = vmatprep.mubr.f32.mxu1 %v26267_v0 }
  0xb8   : > { %1743 = vmatprep.subr.mxu0 %v1624_v55  ;;  %1856 = vmatprep.subr.mxu1 %v1626_v56 }
  0xb9   : > { %1744 = vmatpush1.msra.mxu0 %v1623_v57  ;;  %1857 = vmatpush1.msra.mxu1 %v1625_v58 }
  0xba   : > { %15605 = vmatmul.mubr.msk.f32.gmra.mxu0 %vm588_vm1, %v20210_v21  ;;  %15615 = vmatmul.mubr.msk.f32.gmra.mxu1 %vm588_vm1, %v20210_v21  ;;  %v1651_v21 = vld [vmem:[#allocation2 + $0x620] sm:$0xff] }
  0xbb   : > { %1745 = vmatprep.subr.mxu0 %v1616_v59  ;;  %1858 = vmatprep.subr.mxu1 %v1618_v60 }
  0xbc   : > { %1470 = vmatprep.mubr.f32.mxu0 %v26267_v0  ;;  %1583 = vmatprep.mubr.f32.mxu1 %v26267_v0 }
  0xbd   : > { %1746 = vmatpush1.msra.mxu0 %v1615_v61  ;;  %1859 = vmatpush1.msra.mxu1 %v1617_v62 }
  0xbe   : > { %15606 = vmatmul.mubr.msk.f32.gmra.mxu0 %vm588_vm1, %v20219_v26  ;;  %15616 = vmatmul.mubr.msk.f32.gmra.mxu1 %vm588_vm1, %v20219_v26  ;;  %v1643_v26 = vld [vmem:[#allocation2 + $0x5e0] sm:$0xff] }
  0xbf   : > { %1747 = vmatprep.subr.mxu0 %v1608_v63  ;;  %1860 = vmatprep.subr.mxu1 %v1610_v1 }
  0xc0   : > { %1748 = vmatpush1.msra.mxu0 %v1607_v2  ;;  %1861 = vmatpush1.msra.mxu1 %v1609_v3 }
  0xc1   : > { %1749 = vmatprep.subr.mxu0 %v1600_v4  ;;  %1862 = vmatprep.subr.mxu1 %v1602_v5 }
  0xc2   : > { %1750 = vmatpush1.msra.mxu0 %v1599_v6  ;;  %1783 = vmatprep.mubr.f32.mxu0 %v26267_v0 }
  0xc3   : > { %1863 = vmatpush1.msra.mxu1 %v1601_v7  ;;  %1896 = vmatprep.mubr.f32.mxu1 %v26267_v0 }
  0xc4   : > { %15619 = vmatmul.mubr.msk.f32.vlgmr.msra.gmra.mxu0 %vm588_vm1, %v20284_v8  ;;  %15629 = vmatmul.mubr.msk.f32.vlgmr.msra.gmra.mxu1 %vm588_vm1, %v20284_v8 }
  0xc5   : > { %1789 = vmatprep.mubr.f32.mxu0 %v26267_v0  ;;  %1902 = vmatprep.mubr.f32.mxu1 %v26267_v0 }
  0xc6   : > { %15637 = vmatprep.subr.msk.mxu0 %vm613_vm0, %v1668_v9  ;;  %15647 = vmatprep.subr.msk.mxu1 %vm613_vm0, %v1670_v10 }
  0xc7   : > { %15638 = vmatpush1.msk.msra.mxu0 %vm613_vm0, %v1667_v11  ;;  %15648 = vmatpush1.msk.msra.mxu1 %vm613_vm0, %v1669_v12 }
  0xc8   : > { %15620 = vmatmul.mubr.msk.f32.gmra.mxu0 %vm588_vm1, %v20289_v13  ;;  %15630 = vmatmul.mubr.msk.f32.gmra.mxu1 %vm588_vm1, %v20289_v13 }
  0xc9   : > { %1795 = vmatprep.mubr.f32.mxu0 %v26267_v0  ;;  %1908 = vmatprep.mubr.f32.mxu1 %v26267_v0 }
  0xca   : > { %1961 = vmatprep.subr.mxu0 %v1660_v14  ;;  %2074 = vmatprep.subr.mxu1 %v1662_v15 }
  0xcb   : > { %1962 = vmatpush1.msra.mxu0 %v1659_v16  ;;  %2075 = vmatpush1.msra.mxu1 %v1661_v17 }
  0xcc   : > { %15621 = vmatmul.mubr.msk.f32.gmra.mxu0 %vm588_vm1, %v20300_v18  ;;  %15631 = vmatmul.mubr.msk.f32.gmra.mxu1 %vm588_vm1, %v20300_v18 }
  0xcd   : > { %1801 = vmatprep.mubr.f32.mxu0 %v26267_v0  ;;  %1914 = vmatprep.mubr.f32.mxu1 %v26267_v0 }
  0xce   : > { %1963 = vmatprep.subr.mxu0 %v1652_v19  ;;  %2076 = vmatprep.subr.mxu1 %v1654_v20 }
  0xcf   : > { %1964 = vmatpush1.msra.mxu0 %v1651_v21  ;;  %2077 = vmatpush1.msra.mxu1 %v1653_v22 }
  0xd0   : > { %15622 = vmatmul.mubr.msk.f32.gmra.mxu0 %vm588_vm1, %v20311_v23  ;;  %15632 = vmatmul.mubr.msk.f32.gmra.mxu1 %vm588_vm1, %v20311_v23 }
  0xd1   : > { %1807 = vmatprep.mubr.f32.mxu0 %v26267_v0  ;;  %1920 = vmatprep.mubr.f32.mxu1 %v26267_v0 }
  0xd2   : > { %1965 = vmatprep.subr.mxu0 %v1644_v24  ;;  %2078 = vmatprep.subr.mxu1 %v1646_v25 }
  0xd3   : > { %1966 = vmatpush1.msra.mxu0 %v1643_v26  ;;  %2079 = vmatpush1.msra.mxu1 %v1645_v27 }
  0xd4   : > { %15623 = vmatmul.mubr.msk.f32.gmra.mxu0 %vm588_vm1, %v20320_v28  ;;  %15633 = vmatmul.mubr.msk.f32.gmra.mxu1 %vm588_vm1, %v20320_v28 }
  0xd5   : > { %1813 = vmatprep.mubr.f32.mxu0 %v26267_v0  ;;  %1926 = vmatprep.mubr.f32.mxu1 %v26267_v0 }
  0xd6   : > { %1967 = vmatprep.subr.mxu0 %v1636_v29  ;;  %2080 = vmatprep.subr.mxu1 %v1638_v30 }
  0xd7   : > { %1968 = vmatpush1.msra.mxu0 %v1635_v31  ;;  %2081 = vmatpush1.msra.mxu1 %v1637_v32 }
  0xd8   : > { %15624 = vmatmul.mubr.msk.f32.gmra.mxu0 %vm588_vm1, %v20329_v33  ;;  %15634 = vmatmul.mubr.msk.f32.gmra.mxu1 %vm588_vm1, %v20329_v33 }
  0xd9   : > { %1819 = vmatprep.mubr.f32.mxu0 %v26267_v0  ;;  %1932 = vmatprep.mubr.f32.mxu1 %v26267_v0 }
  0xda   : > { %1969 = vmatprep.subr.mxu0 %v1628_v34  ;;  %2082 = vmatprep.subr.mxu1 %v1630_v35 }
  0xdb   : > { %1970 = vmatpush1.msra.mxu0 %v1627_v36  ;;  %2083 = vmatpush1.msra.mxu1 %v1629_v37 }
  0xdc   : > { %15625 = vmatmul.mubr.msk.f32.gmra.mxu0 %vm588_vm1, %v20338_v38  ;;  %15635 = vmatmul.mubr.msk.f32.gmra.mxu1 %vm588_vm1, %v20338_v38 }
  0xdd   : > { %1971 = vmatprep.subr.mxu0 %v1620_v39  ;;  %2084 = vmatprep.subr.mxu1 %v1622_v40 }
  0xde   : > { %1825 = vmatprep.mubr.f32.mxu0 %v26267_v0  ;;  %1938 = vmatprep.mubr.f32.mxu1 %v26267_v0 }
  0xdf   : > { %1972 = vmatpush1.msra.mxu0 %v1619_v41  ;;  %2085 = vmatpush1.msra.mxu1 %v1621_v42 }
  0xe0   : > { %15626 = vmatmul.mubr.msk.f32.gmra.mxu0 %vm588_vm1, %v20347_v43  ;;  %15636 = vmatmul.mubr.msk.f32.gmra.mxu1 %vm588_vm1, %v20347_v43 }
  0xe1   : > { %1973 = vmatprep.subr.mxu0 %v1612_v44  ;;  %2086 = vmatprep.subr.mxu1 %v1614_v45 }
  0xe2   : > { %1974 = vmatpush1.msra.mxu0 %v1611_v46  ;;  %2087 = vmatpush1.msra.mxu1 %v1613_v47 }
  0xe3   : > { %1975 = vmatprep.subr.mxu0 %v1604_v48  ;;  %2088 = vmatprep.subr.mxu1 %v1606_v49 }
  0xe4   : > { %1976 = vmatpush1.msra.mxu0 %v1603_v50  ;;  %2009 = vmatprep.mubr.f32.mxu0 %v26267_v0 }
  0xe5   : > { %2089 = vmatpush1.msra.mxu1 %v1605_v51  ;;  %2122 = vmatprep.mubr.f32.mxu1 %v26267_v0 }
  0xe6   : > { %15639 = vmatmul.mubr.msk.f32.vlgmr.msra.gmra.mxu0 %vm588_vm1, %v20284_v8  ;;  %15649 = vmatmul.mubr.msk.f32.vlgmr.msra.gmra.mxu1 %vm588_vm1, %v20284_v8 }
  0xe7   : > { %2015 = vmatprep.mubr.f32.mxu0 %v26267_v0  ;;  %2128 = vmatprep.mubr.f32.mxu1 %v26267_v0 }
  0xea   : > { %15640 = vmatmul.mubr.msk.f32.gmra.mxu0 %vm588_vm1, %v20289_v13  ;;  %15650 = vmatmul.mubr.msk.f32.gmra.mxu1 %vm588_vm1, %v20289_v13 }
  0xeb   : > { %2021 = vmatprep.mubr.f32.mxu0 %v26267_v0  ;;  %2134 = vmatprep.mubr.f32.mxu1 %v26267_v0 }
  0xee   : > { %15641 = vmatmul.mubr.msk.f32.gmra.mxu0 %vm588_vm1, %v20300_v18  ;;  %15651 = vmatmul.mubr.msk.f32.gmra.mxu1 %vm588_vm1, %v20300_v18 }
  0xef   : > { %2027 = vmatprep.mubr.f32.mxu0 %v26267_v0  ;;  %2140 = vmatprep.mubr.f32.mxu1 %v26267_v0 }
  0xf2   : > { %15642 = vmatmul.mubr.msk.f32.gmra.mxu0 %vm588_vm1, %v20311_v23  ;;  %15652 = vmatmul.mubr.msk.f32.gmra.mxu1 %vm588_vm1, %v20311_v23 }
  0xf3   : > { %2033 = vmatprep.mubr.f32.mxu0 %v26267_v0  ;;  %2146 = vmatprep.mubr.f32.mxu1 %v26267_v0 }
  0xf6   : > { %15643 = vmatmul.mubr.msk.f32.gmra.mxu0 %vm588_vm1, %v20320_v28  ;;  %15653 = vmatmul.mubr.msk.f32.gmra.mxu1 %vm588_vm1, %v20320_v28 }
  0xf7   : > { %2039 = vmatprep.mubr.f32.mxu0 %v26267_v0  ;;  %2152 = vmatprep.mubr.f32.mxu1 %v26267_v0 }
  0xfa   : > { %15644 = vmatmul.mubr.msk.f32.gmra.mxu0 %vm588_vm1, %v20329_v33  ;;  %15654 = vmatmul.mubr.msk.f32.gmra.mxu1 %vm588_vm1, %v20329_v33 }
  0xfb   : > { %2045 = vmatprep.mubr.f32.mxu0 %v26267_v0  ;;  %2158 = vmatprep.mubr.f32.mxu1 %v26267_v0 }
  0xfc   : > { %v20397_v52 = vpop.f32.mrf.mxu0  ;;  %v20399_v53 = vpop.f32.mrf.mxu1 }
  0xfe   : > { %15645 = vmatmul.mubr.msk.f32.gmra.mxu0 %vm588_vm1, %v20338_v38  ;;  %15655 = vmatmul.mubr.msk.f32.gmra.mxu1 %vm588_vm1, %v20338_v38  ;;  %v20405_v54 = vpop.f32.mrf.mxu0  ;;  %v20407_v55 = vpop.f32.mrf.mxu1 }
  0xff   : > { %2051 = vmatprep.mubr.f32.mxu0 %v26267_v0  ;;  %2164 = vmatprep.mubr.f32.mxu1 %v26267_v0 }
 0x100   : > { %v20411_v56 = vpop.f32.mrf.mxu0  ;;  %v20413_v57 = vpop.f32.mrf.mxu1 }
 0x102   : > { %15646 = vmatmul.mubr.msk.f32.gmra.mxu0 %vm588_vm1, %v20347_v43  ;;  %15656 = vmatmul.mubr.msk.f32.gmra.mxu1 %vm588_vm1, %v20347_v43  ;;  %v20419_v58 = vpop.f32.mrf.mxu0  ;;  %v20421_v59 = vpop.f32.mrf.mxu1 }
 0x103   : > { %2518 = vmatprep.mubr.f32.mxu0 %v26267_v0  ;;  %2607 = vmatprep.mubr.f32.mxu1 %v26267_v0 }
 0x104   : > { %v20425_v60 = vpop.f32.mrf.mxu0  ;;  %v20427_v61 = vpop.f32.mrf.mxu1 }
 0x106   : > { %v20429_v62 = vpop.f32.mrf.mxu0  ;;  %v20431_v63 = vpop.f32.mrf.mxu1 }
 0x108   : > { %v20433_v1 = vpop.f32.mrf.mxu0  ;;  %v20435_v2 = vpop.f32.mrf.mxu1 }
 0x10a   : > { %v20437_v3 = vpop.f32.mrf.mxu0  ;;  %v20439_v4 = vpop.f32.mrf.mxu1 }
 0x10c   : > { %v20441_v5 = vpop.f32.mrf.mxu0  ;;  %v20443_v6 = vpop.f32.mrf.mxu1 }
 0x10e   : > { %v20445_v7 = vpop.f32.mrf.mxu0  ;;  %v20447_v8 = vpop.f32.mrf.mxu1 }
 0x110   : > { %v20449_v9 = vpop.f32.mrf.mxu0  ;;  %v20451_v10 = vpop.f32.mrf.mxu1 }
 0x112   : > { %v20453_v11 = vpop.f32.mrf.mxu0  ;;  %v20455_v12 = vpop.f32.mrf.mxu1 }
 0x114   : > { %v20457_v13 = vpop.f32.mrf.mxu0  ;;  %v20459_v14 = vpop.f32.mrf.mxu1 }
 0x115   : > { %26291 = vst [vmem:[#allocation8_spill] sm:$0xff] %v20457_v13  ;;  %26292 = vst [vmem:[#allocation9_spill] sm:$0xff] %v20459_v14 }
 0x116   : > { %v20461_v15 = vpop.f32.mrf.mxu0  ;;  %v20463_v16 = vpop.f32.mrf.mxu1 }
 0x117   : > { %26293 = vst [vmem:[#allocation10_spill] sm:$0xff] %v20461_v15  ;;  %26294 = vst [vmem:[#allocation11_spill] sm:$0xff] %v20463_v16 }
 0x118   : > { %v20465_v17 = vpop.f32.mrf.mxu0  ;;  %v20467_v18 = vpop.f32.mrf.mxu1 }
 0x119   : > { %26295 = vst [vmem:[#allocation12_spill] sm:$0xff] %v20465_v17  ;;  %26296 = vst [vmem:[#allocation13_spill] sm:$0xff] %v20467_v18 }
 0x11a   : > { %v20469_v19 = vpop.f32.mrf.mxu0  ;;  %v20471_v20 = vpop.f32.mrf.mxu1 }
 0x11b   : > { %26297 = vst [vmem:[#allocation14_spill] sm:$0xff] %v20469_v19  ;;  %26298 = vst [vmem:[#allocation15_spill] sm:$0xff] %v20471_v20 }
 0x11e   : > { %v20473_v21 = vpop.f32.mrf.mxu0  ;;  %v20475_v22 = vpop.f32.mrf.mxu1 }
 0x11f   : > { %26299 = vst [vmem:[#allocation16_spill] sm:$0xff] %v20473_v21  ;;  %26300 = vst [vmem:[#allocation17_spill] sm:$0xff] %v20475_v22 }
 0x120   : > { %v20477_v23 = vpop.f32.mrf.mxu0  ;;  %v20479_v24 = vpop.f32.mrf.mxu1 }
 0x121   : > { %26301 = vst [vmem:[#allocation18_spill] sm:$0xff] %v20477_v23  ;;  %26302 = vst [vmem:[#allocation19_spill] sm:$0xff] %v20479_v24 }
 0x122   : > { %v20481_v25 = vpop.f32.mrf.mxu0  ;;  %v20483_v26 = vpop.f32.mrf.mxu1 }
 0x123   : > { %26303 = vst [vmem:[#allocation20_spill] sm:$0xff] %v20481_v25  ;;  %26304 = vst [vmem:[#allocation21_spill] sm:$0xff] %v20483_v26 }
 0x124   : > { %v20485_v27 = vpop.f32.mrf.mxu0  ;;  %v20487_v28 = vpop.f32.mrf.mxu1 }
 0x125   : > { %26305 = vst [vmem:[#allocation22_spill] sm:$0xff] %v20485_v27  ;;  %26306 = vst [vmem:[#allocation23_spill] sm:$0xff] %v20487_v28 }
 0x126   : > { %v20489_v29 = vpop.f32.mrf.mxu0  ;;  %v20491_v30 = vpop.f32.mrf.mxu1 }
 0x127   : > { %26307 = vst [vmem:[#allocation24_spill] sm:$0xff] %v20489_v29  ;;  %26308 = vst [vmem:[#allocation25_spill] sm:$0xff] %v20491_v30 }
 0x128   : > { %v20493_v31 = vpop.f32.mrf.mxu0  ;;  %v20495_v32 = vpop.f32.mrf.mxu1 }
 0x129   : > { %26309 = vst [vmem:[#allocation26_spill] sm:$0xff] %v20493_v31  ;;  %26310 = vst [vmem:[#allocation27_spill] sm:$0xff] %v20495_v32 }
 0x12a   : > { %v20497_v33 = vpop.f32.mrf.mxu0  ;;  %v20499_v34 = vpop.f32.mrf.mxu1 }
 0x12b   : > { %26311 = vst [vmem:[#allocation28_spill] sm:$0xff] %v20497_v33  ;;  %26312 = vst [vmem:[#allocation29_spill] sm:$0xff] %v20499_v34 }
 0x12c   : > { %v20501_v35 = vpop.f32.mrf.mxu0  ;;  %v20503_v36 = vpop.f32.mrf.mxu1 }
 0x12d   : > { %26313 = vst [vmem:[#allocation30_spill] sm:$0xff] %v20501_v35  ;;  %26314 = vst [vmem:[#allocation31_spill] sm:$0xff] %v20503_v36 }
 0x12e   : > { %v20505_v37 = vpop.f32.mrf.mxu0  ;;  %v20507_v38 = vpop.f32.mrf.mxu1 }
 0x12f   : > { %26315 = vst [vmem:[#allocation32_spill] sm:$0xff] %v20505_v37  ;;  %26316 = vst [vmem:[#allocation33_spill] sm:$0xff] %v20507_v38 }
 0x130   : > { %v20509_v39 = vpop.f32.mrf.mxu0  ;;  %v20511_v40 = vpop.f32.mrf.mxu1 }
 0x131   : > { %26317 = vst [vmem:[#allocation34_spill] sm:$0xff] %v20509_v39  ;;  %26318 = vst [vmem:[#allocation35_spill] sm:$0xff] %v20511_v40 }
 0x132   : > { %v20513_v41 = vpop.f32.mrf.mxu0  ;;  %v20515_v42 = vpop.f32.mrf.mxu1 }
 0x133   : > { %26319 = vst [vmem:[#allocation36_spill] sm:$0xff] %v20513_v41  ;;  %26320 = vst [vmem:[#allocation37_spill] sm:$0xff] %v20515_v42 }
 0x134   : > { %v20517_v43 = vpop.f32.mrf.mxu0  ;;  %v20519_v44 = vpop.f32.mrf.mxu1 }
 0x135   : > { %26321 = vst [vmem:[#allocation38_spill] sm:$0xff] %v20517_v43  ;;  %26322 = vst [vmem:[#allocation39_spill] sm:$0xff] %v20519_v44 }
 0x136   : > { %v20521_v45 = vpop.f32.mrf.mxu0  ;;  %v20523_v46 = vpop.f32.mrf.mxu1 }
 0x137   : > { %26323 = vst [vmem:[#allocation40_spill] sm:$0xff] %v20521_v45  ;;  %26324 = vst [vmem:[#allocation41_spill] sm:$0xff] %v20523_v46 }
 0x138   : > { %v20525_v47 = vpop.f32.mrf.mxu0  ;;  %v20527_v48 = vpop.f32.mrf.mxu1 }
 0x139   : > { %26325 = vst [vmem:[#allocation42_spill] sm:$0xff] %v20525_v47  ;;  %26326 = vst [vmem:[#allocation43_spill] sm:$0xff] %v20527_v48 }
 0x13a   : > { %v20529_v49 = vpop.f32.mrf.mxu0  ;;  %v20531_v50 = vpop.f32.mrf.mxu1 }
 0x13b   : > { %26327 = vst [vmem:[#allocation44_spill] sm:$0xff] %v20529_v49  ;;  %26328 = vst [vmem:[#allocation45_spill] sm:$0xff] %v20531_v50 }
 0x13c   : > { %v20533_v51 = vpop.f32.mrf.mxu0  ;;  %v20535_v0 = vpop.f32.mrf.mxu1 }
 0x13d   : > { %26329 = vst [vmem:[#allocation46_spill] sm:$0xff] %v20533_v51  ;;  %26330 = vst [vmem:[#allocation47_spill] sm:$0xff] %v20535_v0 }
 0x140   : > { %v20537_v42 = vpop.f32.mrf.mxu0  ;;  %v20539_v43 = vpop.f32.mrf.mxu1 }
 0x141   : > { %v1318_v14 = vadd.f32 %v20539_v43, %v20399_v53 }
 0x142   : > { %v20541_v44 = vpop.f32.mrf.mxu0  ;;  %v20543_v45 = vpop.f32.mrf.mxu1 }
 0x144   : > { %v20545_v46 = vpop.f32.mrf.mxu0  ;;  %v20547_v47 = vpop.f32.mrf.mxu1 }
 0x145   : > { %v1324_v53 = vadd.f32 %v20547_v47, %v20413_v57 }
 0x146   : > { %v20549_v48 = vpop.f32.mrf.mxu0  ;;  %v20551_v49 = vpop.f32.mrf.mxu1 }
 0x148   : > { %v20553_v50 = vpop.f32.mrf.mxu0  ;;  %v20555_v51 = vpop.f32.mrf.mxu1 }
 0x14a   : > { %v20557_v0 = vpop.f32.mrf.mxu0  ;;  %v20559_v41 = vpop.f32.mrf.mxu1 }
 0x14b   : > { %v1332_v57 = vadd.f32 %v20559_v41, %v20431_v63 }
 0x14c   : > { %v20561_v40 = vpop.f32.mrf.mxu0  ;;  %v20563_v39 = vpop.f32.mrf.mxu1 }
 0x14e   : > { %v20565_v38 = vpop.f32.mrf.mxu0  ;;  %v20567_v37 = vpop.f32.mrf.mxu1 }
 0x150   : > { %v20569_v36 = vpop.f32.mrf.mxu0  ;;  %v20571_v35 = vpop.f32.mrf.mxu1 }
 0x152   : > { %v20573_v34 = vpop.f32.mrf.mxu0  ;;  %v20575_v33 = vpop.f32.mrf.mxu1 }
 0x154   : > { %v20577_v32 = vpop.f32.mrf.mxu0  ;;  %v20579_v31 = vpop.f32.mrf.mxu1 }
 0x156   : > { %v20581_v30 = vpop.f32.mrf.mxu0  ;;  %v20583_v29 = vpop.f32.mrf.mxu1 }
 0x158   : > { %v20585_v28 = vpop.f32.mrf.mxu0  ;;  %v20587_v27 = vpop.f32.mrf.mxu1 }
 0x159   : > { %26331 = vst [vmem:[#allocation48_spill] sm:$0xff] %v20585_v28  ;;  %26332 = vst [vmem:[#allocation49_spill] sm:$0xff] %v20587_v27 }
 0x15a   : > { %v20589_v26 = vpop.f32.mrf.mxu0  ;;  %v20591_v25 = vpop.f32.mrf.mxu1 }
 0x15b   : > { %26333 = vst [vmem:[#allocation50_spill] sm:$0xff] %v20589_v26  ;;  %26334 = vst [vmem:[#allocation51_spill] sm:$0xff] %v20591_v25 }
 0x15c   : > { %v20593_v24 = vpop.f32.mrf.mxu0  ;;  %v20595_v23 = vpop.f32.mrf.mxu1 }
 0x15d   : > { %26335 = vst [vmem:[#allocation52_spill] sm:$0xff] %v20593_v24  ;;  %26336 = vst [vmem:[#allocation53_spill] sm:$0xff] %v20595_v23 }
 0x15e   : > { %v20597_v22 = vpop.f32.mrf.mxu0  ;;  %v20599_v21 = vpop.f32.mrf.mxu1 }
 0x15f   : > { %26337 = vst [vmem:[#allocation54_spill] sm:$0xff] %v20597_v22  ;;  %26338 = vst [vmem:[#allocation55_spill] sm:$0xff] %v20599_v21  ;;  %v2237_v21 = vlaneseq }
 0x162   : > { %v20601_v20 = vpop.f32.mrf.mxu0  ;;  %v20603_v19 = vpop.f32.mrf.mxu1 }
 0x163   : > { %26339 = vst [vmem:[#allocation56_spill] sm:$0xff] %v20601_v20  ;;  %26340 = vst [vmem:[#allocation57_spill] sm:$0xff] %v20603_v19 }
 0x164   : > { %v20605_v18 = vpop.f32.mrf.mxu0  ;;  %v20607_v17 = vpop.f32.mrf.mxu1 }
 0x165   : > { %26341 = vst [vmem:[#allocation58_spill] sm:$0xff] %v20605_v18  ;;  %26342 = vst [vmem:[#allocation59_spill] sm:$0xff] %v20607_v17 }
 0x166   : > { %v20609_v16 = vpop.f32.mrf.mxu0  ;;  %v20611_v26 = vpop.f32.mrf.mxu1 }
 0x167   : > { %26343 = vst [vmem:[#allocation60_spill] sm:$0xff] %v20609_v16  ;;  %26344 = vst [vmem:[#allocation61_spill] sm:$0xff] %v20611_v26  ;;  %v20629_v16 = vshrl.u32 %v2237_v21, 7 }
 0x168   : > { %v20613_v25 = vpop.f32.mrf.mxu0  ;;  %v20615_v24 = vpop.f32.mrf.mxu1 }
 0x169   : > { %26345 = vst [vmem:[#allocation62_spill] sm:$0xff] %v20613_v25  ;;  %26346 = vst [vmem:[#allocation63_spill] sm:$0xff] %v20615_v24 }
 0x16a   : > { %v20617_v23 = vpop.f32.mrf.mxu0  ;;  %v20619_v22 = vpop.f32.mrf.mxu1  ;;  %26353 = vst [vmem:[#allocation70_spill] sm:$0xff] %v20629_v16 }
 0x16b   : > { %26347 = vst [vmem:[#allocation64_spill] sm:$0xff] %v20617_v23  ;;  %26348 = vst [vmem:[#allocation65_spill] sm:$0xff] %v20619_v22 }
 0x16c   : > { %v20621_v20 = vpop.f32.mrf.mxu0  ;;  %v20623_v19 = vpop.f32.mrf.mxu1 }
 0x16d   : > { %26349 = vst [vmem:[#allocation66_spill] sm:$0xff] %v20621_v20  ;;  %26350 = vst [vmem:[#allocation67_spill] sm:$0xff] %v20623_v19 }
 0x16e   : > { %v20625_v18 = vpop.f32.mrf.mxu0  ;;  %v20627_v17 = vpop.f32.mrf.mxu1 }
 0x16f   : > { %26351 = vst [vmem:[#allocation68_spill] sm:$0xff] %v20625_v18  ;;  %26352 = vst [vmem:[#allocation69_spill] sm:$0xff] %v20627_v17  ;;  %v26372_v18 = vsub.s32 0, %v20629_v16 }
 0x170   : > { %v20631_v26 = vpop.f32.mrf.mxu0  ;;  %v20633_v25 = vpop.f32.mrf.mxu1 }
 0x171   : > { %26354 = vst [vmem:[#allocation71_spill] sm:$0xff] %v20631_v26  ;;  %26355 = vst [vmem:[#allocation72_spill] sm:$0xff] %v20633_v25  ;;  %v2235_v25 = vld [vmem:[%s26256_s2] sm:$0xff] }
 0x172   : > { %v20635_v24 = vpop.f32.mrf.mxu0  ;;  %v20637_v23 = vpop.f32.mrf.mxu1 }
 0x173   : > { %26356 = vst [vmem:[#allocation73_spill] sm:$0xff] %v20635_v24  ;;  %26357 = vst [vmem:[#allocation74_spill] sm:$0xff] %v20637_v23 }
 0x174   : > { %v20639_v22 = vpop.f32.mrf.mxu0  ;;  %v20641_v15 = vpop.f32.mrf.mxu1 }
 0x175   : > { %26358 = vst [vmem:[#allocation75_spill] sm:$0xff] %v20639_v22  ;;  %26359 = vst [vmem:[#allocation76_spill] sm:$0xff] %v20641_v15 }
 0x176   : > { %v20645_v20 = vpop.f32.mrf.mxu0  ;;  %v20647_v21 = vpop.f32.mrf.mxu1 }
 0x177   : > { %26360 = vst [vmem:[#allocation77_spill] sm:$0xff] %v20645_v20  ;;  %26361 = vst [vmem:[#allocation78_spill] sm:$0xff] %v20647_v21 }
 0x178   : > { %v20651_v17 = vpop.f32.mrf.mxu0  ;;  %v20653_v24 = vpop.f32.mrf.mxu1 }
 0x179   : > { %26362 = vst [vmem:[#allocation79_spill] sm:$0xff] %v20651_v17  ;;  %26363 = vst [vmem:[#allocation80_spill] sm:$0xff] %v20653_v24 }
 0x17a   : > { %v20655_v23 = vpop.f32.mrf.mxu0  ;;  %v20657_v22 = vpop.f32.mrf.mxu1 }
 0x17b   : > { %26364 = vst [vmem:[#allocation81_spill] sm:$0xff] %v20655_v23  ;;  %26365 = vst [vmem:[#allocation82_spill] sm:$0xff] %v20657_v22  ;;  %v26375_v23 = vsub.s32 3, %v20629_v16  ;;  %v26376_v22 = vsub.s32 4, %v20629_v16 }
 0x17c   : > { %v20661_v15 = vpop.f32.mrf.mxu0  ;;  %v20663_v20 = vpop.f32.mrf.mxu1 }
 0x17d   : > { %26366 = vst [vmem:[#allocation83_spill] sm:$0xff] %v20661_v15  ;;  %26367 = vst [vmem:[#allocation84_spill] sm:$0xff] %v20663_v20  ;;  %v20680_v15 = vrot.slane %v2235_v25, %v26372_v18  ;;  %v26373_v20 = vsub.s32 2, %v20629_v16 }
 0x17e   : > { %v20668_v26 = vpop.f32.mrf.mxu0  ;;  %v20670_v17 = vpop.f32.mrf.mxu1 }
 0x17f   : > { %26368 = vst [vmem:[#allocation85_spill] sm:$0xff] %v20668_v26  ;;  %26369 = vst [vmem:[#allocation86_spill] sm:$0xff] %v20670_v17  ;;  %v20684_v21 = vrot.slane %v2235_v25, %v26373_v20  ;;  %v26374_v26 = vsub.s32 1, %v20629_v16  ;;  %v20692_v17 = vrot.slane %v2235_v25, %v26375_v23  ;;  %v1205_v20 = vadd.f32 %v20537_v42, %v20397_v52 }
 0x180   : > { %v20674_v24 = vpop.f32.mrf.mxu0  ;;  %v20676_v19 = vpop.f32.mrf.mxu1  ;;  %v26379_v23 = vsub.s32 7, %v20629_v16  ;;  %v1211_v52 = vadd.f32 %v20545_v46, %v20411_v56  ;;  %v1219_v56 = vadd.f32 %v20557_v0, %v20429_v62  ;;  %v1225_v0 = vadd.f32 %v20565_v38, %v20437_v3 }
 0x181   : > { %26370 = vst [vmem:[#allocation87_spill] sm:$0xff] %v20674_v24  ;;  %26371 = vst [vmem:[#allocation88_spill] sm:$0xff] %v20676_v19  ;;  %v20688_v27 = vrot.slane %v2235_v25, %v26374_v26  ;;  %v20696_v24 = vrot.slane %v2235_v25, %v26376_v22  ;;  %v26377_v19 = vsub.s32 6, %v20629_v16  ;;  %v26378_v26 = vsub.s32 5, %v20629_v16 }
 0x182   : > { %v20712_v13 = vrot.slane %v2235_v25, %v26379_v23  ;;  %v1207_v22 = vadd.f32 %v20541_v44, %v20405_v54  ;;  %v1217_v54 = vadd.f32 %v20553_v50, %v20425_v60  ;;  %v1223_v60 = vadd.f32 %v20561_v40, %v20433_v1 }
 0x183   : > { %v20700_v18 = vrot.slane %v2235_v25, %v26377_v19  ;;  %v20708_v28 = vrot.slane %v2235_v25, %v26378_v26  ;;  %v1320_v19 = vadd.f32 %v20543_v45, %v20407_v55  ;;  %v1213_v26 = vadd.f32 %v20549_v48, %v20419_v58 }
 0x184   : > { %v1785_v42 = vpop.f32.mrf.mxu0  ;;  %v1898_v43 = vpop.f32.mrf.mxu1  ;;  %v1326_v25 = vadd.f32 %v20551_v49, %v20421_v59  ;;  %v1330_v55 = vadd.f32 %v20555_v51, %v20427_v61  ;;  %v1336_v61 = vadd.f32 %v20563_v39, %v20435_v2  ;;  %v1338_v62 = vadd.f32 %v20567_v37, %v20439_v4 }
 0x185   : > { %v2171_v23 = vadd.f32 %v1785_v42, %v1205_v20  ;;  %v2173_v16 = vadd.f32 %v1898_v43, %v1318_v14  ;;  %v1229_v2 = vadd.f32 %v20569_v36, %v20441_v5  ;;  %v1342_v3 = vadd.f32 %v20571_v35, %v20443_v6 }
 0x186   : > { %v1787_v44 = vpop.f32.mrf.mxu0  ;;  %v1900_v45 = vpop.f32.mrf.mxu1  ;;  %v1231_v20 = vadd.f32 %v20573_v34, %v20445_v7  ;;  %v1235_v7 = vadd.f32 %v20577_v32, %v20449_v9  ;;  %v1237_v9 = vadd.f32 %v20581_v30, %v20453_v11 }
 0x187   : > { %v20735_v58 = vadd.f32 %v20680_v15, %v2171_v23  ;;  %v20738_v59 = vadd.f32 %v20684_v21, %v2173_v16  ;;  %v2172_v14 = vadd.f32 %v1787_v44, %v1207_v22  ;;  %v2174_v46 = vadd.f32 %v1900_v45, %v1320_v19 }
 0x188   : > { %v1791_v63 = vpop.f32.mrf.mxu0  ;;  %v1904_v41 = vpop.f32.mrf.mxu1  ;;  %v1344_v22 = vadd.f32 %v20575_v33, %v20447_v8  ;;  %v1348_v8 = vadd.f32 %v20579_v31, %v20451_v10  ;;  %v1350_v10 = vadd.f32 %v20583_v29, %v20455_v12  ;;  %v26409_v33 = vld [vmem:[#allocation60_spill] sm:$0xff] }
 0x189   : > { %v20751_v48 = vadd.f32 %v20688_v27, %v2172_v14  ;;  %v20754_v1 = vadd.f32 %v20692_v17, %v2174_v46  ;;  %v2179_v38 = vadd.f32 %v1791_v63, %v1211_v52  ;;  %v2181_v4 = vadd.f32 %v1904_v41, %v1324_v53  ;;  %v26399_v46 = vld [vmem:[#allocation55_spill] sm:$0xff] }
 0x18a   : > { %v1793_v37 = vpop.f32.mrf.mxu0  ;;  %v1906_v39 = vpop.f32.mrf.mxu1 }
 0x18b   : > { %v2180_v50 = vadd.f32 %v1793_v37, %v1213_v26  ;;  %v2182_v51 = vadd.f32 %v1906_v39, %v1326_v25  ;;  %v20767_v5 = vadd.f32 %v20680_v15, %v2179_v38  ;;  %v20770_v6 = vadd.f32 %v20684_v21, %v2181_v4  ;;  %v26382_v38 = vld [vmem:[#allocation8_spill] sm:$0xff]  ;;  %v26384_v39 = vld [vmem:[#allocation9_spill] sm:$0xff] }
 0x18c   : > { %v1797_v35 = vpop.f32.mrf.mxu0  ;;  %v1910_v36 = vpop.f32.mrf.mxu1  ;;  %v26383_v4 = vld [vmem:[#allocation48_spill] sm:$0xff] }
 0x18d   : > { %v20773_v19 = vadd.f32 %v20688_v27, %v2180_v50  ;;  %v20776_v52 = vadd.f32 %v20692_v17, %v2182_v51  ;;  %v2187_v53 = vadd.f32 %v1797_v35, %v1217_v54  ;;  %v2189_v42 = vadd.f32 %v1910_v36, %v1330_v55  ;;  %v26385_v50 = vld [vmem:[#allocation49_spill] sm:$0xff]  ;;  %v26386_v35 = vld [vmem:[#allocation10_spill] sm:$0xff] }
 0x18e   : > { %v1799_v43 = vpop.f32.mrf.mxu0  ;;  %v1912_v26 = vpop.f32.mrf.mxu1  ;;  %v1241_v37 = vadd.f32 %v26383_v4, %v26382_v38  ;;  %v1354_v51 = vadd.f32 %v26385_v50, %v26384_v39  ;;  %v26387_v36 = vld [vmem:[#allocation50_spill] sm:$0xff]  ;;  %v26393_v4 = vld [vmem:[#allocation52_spill] sm:$0xff]  ;;  %v26394_v50 = vld [vmem:[#allocation13_spill] sm:$0xff] }
 0x18f   : > { %26380 = vst [vmem:[#allocation89_spill] sm:$0xff] %v20773_v19  ;;  %26381 = vst [vmem:[#allocation90_spill] sm:$0xff] %v20776_v52  ;;  %v20787_v44 = vadd.f32 %v20680_v15, %v2187_v53  ;;  %v20790_v54 = vadd.f32 %v20684_v21, %v2189_v42  ;;  %v2188_v31 = vadd.f32 %v1799_v43, %v1219_v56  ;;  %v26388_v42 = vld [vmem:[#allocation11_spill] sm:$0xff]  ;;  %v26426_v19 = vld [vmem:[#allocation66_spill] sm:$0xff] }
 0x190   : > { %v2190_v32 = vadd.f32 %v1912_v26, %v1332_v57  ;;  %v1803_v55 = vpop.f32.mrf.mxu0  ;;  %v1916_v45 = vpop.f32.mrf.mxu1  ;;  %v1243_v53 = vadd.f32 %v26387_v36, %v26386_v35  ;;  %v26389_v43 = vld [vmem:[#allocation51_spill] sm:$0xff] }
 0x191   : > { %v2195_v63 = vadd.f32 %v1803_v55, %v1223_v60  ;;  %v2197_v41 = vadd.f32 %v1916_v45, %v1336_v61  ;;  %v20803_v11 = vadd.f32 %v20688_v27, %v2188_v31  ;;  %v1356_v26 = vadd.f32 %v26389_v43, %v26388_v42  ;;  %v26398_v31 = vld [vmem:[#allocation15_spill] sm:$0xff] }
 0x192   : > { %v20806_v12 = vadd.f32 %v20692_v17, %v2190_v32  ;;  %v1805_v29 = vpop.f32.mrf.mxu0  ;;  %v1918_v30 = vpop.f32.mrf.mxu1  ;;  %v26397_v32 = vld [vmem:[#allocation54_spill] sm:$0xff]  ;;  %v1362_v14 = vadd.f32 %v26399_v46, %v26398_v31  ;;  %v26402_v46 = vld [vmem:[#allocation17_spill] sm:$0xff] }
 0x193   : > { %v20809_v56 = vadd.f32 %v20680_v15, %v2195_v63  ;;  %v20812_v57 = vadd.f32 %v20684_v21, %v2197_v41  ;;  %v2196_v60 = vadd.f32 %v1805_v29, %v1225_v0  ;;  %v2198_v61 = vadd.f32 %v1918_v30, %v1338_v62  ;;  %v26392_v62 = vld [vmem:[#allocation12_spill] sm:$0xff]  ;;  %v26395_v29 = vld [vmem:[#allocation53_spill] sm:$0xff]  ;;  %v26396_v63 = vld [vmem:[#allocation14_spill] sm:$0xff] }
 0x194   : > { %v1809_v55 = vpop.f32.mrf.mxu0  ;;  %v1922_v45 = vpop.f32.mrf.mxu1  ;;  %v1247_v39 = vadd.f32 %v26393_v4, %v26392_v62  ;;  %v1360_v30 = vadd.f32 %v26395_v29, %v26394_v50  ;;  %v26403_v31 = vld [vmem:[#allocation57_spill] sm:$0xff] }
 0x195   : > { %v20823_v41 = vadd.f32 %v20688_v27, %v2196_v60  ;;  %v20826_v0 = vadd.f32 %v20692_v17, %v2198_v61  ;;  %v2203_v35 = vadd.f32 %v1809_v55, %v1229_v2  ;;  %v2205_v36 = vadd.f32 %v1922_v45, %v1342_v3 }
 0x196   : > { %v1811_v42 = vpop.f32.mrf.mxu0  ;;  %v1924_v43 = vpop.f32.mrf.mxu1  ;;  %v1249_v61 = vadd.f32 %v26397_v32, %v26396_v63  ;;  %v26400_v32 = vld [vmem:[#allocation16_spill] sm:$0xff]  ;;  %v20856_v29 = vadd.f32 %v26403_v31, %v26402_v46  ;;  %v26407_v46 = vld [vmem:[#allocation59_spill] sm:$0xff] }
 0x197   : > { %26390 = vst [vmem:[#allocation8_spill] sm:$0xff] %v20823_v41  ;;  %26391 = vst [vmem:[#allocation48_spill] sm:$0xff] %v20826_v0  ;;  %v2204_v38 = vadd.f32 %v1811_v42, %v1231_v20  ;;  %v2206_v60 = vadd.f32 %v1924_v43, %v1344_v22  ;;  %v20839_v62 = vadd.f32 %v20680_v15, %v2203_v35  ;;  %v26401_v63 = vld [vmem:[#allocation56_spill] sm:$0xff] }
 0x198   : > { %v20842_v2 = vadd.f32 %v20684_v21, %v2205_v36  ;;  %v1815_v3 = vpop.f32.mrf.mxu0  ;;  %v1928_v55 = vpop.f32.mrf.mxu1  ;;  %v20852_v50 = vadd.f32 %v26401_v63, %v26400_v32  ;;  %v26406_v63 = vld [vmem:[#allocation19_spill] sm:$0xff] }
 0x199   : > { %v20845_v45 = vadd.f32 %v20688_v27, %v2204_v38  ;;  %v20848_v20 = vadd.f32 %v20692_v17, %v2206_v60  ;;  %v2211_v22 = vadd.f32 %v1815_v3, %v1235_v7  ;;  %v2213_v4 = vadd.f32 %v1928_v55, %v1348_v8  ;;  %v26404_v3 = vld [vmem:[#allocation18_spill] sm:$0xff] }
 0x19a   : > { %v1817_v42 = vpop.f32.mrf.mxu0  ;;  %v1930_v38 = vpop.f32.mrf.mxu1  ;;  %v26405_v55 = vld [vmem:[#allocation58_spill] sm:$0xff]  ;;  %v20874_v31 = vadd.f32 %v26407_v46, %v26406_v63 }
 0x19b   : > { %v20863_v7 = vadd.f32 %v20680_v15, %v2211_v22  ;;  %v20866_v8 = vadd.f32 %v20684_v21, %v2213_v4  ;;  %v20870_v32 = vadd.f32 %v26405_v55, %v26404_v3  ;;  %v2212_v25 = vadd.f32 %v1817_v42, %v1237_v9  ;;  %v26408_v4 = vld [vmem:[#allocation20_spill] sm:$0xff]  ;;  %v26410_v3 = vld [vmem:[#allocation21_spill] sm:$0xff] }
 0x19c   : > { %v2214_v23 = vadd.f32 %v1930_v38, %v1350_v10  ;;  %v1821_v36 = vpop.f32.mrf.mxu0  ;;  %v1934_v43 = vpop.f32.mrf.mxu1  ;;  %v20880_v49 = vadd.f32 %v26409_v33, %v26408_v4  ;;  %v26411_v55 = vld [vmem:[#allocation61_spill] sm:$0xff]  ;;  %v26417_v4 = vld [vmem:[#allocation23_spill] sm:$0xff] }
 0x19d   : > { %v2219_v35 = vadd.f32 %v1821_v36, %v1241_v37  ;;  %v2221_v34 = vadd.f32 %v1934_v43, %v1354_v51  ;;  %v20884_v40 = vadd.f32 %v26411_v55, %v26410_v3  ;;  %v20887_v63 = vadd.f32 %v20688_v27, %v2212_v25  ;;  %v26415_v36 = vld [vmem:[#allocation22_spill] sm:$0xff]  ;;  %v26418_v25 = vld [vmem:[#allocation63_spill] sm:$0xff] }
 0x19e   : > { %v20890_v9 = vadd.f32 %v20692_v17, %v2214_v23  ;;  %v1823_v10 = vpop.f32.mrf.mxu0  ;;  %v1936_v42 = vpop.f32.mrf.mxu1  ;;  %v26416_v43 = vld [vmem:[#allocation62_spill] sm:$0xff]  ;;  %v20904_v3 = vadd.f32 %v26418_v25, %v26417_v4  ;;  %v26424_v4 = vld [vmem:[#allocation65_spill] sm:$0xff] }
 0x19f   : > { %26412 = vst [vmem:[#allocation9_spill] sm:$0xff] %v20887_v63  ;;  %v20893_v38 = vadd.f32 %v20680_v15, %v2219_v35  ;;  %v20896_v37 = vadd.f32 %v20684_v21, %v2221_v34  ;;  %v2220_v33 = vadd.f32 %v1823_v10, %v1243_v53  ;;  %v2222_v51 = vadd.f32 %v1936_v42, %v1356_v26  ;;  %v26421_v10 = vld [vmem:[#allocation24_spill] sm:$0xff]  ;;  %v26447_v34 = vld [vmem:[#allocation35_spill] sm:$0xff] }
 0x1a0   : > { %26413 = vst [vmem:[#allocation49_spill] sm:$0xff] %v20890_v9  ;;  %v20900_v46 = vadd.f32 %v26416_v43, %v26415_v36  ;;  %v1827_v22 = vpop.f32.mrf.mxu0  ;;  %v1940_v35 = vpop.f32.mrf.mxu1  ;;  %v26422_v42 = vld [vmem:[#allocation64_spill] sm:$0xff]  ;;  %v26423_v43 = vld [vmem:[#allocation25_spill] sm:$0xff] }
 0x1a1   : > { %26414 = vst [vmem:[#allocation10_spill] sm:$0xff] %v20896_v37  ;;  %v20911_v53 = vadd.f32 %v20688_v27, %v2220_v33  ;;  %v20914_v26 = vadd.f32 %v20692_v17, %v2222_v51  ;;  %v20918_v36 = vadd.f32 %v26422_v42, %v26421_v10  ;;  %v20922_v25 = vadd.f32 %v26424_v4, %v26423_v43  ;;  %v26425_v51 = vld [vmem:[#allocation26_spill] sm:$0xff]  ;;  %v26427_v10 = vld [vmem:[#allocation27_spill] sm:$0xff] }
 0x1a2   : > { %v2227_v55 = vadd.f32 %v1827_v22, %v1247_v39  ;;  %v2229_v23 = vadd.f32 %v1940_v35, %v1360_v30  ;;  %v1829_v16 = vpop.f32.mrf.mxu0  ;;  %v1942_v60 = vpop.f32.mrf.mxu1  ;;  %v20928_v0 = vadd.f32 %v26426_v19, %v26425_v51  ;;  %v26428_v42 = vld [vmem:[#allocation67_spill] sm:$0xff]  ;;  %v26431_v30 = vld [vmem:[#allocation28_spill] sm:$0xff]  ;;  %v26437_v4 = vld [vmem:[#allocation30_spill] sm:$0xff] }
 0x1a3   : > { %26419 = vst [vmem:[#allocation50_spill] sm:$0xff] %v20911_v53  ;;  %26420 = vst [vmem:[#allocation11_spill] sm:$0xff] %v20914_v26  ;;  %v2228_v47 = vadd.f32 %v1829_v16, %v1249_v61  ;;  %v2230_v52 = vadd.f32 %v1942_v60, %v1362_v14  ;;  %v20932_v41 = vadd.f32 %v26428_v42, %v26427_v10  ;;  %v26432_v22 = vld [vmem:[#allocation68_spill] sm:$0xff]  ;;  %v26433_v16 = vld [vmem:[#allocation29_spill] sm:$0xff] }
 0x1a4   : > { %v20935_v43 = vadd.f32 %v20680_v15, %v2227_v55  ;;  %v20938_v39 = vadd.f32 %v20684_v21, %v2229_v23  ;;  %v20942_v35 = vadd.f32 %v26432_v22, %v26431_v30  ;;  %v26434_v14 = vld [vmem:[#allocation69_spill] sm:$0xff]  ;;  %v26438_v15 = vld [vmem:[#allocation71_spill] sm:$0xff]  ;;  %v26440_v23 = vld [vmem:[#allocation72_spill] sm:$0xff] }
 0x1a5   : > { %v20946_v61 = vadd.f32 %v26434_v14, %v26433_v16  ;;  %v20949_v19 = vadd.f32 %v20688_v27, %v2228_v47  ;;  %v20952_v60 = vadd.f32 %v20692_v17, %v2230_v52  ;;  %v20956_v55 = vadd.f32 %v26438_v15, %v26437_v4  ;;  %v26439_v21 = vld [vmem:[#allocation31_spill] sm:$0xff]  ;;  %v26441_v16 = vld [vmem:[#allocation32_spill] sm:$0xff]  ;;  %v26442_v14 = vld [vmem:[#allocation73_spill] sm:$0xff] }
 0x1a6   : > { %26429 = vst [vmem:[#allocation51_spill] sm:$0xff] %v20935_v43  ;;  %26430 = vst [vmem:[#allocation12_spill] sm:$0xff] %v20938_v39  ;;  %v20960_v51 = vadd.f32 %v26440_v23, %v26439_v21  ;;  %v2011_v30 = vpop.f32.mrf.mxu0  ;;  %v2124_v22 = vpop.f32.mrf.mxu1  ;;  %v20970_v4 = vadd.f32 %v26442_v14, %v26441_v16  ;;  %v26443_v15 = vld [vmem:[#allocation33_spill] sm:$0xff]  ;;  %v26444_v21 = vld [vmem:[#allocation74_spill] sm:$0xff] }
 0x1a7   : > { %26435 = vst [vmem:[#allocation52_spill] sm:$0xff] %v20949_v19  ;;  %26436 = vst [vmem:[#allocation13_spill] sm:$0xff] %v20952_v60  ;;  %v2175_v17 = vadd.f32 %v2011_v30, %v20852_v50  ;;  %v2177_v52 = vadd.f32 %v2124_v22, %v20856_v29  ;;  %v20974_v23 = vadd.f32 %v26444_v21, %v26443_v15  ;;  %v26445_v10 = vld [vmem:[#allocation34_spill] sm:$0xff]  ;;  %v26446_v42 = vld [vmem:[#allocation75_spill] sm:$0xff] }
 0x1a8   : > { %v20978_v33 = vadd.f32 %v26446_v42, %v26445_v10  ;;  %v26448_v27 = vld [vmem:[#allocation76_spill] sm:$0xff]  ;;  %v2013_v47 = vpop.f32.mrf.mxu0  ;;  %v2126_v50 = vpop.f32.mrf.mxu1  ;;  %v26450_v15 = vld [vmem:[#allocation77_spill] sm:$0xff]  ;;  %v26452_v42 = vld [vmem:[#allocation78_spill] sm:$0xff] }
 0x1a9   : > { %v20982_v9 = vadd.f32 %v26448_v27, %v26447_v34  ;;  %v2281_v29 = vadd.f32 %v20696_v24, %v2175_v17  ;;  %v2283_v30 = vadd.f32 %v20700_v18, %v2177_v52  ;;  %v2176_v22 = vadd.f32 %v2013_v47, %v20870_v32  ;;  %v26449_v14 = vld [vmem:[#allocation36_spill] sm:$0xff]  ;;  %v26451_v10 = vld [vmem:[#allocation37_spill] sm:$0xff]  ;;  %v26453_v34 = vld [vmem:[#allocation38_spill] sm:$0xff] }
 0x1aa   : > { %v2178_v16 = vadd.f32 %v2126_v50, %v20874_v31  ;;  %v20990_v21 = vadd.f32 %v26450_v15, %v26449_v14  ;;  %v20994_v63 = vadd.f32 %v26452_v42, %v26451_v10  ;;  %v26454_v27 = vld [vmem:[#allocation79_spill] sm:$0xff]  ;;  %v26456_v17 = vld [vmem:[#allocation80_spill] sm:$0xff]  ;;  %v2017_v52 = vpop.f32.mrf.mxu0  ;;  %v2130_v32 = vpop.f32.mrf.mxu1  ;;  %v26458_v43 = vld [vmem:[#allocation81_spill] sm:$0xff] }
 0x1ab   : > { %v20998_v60 = vadd.f32 %v26454_v27, %v26453_v34  ;;  %v26455_v19 = vld [vmem:[#allocation39_spill] sm:$0xff]  ;;  %v2345_v47 = vmax.f32 %v2281_v29, 0.0  ;;  %v2347_v31 = vmax.f32 %v2283_v30, 0.0  ;;  %v2282_v50 = vadd.f32 %v20708_v28, %v2176_v22  ;;  %v26457_v15 = vld [vmem:[#allocation40_spill] sm:$0xff]  ;;  %v26459_v42 = vld [vmem:[#allocation41_spill] sm:$0xff] }
 0x1ac   : > { %v21002_v39 = vadd.f32 %v26456_v17, %v26455_v19  ;;  %v2284_v14 = vadd.f32 %v20712_v13, %v2178_v16  ;;  %v21008_v10 = vadd.f32 %v26458_v43, %v26457_v15  ;;  %v26460_v26 = vld [vmem:[#allocation82_spill] sm:$0xff]  ;;  %v2183_v27 = vadd.f32 %v2017_v52, %v20880_v49  ;;  %v2019_v17 = vpop.f32.mrf.mxu0  ;;  %v2132_v53 = vpop.f32.mrf.mxu1 }
 0x1ad   : > { %v21012_v34 = vadd.f32 %v26460_v26, %v26459_v42  ;;  %v2185_v19 = vadd.f32 %v2130_v32, %v20884_v40  ;;  %v26461_v29 = vmax.f32 %v20735_v58, 0.0  ;;  %v26462_v22 = vmax.f32 %v20738_v59, 0.0 }
 0x1ae   : > { %v2346_v43 = vmax.f32 %v2282_v50, 0.0  ;;  %v2348_v15 = vmax.f32 %v2284_v14, 0.0  ;;  %v2289_v37 = vadd.f32 %v20696_v24, %v2183_v27  ;;  %v2184_v49 = vadd.f32 %v2019_v17, %v20900_v46  ;;  %v2023_v52 = vpop.f32.mrf.mxu0  ;;  %v2136_v32 = vpop.f32.mrf.mxu1 }
 0x1af   : > { %v21018_v30 = vmax.f32 %v26461_v29, %v2345_v47  ;;  %v21022_v16 = vmax.f32 %v26462_v22, %v2347_v31  ;;  %v2291_v26 = vadd.f32 %v20700_v18, %v2185_v19  ;;  %v2186_v40 = vadd.f32 %v2132_v53, %v20904_v3 }
 0x1b0   : > { %v2191_v58 = vadd.f32 %v2023_v52, %v20918_v36  ;;  %v2193_v47 = vadd.f32 %v2136_v32, %v20922_v25  ;;  %v26463_v59 = vmax.f32 %v20751_v48, 0.0  ;;  %v26464_v50 = vmax.f32 %v20754_v1, 0.0  ;;  %v2025_v53 = vpop.f32.mrf.mxu0  ;;  %v2138_v36 = vpop.f32.mrf.mxu1  ;;  %v26467_v32 = vld [vmem:[#allocation42_spill] sm:$0xff] }
 0x1b1   : > { %v2353_v42 = vmax.f32 %v2289_v37, 0.0  ;;  %v2355_v27 = vmax.f32 %v2291_v26, 0.0  ;;  %v21039_v46 = vadd.f32 %v20708_v28, %v2184_v49  ;;  %v21042_v3 = vadd.f32 %v20712_v13, %v2186_v40 }
 0x1b2   : > { %v21032_v31 = vmax.f32 %v26463_v59, %v2346_v43  ;;  %v21036_v14 = vmax.f32 %v26464_v50, %v2348_v15  ;;  %v2297_v25 = vadd.f32 %v20696_v24, %v2191_v58  ;;  %v2299_v48 = vadd.f32 %v20700_v18, %v2193_v47  ;;  %v2029_v26 = vpop.f32.mrf.mxu0  ;;  %v2142_v49 = vpop.f32.mrf.mxu1  ;;  %v26469_v47 = vld [vmem:[#allocation43_spill] sm:$0xff] }
 0x1b3   : > { %v2192_v19 = vadd.f32 %v2025_v53, %v20928_v0  ;;  %v2194_v1 = vadd.f32 %v2138_v36, %v20932_v41  ;;  %v26465_v17 = vmax.f32 %v20767_v5, 0.0  ;;  %v26466_v29 = vmax.f32 %v20770_v6, 0.0  ;;  %v26468_v5 = vld [vmem:[#allocation83_spill] sm:$0xff]  ;;  %v26470_v6 = vld [vmem:[#allocation84_spill] sm:$0xff] }
 0x1b4   : > { %v2354_v43 = vmax.f32 %v21039_v46, 0.0  ;;  %v2356_v15 = vmax.f32 %v21042_v3, 0.0  ;;  %v2361_v40 = vmax.f32 %v2297_v25, 0.0  ;;  %v2363_v52 = vmax.f32 %v2299_v48, 0.0  ;;  %v2144_v53 = vpop.f32.mrf.mxu1  ;;  %v2438_v46 = vld [vmem:[%s26257_s3 + $0x8] sm:$0xff] }
 0x1b5   : > { %v21050_v37 = vmax.f32 %v26465_v17, %v2353_v42  ;;  %v21054_v22 = vmax.f32 %v26466_v29, %v2355_v27  ;;  %v2298_v0 = vadd.f32 %v20708_v28, %v2192_v19  ;;  %v2300_v41 = vadd.f32 %v20712_v13, %v2194_v1  ;;  %v2031_v27 = vpop.f32.mrf.mxu0 }
 0x1b6   : > { %v21062_v58 = vadd.f32 %v26468_v5, %v26467_v32  ;;  %v21066_v59 = vadd.f32 %v26470_v6, %v26469_v47  ;;  %v2199_v50 = vadd.f32 %v2029_v26, %v20942_v35  ;;  %v2201_v42 = vadd.f32 %v2142_v49, %v20946_v61  ;;  %v2148_v49 = vpop.f32.mrf.mxu1 }
 0x1b7   : > { %v26471_v36 = vmax.f32 %v20787_v44, 0.0  ;;  %v26472_v48 = vmax.f32 %v20790_v54, 0.0  ;;  %v2362_v1 = vmax.f32 %v2298_v0, 0.0  ;;  %v2364_v17 = vmax.f32 %v2300_v41, 0.0  ;;  %v2035_v26 = vpop.f32.mrf.mxu0 }
 0x1b8   : > { %v2305_v29 = vadd.f32 %v20696_v24, %v2199_v50  ;;  %v2307_v32 = vadd.f32 %v20700_v18, %v2201_v42  ;;  %v2200_v35 = vadd.f32 %v2031_v27, %v20956_v55  ;;  %v2202_v61 = vadd.f32 %v2144_v53, %v20960_v51 }
 0x1b9   : > { %v21072_v25 = vmax.f32 %v26471_v36, %v2361_v40  ;;  %v21076_v19 = vmax.f32 %v26472_v48, %v2363_v52  ;;  %v2207_v44 = vadd.f32 %v2035_v26, %v20970_v4  ;;  %v2209_v40 = vadd.f32 %v2148_v49, %v20974_v23  ;;  %v2037_v6 = vpop.f32.mrf.mxu0  ;;  %v2150_v4 = vpop.f32.mrf.mxu1  ;;  %v26479_v49 = vld [vmem:[#allocation45_spill] sm:$0xff] }
 0x1ba   : > { %v26473_v54 = vmax.f32 %v20803_v11, 0.0  ;;  %v26474_v0 = vmax.f32 %v20806_v12, 0.0  ;;  %v2369_v5 = vmax.f32 %v2305_v29, 0.0  ;;  %v2371_v47 = vmax.f32 %v2307_v32, 0.0 }
 0x1bb   : > { %v21093_v55 = vadd.f32 %v20708_v28, %v2200_v35  ;;  %v21096_v51 = vadd.f32 %v20712_v13, %v2202_v61  ;;  %v2313_v23 = vadd.f32 %v20696_v24, %v2207_v44  ;;  %v2315_v11 = vadd.f32 %v20700_v18, %v2209_v40  ;;  %v2154_v29 = vpop.f32.mrf.mxu1  ;;  %v26477_v61 = vld [vmem:[#allocation44_spill] sm:$0xff]  ;;  %v26480_v44 = vld [vmem:[#allocation86_spill] sm:$0xff] }
 0x1bc   : > { %v21086_v52 = vmax.f32 %v26473_v54, %v2362_v1  ;;  %v21090_v41 = vmax.f32 %v26474_v0, %v2364_v17  ;;  %v2208_v50 = vadd.f32 %v2037_v6, %v20978_v33  ;;  %v2210_v12 = vadd.f32 %v2150_v4, %v20982_v9  ;;  %v2041_v17 = vpop.f32.mrf.mxu0 }
 0x1bd   : > { %v26475_v42 = vmax.f32 %v20809_v56, 0.0  ;;  %v26476_v53 = vmax.f32 %v20812_v57, 0.0  ;;  %v2370_v48 = vmax.f32 %v21093_v55, 0.0  ;;  %v2372_v1 = vmax.f32 %v21096_v51, 0.0  ;;  %v26478_v56 = vld [vmem:[#allocation85_spill] sm:$0xff] }
 0x1be   : > { %v2377_v32 = vmax.f32 %v2313_v23, 0.0  ;;  %v2379_v35 = vmax.f32 %v2315_v11, 0.0  ;;  %v2314_v33 = vadd.f32 %v20708_v28, %v2208_v50  ;;  %v2316_v9 = vadd.f32 %v20712_v13, %v2210_v12  ;;  %v2043_v0 = vpop.f32.mrf.mxu0  ;;  %v26514_v55 = vld [vmem:[#allocation89_spill] sm:$0xff] }
 0x1bf   : > { %v21104_v27 = vmax.f32 %v26475_v42, %v2369_v5  ;;  %v21108_v36 = vmax.f32 %v26476_v53, %v2371_v47  ;;  %v1473_v26 = vadd.f32 %v26478_v56, %v26477_v61  ;;  %v1586_v57 = vadd.f32 %v26480_v44, %v26479_v49  ;;  %v2156_v5 = vpop.f32.mrf.mxu1 }
 0x1c0   : > { %v2215_v40 = vadd.f32 %v2041_v17, %v20990_v21  ;;  %v2217_v54 = vadd.f32 %v2154_v29, %v20994_v63  ;;  %v26481_v47 = vmax.f32 %v20839_v62, 0.0  ;;  %v26482_v4 = vmax.f32 %v20842_v2, 0.0  ;;  %v2047_v53 = vpop.f32.mrf.mxu0 }
 0x1c1   : > { %v2378_v11 = vmax.f32 %v2314_v33, 0.0  ;;  %v2380_v50 = vmax.f32 %v2316_v9, 0.0  ;;  %v2216_v21 = vadd.f32 %v2043_v0, %v20998_v60  ;;  %v2218_v63 = vadd.f32 %v2156_v5, %v21002_v39  ;;  %v2160_v17 = vpop.f32.mrf.mxu1 }
 0x1c2   : > { %v21122_v6 = vmax.f32 %v26481_v47, %v2377_v32  ;;  %v21126_v23 = vmax.f32 %v26482_v4, %v2379_v35  ;;  %v2321_v12 = vadd.f32 %v20696_v24, %v2215_v40  ;;  %v2323_v42 = vadd.f32 %v20700_v18, %v2217_v54  ;;  %v2049_v56 = vpop.f32.mrf.mxu0 }
 0x1c3   : > { %v2223_v62 = vadd.f32 %v2047_v53, %v21008_v10  ;;  %v2225_v29 = vadd.f32 %v2160_v17, %v21012_v34  ;;  %v26483_v2 = vmax.f32 %v20845_v45, 0.0  ;;  %v26484_v35 = vmax.f32 %v20848_v20, 0.0  ;;  %v2162_v49 = vpop.f32.mrf.mxu1  ;;  %v26490_v53 = vld [vmem:[#allocation88_spill] sm:$0xff] }
 0x1c4   : > { %v2385_v9 = vmax.f32 %v2321_v12, 0.0  ;;  %v2387_v61 = vmax.f32 %v2323_v42, 0.0  ;;  %v2322_v60 = vadd.f32 %v20708_v28, %v2216_v21  ;;  %v2324_v39 = vadd.f32 %v20712_v13, %v2218_v63  ;;  %v2053_v4 = vpop.f32.mrf.mxu0  ;;  %v26487_v21 = vld [vmem:[#allocation46_spill] sm:$0xff] }
 0x1c5   : > { %v21136_v32 = vmax.f32 %v26483_v2, %v2378_v11  ;;  %v21140_v33 = vmax.f32 %v26484_v35, %v2380_v50  ;;  %v2329_v10 = vadd.f32 %v20696_v24, %v2223_v62  ;;  %v2331_v34 = vadd.f32 %v20700_v18, %v2225_v29  ;;  %v2166_v11 = vpop.f32.mrf.mxu1 }
 0x1c6   : > { %v2224_v45 = vadd.f32 %v2049_v56, %v21062_v58  ;;  %v2226_v44 = vadd.f32 %v2162_v49, %v21066_v59  ;;  %v26485_v20 = vmax.f32 %v20863_v7, 0.0  ;;  %v26486_v54 = vmax.f32 %v20866_v8, 0.0  ;;  %v26488_v59 = vld [vmem:[#allocation87_spill] sm:$0xff]  ;;  %v2055_v29 = vpop.f32.mrf.mxu0 }
 0x1c7   : > { %v2386_v5 = vmax.f32 %v2322_v60, 0.0  ;;  %v2388_v47 = vmax.f32 %v2324_v39, 0.0  ;;  %v2393_v50 = vmax.f32 %v2329_v10, 0.0  ;;  %v2395_v12 = vmax.f32 %v2331_v34, 0.0  ;;  %v26489_v7 = vld [vmem:[#allocation47_spill] sm:$0xff]  ;;  %v2168_v2 = vpop.f32.mrf.mxu1 }
 0x1c8   : > { %v21150_v40 = vmax.f32 %v26485_v20, %v2385_v9  ;;  %v21154_v0 = vmax.f32 %v26486_v54, %v2387_v61  ;;  %v2330_v42 = vadd.f32 %v20708_v28, %v2224_v45  ;;  %v2332_v58 = vadd.f32 %v20712_v13, %v2226_v44  ;;  %v26492_v61 = vld [vmem:[#allocation10_spill] sm:$0xff]  ;;  %v26496_v54 = vld [vmem:[#allocation11_spill] sm:$0xff] }
 0x1c9   : > { %v1475_v63 = vadd.f32 %v26488_v59, %v26487_v21  ;;  %v1588_v17 = vadd.f32 %v26490_v53, %v26489_v7  ;;  %v2231_v62 = vadd.f32 %v2053_v4, %v1473_v26  ;;  %v2233_v8 = vadd.f32 %v2166_v11, %v1586_v57  ;;  %v26494_v26 = vld [vmem:[#allocation50_spill] sm:$0xff] }
 0x1ca   : > { %v26491_v35 = vmax.f32 %v20893_v38, 0.0  ;;  %v26493_v60 = vmax.f32 %v26492_v61, 0.0  ;;  %v2394_v56 = vmax.f32 %v2330_v42, 0.0  ;;  %v2396_v49 = vmax.f32 %v2332_v58, 0.0  ;;  %v26498_v42 = vld [vmem:[#allocation51_spill] sm:$0xff] }
 0x1cb   : > { %v2337_v10 = vadd.f32 %v20696_v24, %v2231_v62  ;;  %v2339_v34 = vadd.f32 %v20700_v18, %v2233_v8  ;;  %v2232_v45 = vadd.f32 %v2055_v29, %v1475_v63  ;;  %v2234_v44 = vadd.f32 %v2168_v2, %v1588_v17  ;;  %v26500_v24 = vld [vmem:[#allocation12_spill] sm:$0xff]  ;;  %v26504_v29 = vld [vmem:[#allocation13_spill] sm:$0xff] }
 0x1cc   : > { %v21164_v9 = vmax.f32 %v26491_v35, %v2393_v50  ;;  %v21168_v39 = vmax.f32 %v26493_v60, %v2395_v12  ;;  %v26495_v57 = vmax.f32 %v26494_v26, 0.0  ;;  %v26497_v4 = vmax.f32 %v26496_v54, 0.0  ;;  %v26502_v17 = vld [vmem:[#allocation52_spill] sm:$0xff]  ;;  %v26508_v60 = vld [vmem:[#allocation49_spill] sm:$0xff] }
 0x1cd   : > { %v2401_v11 = vmax.f32 %v2337_v10, 0.0  ;;  %v2403_v50 = vmax.f32 %v2339_v34, 0.0  ;;  %v2338_v21 = vadd.f32 %v20708_v28, %v2232_v45  ;;  %v2340_v12 = vadd.f32 %v20712_v13, %v2234_v44  ;;  %v26506_v13 = vld [vmem:[#allocation9_spill] sm:$0xff]  ;;  %v26512_v34 = vld [vmem:[#allocation48_spill] sm:$0xff] }
 0x1ce   : > { %v2430_v20 = vmax.f32 %v26495_v57, %v2394_v56  ;;  %v2432_v38 = vmax.f32 %v26497_v4, %v2396_v49  ;;  %v26499_v58 = vmax.f32 %v26498_v42, 0.0  ;;  %v26501_v7 = vmax.f32 %v26500_v24, 0.0  ;;  %v2437_v54 = vld [vmem:[%s26257_s3] sm:$0xff] }
 0x1cf   : > { %v2402_v63 = vmax.f32 %v2338_v21, 0.0  ;;  %v2404_v53 = vmax.f32 %v2340_v12, 0.0  ;;  %v26503_v62 = vmax.f32 %v26502_v17, 0.0  ;;  %v26505_v2 = vmax.f32 %v26504_v29, 0.0 }
 0x1d0   : > { %v2433_v59 = vmax.f32 %v26499_v58, %v2401_v11  ;;  %v2435_v18 = vmax.f32 %v26501_v7, %v2403_v50  ;;  %v26507_v28 = vmax.f32 %v26506_v13, 0.0  ;;  %v26509_v56 = vmax.f32 %v26508_v60, 0.0  ;;  %v2843_v60 = vld [vmem:[%s26258_s4] sm:$0xff] }
 0x1d1   : > { %v2434_v8 = vmax.f32 %v26503_v62, %v2402_v63  ;;  %v2436_v35 = vmax.f32 %v26505_v2, %v2404_v53  ;;  %v26513_v45 = vmax.f32 %v26512_v34, 0.0  ;;  %v26515_v51 = vmax.f32 %v26514_v55, 0.0  ;;  %v2844_v34 = vld [vmem:[%s26258_s4 + $0x8] sm:$0xff] }
 0x1d2   : > { %v2426_v61 = vmax.f32 %v26507_v28, %v2386_v5  ;;  %v2428_v49 = vmax.f32 %v26509_v56, %v2388_v47  ;;  %v26510_v5 = vld [vmem:[#allocation8_spill] sm:$0xff]  ;;  %v26518_v3 = vmov 0.0   ;;  %v21346_v56 = vld [vmem:[%s26258_s4 + $0x10] sm:$0xff] }
 0x1d3   : > { %2470 = vmatprep.subr.mxu0 %v2434_v8  ;;  %2559 = vmatprep.subr.mxu1 %v2436_v35  ;;  %v26511_v10 = vmax.f32 %v26510_v5, 0.0  ;;  %v2420_v44 = vmax.f32 %v26513_v45, %v2372_v1  ;;  %v26516_v1 = vld [vmem:[#allocation90_spill] sm:$0xff] }
 0x1d4   : > { %2471 = vmatpush1.msra.mxu0 %v2433_v59  ;;  %2560 = vmatpush1.msra.mxu1 %v2435_v18  ;;  %v26517_v26 = vmax.f32 %v26516_v1, 0.0  ;;  %v21375_v45 = vld [vmem:[%s26258_s4 + $0x18] sm:$0xff]  ;;  %v15753_v1 = vld [vmem:[%s26259_s5 + $0x9c0] sm:$0xff] }
 0x1d5   : > { %2472 = vmatprep.subr.mxu0 %v2430_v20  ;;  %2561 = vmatprep.subr.mxu1 %v2432_v38  ;;  %v2418_v47 = vmax.f32 %v26511_v10, %v2370_v48  ;;  %v2410_v48 = vmax.f32 %v26515_v51, %v2354_v43  ;;  %v2439_v43 = vld [vmem:[%s26257_s3 + $0x10] sm:$0xff] }
 0x1d6   : > { %2473 = vmatpush1.msra.mxu0 %v21164_v9  ;;  %2562 = vmatpush1.msra.mxu1 %v21168_v39  ;;  %v2412_v57 = vmax.f32 %v26517_v26, %v2356_v15  ;;  %v2440_v15 = vld [vmem:[%s26257_s3 + $0x18] sm:$0xff]  ;;  %v15757_v26 = vld [vmem:[%s26259_s5 + $0x9e0] sm:$0xff] }
 0x1d7   : > { %2474 = vmatprep.subr.mxu0 %v2426_v61  ;;  %2563 = vmatprep.subr.mxu1 %v2428_v49 }
 0x1d8   : > { %2475 = vmatpush1.msra.mxu0 %v21150_v40  ;;  %2564 = vmatpush1.msra.mxu1 %v21154_v0 }
 0x1d9   : > { %2476 = vmatprep.subr.mxu0 %v21136_v32  ;;  %2565 = vmatprep.subr.mxu1 %v21140_v33 }
 0x1da   : > { %2477 = vmatpush1.msra.mxu0 %v21122_v6  ;;  %2566 = vmatpush1.msra.mxu1 %v21126_v23 }
 0x1db   : > { %2478 = vmatprep.subr.mxu0 %v2418_v47  ;;  %2567 = vmatprep.subr.mxu1 %v2420_v44 }
 0x1dc   : > { %2479 = vmatpush1.msra.mxu0 %v21104_v27  ;;  %2568 = vmatpush1.msra.mxu1 %v21108_v36 }
 0x1dd   : > { %2480 = vmatprep.subr.mxu0 %v21086_v52  ;;  %2569 = vmatprep.subr.mxu1 %v21090_v41 }
 0x1de   : > { %2481 = vmatpush1.msra.mxu0 %v21072_v25  ;;  %2570 = vmatpush1.msra.mxu1 %v21076_v19 }
 0x1df   : > { %2482 = vmatprep.subr.mxu0 %v2410_v48  ;;  %2571 = vmatprep.subr.mxu1 %v2412_v57 }
 0x1e0   : > { %2483 = vmatpush1.msra.mxu0 %v21050_v37  ;;  %2572 = vmatpush1.msra.mxu1 %v21054_v22 }
 0x1e1   : > { %2484 = vmatprep.subr.mxu0 %v21032_v31  ;;  %2573 = vmatprep.subr.mxu1 %v21036_v14 }
 0x1e2   : > { %2485 = vmatpush1.msra.mxu0 %v21018_v30  ;;  %2574 = vmatpush1.msra.mxu1 %v21022_v16 }
 0x1e3   : > { %15657 = vmatmul.mubr.msk.f32.vlgmr.msra.gmra.mxu0 %vm2441_vm2, %v2437_v54  ;;  %15661 = vmatmul.mubr.msk.f32.vlgmr.msra.gmra.mxu1 %vm2441_vm2, %v2437_v54  ;;  %v16010_v54 = vcombine.high %v15753_v1, %v15757_v26 }
 0x1e4   : > { %2665 = vmatprep.subr.mxu0 %v2434_v8  ;;  %2754 = vmatprep.subr.mxu1 %v2436_v35 }
 0x1e5   : > { %2666 = vmatpush1.msra.mxu0 %v2433_v59  ;;  %2755 = vmatpush1.msra.mxu1 %v2435_v18 }
 0x1e6   : > { %2667 = vmatprep.subr.mxu0 %v2430_v20  ;;  %2756 = vmatprep.subr.mxu1 %v2432_v38 }
 0x1e7   : > { %2524 = vmatprep.mubr.f32.mxu0 %v26518_v3  ;;  %2613 = vmatprep.mubr.f32.mxu1 %v26518_v3 }
 0x1e8   : > { %2668 = vmatpush1.msra.mxu0 %v21164_v9  ;;  %2757 = vmatpush1.msra.mxu1 %v21168_v39 }
 0x1e9   : > { %15658 = vmatmul.mubr.msk.f32.gmra.mxu0 %vm2441_vm2, %v2438_v46  ;;  %15662 = vmatmul.mubr.msk.f32.gmra.mxu1 %vm2441_vm2, %v2438_v46  ;;  %v21423_v46 = vld [vmem:[%s26258_s4 + $0x28] sm:$0xff] }
 0x1ea   : > { %2669 = vmatprep.subr.mxu0 %v2426_v61  ;;  %2758 = vmatprep.subr.mxu1 %v2428_v49 }
 0x1eb   : > { %2670 = vmatpush1.msra.mxu0 %v21150_v40  ;;  %2759 = vmatpush1.msra.mxu1 %v21154_v0 }
 0x1ec   : > { %2671 = vmatprep.subr.mxu0 %v21136_v32  ;;  %2760 = vmatprep.subr.mxu1 %v21140_v33 }
 0x1ed   : > { %2530 = vmatprep.mubr.f32.mxu0 %v26518_v3  ;;  %2619 = vmatprep.mubr.f32.mxu1 %v26518_v3 }
 0x1ee   : > { %2672 = vmatpush1.msra.mxu0 %v21122_v6  ;;  %2761 = vmatpush1.msra.mxu1 %v21126_v23 }
 0x1ef   : > { %15659 = vmatmul.mubr.msk.f32.gmra.mxu0 %vm2441_vm2, %v2439_v43  ;;  %15663 = vmatmul.mubr.msk.f32.gmra.mxu1 %vm2441_vm2, %v2439_v43  ;;  %v15745_v43 = vld [vmem:[%s26259_s5 + $0x980] sm:$0xff] }
 0x1f0   : > { %2673 = vmatprep.subr.mxu0 %v2418_v47  ;;  %2762 = vmatprep.subr.mxu1 %v2420_v44 }
 0x1f1   : > { %2674 = vmatpush1.msra.mxu0 %v21104_v27  ;;  %2763 = vmatpush1.msra.mxu1 %v21108_v36 }
 0x1f2   : > { %2675 = vmatprep.subr.mxu0 %v21086_v52  ;;  %2764 = vmatprep.subr.mxu1 %v21090_v41 }
 0x1f3   : > { %2536 = vmatprep.mubr.f32.mxu0 %v26518_v3  ;;  %2625 = vmatprep.mubr.f32.mxu1 %v26518_v3 }
 0x1f4   : > { %2676 = vmatpush1.msra.mxu0 %v21072_v25  ;;  %2765 = vmatpush1.msra.mxu1 %v21076_v19  ;;  %v15665_v25 = vld [vmem:[%s26257_s3 + $0x20] sm:$0xff] }
 0x1f5   : > { %15660 = vmatmul.mubr.msk.f32.gmra.mxu0 %vm2441_vm2, %v2440_v15  ;;  %15664 = vmatmul.mubr.msk.f32.gmra.mxu1 %vm2441_vm2, %v2440_v15  ;;  %v15749_v15 = vld [vmem:[%s26259_s5 + $0x9a0] sm:$0xff] }
 0x1f6   : > { %2677 = vmatprep.subr.mxu0 %v2410_v48  ;;  %2766 = vmatprep.subr.mxu1 %v2412_v57  ;;  %v15685_v57 = vld [vmem:[%s26258_s4 + $0x20] sm:$0xff] }
 0x1f7   : > { %2678 = vmatpush1.msra.mxu0 %v21050_v37  ;;  %2767 = vmatpush1.msra.mxu1 %v21054_v22 }
 0x1f8   : > { %2679 = vmatprep.subr.mxu0 %v21032_v31  ;;  %2768 = vmatprep.subr.mxu1 %v21036_v14  ;;  %v15666_v31 = vld [vmem:[%s26257_s3 + $0x28] sm:$0xff] }
 0x1f9   : > { %2680 = vmatpush1.msra.mxu0 %v21018_v30  ;;  %2713 = vmatprep.mubr.f32.mxu0 %v26518_v3  ;;  %v15667_v30 = vld [vmem:[%s26257_s3 + $0x30] sm:$0xff] }
 0x1fa   : > { %2769 = vmatpush1.msra.mxu1 %v21022_v16  ;;  %2802 = vmatprep.mubr.f32.mxu1 %v26518_v3  ;;  %v15668_v16 = vld [vmem:[%s26257_s3 + $0x38] sm:$0xff] }
 0x1fb   : > { %15669 = vmatmul.mubr.msk.f32.vlgmr.msra.gmra.mxu0 %vm2441_vm2, %v15665_v25  ;;  %15673 = vmatmul.mubr.msk.f32.vlgmr.msra.gmra.mxu1 %vm2441_vm2, %v15665_v25  ;;  %v15881_v25 = vld [vmem:[%s26259_s5 + $0xdc0] sm:$0xff] }
 0x1fc   : > { %2719 = vmatprep.mubr.f32.mxu0 %v26518_v3  ;;  %2808 = vmatprep.mubr.f32.mxu1 %v26518_v3 }
 0x1ff   : > { %15670 = vmatmul.mubr.msk.f32.gmra.mxu0 %vm2441_vm2, %v15666_v31  ;;  %15674 = vmatmul.mubr.msk.f32.gmra.mxu1 %vm2441_vm2, %v15666_v31  ;;  %v15885_v31 = vld [vmem:[%s26259_s5 + $0xde0] sm:$0xff] }
 0x200   : > { %2725 = vmatprep.mubr.f32.mxu0 %v26518_v3  ;;  %2814 = vmatprep.mubr.f32.mxu1 %v26518_v3 }
 0x203   : > { %15671 = vmatmul.mubr.msk.f32.gmra.mxu0 %vm2441_vm2, %v15667_v30  ;;  %15675 = vmatmul.mubr.msk.f32.gmra.mxu1 %vm2441_vm2, %v15667_v30  ;;  %v21448_v30 = vld [vmem:[%s26258_s4 + $0x30] sm:$0xff] }
 0x204   : > { %2731 = vmatprep.mubr.f32.mxu0 %v26518_v3  ;;  %2820 = vmatprep.mubr.f32.mxu1 %v26518_v3 }
 0x207   : > { %15672 = vmatmul.mubr.msk.f32.gmra.mxu0 %vm2441_vm2, %v15668_v16  ;;  %15676 = vmatmul.mubr.msk.f32.gmra.mxu1 %vm2441_vm2, %v15668_v16  ;;  %v16009_v16 = vcombine.low %v15753_v1, %v15757_v26 }
 0x208   : > { %2924 = vmatprep.mubr.f32.mxu0 %v26518_v3  ;;  %2936 = vmatprep.mubr.f32.mxu1 %v26518_v3 }
 0x2a3   : > { %v2520_v14 = vpop.f32.mrf.mxu0  ;;  %v21302_v37 = vpop.f32.mrf.mxu1 }
 0x2a5   : > { %v2522_v22 = vpop.f32.mrf.mxu0  ;;  %v21304_v19 = vpop.f32.mrf.mxu1 }
 0x2a9   : > { %v2526_v52 = vpop.f32.mrf.mxu0  ;;  %v21306_v41 = vpop.f32.mrf.mxu1 }
 0x2ab   : > { %v2528_v27 = vpop.f32.mrf.mxu0  ;;  %v21308_v36 = vpop.f32.mrf.mxu1 }
 0x2af   : > { %v2532_v6 = vpop.f32.mrf.mxu0  ;;  %v2621_v23 = vpop.f32.mrf.mxu1 }
 0x2b1   : > { %v2534_v32 = vpop.f32.mrf.mxu0  ;;  %v2623_v33 = vpop.f32.mrf.mxu1 }
 0x2b5   : > { %v2538_v40 = vpop.f32.mrf.mxu0  ;;  %v2627_v0 = vpop.f32.mrf.mxu1 }
 0x2b7   : > { %v2540_v9 = vpop.f32.mrf.mxu0  ;;  %v2629_v39 = vpop.f32.mrf.mxu1 }
 0x2bb   : > { %v2715_v20 = vpop.f32.mrf.mxu0  ;;  %v21310_v4 = vpop.f32.mrf.mxu1 }
 0x2bc   : > { %v21336_v61 = vmax.f32 %v2520_v14, %v2715_v20  ;;  %v21397_v48 = vmax.f32 %v21302_v37, %v21310_v4  ;;  %v16002_v14 = vcombine.high %v15745_v43, %v15749_v15  ;;  %v16138_v37 = vcombine.high %v15881_v25, %v15885_v31  ;;  %v15865_v4 = vld [vmem:[%s26259_s5 + $0xd40] sm:$0xff] }
 0x2bd   : > { %v2717_v38 = vpop.f32.mrf.mxu0  ;;  %v2806_v11 = vpop.f32.mrf.mxu1 }
 0x2be   : > { %v21332_v13 = vmax.f32 %v2522_v22, %v2717_v38  ;;  %v21391_v51 = vmax.f32 %v21304_v19, %v2806_v11  ;;  %v15737_v22 = vld [vmem:[%s26259_s5 + $0x940] sm:$0xff] }
 0x2bf   : > { %v2721_v50 = vpop.f32.mrf.mxu0  ;;  %v2810_v21 = vpop.f32.mrf.mxu1  ;;  %v15741_v19 = vld [vmem:[%s26259_s5 + $0x960] sm:$0xff] }
 0x2c0   : > { %v21328_v35 = vmax.f32 %v2526_v52, %v2721_v50  ;;  %v21385_v55 = vmax.f32 %v21306_v41, %v2810_v21  ;;  %v21469_v52 = vld [vmem:[%s26258_s4 + $0x38] sm:$0xff]  ;;  %v16001_v41 = vcombine.low %v15745_v43, %v15749_v15  ;;  %v15869_v38 = vld [vmem:[%s26259_s5 + $0xd60] sm:$0xff] }
 0x2c1   : > { %v2723_v12 = vpop.f32.mrf.mxu0  ;;  %v2812_v42 = vpop.f32.mrf.mxu1  ;;  %v15841_v43 = vld [vmem:[%s26259_s5 + $0xc80] sm:$0xff] }
 0x2c2   : > { %v21324_v2 = vmax.f32 %v2528_v27, %v2723_v12  ;;  %v21380_v44 = vmax.f32 %v21308_v36, %v2812_v42  ;;  %v15994_v27 = vcombine.high %v15737_v22, %v15741_v19  ;;  %v15729_v36 = vld [vmem:[%s26259_s5 + $0x900] sm:$0xff] }
 0x2c3   : > { %v2727_v58 = vpop.f32.mrf.mxu0  ;;  %v2816_v59 = vpop.f32.mrf.mxu1  ;;  %v15713_v12 = vld [vmem:[%s26259_s5 + $0x880] sm:$0xff] }
 0x2c4   : > { %v21320_v29 = vmax.f32 %v2532_v6, %v2727_v58  ;;  %v21365_v47 = vmax.f32 %v2621_v23, %v2816_v59  ;;  %v15733_v6 = vld [vmem:[%s26259_s5 + $0x920] sm:$0xff]  ;;  %v16122_v58 = vcombine.high %v15865_v4, %v15869_v38 }
 0x2c5   : > { %v2729_v24 = vpop.f32.mrf.mxu0  ;;  %v2818_v18 = vpop.f32.mrf.mxu1  ;;  %v15873_v23 = vld [vmem:[%s26259_s5 + $0xd80] sm:$0xff]  ;;  %v15985_v11 = vcombine.low %v15729_v36, %v15733_v6 }
 0x2c6   : > { %v21316_v62 = vmax.f32 %v2534_v32, %v2729_v24  ;;  %v21359_v10 = vmax.f32 %v2623_v33, %v2818_v18  ;;  %v15877_v32 = vld [vmem:[%s26259_s5 + $0xda0] sm:$0xff]  ;;  %v15993_v33 = vcombine.low %v15737_v22, %v15741_v19 }
 0x2c7   : > { %v2733_v7 = vpop.f32.mrf.mxu0  ;;  %v2822_v8 = vpop.f32.mrf.mxu1  ;;  %v16130_v20 = vcombine.high %v15873_v23, %v15877_v32  ;;  %v16129_v21 = vcombine.low %v15873_v23, %v15877_v32  ;;  %v15717_v42 = vld [vmem:[%s26259_s5 + $0x8a0] sm:$0xff] }
 0x2c8   : > { %v21314_v17 = vmax.f32 %v2538_v40, %v2733_v7  ;;  %v21354_v5 = vmax.f32 %v2627_v0, %v2822_v8  ;;  %v15986_v40 = vcombine.high %v15729_v36, %v15733_v6  ;;  %v16137_v0 = vcombine.low %v15881_v25, %v15885_v31  ;;  %v15857_v59 = vld [vmem:[%s26259_s5 + $0xd00] sm:$0xff] }
 0x2c9   : > { %v2735_v63 = vpop.f32.mrf.mxu0  ;;  %v2824_v28 = vpop.f32.mrf.mxu1  ;;  %v15861_v24 = vld [vmem:[%s26259_s5 + $0xd20] sm:$0xff]  ;;  %v15970_v18 = vcombine.high %v15713_v12, %v15717_v42 }
 0x2ca   : > { %v21312_v53 = vmax.f32 %v2540_v9, %v2735_v63  ;;  %v21350_v49 = vmax.f32 %v2629_v39, %v2824_v28  ;;  %v15721_v9 = vld [vmem:[%s26259_s5 + $0x8c0] sm:$0xff]  ;;  %v16121_v63 = vcombine.low %v15865_v4, %v15869_v38  ;;  %v16113_v26 = vcombine.low %v15857_v59, %v15861_v24 }
 0x2cb   : > { %v15725_v39 = vld [vmem:[%s26259_s5 + $0x8e0] sm:$0xff] }
 0x2cc   : > { %2884 = vmatprep.subr.mxu0 %v21312_v53  ;;  %19207 = vmatprep.subr.mxu1 %v21312_v53  ;;  %v15978_v50 = vcombine.high %v15721_v9, %v15725_v39  ;;  %v15977_v7 = vcombine.low %v15721_v9, %v15725_v39  ;;  %v15705_v8 = vld [vmem:[%s26259_s5 + $0x840] sm:$0xff] }
 0x2cd   : > { %2885 = vmatpush1.msra.mxu0 %v21314_v17  ;;  %19211 = vmatpush1.msra.mxu1 %v21314_v17  ;;  %v15709_v28 = vld [vmem:[%s26259_s5 + $0x860] sm:$0xff] }
 0x2ce   : > { %2886 = vmatprep.subr.mxu0 %v21316_v62  ;;  %19208 = vmatprep.subr.mxu1 %v21316_v62  ;;  %v15962_v1 = vcombine.high %v15705_v8, %v15709_v28  ;;  %v15845_v15 = vld [vmem:[%s26259_s5 + $0xca0] sm:$0xff]  ;;  %v15961_v25 = vcombine.low %v15705_v8, %v15709_v28 }
 0x2cf   : > { %2887 = vmatpush1.msra.mxu0 %v21320_v29  ;;  %19212 = vmatpush1.msra.mxu1 %v21320_v29  ;;  %v15833_v22 = vld [vmem:[%s26259_s5 + $0xc40] sm:$0xff] }
 0x2d0   : > { %2888 = vmatprep.subr.mxu0 %v21324_v2  ;;  %19209 = vmatprep.subr.mxu1 %v21324_v2  ;;  %v15837_v19 = vld [vmem:[%s26259_s5 + $0xc60] sm:$0xff] }
 0x2d1   : > { %2889 = vmatpush1.msra.mxu0 %v21328_v35  ;;  %19213 = vmatpush1.msra.mxu1 %v21328_v35  ;;  %v15809_v36 = vld [vmem:[%s26259_s5 + $0xb80] sm:$0xff]  ;;  %v16090_v23 = vcombine.high %v15833_v22, %v15837_v19  ;;  %v16089_v9 = vcombine.low %v15833_v22, %v15837_v19 }
 0x2d2   : > { %2890 = vmatprep.subr.mxu0 %v21332_v13  ;;  %19210 = vmatprep.subr.mxu1 %v21332_v13  ;;  %v15813_v6 = vld [vmem:[%s26259_s5 + $0xba0] sm:$0xff] }
 0x2d3   : > { %2891 = vmatpush1.msra.mxu0 %v21336_v61  ;;  %19214 = vmatpush1.msra.mxu1 %v21336_v61  ;;  %v15825_v32 = vld [vmem:[%s26259_s5 + $0xc00] sm:$0xff]  ;;  %v16065_v38 = vcombine.low %v15809_v36, %v15813_v6 }
 0x2d4   : > { %15677 = vmatmul.mubr.msk.f32.vlgmr.msra.gmra.mxu0 %vm2847_vm3, %v2843_v60  ;;  %15679 = vmatmul.mubr.msk.f32.vlgmr.msra.gmra.mxu1 %vm2847_vm3, %v21346_v56  ;;  %v15801_v39 = vld [vmem:[%s26259_s5 + $0xb40] sm:$0xff] }
 0x2d5   : > { %2973 = vmatprep.subr.mxu1 %v21350_v49  ;;  %3343 = vmatprep.subr.mxu0 %v21312_v53  ;;  %v15949_v8 = vld [vmem:[%s26259_s5 + $0xfe0] sm:$0xff] }
 0x2d6   : > { %2974 = vmatpush1.msra.mxu1 %v21354_v5  ;;  %3344 = vmatpush1.msra.mxu0 %v21314_v17  ;;  %v15761_v19 = vld [vmem:[%s26259_s5 + $0xa00] sm:$0xff] }
 0x2d7   : > { %2975 = vmatprep.subr.mxu1 %v21359_v10  ;;  %3345 = vmatprep.subr.mxu0 %v21316_v62 }
 0x2d8   : > { %2930 = vmatprep.mubr.f32.mxu0 %v26518_v3  ;;  %2942 = vmatprep.mubr.f32.mxu1 %v26518_v3 }
 0x2d9   : > { %2976 = vmatpush1.msra.mxu1 %v21365_v47  ;;  %3346 = vmatpush1.msra.mxu0 %v21320_v29 }
 0x2da   : > { %15678 = vmatmul.mubr.msk.f32.gmra.mxu0 %vm2847_vm3, %v2844_v34  ;;  %15680 = vmatmul.mubr.msk.f32.gmra.mxu1 %vm2847_vm3, %v21375_v45 }
 0x2db   : > { %2977 = vmatprep.subr.mxu1 %v21380_v44  ;;  %3347 = vmatprep.subr.mxu0 %v21324_v2 }
 0x2dc   : > { %2978 = vmatpush1.msra.mxu1 %v21385_v55  ;;  %3348 = vmatpush1.msra.mxu0 %v21328_v35 }
 0x2dd   : > { %2979 = vmatprep.subr.mxu1 %v21391_v51  ;;  %3349 = vmatprep.subr.mxu0 %v21332_v13 }
 0x2de   : > { %2980 = vmatpush1.msra.mxu1 %v21397_v48  ;;  %3013 = vmatprep.mubr.f32.mxu1 %v26518_v3 }
 0x2df   : > { %3350 = vmatpush1.msra.mxu0 %v21336_v61  ;;  %3383 = vmatprep.mubr.f32.mxu0 %v26518_v3 }
 0x2e0   : > { %15681 = vmatmul.mubr.msk.f32.vlgmr.msra.gmra.mxu1 %vm2847_vm3, %v2843_v60  ;;  %15689 = vmatmul.mubr.msk.f32.vlgmr.msra.gmra.mxu0 %vm2847_vm3, %v15685_v57  ;;  %v16114_v60 = vcombine.high %v15857_v59, %v15861_v24  ;;  %v15785_v24 = vld [vmem:[%s26259_s5 + $0xac0] sm:$0xff] }
 0x2e1   : > { %3432 = vmatprep.subr.mxu1 %v21350_v49  ;;  %3019 = vmatprep.mubr.f32.mxu1 %v26518_v3 }
 0x2e2   : > { %3433 = vmatpush1.msra.mxu1 %v21354_v5  ;;  %3389 = vmatprep.mubr.f32.mxu0 %v26518_v3 }
 0x2e3   : > { %3434 = vmatprep.subr.mxu1 %v21359_v10  ;;  %5042 = vmatprep.subr.bf16.mxu0 %v16010_v54  ;;  %v15701_v54 = vld [vmem:[%s26259_s5 + $0x820] sm:$0xff] }
 0x2e4   : > { %3435 = vmatpush1.msra.mxu1 %v21365_v47  ;;  %15690 = vmatmul.mubr.msk.f32.gmra.mxu0 %vm2847_vm3, %v21423_v46 }
 0x2e5   : > { %15682 = vmatmul.mubr.msk.f32.gmra.mxu1 %vm2847_vm3, %v2844_v34  ;;  %3436 = vmatprep.subr.mxu1 %v21380_v44  ;;  %v15853_v34 = vld [vmem:[%s26259_s5 + $0xce0] sm:$0xff] }
 0x2e6   : > { %3437 = vmatpush1.msra.mxu1 %v21385_v55  ;;  %3025 = vmatprep.mubr.f32.mxu1 %v26518_v3 }
 0x2e7   : > { %3438 = vmatprep.subr.mxu1 %v21391_v51  ;;  %3395 = vmatprep.mubr.f32.mxu0 %v26518_v3 }
 0x2e8   : > { %3439 = vmatpush1.msra.mxu1 %v21397_v48  ;;  %15691 = vmatmul.mubr.msk.f32.gmra.mxu0 %vm2847_vm3, %v21448_v30 }
 0x2e9   : > { %15683 = vmatmul.mubr.msk.f32.gmra.mxu1 %vm2847_vm3, %v21346_v56  ;;  %3401 = vmatprep.mubr.f32.mxu0 %v26518_v3  ;;  %v15849_v56 = vld [vmem:[%s26259_s5 + $0xcc0] sm:$0xff] }
 0x2ea   : > { %3031 = vmatprep.mubr.f32.mxu1 %v26518_v3  ;;  %5043 = vmatpush1.bf16.msra.mxu0 %v16009_v16  ;;  %v15817_v16 = vld [vmem:[%s26259_s5 + $0xbc0] sm:$0xff] }
 0x2eb   : > { %5044 = vmatprep.subr.bf16.mxu0 %v16002_v14  ;;  %5095 = vmatprep.subr.bf16.mxu1 %v16138_v37  ;;  %v15821_v14 = vld [vmem:[%s26259_s5 + $0xbe0] sm:$0xff]  ;;  %v16098_v37 = vcombine.high %v15841_v43, %v15845_v15 }
 0x2ec   : > { %15692 = vmatmul.mubr.msk.f32.gmra.mxu0 %vm2847_vm3, %v21469_v52 }
 0x2ed   : > { %15684 = vmatmul.mubr.msk.f32.gmra.mxu1 %vm2847_vm3, %v21375_v45  ;;  %v15969_v45 = vcombine.low %v15713_v12, %v15717_v42  ;;  %v15797_v12 = vld [vmem:[%s26259_s5 + $0xb20] sm:$0xff] }
 0x2ee   : > { %3472 = vmatprep.mubr.f32.mxu1 %v26518_v3  ;;  %5045 = vmatpush1.bf16.msra.mxu0 %v16001_v41  ;;  %v16074_v41 = vcombine.high %v15817_v16, %v15821_v14 }
 0x2ef   : > { %5046 = vmatprep.subr.bf16.mxu0 %v15994_v27  ;;  %v16097_v27 = vcombine.low %v15841_v43, %v15845_v15  ;;  %v15769_v15 = vld [vmem:[%s26259_s5 + $0xa40] sm:$0xff] }
 0x2f1   : > { %15693 = vmatmul.mubr.msk.f32.vlgmr.msra.gmra.mxu1 %vm2847_vm3, %v15685_v57  ;;  %v15697_v57 = vld [vmem:[%s26259_s5 + $0x800] sm:$0xff] }
 0x2f2   : > { %3478 = vmatprep.mubr.f32.mxu1 %v26518_v3  ;;  %5047 = vmatpush1.bf16.msra.mxu0 %v15993_v33  ;;  %v15954_v31 = vcombine.high %v15697_v57, %v15701_v54  ;;  %v15829_v33 = vld [vmem:[%s26259_s5 + $0xc20] sm:$0xff] }
 0x2f3   : > { %5048 = vmatprep.subr.bf16.mxu0 %v15986_v40  ;;  %5096 = vmatpush1.bf16.msra.mxu1 %v16137_v0  ;;  %v16073_v40 = vcombine.low %v15817_v16, %v15821_v14  ;;  %v16066_v0 = vcombine.high %v15809_v36, %v15813_v6  ;;  %v16082_v4 = vcombine.high %v15825_v32, %v15829_v33  ;;  %v15933_v14 = vld [vmem:[%s26259_s5 + $0xf60] sm:$0xff] }
 0x2f4   : > { %5097 = vmatprep.subr.bf16.mxu1 %v16130_v20  ;;  %v15805_v20 = vld [vmem:[%s26259_s5 + $0xb60] sm:$0xff] }
 0x2f5   : > { %15694 = vmatmul.mubr.msk.f32.gmra.mxu1 %vm2847_vm3, %v21423_v46  ;;  %v16106_v46 = vcombine.high %v15849_v56, %v15853_v34  ;;  %v16057_v42 = vcombine.low %v15801_v39, %v15805_v20  ;;  %v15925_v36 = vld [vmem:[%s26259_s5 + $0xf20] sm:$0xff] }
 0x2f6   : > { %3484 = vmatprep.mubr.f32.mxu1 %v26518_v3  ;;  %5049 = vmatpush1.bf16.msra.mxu0 %v15985_v11  ;;  %v16058_v11 = vcombine.high %v15801_v39, %v15805_v20  ;;  %v15758_v39 = vld [vmem:[%s26259_s5 + $0x9e8] sm:$0xff] }
 0x2f7   : > { %5050 = vmatprep.subr.bf16.mxu0 %v15978_v50  ;;  %5098 = vmatpush1.bf16.msra.mxu1 %v16129_v21  ;;  %v16081_v50 = vcombine.low %v15825_v32, %v15829_v33  ;;  %v15793_v21 = vld [vmem:[%s26259_s5 + $0xb00] sm:$0xff] }
 0x2f8   : > { %5099 = vmatprep.subr.bf16.mxu1 %v16122_v58  ;;  %v16050_v58 = vcombine.high %v15793_v21, %v15797_v12  ;;  %v16049_v59 = vcombine.low %v15793_v21, %v15797_v12  ;;  %v15913_v33 = vld [vmem:[%s26259_s5 + $0xec0] sm:$0xff] }
 0x2f9   : > { %15695 = vmatmul.mubr.msk.f32.gmra.mxu1 %vm2847_vm3, %v21448_v30  ;;  %v16105_v30 = vcombine.low %v15849_v56, %v15853_v34  ;;  %v15777_v34 = vld [vmem:[%s26259_s5 + $0xa80] sm:$0xff] }
 0x2fa   : > { %3490 = vmatprep.mubr.f32.mxu1 %v26518_v3  ;;  %5051 = vmatpush1.bf16.msra.mxu0 %v15977_v7  ;;  %v15789_v7 = vld [vmem:[%s26259_s5 + $0xae0] sm:$0xff] }
 0x2fb   : > { %5052 = vmatprep.subr.bf16.mxu0 %v15970_v18  ;;  %5100 = vmatpush1.bf16.msra.mxu1 %v16121_v63  ;;  %v15945_v18 = vld [vmem:[%s26259_s5 + $0xfc0] sm:$0xff]  ;;  %v16042_v63 = vcombine.high %v15785_v24, %v15789_v7  ;;  %v16041_v28 = vcombine.low %v15785_v24, %v15789_v7 }
 0x2fc   : > { %5101 = vmatprep.subr.bf16.mxu1 %v16114_v60  ;;  %v16201_v60 = vcombine.low %v15945_v18, %v15949_v8  ;;  %v16202_v56 = vcombine.high %v15945_v18, %v15949_v8  ;;  %v15889_v7 = vld [vmem:[%s26259_s5 + $0xe00] sm:$0xff] }
 0x2fd   : > { %15696 = vmatmul.mubr.msk.f32.gmra.mxu1 %vm2847_vm3, %v21469_v52  ;;  %v15953_v52 = vcombine.low %v15697_v57, %v15701_v54  ;;  %v15941_v54 = vld [vmem:[%s26259_s5 + $0xfa0] sm:$0xff] }
 0x2fe   : > { %5053 = vmatpush1.bf16.msra.mxu0 %v15969_v45  ;;  %v15781_v45 = vld [vmem:[%s26259_s5 + $0xaa0] sm:$0xff] }
 0x2ff   : > { %5054 = vmatprep.subr.bf16.mxu0 %v15962_v1  ;;  %5102 = vmatpush1.bf16.msra.mxu1 %v16113_v26  ;;  %v15937_v1 = vld [vmem:[%s26259_s5 + $0xf80] sm:$0xff]  ;;  %v16033_v26 = vcombine.low %v15777_v34, %v15781_v45  ;;  %v16034_v57 = vcombine.high %v15777_v34, %v15781_v45 }
 0x300   : > { %5103 = vmatprep.subr.bf16.mxu1 %v16106_v46  ;;  %v16193_v46 = vcombine.low %v15937_v1, %v15941_v54  ;;  %v16194_v43 = vcombine.high %v15937_v1, %v15941_v54  ;;  %v15893_v18 = vld [vmem:[%s26259_s5 + $0xe20] sm:$0xff] }
 0x301   : > { %v16145_v8 = vcombine.low %v15889_v7, %v15893_v18 }
 0x302   : > { %5055 = vmatpush1.bf16.msra.mxu0 %v15961_v25  ;;  %v15773_v25 = vld [vmem:[%s26259_s5 + $0xa60] sm:$0xff] }
 0x303   : > { %5056 = vmatprep.subr.bf16.mxu0 %v15954_v31  ;;  %5104 = vmatpush1.bf16.msra.mxu1 %v16105_v30  ;;  %v15929_v31 = vld [vmem:[%s26259_s5 + $0xf40] sm:$0xff]  ;;  %v16025_v30 = vcombine.low %v15769_v15, %v15773_v25  ;;  %v16026_v16 = vcombine.high %v15769_v15, %v15773_v25 }
 0x304   : > { %5105 = vmatprep.subr.bf16.mxu1 %v16098_v37  ;;  %v16185_v37 = vcombine.low %v15929_v31, %v15933_v14  ;;  %v16186_v22 = vcombine.high %v15929_v31, %v15933_v14 }
 0x306   : > { %5057 = vmatpush1.bf16.msra.mxu0 %v15953_v52  ;;  %v15765_v52 = vld [vmem:[%s26259_s5 + $0xa20] sm:$0xff] }
 0x307   : > { %5058 = vmatprep.subr.bf16.mxu0 %v16074_v41  ;;  %5106 = vmatpush1.bf16.msra.mxu1 %v16097_v27  ;;  %v15921_v41 = vld [vmem:[%s26259_s5 + $0xf00] sm:$0xff]  ;;  %v16018_v27 = vcombine.high %v15761_v19, %v15765_v52  ;;  %v16017_v6 = vcombine.low %v15761_v19, %v15765_v52  ;;  %v15746_v52 = vld [vmem:[%s26259_s5 + $0x988] sm:$0xff] }
 0x308   : > { %5107 = vmatprep.subr.bf16.mxu1 %v16090_v23  ;;  %v16177_v23 = vcombine.low %v15921_v41, %v15925_v36  ;;  %v16178_v32 = vcombine.high %v15921_v41, %v15925_v36  ;;  %v15750_v41 = vld [vmem:[%s26259_s5 + $0x9a8] sm:$0xff] }
 0x30a   : > { %5059 = vmatpush2.bf16.msra.mxu0 %v16073_v40  ;;  %v15917_v40 = vld [vmem:[%s26259_s5 + $0xee0] sm:$0xff] }
 0x30b   : > { %5060 = vmatprep.subr.bf16.mxu0 %v16066_v0  ;;  %5108 = vmatpush1.bf16.msra.mxu1 %v16089_v9  ;;  %v21640_v0 = vld [vmem:[%s26259_s5 + $0x9c8] sm:$0xff]  ;;  %v16170_v9 = vcombine.high %v15913_v33, %v15917_v40  ;;  %v16169_v20 = vcombine.low %v15913_v33, %v15917_v40  ;;  %v16004_v33 = vcombine.high %v15746_v52, %v15750_v41 }
 0x30c   : > { %5109 = vmatprep.subr.bf16.mxu1 %v16082_v4  ;;  %v16011_v4 = vcombine.low %v21640_v0, %v15758_v39 }
 0x30e   : > { %5061 = vmatpush2.bf16.msra.mxu0 %v16065_v38  ;;  %v16012_v38 = vcombine.high %v21640_v0, %v15758_v39  ;;  %v15742_v39 = vld [vmem:[%s26259_s5 + $0x968] sm:$0xff] }
 0x30f   : > { %5062 = vmatprep.subr.bf16.mxu0 %v16058_v11  ;;  %5110 = vmatpush1.bf16.msra.mxu1 %v16081_v50  ;;  %v15905_v11 = vld [vmem:[%s26259_s5 + $0xe80] sm:$0xff] }
 0x310   : > { %5111 = vmatprep.subr.bf16.mxu1 %v16202_v56  ;;  %v15909_v50 = vld [vmem:[%s26259_s5 + $0xea0] sm:$0xff] }
 0x311   : > { %v16162_v21 = vcombine.high %v15905_v11, %v15909_v50  ;;  %v16161_v12 = vcombine.low %v15905_v11, %v15909_v50  ;;  %v16003_v11 = vcombine.low %v15746_v52, %v15750_v41  ;;  %v15878_v52 = vld [vmem:[%s26259_s5 + $0xda8] sm:$0xff] }
 0x312   : > { %5063 = vmatpush2.bf16.msra.mxu0 %v16057_v42  ;;  %v15897_v42 = vld [vmem:[%s26259_s5 + $0xe40] sm:$0xff] }
 0x313   : > { %5064 = vmatprep.subr.bf16.mxu0 %v16050_v58  ;;  %5112 = vmatpush2.bf16.msra.mxu1 %v16201_v60  ;;  %v15901_v58 = vld [vmem:[%s26259_s5 + $0xe60] sm:$0xff]  ;;  %v21673_v60 = vld [vmem:[%s26259_s5 + $0xde8] sm:$0xff] }
 0x314   : > { %5113 = vmatprep.subr.bf16.mxu1 %v16194_v43  ;;  %v16153_v24 = vcombine.low %v15897_v42, %v15901_v58 }
 0x316   : > { %5065 = vmatpush2.bf16.msra.mxu0 %v16049_v59  ;;  %v16154_v59 = vcombine.high %v15897_v42, %v15901_v58  ;;  %v15730_v42 = vld [vmem:[%s26259_s5 + $0x908] sm:$0xff] }
 0x317   : > { %5066 = vmatprep.subr.bf16.mxu0 %v16042_v63  ;;  %5114 = vmatpush2.bf16.msra.mxu1 %v16193_v46  ;;  %v16146_v63 = vcombine.high %v15889_v7, %v15893_v18  ;;  %v15734_v58 = vld [vmem:[%s26259_s5 + $0x928] sm:$0xff] }
 0x318   : > { %5115 = vmatprep.subr.bf16.mxu1 %v16186_v22 }
 0x31a   : > { %5067 = vmatpush2.bf16.msra.mxu0 %v16041_v28  ;;  %v21668_v28 = vld [vmem:[%s26259_s5 + $0xdc8] sm:$0xff] }
 0x31b   : > { %5068 = vmatprep.subr.bf16.mxu0 %v16034_v57  ;;  %5116 = vmatpush2.bf16.msra.mxu1 %v16185_v37  ;;  %v16139_v56 = vcombine.low %v21668_v28, %v21673_v60  ;;  %v16140_v34 = vcombine.high %v21668_v28, %v21673_v60  ;;  %v15862_v28 = vld [vmem:[%s26259_s5 + $0xd28] sm:$0xff] }
 0x31c   : > { %5117 = vmatprep.subr.bf16.mxu1 %v16178_v32 }
 0x31e   : > { %5069 = vmatpush2.bf16.msra.mxu0 %v16033_v26 }
 0x31f   : > { %5070 = vmatprep.subr.bf16.mxu0 %v16026_v16  ;;  %5118 = vmatpush2.bf16.msra.mxu1 %v16177_v23 }
 0x320   : > { %5119 = vmatprep.subr.bf16.mxu1 %v16170_v9  ;;  %v15738_v9 = vld [vmem:[%s26259_s5 + $0x948] sm:$0xff] }
 0x321   : > { %v15996_v50 = vcombine.high %v15738_v9, %v15742_v39 }
 0x322   : > { %5071 = vmatpush2.bf16.msra.mxu0 %v16025_v30 }
 0x323   : > { %5072 = vmatprep.subr.bf16.mxu0 %v16018_v27  ;;  %5120 = vmatpush2.bf16.msra.mxu1 %v16169_v20 }
 0x324   : > { %5121 = vmatprep.subr.bf16.mxu1 %v16162_v21 }
 0x326   : > { %5073 = vmatpush2.bf16.msra.mxu0 %v16017_v6 }
 0x327   : > { %5148 = vmatprep.subr.bf16.mxu0 %v16012_v38  ;;  %5122 = vmatpush2.bf16.msra.mxu1 %v16161_v12 }
 0x328   : > { %5123 = vmatprep.subr.bf16.mxu1 %v16154_v59 }
 0x32b   : > { %5124 = vmatpush2.bf16.msra.mxu1 %v16153_v24 }
 0x32c   : > { %5125 = vmatprep.subr.bf16.mxu1 %v16146_v63 }
 0x32f   : > { %5126 = vmatpush2.bf16.msra.mxu1 %v16145_v8  ;;  %v15988_v8 = vcombine.high %v15730_v42, %v15734_v58 }
 0x330   : > { %5201 = vmatprep.subr.bf16.mxu1 %v16140_v34 }
 0x394   : > { %v2926_v45 = vpop.f32.mrf.mxu0  ;;  %v2938_v1 = vpop.f32.mrf.mxu1 }
 0x396   : > { %v21679_v26 = vpop.f32.mrf.mxu0  ;;  %v21681_v57 = vpop.f32.mrf.mxu1 }
 0x39a   : > { %v2932_v54 = vpop.f32.mrf.mxu0  ;;  %v2944_v46 = vpop.f32.mrf.mxu1 }
 0x39b   : > { %v21683_v43 = vpack.c.bf16 %v2932_v54, %v2926_v45  ;;  %v21685_v15 = vpack.c.bf16 %v2944_v46, %v2938_v1  ;;  %v15722_v45 = vld [vmem:[%s26259_s5 + $0x8c8] sm:$0xff]  ;;  %v15987_v46 = vcombine.low %v15730_v42, %v15734_v58 }
 0x39c   : > { %v21687_v25 = vpop.f32.mrf.mxu0  ;;  %v21689_v31 = vpop.f32.mrf.mxu1  ;;  %v15726_v1 = vld [vmem:[%s26259_s5 + $0x8e8] sm:$0xff] }
 0x3a0   : > { %v3015_v30 = vpop.f32.mrf.mxu1  ;;  %v3385_v16 = vpop.f32.mrf.mxu0 }
 0x3a2   : > { %v21691_v14 = vpop.f32.mrf.mxu1  ;;  %v3387_v37 = vpop.f32.mrf.mxu0 }
 0x3a4   : > { %v3391_v22 = vpop.f32.mrf.mxu0 }
 0x3a5   : > { %v3021_v19 = vpop.f32.mrf.mxu1  ;;  %v21701_v36 = vpack.c.bf16 %v3391_v22, %v3385_v16  ;;  %v15718_v22 = vld [vmem:[%s26259_s5 + $0x8a8] sm:$0xff] }
 0x3a6   : > { %v21699_v27 = vpack.c.bf16 %v3021_v19, %v3015_v30  ;;  %v3393_v6 = vpop.f32.mrf.mxu0  ;;  %v15980_v30 = vcombine.high %v15722_v45, %v15726_v1  ;;  %v15874_v19 = vld [vmem:[%s26259_s5 + $0xd88] sm:$0xff] }
 0x3a7   : > { %v21703_v23 = vpop.f32.mrf.mxu1  ;;  %v21705_v32 = vpack.c.bf16 %v3393_v6, %v3387_v37  ;;  %v15714_v37 = vld [vmem:[%s26259_s5 + $0x888] sm:$0xff]  ;;  %v15979_v6 = vcombine.low %v15722_v45, %v15726_v1  ;;  %v16131_v58 = vcombine.low %v15874_v19, %v15878_v52 }
 0x3a8   : > { %v3397_v40 = vpop.f32.mrf.mxu0  ;;  %v15971_v42 = vcombine.low %v15714_v37, %v15718_v22  ;;  %v15702_v45 = vld [vmem:[%s26259_s5 + $0x828] sm:$0xff] }
 0x3a9   : > { %v3027_v0 = vpop.f32.mrf.mxu1  ;;  %5074 = vmatprep.mubr.bf16.mxu0 %v21705_v32  ;;  %v15858_v1 = vld [vmem:[%s26259_s5 + $0xd08] sm:$0xff] }
 0x3aa   : > { %5075 = vmatmul.mubr.bf16.vlgmr.msra.gmra.mxu0 %v21701_v36  ;;  %v3399_v20 = vpop.f32.mrf.mxu0 }
 0x3ab   : > { %v21715_v38 = vpop.f32.mrf.mxu1  ;;  %5149 = vmatpush1.bf16.msra.mxu0 %v16011_v4  ;;  %v15995_v4 = vcombine.low %v15738_v9, %v15742_v39  ;;  %v16132_v39 = vcombine.high %v15874_v19, %v15878_v52  ;;  %v15822_v19 = vld [vmem:[%s26259_s5 + $0xbe8] sm:$0xff] }
 0x3ac   : > { %5150 = vmatprep.subr.bf16.mxu0 %v16004_v33  ;;  %v3403_v21 = vpop.f32.mrf.mxu0  ;;  %v15850_v52 = vld [vmem:[%s26259_s5 + $0xcc8] sm:$0xff] }
 0x3ad   : > { %v3033_v12 = vpop.f32.mrf.mxu1  ;;  %v21725_v24 = vpack.c.bf16 %v3403_v21, %v3397_v40  ;;  %v15972_v40 = vcombine.high %v15714_v37, %v15718_v22  ;;  %v15870_v21 = vld [vmem:[%s26259_s5 + $0xd68] sm:$0xff]  ;;  %v16116_v37 = vcombine.high %v15858_v1, %v15862_v28 }
 0x3ae   : > { %v21723_v59 = vpack.c.bf16 %v3033_v12, %v3027_v0  ;;  %v3405_v7 = vpop.f32.mrf.mxu0  ;;  %v15818_v22 = vld [vmem:[%s26259_s5 + $0xbc8] sm:$0xff] }
 0x3af   : > { %v21727_v18 = vpop.f32.mrf.mxu1  ;;  %5151 = vmatpush1.bf16.msra.mxu0 %v16003_v11  ;;  %v21729_v63 = vpack.c.bf16 %v3405_v7, %v3399_v20  ;;  %v15706_v20 = vld [vmem:[%s26259_s5 + $0x848] sm:$0xff] }
 0x3b0   : > { %5152 = vmatprep.subr.bf16.mxu0 %v15996_v50  ;;  %v15710_v11 = vld [vmem:[%s26259_s5 + $0x868] sm:$0xff] }
 0x3b1   : > { %v3474_v34 = vpop.f32.mrf.mxu1  ;;  %5084 = vmatprep.mubr.bf16.mxu0 %v21729_v63  ;;  %v15866_v50 = vld [vmem:[%s26259_s5 + $0xd48] sm:$0xff]  ;;  %v15964_v7 = vcombine.high %v15706_v20, %v15710_v11 }
 0x3b2   : > { %5085 = vmatmul.mubr.bf16.gmra.mxu0 %v21725_v24 }
 0x3b3   : > { %v3476_v54 = vpop.f32.mrf.mxu1  ;;  %5153 = vmatpush1.bf16.msra.mxu0 %v15995_v4  ;;  %5180 = vmatprep.mubr.bf16.mxu0 %v21705_v32 }
 0x3b4   : > { %5154 = vmatprep.subr.bf16.mxu0 %v15988_v8  ;;  %v16124_v8 = vcombine.high %v15866_v50, %v15870_v21 }
 0x3b5   : > { %v3480_v16 = vpop.f32.mrf.mxu1 }
 0x3b6   : > { %v21754_v0 = vpack.c.bf16 %v3480_v16, %v3474_v34  ;;  %v15698_v34 = vld [vmem:[%s26259_s5 + $0x808] sm:$0xff] }
 0x3b7   : > { %v3482_v41 = vpop.f32.mrf.mxu1  ;;  %5155 = vmatpush1.bf16.msra.mxu0 %v15987_v46  ;;  %v15956_v16 = vcombine.high %v15698_v34, %v15702_v45 }
 0x3b8   : > { %v21752_v33 = vpack.c.bf16 %v3482_v41, %v3476_v54  ;;  %5156 = vmatprep.subr.bf16.mxu0 %v15980_v30  ;;  %v15963_v54 = vcombine.low %v15706_v20, %v15710_v11  ;;  %v16123_v30 = vcombine.low %v15866_v50, %v15870_v21  ;;  %v15854_v41 = vld [vmem:[%s26259_s5 + $0xce8] sm:$0xff] }
 0x3b9   : > { %v3486_v9 = vpop.f32.mrf.mxu1  ;;  %v15810_v20 = vld [vmem:[%s26259_s5 + $0xb88] sm:$0xff] }
 0x3ba   : > { %5127 = vmatprep.mubr.bf16.mxu1 %v21752_v33  ;;  %v15814_v11 = vld [vmem:[%s26259_s5 + $0xba8] sm:$0xff] }
 0x3bb   : > { %v3488_v12 = vpop.f32.mrf.mxu1  ;;  %5128 = vmatmul.mubr.bf16.vlgmr.msra.gmra.mxu1 %v21754_v0  ;;  %5157 = vmatpush1.bf16.msra.mxu0 %v15979_v6  ;;  %v15955_v6 = vcombine.low %v15698_v34, %v15702_v45  ;;  %v15842_v50 = vld [vmem:[%s26259_s5 + $0xc88] sm:$0xff] }
 0x3bc   : > { %5202 = vmatpush1.bf16.msra.mxu1 %v16139_v56  ;;  %5158 = vmatprep.subr.bf16.mxu0 %v15972_v40  ;;  %v16115_v40 = vcombine.low %v15858_v1, %v15862_v28  ;;  %v15846_v21 = vld [vmem:[%s26259_s5 + $0xca8] sm:$0xff]  ;;  %v16067_v1 = vcombine.low %v15810_v20, %v15814_v11 }
 0x3bd   : > { %v3492_v4 = vpop.f32.mrf.mxu1  ;;  %5203 = vmatprep.subr.bf16.mxu1 %v16132_v39  ;;  %v16108_v39 = vcombine.high %v15850_v52, %v15854_v41  ;;  %v15834_v34 = vld [vmem:[%s26259_s5 + $0xc48] sm:$0xff]  ;;  %v16099_v28 = vcombine.low %v15842_v50, %v15846_v21 }
 0x3be   : > { %v21785_v60 = vpack.c.bf16 %v3492_v4, %v3486_v9  ;;  %v16076_v9 = vcombine.high %v15818_v22, %v15822_v19  ;;  %v15802_v4 = vld [vmem:[%s26259_s5 + $0xb48] sm:$0xff] }
 0x3bf   : > { %v3494_v56 = vpop.f32.mrf.mxu1  ;;  %5159 = vmatpush1.bf16.msra.mxu0 %v15971_v42  ;;  %v16107_v42 = vcombine.low %v15850_v52, %v15854_v41  ;;  %v15838_v45 = vld [vmem:[%s26259_s5 + $0xc68] sm:$0xff] }
 0x3c0   : > { %v21787_v46 = vpack.c.bf16 %v3494_v56, %v3488_v12  ;;  %5204 = vmatpush1.bf16.msra.mxu1 %v16131_v58  ;;  %5160 = vmatprep.subr.bf16.mxu0 %v15964_v7  ;;  %v16075_v12 = vcombine.low %v15818_v22, %v15822_v19  ;;  %v16068_v58 = vcombine.high %v15810_v20, %v15814_v11  ;;  %v15830_v22 = vld [vmem:[%s26259_s5 + $0xc28] sm:$0xff] }
 0x3c1   : > { %5205 = vmatprep.subr.bf16.mxu1 %v16124_v8  ;;  %v16100_v7 = vcombine.high %v15842_v50, %v15846_v21  ;;  %v15806_v8 = vld [vmem:[%s26259_s5 + $0xb68] sm:$0xff]  ;;  %v16091_v52 = vcombine.low %v15834_v34, %v15838_v45 }
 0x3c2   : > { %5137 = vmatprep.mubr.bf16.mxu1 %v21787_v46  ;;  %v16060_v56 = vcombine.high %v15802_v4, %v15806_v8  ;;  %v16059_v19 = vcombine.low %v15802_v4, %v15806_v8  ;;  %v15950_v20 = vld [vmem:[%s26259_s5 + $0xfe8] sm:$0xff] }
 0x3c3   : > { %5138 = vmatmul.mubr.bf16.gmra.mxu1 %v21785_v60  ;;  %5161 = vmatpush1.bf16.msra.mxu0 %v15963_v54  ;;  %v16092_v54 = vcombine.high %v15834_v34, %v15838_v45  ;;  %v15942_v4 = vld [vmem:[%s26259_s5 + $0xfa8] sm:$0xff] }
 0x3c4   : > { %5206 = vmatpush1.bf16.msra.mxu1 %v16123_v30  ;;  %5233 = vmatprep.mubr.bf16.mxu1 %v21752_v33  ;;  %v15794_v30 = vld [vmem:[%s26259_s5 + $0xb08] sm:$0xff] }
 0x3c5   : > { %5162 = vmatprep.subr.bf16.mxu0 %v15956_v16  ;;  %5207 = vmatprep.subr.bf16.mxu1 %v16116_v37  ;;  %v15798_v16 = vld [vmem:[%s26259_s5 + $0xb28] sm:$0xff] }
 0x3c6   : > { %v15826_v37 = vld [vmem:[%s26259_s5 + $0xc08] sm:$0xff]  ;;  %v16052_v41 = vcombine.high %v15794_v30, %v15798_v16  ;;  %v16051_v11 = vcombine.low %v15794_v30, %v15798_v16 }
 0x3c7   : > { %5163 = vmatpush1.bf16.msra.mxu0 %v15955_v6  ;;  %v16084_v6 = vcombine.high %v15826_v37, %v15830_v22  ;;  %v16083_v50 = vcombine.low %v15826_v37, %v15830_v22  ;;  %v15934_v30 = vld [vmem:[%s26259_s5 + $0xf68] sm:$0xff] }
 0x3c8   : > { %5208 = vmatpush1.bf16.msra.mxu1 %v16115_v40  ;;  %5164 = vmatprep.subr.bf16.mxu0 %v16076_v9  ;;  %v15786_v40 = vld [vmem:[%s26259_s5 + $0xac8] sm:$0xff] }
 0x3c9   : > { %5209 = vmatprep.subr.bf16.mxu1 %v16108_v39  ;;  %v15790_v9 = vld [vmem:[%s26259_s5 + $0xae8] sm:$0xff] }
 0x3ca   : > { %v15946_v39 = vld [vmem:[%s26259_s5 + $0xfc8] sm:$0xff]  ;;  %v16044_v21 = vcombine.high %v15786_v40, %v15790_v9  ;;  %v16043_v8 = vcombine.low %v15786_v40, %v15790_v9 }
 0x3cb   : > { %5165 = vmatpush2.bf16.msra.mxu0 %v16075_v12  ;;  %v16204_v12 = vcombine.high %v15946_v39, %v15950_v20  ;;  %v16203_v34 = vcombine.low %v15946_v39, %v15950_v20  ;;  %v15926_v40 = vld [vmem:[%s26259_s5 + $0xf28] sm:$0xff] }
 0x3cc   : > { %5210 = vmatpush1.bf16.msra.mxu1 %v16107_v42  ;;  %5166 = vmatprep.subr.bf16.mxu0 %v16068_v58  ;;  %v15778_v42 = vld [vmem:[%s26259_s5 + $0xa88] sm:$0xff] }
 0x3cd   : > { %5211 = vmatprep.subr.bf16.mxu1 %v16100_v7  ;;  %v15782_v58 = vld [vmem:[%s26259_s5 + $0xaa8] sm:$0xff] }
 0x3ce   : > { %v15938_v7 = vld [vmem:[%s26259_s5 + $0xf88] sm:$0xff]  ;;  %v16036_v45 = vcombine.high %v15778_v42, %v15782_v58  ;;  %v16035_v16 = vcombine.low %v15778_v42, %v15782_v58 }
 0x3cf   : > { %5167 = vmatpush2.bf16.msra.mxu0 %v16067_v1  ;;  %v16196_v1 = vcombine.high %v15938_v7, %v15942_v4  ;;  %v16195_v37 = vcombine.low %v15938_v7, %v15942_v4  ;;  %v15918_v42 = vld [vmem:[%s26259_s5 + $0xee8] sm:$0xff] }
 0x3d0   : > { %5212 = vmatpush1.bf16.msra.mxu1 %v16099_v28  ;;  %5168 = vmatprep.subr.bf16.mxu0 %v16060_v56  ;;  %v15770_v28 = vld [vmem:[%s26259_s5 + $0xa48] sm:$0xff] }
 0x3d1   : > { %5213 = vmatprep.subr.bf16.mxu1 %v16092_v54  ;;  %v15774_v56 = vld [vmem:[%s26259_s5 + $0xa68] sm:$0xff] }
 0x3d2   : > { %v15930_v54 = vld [vmem:[%s26259_s5 + $0xf48] sm:$0xff]  ;;  %v16028_v22 = vcombine.high %v15770_v28, %v15774_v56  ;;  %v16027_v9 = vcombine.low %v15770_v28, %v15774_v56 }
 0x3d3   : > { %5169 = vmatpush2.bf16.msra.mxu0 %v16059_v19  ;;  %v16188_v19 = vcombine.high %v15930_v54, %v15934_v30  ;;  %v16187_v39 = vcombine.low %v15930_v54, %v15934_v30  ;;  %v15910_v28 = vld [vmem:[%s26259_s5 + $0xea8] sm:$0xff] }
 0x3d4   : > { %5214 = vmatpush1.bf16.msra.mxu1 %v16091_v52  ;;  %5170 = vmatprep.subr.bf16.mxu0 %v16052_v41  ;;  %v15762_v52 = vld [vmem:[%s26259_s5 + $0xa08] sm:$0xff] }
 0x3d5   : > { %5215 = vmatprep.subr.bf16.mxu1 %v16084_v6  ;;  %v15766_v41 = vld [vmem:[%s26259_s5 + $0xa28] sm:$0xff] }
 0x3d6   : > { %v15922_v6 = vld [vmem:[%s26259_s5 + $0xf08] sm:$0xff]  ;;  %v16020_v20 = vcombine.high %v15762_v52, %v15766_v41  ;;  %v16019_v58 = vcombine.low %v15762_v52, %v15766_v41 }
 0x3d7   : > { %5171 = vmatpush2.bf16.msra.mxu0 %v16051_v11  ;;  %v16180_v11 = vcombine.high %v15922_v6, %v15926_v40  ;;  %v16179_v7 = vcombine.low %v15922_v6, %v15926_v40  ;;  %v15902_v52 = vld [vmem:[%s26259_s5 + $0xe68] sm:$0xff] }
 0x3d8   : > { %5216 = vmatpush1.bf16.msra.mxu1 %v16083_v50  ;;  %5172 = vmatprep.subr.bf16.mxu0 %v16044_v21  ;;  %v15755_v50 = vld [vmem:[%s26259_s5 + $0x9d0] sm:$0xff] }
 0x3d9   : > { %5217 = vmatprep.subr.bf16.mxu1 %v16204_v12  ;;  %v15759_v21 = vld [vmem:[%s26259_s5 + $0x9f0] sm:$0xff]  ;;  %v15914_v12 = vld [vmem:[%s26259_s5 + $0xec8] sm:$0xff] }
 0x3da   : > { %v16014_v4 = vcombine.high %v15755_v50, %v15759_v21  ;;  %v16013_v56 = vcombine.low %v15755_v50, %v15759_v21  ;;  %v16171_v54 = vcombine.low %v15914_v12, %v15918_v42  ;;  %v15894_v50 = vld [vmem:[%s26259_s5 + $0xe28] sm:$0xff] }
 0x3db   : > { %5173 = vmatpush2.bf16.msra.mxu0 %v16043_v8  ;;  %v16172_v8 = vcombine.high %v15914_v12, %v15918_v42 }
 0x3dc   : > { %5218 = vmatpush2.bf16.msra.mxu1 %v16203_v34  ;;  %5174 = vmatprep.subr.bf16.mxu0 %v16036_v45  ;;  %v15747_v34 = vld [vmem:[%s26259_s5 + $0x990] sm:$0xff] }
 0x3dd   : > { %5219 = vmatprep.subr.bf16.mxu1 %v16196_v1  ;;  %v15751_v45 = vld [vmem:[%s26259_s5 + $0x9b0] sm:$0xff]  ;;  %v15906_v1 = vld [vmem:[%s26259_s5 + $0xe88] sm:$0xff] }
 0x3de   : > { %v16006_v30 = vcombine.high %v15747_v34, %v15751_v45  ;;  %v16005_v41 = vcombine.low %v15747_v34, %v15751_v45  ;;  %v16163_v6 = vcombine.low %v15906_v1, %v15910_v28  ;;  %v15887_v34 = vld [vmem:[%s26259_s5 + $0xdf0] sm:$0xff] }
 0x3df   : > { %5175 = vmatpush2.bf16.msra.mxu0 %v16035_v16  ;;  %v16164_v16 = vcombine.high %v15906_v1, %v15910_v28 }
 0x3e0   : > { %5220 = vmatpush2.bf16.msra.mxu1 %v16195_v37  ;;  %5176 = vmatprep.subr.bf16.mxu0 %v16028_v22  ;;  %v15739_v37 = vld [vmem:[%s26259_s5 + $0x950] sm:$0xff] }
 0x3e1   : > { %5221 = vmatprep.subr.bf16.mxu1 %v16188_v19  ;;  %v15743_v22 = vld [vmem:[%s26259_s5 + $0x970] sm:$0xff]  ;;  %v15898_v19 = vld [vmem:[%s26259_s5 + $0xe48] sm:$0xff] }
 0x3e2   : > { %v15998_v40 = vcombine.high %v15739_v37, %v15743_v22  ;;  %v15997_v21 = vcombine.low %v15739_v37, %v15743_v22  ;;  %v16155_v12 = vcombine.low %v15898_v19, %v15902_v52  ;;  %v15879_v37 = vld [vmem:[%s26259_s5 + $0xdb0] sm:$0xff] }
 0x3e3   : > { %5177 = vmatpush2.bf16.msra.mxu0 %v16027_v9  ;;  %v16156_v9 = vcombine.high %v15898_v19, %v15902_v52 }
 0x3e4   : > { %5222 = vmatpush2.bf16.msra.mxu1 %v16187_v39  ;;  %5178 = vmatprep.subr.bf16.mxu0 %v16020_v20  ;;  %v15731_v39 = vld [vmem:[%s26259_s5 + $0x910] sm:$0xff] }
 0x3e5   : > { %5223 = vmatprep.subr.bf16.mxu1 %v16180_v11  ;;  %v15735_v20 = vld [vmem:[%s26259_s5 + $0x930] sm:$0xff]  ;;  %v15890_v11 = vld [vmem:[%s26259_s5 + $0xe08] sm:$0xff] }
 0x3e6   : > { %v15990_v42 = vcombine.high %v15731_v39, %v15735_v20  ;;  %v15989_v45 = vcombine.low %v15731_v39, %v15735_v20  ;;  %v16147_v1 = vcombine.low %v15890_v11, %v15894_v50  ;;  %v15871_v39 = vld [vmem:[%s26259_s5 + $0xd70] sm:$0xff] }
 0x3e7   : > { %5179 = vmatpush2.bf16.msra.mxu0 %v16019_v58  ;;  %v16148_v58 = vcombine.high %v15890_v11, %v15894_v50 }
 0x3e8   : > { %5224 = vmatpush2.bf16.msra.mxu1 %v16179_v7  ;;  %5254 = vmatprep.subr.bf16.mxu0 %v16014_v4  ;;  %v15723_v7 = vld [vmem:[%s26259_s5 + $0x8d0] sm:$0xff] }
 0x3e9   : > { %5225 = vmatprep.subr.bf16.mxu1 %v16172_v8  ;;  %v15727_v4 = vld [vmem:[%s26259_s5 + $0x8f0] sm:$0xff] }
 0x3ea   : > { %5181 = vmatmul.mubr.bf16.vlgmr.msra.gmra.mxu0 %v21701_v36  ;;  %v15883_v8 = vld [vmem:[%s26259_s5 + $0xdd0] sm:$0xff]  ;;  %v15982_v28 = vcombine.high %v15723_v7, %v15727_v4  ;;  %v15981_v22 = vcombine.low %v15723_v7, %v15727_v4 }
 0x3eb   : > { %5255 = vmatpush1.bf16.msra.mxu0 %v16013_v56  ;;  %5190 = vmatprep.mubr.bf16.mxu0 %v21729_v63  ;;  %v16142_v56 = vcombine.high %v15883_v8, %v15887_v34  ;;  %v16141_v19 = vcombine.low %v15883_v8, %v15887_v34  ;;  %v15863_v7 = vld [vmem:[%s26259_s5 + $0xd30] sm:$0xff] }
 0x3ec   : > { %5226 = vmatpush2.bf16.msra.mxu1 %v16171_v54  ;;  %5256 = vmatprep.subr.bf16.mxu0 %v16006_v30  ;;  %v15715_v54 = vld [vmem:[%s26259_s5 + $0x890] sm:$0xff] }
 0x3ed   : > { %5227 = vmatprep.subr.bf16.mxu1 %v16164_v16  ;;  %v15719_v30 = vld [vmem:[%s26259_s5 + $0x8b0] sm:$0xff] }
 0x3ee   : > { %v15875_v16 = vld [vmem:[%s26259_s5 + $0xd90] sm:$0xff]  ;;  %v15974_v52 = vcombine.high %v15715_v54, %v15719_v30  ;;  %v15973_v20 = vcombine.low %v15715_v54, %v15719_v30 }
 0x3ef   : > { %5257 = vmatpush1.bf16.msra.mxu0 %v16005_v41  ;;  %v16134_v41 = vcombine.high %v15875_v16, %v15879_v37  ;;  %v16133_v11 = vcombine.low %v15875_v16, %v15879_v37  ;;  %v15855_v54 = vld [vmem:[%s26259_s5 + $0xcf0] sm:$0xff] }
 0x3f0   : > { %5228 = vmatpush2.bf16.msra.mxu1 %v16163_v6  ;;  %5258 = vmatprep.subr.bf16.mxu0 %v15998_v40  ;;  %v15707_v6 = vld [vmem:[%s26259_s5 + $0x850] sm:$0xff] }
 0x3f1   : > { %5229 = vmatprep.subr.bf16.mxu1 %v16156_v9  ;;  %v15711_v40 = vld [vmem:[%s26259_s5 + $0x870] sm:$0xff] }
 0x3f2   : > { %5191 = vmatmul.mubr.bf16.gmra.mxu0 %v21725_v24  ;;  %v15867_v9 = vld [vmem:[%s26259_s5 + $0xd50] sm:$0xff]  ;;  %v15966_v50 = vcombine.high %v15707_v6, %v15711_v40  ;;  %v15965_v4 = vcombine.low %v15707_v6, %v15711_v40 }
 0x3f3   : > { %5259 = vmatpush1.bf16.msra.mxu0 %v15997_v21  ;;  %5286 = vmatprep.mubr.bf16.mxu0 %v21705_v32  ;;  %v16126_v21 = vcombine.high %v15867_v9, %v15871_v39  ;;  %v16125_v8 = vcombine.low %v15867_v9, %v15871_v39  ;;  %v15847_v6 = vld [vmem:[%s26259_s5 + $0xcb0] sm:$0xff] }
 0x3f4   : > { %5230 = vmatpush2.bf16.msra.mxu1 %v16155_v12  ;;  %5260 = vmatprep.subr.bf16.mxu0 %v15990_v42  ;;  %v15699_v12 = vld [vmem:[%s26259_s5 + $0x810] sm:$0xff] }
 0x3f5   : > { %5231 = vmatprep.subr.bf16.mxu1 %v16148_v58  ;;  %v15703_v42 = vld [vmem:[%s26259_s5 + $0x830] sm:$0xff] }
 0x3f6   : > { %v15859_v58 = vld [vmem:[%s26259_s5 + $0xd10] sm:$0xff]  ;;  %v15958_v34 = vcombine.high %v15699_v12, %v15703_v42  ;;  %v15957_v30 = vcombine.low %v15699_v12, %v15703_v42 }
 0x3f7   : > { %5261 = vmatpush1.bf16.msra.mxu0 %v15989_v45  ;;  %v16118_v45 = vcombine.high %v15859_v58, %v15863_v7  ;;  %v16117_v16 = vcombine.low %v15859_v58, %v15863_v7  ;;  %v15839_v12 = vld [vmem:[%s26259_s5 + $0xc70] sm:$0xff] }
 0x3f8   : > { %5232 = vmatpush2.bf16.msra.mxu1 %v16147_v1  ;;  %5262 = vmatprep.subr.bf16.mxu0 %v15982_v28  ;;  %v15819_v1 = vld [vmem:[%s26259_s5 + $0xbd0] sm:$0xff] }
 0x3f9   : > { %5307 = vmatprep.subr.bf16.mxu1 %v16142_v56  ;;  %v15823_v28 = vld [vmem:[%s26259_s5 + $0xbf0] sm:$0xff] }
 0x3fa   : > { %v15851_v56 = vld [vmem:[%s26259_s5 + $0xcd0] sm:$0xff]  ;;  %v16078_v37 = vcombine.high %v15819_v1, %v15823_v28  ;;  %v16077_v40 = vcombine.low %v15819_v1, %v15823_v28 }
 0x3fb   : > { %5234 = vmatmul.mubr.bf16.vlgmr.msra.gmra.mxu1 %v21754_v0  ;;  %5263 = vmatpush1.bf16.msra.mxu0 %v15981_v22  ;;  %v16110_v22 = vcombine.high %v15851_v56, %v15855_v54  ;;  %v16109_v9 = vcombine.low %v15851_v56, %v15855_v54  ;;  %v15831_v1 = vld [vmem:[%s26259_s5 + $0xc30] sm:$0xff] }
 0x3fc   : > { %5243 = vmatprep.mubr.bf16.mxu1 %v21787_v46  ;;  %5308 = vmatpush1.bf16.msra.mxu1 %v16141_v19  ;;  %v15811_v19 = vld [vmem:[%s26259_s5 + $0xb90] sm:$0xff] }
 0x3fd   : > { %5264 = vmatprep.subr.bf16.mxu0 %v15974_v52  ;;  %5309 = vmatprep.subr.bf16.mxu1 %v16134_v41  ;;  %v15815_v52 = vld [vmem:[%s26259_s5 + $0xbb0] sm:$0xff] }
 0x3fe   : > { %v15843_v41 = vld [vmem:[%s26259_s5 + $0xc90] sm:$0xff]  ;;  %v16070_v39 = vcombine.high %v15811_v19, %v15815_v52  ;;  %v16069_v42 = vcombine.low %v15811_v19, %v15815_v52 }
 0x3ff   : > { %5265 = vmatpush1.bf16.msra.mxu0 %v15973_v20  ;;  %v16102_v20 = vcombine.high %v15843_v41, %v15847_v6  ;;  %v16101_v58 = vcombine.low %v15843_v41, %v15847_v6  ;;  %v15951_v19 = vld [vmem:[%s26259_s5 + $0xff0] sm:$0xff] }
 0x400   : > { %5310 = vmatpush1.bf16.msra.mxu1 %v16133_v11  ;;  %5266 = vmatprep.subr.bf16.mxu0 %v15966_v50  ;;  %v15803_v11 = vld [vmem:[%s26259_s5 + $0xb50] sm:$0xff] }
 0x401   : > { %5311 = vmatprep.subr.bf16.mxu1 %v16126_v21  ;;  %v15807_v50 = vld [vmem:[%s26259_s5 + $0xb70] sm:$0xff] }
 0x402   : > { %v15835_v21 = vld [vmem:[%s26259_s5 + $0xc50] sm:$0xff]  ;;  %v16062_v7 = vcombine.high %v15803_v11, %v15807_v50  ;;  %v16061_v28 = vcombine.low %v15803_v11, %v15807_v50 }
 0x403   : > { %5244 = vmatmul.mubr.bf16.gmra.mxu1 %v21785_v60  ;;  %5267 = vmatpush1.bf16.msra.mxu0 %v15965_v4  ;;  %v16094_v4 = vcombine.high %v15835_v21, %v15839_v12  ;;  %v16093_v56 = vcombine.low %v15835_v21, %v15839_v12  ;;  %v15943_v11 = vld [vmem:[%s26259_s5 + $0xfb0] sm:$0xff] }
 0x404   : > { %5312 = vmatpush1.bf16.msra.mxu1 %v16125_v8  ;;  %5339 = vmatprep.mubr.bf16.mxu1 %v21752_v33  ;;  %v15795_v8 = vld [vmem:[%s26259_s5 + $0xb10] sm:$0xff] }
 0x405   : > { %5268 = vmatprep.subr.bf16.mxu0 %v15958_v34  ;;  %5313 = vmatprep.subr.bf16.mxu1 %v16118_v45  ;;  %v15799_v34 = vld [vmem:[%s26259_s5 + $0xb30] sm:$0xff] }
 0x406   : > { %v15827_v45 = vld [vmem:[%s26259_s5 + $0xc10] sm:$0xff]  ;;  %v16054_v54 = vcombine.high %v15795_v8, %v15799_v34  ;;  %v16053_v52 = vcombine.low %v15795_v8, %v15799_v34 }
 0x407   : > { %5269 = vmatpush1.bf16.msra.mxu0 %v15957_v30  ;;  %v16086_v30 = vcombine.high %v15827_v45, %v15831_v1  ;;  %v16085_v41 = vcombine.low %v15827_v45, %v15831_v1  ;;  %v15935_v8 = vld [vmem:[%s26259_s5 + $0xf70] sm:$0xff] }
 0x408   : > { %5314 = vmatpush1.bf16.msra.mxu1 %v16117_v16  ;;  %5270 = vmatprep.subr.bf16.mxu0 %v16078_v37  ;;  %v15787_v16 = vld [vmem:[%s26259_s5 + $0xad0] sm:$0xff] }
 0x409   : > { %5315 = vmatprep.subr.bf16.mxu1 %v16110_v22  ;;  %v15791_v37 = vld [vmem:[%s26259_s5 + $0xaf0] sm:$0xff] }
 0x40a   : > { %v15947_v22 = vld [vmem:[%s26259_s5 + $0xfd0] sm:$0xff]  ;;  %v16046_v6 = vcombine.high %v15787_v16, %v15791_v37  ;;  %v16045_v50 = vcombine.low %v15787_v16, %v15791_v37 }
 0x40b   : > { %5271 = vmatpush2.bf16.msra.mxu0 %v16077_v40  ;;  %v16206_v40 = vcombine.high %v15947_v22, %v15951_v19  ;;  %v16205_v21 = vcombine.low %v15947_v22, %v15951_v19  ;;  %v15927_v16 = vld [vmem:[%s26259_s5 + $0xf30] sm:$0xff] }
 0x40c   : > { %5316 = vmatpush1.bf16.msra.mxu1 %v16109_v9  ;;  %5272 = vmatprep.subr.bf16.mxu0 %v16070_v39  ;;  %v15779_v9 = vld [vmem:[%s26259_s5 + $0xa90] sm:$0xff] }
 0x40d   : > { %5317 = vmatprep.subr.bf16.mxu1 %v16102_v20  ;;  %v15783_v39 = vld [vmem:[%s26259_s5 + $0xab0] sm:$0xff] }
 0x40e   : > { %v15939_v20 = vld [vmem:[%s26259_s5 + $0xf90] sm:$0xff]  ;;  %v16038_v12 = vcombine.high %v15779_v9, %v15783_v39  ;;  %v16037_v34 = vcombine.low %v15779_v9, %v15783_v39 }
 0x40f   : > { %5273 = vmatpush2.bf16.msra.mxu0 %v16069_v42  ;;  %v16198_v42 = vcombine.high %v15939_v20, %v15943_v11  ;;  %v16197_v45 = vcombine.low %v15939_v20, %v15943_v11  ;;  %v15919_v9 = vld [vmem:[%s26259_s5 + $0xef0] sm:$0xff] }
 0x410   : > { %5318 = vmatpush1.bf16.msra.mxu1 %v16101_v58  ;;  %5274 = vmatprep.subr.bf16.mxu0 %v16062_v7  ;;  %v15771_v58 = vld [vmem:[%s26259_s5 + $0xa50] sm:$0xff] }
 0x411   : > { %5319 = vmatprep.subr.bf16.mxu1 %v16094_v4  ;;  %v15775_v7 = vld [vmem:[%s26259_s5 + $0xa70] sm:$0xff] }
 0x412   : > { %v15931_v4 = vld [vmem:[%s26259_s5 + $0xf50] sm:$0xff]  ;;  %v16030_v1 = vcombine.high %v15771_v58, %v15775_v7  ;;  %v16029_v37 = vcombine.low %v15771_v58, %v15775_v7 }
 0x413   : > { %5275 = vmatpush2.bf16.msra.mxu0 %v16061_v28  ;;  %v16190_v28 = vcombine.high %v15931_v4, %v15935_v8  ;;  %v16189_v22 = vcombine.low %v15931_v4, %v15935_v8  ;;  %v15911_v58 = vld [vmem:[%s26259_s5 + $0xeb0] sm:$0xff] }
 0x414   : > { %5320 = vmatpush1.bf16.msra.mxu1 %v16093_v56  ;;  %5276 = vmatprep.subr.bf16.mxu0 %v16054_v54  ;;  %v15763_v56 = vld [vmem:[%s26259_s5 + $0xa10] sm:$0xff] }
 0x415   : > { %5321 = vmatprep.subr.bf16.mxu1 %v16086_v30  ;;  %v15767_v54 = vld [vmem:[%s26259_s5 + $0xa30] sm:$0xff] }
 0x416   : > { %v15923_v30 = vld [vmem:[%s26259_s5 + $0xf10] sm:$0xff]  ;;  %v16022_v19 = vcombine.high %v15763_v56, %v15767_v54  ;;  %v16021_v39 = vcombine.low %v15763_v56, %v15767_v54 }
 0x417   : > { %5277 = vmatpush2.bf16.msra.mxu0 %v16053_v52  ;;  %v16182_v52 = vcombine.high %v15923_v30, %v15927_v16  ;;  %v16181_v20 = vcombine.low %v15923_v30, %v15927_v16  ;;  %v15903_v56 = vld [vmem:[%s26259_s5 + $0xe70] sm:$0xff] }
 0x418   : > { %5322 = vmatpush1.bf16.msra.mxu1 %v16085_v41  ;;  %5278 = vmatprep.subr.bf16.mxu0 %v16046_v6  ;;  %v15756_v41 = vld [vmem:[%s26259_s5 + $0x9d8] sm:$0xff] }
 0x419   : > { %5323 = vmatprep.subr.bf16.mxu1 %v16206_v40  ;;  %v15760_v6 = vld [vmem:[%s26259_s5 + $0x9f8] sm:$0xff]  ;;  %v15915_v40 = vld [vmem:[%s26259_s5 + $0xed0] sm:$0xff] }
 0x41a   : > { %v16016_v11 = vcombine.high %v15756_v41, %v15760_v6  ;;  %v16015_v7 = vcombine.low %v15756_v41, %v15760_v6  ;;  %v16173_v4 = vcombine.low %v15915_v40, %v15919_v9  ;;  %v15895_v41 = vld [vmem:[%s26259_s5 + $0xe30] sm:$0xff] }
 0x41b   : > { %5279 = vmatpush2.bf16.msra.mxu0 %v16045_v50  ;;  %v16174_v50 = vcombine.high %v15915_v40, %v15919_v9 }
 0x41c   : > { %5324 = vmatpush2.bf16.msra.mxu1 %v16205_v21  ;;  %5280 = vmatprep.subr.bf16.mxu0 %v16038_v12  ;;  %v15748_v21 = vld [vmem:[%s26259_s5 + $0x998] sm:$0xff] }
 0x41d   : > { %5325 = vmatprep.subr.bf16.mxu1 %v16198_v42  ;;  %v15752_v12 = vld [vmem:[%s26259_s5 + $0x9b8] sm:$0xff]  ;;  %v15907_v42 = vld [vmem:[%s26259_s5 + $0xe90] sm:$0xff] }
 0x41e   : > { %v16008_v8 = vcombine.high %v15748_v21, %v15752_v12  ;;  %v16007_v54 = vcombine.low %v15748_v21, %v15752_v12  ;;  %v16165_v30 = vcombine.low %v15907_v42, %v15911_v58  ;;  %v15888_v21 = vld [vmem:[%s26259_s5 + $0xdf8] sm:$0xff] }
 0x41f   : > { %5281 = vmatpush2.bf16.msra.mxu0 %v16037_v34  ;;  %v16166_v34 = vcombine.high %v15907_v42, %v15911_v58 }
 0x420   : > { %5326 = vmatpush2.bf16.msra.mxu1 %v16197_v45  ;;  %5282 = vmatprep.subr.bf16.mxu0 %v16030_v1  ;;  %v15740_v45 = vld [vmem:[%s26259_s5 + $0x958] sm:$0xff] }
 0x421   : > { %5327 = vmatprep.subr.bf16.mxu1 %v16190_v28  ;;  %v15744_v1 = vld [vmem:[%s26259_s5 + $0x978] sm:$0xff]  ;;  %v15899_v28 = vld [vmem:[%s26259_s5 + $0xe50] sm:$0xff] }
 0x422   : > { %v16000_v16 = vcombine.high %v15740_v45, %v15744_v1  ;;  %v15999_v6 = vcombine.low %v15740_v45, %v15744_v1  ;;  %v16157_v40 = vcombine.low %v15899_v28, %v15903_v56 }
 0x423   : > { %5283 = vmatpush2.bf16.msra.mxu0 %v16029_v37  ;;  %v16158_v37 = vcombine.high %v15899_v28, %v15903_v56 }
 0x424   : > { %5328 = vmatpush2.bf16.msra.mxu1 %v16189_v22  ;;  %5284 = vmatprep.subr.bf16.mxu0 %v16022_v19  ;;  %v15732_v22 = vld [vmem:[%s26259_s5 + $0x918] sm:$0xff] }
 0x425   : > { %5329 = vmatprep.subr.bf16.mxu1 %v16182_v52  ;;  %v15736_v19 = vld [vmem:[%s26259_s5 + $0x938] sm:$0xff]  ;;  %v15891_v52 = vld [vmem:[%s26259_s5 + $0xe10] sm:$0xff] }
 0x426   : > { %v15992_v9 = vcombine.high %v15732_v22, %v15736_v19  ;;  %v15991_v12 = vcombine.low %v15732_v22, %v15736_v19  ;;  %v16149_v42 = vcombine.low %v15891_v52, %v15895_v41 }
 0x427   : > { %5285 = vmatpush2.bf16.msra.mxu0 %v16021_v39  ;;  %v16150_v39 = vcombine.high %v15891_v52, %v15895_v41 }
 0x428   : > { %5330 = vmatpush2.bf16.msra.mxu1 %v16181_v20  ;;  %5360 = vmatprep.subr.bf16.mxu0 %v16016_v11  ;;  %v15724_v20 = vld [vmem:[%s26259_s5 + $0x8d8] sm:$0xff] }
 0x429   : > { %5331 = vmatprep.subr.bf16.mxu1 %v16174_v50  ;;  %v15728_v11 = vld [vmem:[%s26259_s5 + $0x8f8] sm:$0xff] }
 0x42a   : > { %5287 = vmatmul.mubr.bf16.vlgmr.msra.gmra.mxu0 %v21701_v36  ;;  %v15884_v50 = vld [vmem:[%s26259_s5 + $0xdd8] sm:$0xff]  ;;  %v15984_v58 = vcombine.high %v15724_v20, %v15728_v11  ;;  %v15983_v45 = vcombine.low %v15724_v20, %v15728_v11 }
 0x42b   : > { %5296 = vmatprep.mubr.bf16.mxu0 %v21729_v63  ;;  %5361 = vmatpush1.bf16.msra.mxu0 %v16015_v7  ;;  %v16144_v7 = vcombine.high %v15884_v50, %v15888_v21  ;;  %v16143_v1 = vcombine.low %v15884_v50, %v15888_v21 }
 0x42c   : > { %5332 = vmatpush2.bf16.msra.mxu1 %v16173_v4  ;;  %5362 = vmatprep.subr.bf16.mxu0 %v16008_v8  ;;  %v15716_v4 = vld [vmem:[%s26259_s5 + $0x898] sm:$0xff] }
 0x42d   : > { %5333 = vmatprep.subr.bf16.mxu1 %v16166_v34  ;;  %v15720_v8 = vld [vmem:[%s26259_s5 + $0x8b8] sm:$0xff] }
 0x42e   : > { %v15876_v34 = vld [vmem:[%s26259_s5 + $0xd98] sm:$0xff]  ;;  %v15976_v28 = vcombine.high %v15716_v4, %v15720_v8  ;;  %v15975_v22 = vcombine.low %v15716_v4, %v15720_v8 }
 0x42f   : > { %5363 = vmatpush1.bf16.msra.mxu0 %v16007_v54  ;;  %v15708_v54 = vld [vmem:[%s26259_s5 + $0x858] sm:$0xff] }
 0x430   : > { %5334 = vmatpush2.bf16.msra.mxu1 %v16165_v30  ;;  %5364 = vmatprep.subr.bf16.mxu0 %v16000_v16  ;;  %v15712_v30 = vld [vmem:[%s26259_s5 + $0x878] sm:$0xff] }
 0x431   : > { %5335 = vmatprep.subr.bf16.mxu1 %v16158_v37  ;;  %v15868_v16 = vld [vmem:[%s26259_s5 + $0xd58] sm:$0xff]  ;;  %v15968_v52 = vcombine.high %v15708_v54, %v15712_v30  ;;  %v15967_v20 = vcombine.low %v15708_v54, %v15712_v30 }
 0x432   : > { %5297 = vmatmul.mubr.bf16.gmra.mxu0 %v21725_v24  ;;  %v15872_v37 = vld [vmem:[%s26259_s5 + $0xd78] sm:$0xff] }
 0x433   : > { %5365 = vmatpush1.bf16.msra.mxu0 %v15999_v6  ;;  %5392 = vmatprep.mubr.bf16.mxu0 %v21705_v32  ;;  %v15880_v32 = vld [vmem:[%s26259_s5 + $0xdb8] sm:$0xff]  ;;  %v16128_v41 = vcombine.high %v15868_v16, %v15872_v37  ;;  %v16127_v11 = vcombine.low %v15868_v16, %v15872_v37 }
 0x434   : > { %5336 = vmatpush2.bf16.msra.mxu1 %v16157_v40  ;;  %5366 = vmatprep.subr.bf16.mxu0 %v15992_v9  ;;  %v16136_v56 = vcombine.high %v15876_v34, %v15880_v32  ;;  %v16135_v19 = vcombine.low %v15876_v34, %v15880_v32  ;;  %v15700_v6 = vld [vmem:[%s26259_s5 + $0x818] sm:$0xff] }
 0x435   : > { %5337 = vmatprep.subr.bf16.mxu1 %v16150_v39  ;;  %v15704_v40 = vld [vmem:[%s26259_s5 + $0x838] sm:$0xff] }
 0x436   : > { %v15860_v9 = vld [vmem:[%s26259_s5 + $0xd18] sm:$0xff]  ;;  %v15960_v50 = vcombine.high %v15700_v6, %v15704_v40  ;;  %v15959_v4 = vcombine.low %v15700_v6, %v15704_v40 }
 0x437   : > { %5367 = vmatpush1.bf16.msra.mxu0 %v15991_v12  ;;  %v15864_v39 = vld [vmem:[%s26259_s5 + $0xd38] sm:$0xff] }
 0x438   : > { %5338 = vmatpush2.bf16.msra.mxu1 %v16149_v42  ;;  %5368 = vmatprep.subr.bf16.mxu0 %v15984_v58  ;;  %v16120_v21 = vcombine.high %v15860_v9, %v15864_v39  ;;  %v15820_v12 = vld [vmem:[%s26259_s5 + $0xbd8] sm:$0xff]  ;;  %v16119_v8 = vcombine.low %v15860_v9, %v15864_v39 }
 0x439   : > { %5413 = vmatprep.subr.bf16.mxu1 %v16144_v7  ;;  %v15824_v42 = vld [vmem:[%s26259_s5 + $0xbf8] sm:$0xff] }
 0x43a   : > { %v15852_v58 = vld [vmem:[%s26259_s5 + $0xcd8] sm:$0xff]  ;;  %v16080_v34 = vcombine.high %v15820_v12, %v15824_v42 }
 0x43b   : > { %5340 = vmatmul.mubr.bf16.vlgmr.msra.gmra.mxu1 %v21754_v0  ;;  %5369 = vmatpush1.bf16.msra.mxu0 %v15983_v45  ;;  %v15856_v7 = vld [vmem:[%s26259_s5 + $0xcf8] sm:$0xff] }
 0x43c   : > { %5349 = vmatprep.mubr.bf16.mxu1 %v21787_v46  ;;  %5414 = vmatpush1.bf16.msra.mxu1 %v16143_v1  ;;  %v16112_v32 = vcombine.high %v15852_v58, %v15856_v7  ;;  %v15812_v45 = vld [vmem:[%s26259_s5 + $0xb98] sm:$0xff]  ;;  %v16111_v54 = vcombine.low %v15852_v58, %v15856_v7 }
 0x43d   : > { %5370 = vmatprep.subr.bf16.mxu0 %v15976_v28  ;;  %5415 = vmatprep.subr.bf16.mxu1 %v16136_v56  ;;  %v15816_v1 = vld [vmem:[%s26259_s5 + $0xbb8] sm:$0xff]  ;;  %v16079_v56 = vcombine.low %v15820_v12, %v15824_v42 }
 0x43e   : > { %v15844_v28 = vld [vmem:[%s26259_s5 + $0xc98] sm:$0xff]  ;;  %v16072_v30 = vcombine.high %v15812_v45, %v15816_v1 }
 0x43f   : > { %5371 = vmatpush1.bf16.msra.mxu0 %v15975_v22  ;;  %v15804_v37 = vld [vmem:[%s26259_s5 + $0xb58] sm:$0xff] }
 0x440   : > { %5416 = vmatpush1.bf16.msra.mxu1 %v16135_v19  ;;  %5372 = vmatprep.subr.bf16.mxu0 %v15968_v52  ;;  %v15808_v22 = vld [vmem:[%s26259_s5 + $0xb78] sm:$0xff] }
 0x441   : > { %5417 = vmatprep.subr.bf16.mxu1 %v16128_v41  ;;  %v15836_v19 = vld [vmem:[%s26259_s5 + $0xc58] sm:$0xff]  ;;  %v16071_v41 = vcombine.low %v15812_v45, %v15816_v1  ;;  %v16064_v40 = vcombine.high %v15804_v37, %v15808_v22 }
 0x442   : > { %v15840_v52 = vld [vmem:[%s26259_s5 + $0xc78] sm:$0xff] }
 0x443   : > { %5350 = vmatmul.mubr.bf16.gmra.mxu1 %v21785_v60  ;;  %5373 = vmatpush1.bf16.msra.mxu0 %v15967_v20  ;;  %v16096_v9 = vcombine.high %v15836_v19, %v15840_v52  ;;  %v15796_v39 = vld [vmem:[%s26259_s5 + $0xb18] sm:$0xff]  ;;  %v16095_v12 = vcombine.low %v15836_v19, %v15840_v52 }
 0x444   : > { %5418 = vmatpush1.bf16.msra.mxu1 %v16127_v11  ;;  %5445 = vmatprep.mubr.bf16.mxu1 %v21752_v33  ;;  %v15848_v33 = vld [vmem:[%s26259_s5 + $0xcb8] sm:$0xff] }
 0x445   : > { %5374 = vmatprep.subr.bf16.mxu0 %v15960_v50  ;;  %5419 = vmatprep.subr.bf16.mxu1 %v16120_v21  ;;  %v16104_v16 = vcombine.high %v15844_v28, %v15848_v33  ;;  %v16103_v6 = vcombine.low %v15844_v28, %v15848_v33  ;;  %v15800_v20 = vld [vmem:[%s26259_s5 + $0xb38] sm:$0xff]  ;;  %v16063_v21 = vcombine.low %v15804_v37, %v15808_v22 }
 0x446   : > { %v15828_v11 = vld [vmem:[%s26259_s5 + $0xc18] sm:$0xff]  ;;  %v16056_v42 = vcombine.high %v15796_v39, %v15800_v20 }
 0x447   : > { %5375 = vmatpush1.bf16.msra.mxu0 %v15959_v4  ;;  %v15832_v50 = vld [vmem:[%s26259_s5 + $0xc38] sm:$0xff] }
 0x448   : > { %5420 = vmatpush1.bf16.msra.mxu1 %v16119_v8  ;;  %5376 = vmatprep.subr.bf16.mxu0 %v16080_v34  ;;  %v16088_v58 = vcombine.high %v15828_v11, %v15832_v50  ;;  %v15788_v7 = vld [vmem:[%s26259_s5 + $0xad8] sm:$0xff]  ;;  %v16087_v45 = vcombine.low %v15828_v11, %v15832_v50 }
 0x449   : > { %5421 = vmatprep.subr.bf16.mxu1 %v16112_v32  ;;  %v15792_v4 = vld [vmem:[%s26259_s5 + $0xaf8] sm:$0xff]  ;;  %v16055_v32 = vcombine.low %v15796_v39, %v15800_v20 }
 0x44a   : > { %v15948_v8 = vld [vmem:[%s26259_s5 + $0xfd8] sm:$0xff]  ;;  %v16048_v1 = vcombine.high %v15788_v7, %v15792_v4 }
 0x44b   : > { %5377 = vmatpush2.bf16.msra.mxu0 %v16079_v56  ;;  %v15952_v34 = vld [vmem:[%s26259_s5 + $0xff8] sm:$0xff] }
 0x44c   : > { %5422 = vmatpush1.bf16.msra.mxu1 %v16111_v54  ;;  %5378 = vmatprep.subr.bf16.mxu0 %v16072_v30  ;;  %v16208_v28 = vcombine.high %v15948_v8, %v15952_v34  ;;  %v15780_v33 = vld [vmem:[%s26259_s5 + $0xa98] sm:$0xff]  ;;  %v16207_v37 = vcombine.low %v15948_v8, %v15952_v34  ;;  %v3102_v34 = vld [vmem:[%s26259_s5 + $0x1c0] sm:$0xff] }
 0x44d   : > { %5423 = vmatprep.subr.bf16.mxu1 %v16104_v16  ;;  %v15784_v56 = vld [vmem:[%s26259_s5 + $0xab8] sm:$0xff]  ;;  %v16047_v16 = vcombine.low %v15788_v7, %v15792_v4 }
 0x44e   : > { %v15940_v54 = vld [vmem:[%s26259_s5 + $0xf98] sm:$0xff]  ;;  %v16040_v22 = vcombine.high %v15780_v33, %v15784_v56 }
 0x44f   : > { %5379 = vmatpush2.bf16.msra.mxu0 %v16071_v41  ;;  %v15944_v30 = vld [vmem:[%s26259_s5 + $0xfb8] sm:$0xff] }
 0x450   : > { %5424 = vmatpush1.bf16.msra.mxu1 %v16103_v6  ;;  %5380 = vmatprep.subr.bf16.mxu0 %v16064_v40  ;;  %v16200_v19 = vcombine.high %v15940_v54, %v15944_v30  ;;  %v15772_v52 = vld [vmem:[%s26259_s5 + $0xa58] sm:$0xff]  ;;  %v16199_v39 = vcombine.low %v15940_v54, %v15944_v30  ;;  %v3094_v30 = vld [vmem:[%s26259_s5 + $0x180] sm:$0xff] }
 0x451   : > { %5425 = vmatprep.subr.bf16.mxu1 %v16096_v9  ;;  %v15776_v41 = vld [vmem:[%s26259_s5 + $0xa78] sm:$0xff]  ;;  %v16039_v9 = vcombine.low %v15780_v33, %v15784_v56 }
 0x452   : > { %v15932_v6 = vld [vmem:[%s26259_s5 + $0xf58] sm:$0xff]  ;;  %v16032_v20 = vcombine.high %v15772_v52, %v15776_v41 }
 0x453   : > { %5381 = vmatpush2.bf16.msra.mxu0 %v16063_v21  ;;  %v15936_v40 = vld [vmem:[%s26259_s5 + $0xf78] sm:$0xff] }
 0x454   : > { %5426 = vmatpush1.bf16.msra.mxu1 %v16095_v12  ;;  %5382 = vmatprep.subr.bf16.mxu0 %v16056_v42  ;;  %v16192_v11 = vcombine.high %v15932_v6, %v15936_v40  ;;  %v15764_v50 = vld [vmem:[%s26259_s5 + $0xa18] sm:$0xff]  ;;  %v16191_v7 = vcombine.low %v15932_v6, %v15936_v40  ;;  %v3086_v40 = vld [vmem:[%s26259_s5 + $0x140] sm:$0xff] }
 0x455   : > { %5427 = vmatprep.subr.bf16.mxu1 %v16088_v58  ;;  %v15768_v21 = vld [vmem:[%s26259_s5 + $0xa38] sm:$0xff]  ;;  %v16031_v58 = vcombine.low %v15772_v52, %v15776_v41 }
 0x456   : > { %v15924_v12 = vld [vmem:[%s26259_s5 + $0xf18] sm:$0xff]  ;;  %v16024_v4 = vcombine.high %v15764_v50, %v15768_v21 }
 0x457   : > { %5383 = vmatpush2.bf16.msra.mxu0 %v16055_v32  ;;  %v15928_v42 = vld [vmem:[%s26259_s5 + $0xf38] sm:$0xff]  ;;  %v3106_v32 = vld [vmem:[%s26259_s5 + $0x1e0] sm:$0xff] }
 0x458   : > { %5428 = vmatpush1.bf16.msra.mxu1 %v16087_v45  ;;  %5384 = vmatprep.subr.bf16.mxu0 %v16048_v1  ;;  %v16184_v8 = vcombine.high %v15924_v12, %v15928_v42  ;;  %v15916_v45 = vld [vmem:[%s26259_s5 + $0xed8] sm:$0xff]  ;;  %v16183_v33 = vcombine.low %v15924_v12, %v15928_v42  ;;  %v16266_v56 = vcombine.high %v3102_v34, %v3106_v32  ;;  %v3082_v42 = vld [vmem:[%s26259_s5 + $0x120] sm:$0xff] }
 0x459   : > { %5429 = vmatprep.subr.bf16.mxu1 %v16208_v28  ;;  %v15920_v1 = vld [vmem:[%s26259_s5 + $0xef8] sm:$0xff]  ;;  %v16023_v28 = vcombine.low %v15764_v50, %v15768_v21 }
 0x45a   : > { %v16176_v54 = vcombine.high %v15916_v45, %v15920_v1  ;;  %v16175_v52 = vcombine.low %v15916_v45, %v15920_v1  ;;  %v3070_v1 = vld [vmem:[%s26259_s5 + $0xc0] sm:$0xff] }
 0x45b   : > { %5385 = vmatpush2.bf16.msra.mxu0 %v16047_v16  ;;  %v3098_v16 = vld [vmem:[%s26259_s5 + $0x1a0] sm:$0xff] }
 0x45c   : > { %5430 = vmatpush2.bf16.msra.mxu1 %v16207_v37  ;;  %5386 = vmatprep.subr.bf16.mxu0 %v16040_v22  ;;  %v15908_v37 = vld [vmem:[%s26259_s5 + $0xe98] sm:$0xff]  ;;  %v16258_v41 = vcombine.high %v3094_v30, %v3098_v16 }
 0x45d   : > { %5431 = vmatprep.subr.bf16.mxu1 %v16200_v19  ;;  %v15912_v22 = vld [vmem:[%s26259_s5 + $0xeb8] sm:$0xff]  ;;  %v16265_v19 = vcombine.low %v3102_v34, %v3106_v32  ;;  %v22340_v34 = vpack.c.bf16 %v21687_v25, %v21679_v26  ;;  %v3234_v26 = vld [vmem:[%s26259_s5 + $0x5e0] sm:$0xff] }
 0x45e   : > { %v16168_v6 = vcombine.high %v15908_v37, %v15912_v22  ;;  %v16167_v50 = vcombine.low %v15908_v37, %v15912_v22  ;;  %v3066_v37 = vld [vmem:[%s26259_s5 + $0xa0] sm:$0xff] }
 0x45f   : > { %5387 = vmatpush2.bf16.msra.mxu0 %v16039_v9  ;;  %v3090_v9 = vld [vmem:[%s26259_s5 + $0x160] sm:$0xff] }
 0x460   : > { %5432 = vmatpush2.bf16.msra.mxu1 %v16199_v39  ;;  %5388 = vmatprep.subr.bf16.mxu0 %v16032_v20  ;;  %v15900_v39 = vld [vmem:[%s26259_s5 + $0xe58] sm:$0xff]  ;;  %v16250_v21 = vcombine.high %v3086_v40, %v3090_v9  ;;  %v3222_v22 = vld [vmem:[%s26259_s5 + $0x580] sm:$0xff] }
 0x461   : > { %5433 = vmatprep.subr.bf16.mxu1 %v16192_v11  ;;  %v15904_v20 = vld [vmem:[%s26259_s5 + $0xe78] sm:$0xff]  ;;  %v16257_v11 = vcombine.low %v3094_v30, %v3098_v16 }
 0x462   : > { %v16160_v12 = vcombine.high %v15900_v39, %v15904_v20 }
 0x463   : > { %5389 = vmatpush2.bf16.msra.mxu0 %v16031_v58  ;;  %v15896_v58 = vld [vmem:[%s26259_s5 + $0xe38] sm:$0xff] }
 0x464   : > { %5434 = vmatpush2.bf16.msra.mxu1 %v16191_v7  ;;  %5390 = vmatprep.subr.bf16.mxu0 %v16024_v4  ;;  %v16249_v7 = vcombine.low %v3086_v40, %v3090_v9  ;;  %v16159_v4 = vcombine.low %v15900_v39, %v15904_v20  ;;  %v3054_v39 = vld [vmem:[%s26259_s5 + $0x40] sm:$0xff] }
 0x465   : > { %5435 = vmatprep.subr.bf16.mxu1 %v16184_v8  ;;  %v3058_v20 = vld [vmem:[%s26259_s5 + $0x60] sm:$0xff] }
 0x467   : > { %5391 = vmatpush2.bf16.msra.mxu0 %v16023_v28  ;;  %v3074_v28 = vld [vmem:[%s26259_s5 + $0xe0] sm:$0xff] }
 0x468   : > { %5436 = vmatpush2.bf16.msra.mxu1 %v16183_v33  ;;  %6746 = vmatprep.subr.bf16.mxu0 %v16266_v56  ;;  %v3230_v33 = vld [vmem:[%s26259_s5 + $0x5c0] sm:$0xff] }
 0x469   : > { %5437 = vmatprep.subr.bf16.mxu1 %v16176_v54  ;;  %v16234_v54 = vcombine.high %v3070_v1, %v3074_v28  ;;  %v16394_v16 = vcombine.high %v3230_v33, %v3234_v26 }
 0x46a   : > { %5393 = vmatmul.mubr.bf16.vlgmr.msra.gmra.mxu0 %v21701_v36  ;;  %v3078_v36 = vld [vmem:[%s26259_s5 + $0x100] sm:$0xff]  ;;  %v5076_v32 = vpop.f32.mrf.mxu0 }
 0x46b   : > { %5402 = vmatprep.mubr.bf16.mxu0 %v21729_v63  ;;  %6747 = vmatpush1.bf16.msra.mxu0 %v16265_v19  ;;  %v15892_v63 = vld [vmem:[%s26259_s5 + $0xe18] sm:$0xff]  ;;  %v16242_v8 = vcombine.high %v3078_v36, %v3082_v42  ;;  %v16241_v25 = vcombine.low %v3078_v36, %v3082_v42  ;;  %v3226_v19 = vld [vmem:[%s26259_s5 + $0x5a0] sm:$0xff] }
 0x46c   : > { %5438 = vmatpush2.bf16.msra.mxu1 %v16175_v52  ;;  %6748 = vmatprep.subr.bf16.mxu0 %v16258_v41  ;;  %v16152_v45 = vcombine.high %v15892_v63, %v15896_v58  ;;  %v16151_v56 = vcombine.low %v15892_v63, %v15896_v58  ;;  %v5078_v30 = vpop.f32.mrf.mxu0  ;;  %v16233_v52 = vcombine.low %v3070_v1, %v3074_v28 }
 0x46d   : > { %5439 = vmatprep.subr.bf16.mxu1 %v16168_v6  ;;  %v16393_v41 = vcombine.low %v3230_v33, %v3234_v26  ;;  %v16386_v9 = vcombine.high %v3222_v22, %v3226_v19  ;;  %v16385_v42 = vcombine.low %v3222_v22, %v3226_v19  ;;  %v16218_v63 = vcombine.high %v3054_v39, %v3058_v20  ;;  %v3198_v22 = vld [vmem:[%s26259_s5 + $0x4c0] sm:$0xff] }
 0x46e   : > { %v5080_v6 = vpop.f32.mrf.mxu0  ;;  %v16217_v28 = vcombine.low %v3054_v39, %v3058_v20  ;;  %v3202_v19 = vld [vmem:[%s26259_s5 + $0x4e0] sm:$0xff] }
 0x46f   : > { %6749 = vmatpush1.bf16.msra.mxu0 %v16257_v11  ;;  %v3214_v11 = vld [vmem:[%s26259_s5 + $0x540] sm:$0xff] }
 0x470   : > { %5440 = vmatpush2.bf16.msra.mxu1 %v16167_v50  ;;  %6750 = vmatprep.subr.bf16.mxu0 %v16250_v21  ;;  %v3218_v50 = vld [vmem:[%s26259_s5 + $0x560] sm:$0xff]  ;;  %v22384_v58 = vpop.f32.mrf.mxu0 }
 0x471   : > { %5441 = vmatprep.subr.bf16.mxu1 %v16160_v12  ;;  %26519 = vst [vmem:[#allocation53_spill] sm:$0xff] %v22384_v58  ;;  %v3158_v39 = vld [vmem:[%s26259_s5 + $0x380] sm:$0xff]  ;;  %v3061_v58 = vld [vmem:[%s26259_s5 + $0x78] sm:$0xff] }
 0x472   : > { %5403 = vmatmul.mubr.bf16.gmra.mxu0 %v21725_v24  ;;  %v3062_v24 = vld [vmem:[%s26259_s5 + $0x80] sm:$0xff]  ;;  %v5086_v33 = vpop.f32.mrf.mxu0 }
 0x473   : > { %6751 = vmatpush1.bf16.msra.mxu0 %v16249_v7  ;;  %6778 = vmatprep.mubr.bf16.mxu0 %v22340_v34  ;;  %v16226_v40 = vcombine.high %v3062_v24, %v3066_v37  ;;  %v16225_v12 = vcombine.low %v3062_v24, %v3066_v37  ;;  %v3170_v24 = vld [vmem:[%s26259_s5 + $0x3e0] sm:$0xff]  ;;  %v22412_v37 = vpack.c.bf16 %v21703_v23, %v21691_v14 }
 0x474   : > { %5442 = vmatpush2.bf16.msra.mxu1 %v16159_v4  ;;  %6752 = vmatprep.subr.bf16.mxu0 %v16242_v8  ;;  %v16378_v4 = vcombine.high %v3214_v11, %v3218_v50 }
 0x475   : > { %5443 = vmatprep.subr.bf16.mxu1 %v16152_v45  ;;  %v3210_v45 = vld [vmem:[%s26259_s5 + $0x520] sm:$0xff] }
 0x477   : > { %6753 = vmatpush1.bf16.msra.mxu0 %v16241_v25  ;;  %v16377_v25 = vcombine.low %v3214_v11, %v3218_v50  ;;  %v3190_v11 = vld [vmem:[%s26259_s5 + $0x480] sm:$0xff] }
 0x478   : > { %5444 = vmatpush2.bf16.msra.mxu1 %v16151_v56  ;;  %6754 = vmatprep.subr.bf16.mxu0 %v16234_v54  ;;  %v3194_v50 = vld [vmem:[%s26259_s5 + $0x4a0] sm:$0xff] }
 0x479   : > { %6799 = vmatprep.subr.bf16.mxu1 %v16394_v16  ;;  %v3166_v16 = vld [vmem:[%s26259_s5 + $0x3c0] sm:$0xff] }
 0x47a   : > { %v16330_v14 = vcombine.high %v3166_v16, %v3170_v24 }
 0x47b   : > { %5446 = vmatmul.mubr.bf16.vlgmr.msra.gmra.mxu1 %v21754_v0  ;;  %v5129_v21 = vpop.f32.mrf.mxu1  ;;  %6755 = vmatpush1.bf16.msra.mxu0 %v16233_v52  ;;  %v3046_v0 = vld [vmem:[%s26259_s5] sm:$0xff] }
 0x47c   : > { %v22381_v36 = vadd.f32 %v5129_v21, %v5076_v32  ;;  %5455 = vmatprep.mubr.bf16.mxu1 %v21787_v46  ;;  %6800 = vmatpush1.bf16.msra.mxu1 %v16393_v41  ;;  %v3050_v32 = vld [vmem:[%s26259_s5 + $0x20] sm:$0xff]  ;;  %v5088_v41 = vpop.f32.mrf.mxu0 }
 0x47d   : > { %v5131_v7 = vpop.f32.mrf.mxu1  ;;  %6756 = vmatprep.subr.bf16.mxu0 %v16226_v40  ;;  %6801 = vmatprep.subr.bf16.mxu1 %v16386_v9  ;;  %v3206_v46 = vld [vmem:[%s26259_s5 + $0x500] sm:$0xff]  ;;  %v16210_v54 = vcombine.high %v3046_v0, %v3050_v32  ;;  %v16209_v52 = vcombine.low %v3046_v0, %v3050_v32  ;;  %v16362_v9 = vcombine.high %v3198_v22, %v3202_v19 }
 0x47e   : > { %v22389_v8 = vadd.f32 %v5131_v7, %v5078_v30  ;;  %v16370_v30 = vcombine.high %v3206_v46, %v3210_v45  ;;  %v16369_v40 = vcombine.low %v3206_v46, %v3210_v45  ;;  %v16361_v7 = vcombine.low %v3198_v22, %v3202_v19  ;;  %v3150_v46 = vld [vmem:[%s26259_s5 + $0x340] sm:$0xff] }
 0x47f   : > { %v5133_v1 = vpop.f32.mrf.mxu1  ;;  %6757 = vmatpush1.bf16.msra.mxu0 %v16225_v12  ;;  %v16329_v12 = vcombine.low %v3166_v16, %v3170_v24  ;;  %v16354_v32 = vcombine.high %v3190_v11, %v3194_v50  ;;  %v3154_v45 = vld [vmem:[%s26259_s5 + $0x360] sm:$0xff] }
 0x480   : > { %v22400_v26 = vadd.f32 %v5133_v1, %v5080_v6  ;;  %6802 = vmatpush1.bf16.msra.mxu1 %v16385_v42  ;;  %6758 = vmatprep.subr.bf16.mxu0 %v16218_v63  ;;  %v5090_v42 = vpop.f32.mrf.mxu0  ;;  %v3182_v1 = vld [vmem:[%s26259_s5 + $0x440] sm:$0xff] }
 0x481   : > { %v22402_v56 = vpop.f32.mrf.mxu1  ;;  %6803 = vmatprep.subr.bf16.mxu1 %v16378_v4  ;;  %v3142_v16 = vld [vmem:[%s26259_s5 + $0x300] sm:$0xff] }
 0x482   : > { %26520 = vst [vmem:[#allocation14_spill] sm:$0xff] %v22402_v56  ;;  %v3146_v24 = vld [vmem:[%s26259_s5 + $0x320] sm:$0xff]  ;;  %v3156_v56 = vld [vmem:[%s26259_s5 + $0x370] sm:$0xff] }
 0x483   : > { %5456 = vmatmul.mubr.bf16.gmra.mxu1 %v21785_v60  ;;  %6759 = vmatpush1.bf16.msra.mxu0 %v16217_v28  ;;  %v5139_v6 = vpop.f32.mrf.mxu1  ;;  %v3162_v60 = vld [vmem:[%s26259_s5 + $0x3a0] sm:$0xff] }
 0x484   : > { %6804 = vmatpush1.bf16.msra.mxu1 %v16377_v25  ;;  %6831 = vmatprep.mubr.bf16.mxu1 %v22412_v37  ;;  %v22422_v23 = vadd.f32 %v5139_v6, %v5086_v33  ;;  %v16322_v4 = vcombine.high %v3158_v39, %v3162_v60  ;;  %v3186_v28 = vld [vmem:[%s26259_s5 + $0x460] sm:$0xff]  ;;  %v16321_v33 = vcombine.low %v3158_v39, %v3162_v60 }
 0x485   : > { %6760 = vmatprep.subr.bf16.mxu0 %v16210_v54  ;;  %6805 = vmatprep.subr.bf16.mxu1 %v16370_v30  ;;  %v5141_v20 = vpop.f32.mrf.mxu1  ;;  %v16353_v25 = vcombine.low %v3190_v11, %v3194_v50  ;;  %v16314_v54 = vcombine.high %v3150_v46, %v3154_v45  ;;  %v16346_v30 = vcombine.high %v3182_v1, %v3186_v28  ;;  %v3174_v22 = vld [vmem:[%s26259_s5 + $0x400] sm:$0xff] }
 0x486   : > { %v22436_v21 = vadd.f32 %v5141_v20, %v5088_v41  ;;  %v3178_v19 = vld [vmem:[%s26259_s5 + $0x420] sm:$0xff]  ;;  %v16345_v41 = vcombine.low %v3182_v1, %v3186_v28  ;;  %v16306_v6 = vcombine.high %v3142_v16, %v3146_v24  ;;  %v16305_v20 = vcombine.low %v3142_v16, %v3146_v24 }
 0x487   : > { %6761 = vmatpush1.bf16.msra.mxu0 %v16209_v52  ;;  %v5143_v63 = vpop.f32.mrf.mxu1  ;;  %v16313_v52 = vcombine.low %v3150_v46, %v3154_v45  ;;  %v3294_v39 = vld [vmem:[%s26259_s5 + $0x7c0] sm:$0xff]  ;;  %v16337_v11 = vcombine.low %v3174_v22, %v3178_v19 }
 0x488   : > { %6806 = vmatpush1.bf16.msra.mxu1 %v16369_v40  ;;  %6762 = vmatprep.subr.bf16.mxu0 %v16330_v14  ;;  %v22438_v0 = vadd.f32 %v5143_v63, %v5090_v42  ;;  %v16338_v40 = vcombine.high %v3174_v22, %v3178_v19  ;;  %v3134_v14 = vld [vmem:[%s26259_s5 + $0x2c0] sm:$0xff] }
 0x489   : > { %6807 = vmatprep.subr.bf16.mxu1 %v16362_v9  ;;  %v3138_v9 = vld [vmem:[%s26259_s5 + $0x2e0] sm:$0xff] }
 0x48a   : > { %v3298_v60 = vld [vmem:[%s26259_s5 + $0x7e0] sm:$0xff]  ;;  %v16298_v50 = vcombine.high %v3134_v14, %v3138_v9 }
 0x48b   : > { %6763 = vmatpush2.bf16.msra.mxu0 %v16329_v12  ;;  %v16458_v12 = vcombine.high %v3294_v39, %v3298_v60  ;;  %v3126_v42 = vld [vmem:[%s26259_s5 + $0x280] sm:$0xff]  ;;  %v16457_v46 = vcombine.low %v3294_v39, %v3298_v60  ;;  %v3103_v60 = vld [vmem:[%s26259_s5 + $0x1c8] sm:$0xff] }
 0x48c   : > { %6808 = vmatpush1.bf16.msra.mxu1 %v16361_v7  ;;  %6764 = vmatprep.subr.bf16.mxu0 %v16322_v4  ;;  %v3130_v63 = vld [vmem:[%s26259_s5 + $0x2a0] sm:$0xff] }
 0x48d   : > { %6809 = vmatprep.subr.bf16.mxu1 %v16354_v32  ;;  %v3286_v7 = vld [vmem:[%s26259_s5 + $0x780] sm:$0xff]  ;;  %v16297_v32 = vcombine.low %v3134_v14, %v3138_v9  ;;  %v16290_v45 = vcombine.high %v3126_v42, %v3130_v63 }
 0x48e   : > { %v3290_v4 = vld [vmem:[%s26259_s5 + $0x7a0] sm:$0xff] }
 0x48f   : > { %6765 = vmatpush2.bf16.msra.mxu0 %v16321_v33  ;;  %v16450_v1 = vcombine.high %v3286_v7, %v3290_v4  ;;  %v3118_v28 = vld [vmem:[%s26259_s5 + $0x240] sm:$0xff]  ;;  %v16449_v16 = vcombine.low %v3286_v7, %v3290_v4  ;;  %v3095_v4 = vld [vmem:[%s26259_s5 + $0x188] sm:$0xff] }
 0x490   : > { %6810 = vmatpush1.bf16.msra.mxu1 %v16353_v25  ;;  %6766 = vmatprep.subr.bf16.mxu0 %v16314_v54  ;;  %v3122_v33 = vld [vmem:[%s26259_s5 + $0x260] sm:$0xff] }
 0x491   : > { %6811 = vmatprep.subr.bf16.mxu1 %v16346_v30  ;;  %v3278_v25 = vld [vmem:[%s26259_s5 + $0x740] sm:$0xff]  ;;  %v16289_v30 = vcombine.low %v3126_v42, %v3130_v63  ;;  %v16282_v24 = vcombine.high %v3118_v28, %v3122_v33 }
 0x492   : > { %v3282_v54 = vld [vmem:[%s26259_s5 + $0x760] sm:$0xff] }
 0x493   : > { %6767 = vmatpush2.bf16.msra.mxu0 %v16313_v52  ;;  %v16442_v22 = vcombine.high %v3278_v25, %v3282_v54  ;;  %v3110_v19 = vld [vmem:[%s26259_s5 + $0x200] sm:$0xff]  ;;  %v16441_v14 = vcombine.low %v3278_v25, %v3282_v54  ;;  %v22538_v25 = vpack.c.bf16 %v21689_v31, %v21681_v57  ;;  %v22553_v31 = vpop.f32.mrf.mxu0 }
 0x494   : > { %6812 = vmatpush1.bf16.msra.mxu1 %v16345_v41  ;;  %6768 = vmatprep.subr.bf16.mxu0 %v16306_v6  ;;  %v3114_v52 = vld [vmem:[%s26259_s5 + $0x220] sm:$0xff]  ;;  %26521 = vst [vmem:[#allocation54_spill] sm:$0xff] %v22553_v31  ;;  %v3172_v31 = vld [vmem:[%s26259_s5 + $0x3f0] sm:$0xff] }
 0x495   : > { %6813 = vmatprep.subr.bf16.mxu1 %v16338_v40  ;;  %v3270_v41 = vld [vmem:[%s26259_s5 + $0x700] sm:$0xff]  ;;  %v16281_v40 = vcombine.low %v3118_v28, %v3122_v33  ;;  %v16274_v9 = vcombine.high %v3110_v19, %v3114_v52 }
 0x496   : > { %v3274_v6 = vld [vmem:[%s26259_s5 + $0x720] sm:$0xff] }
 0x497   : > { %6769 = vmatpush2.bf16.msra.mxu0 %v16305_v20  ;;  %v16434_v39 = vcombine.high %v3270_v41, %v3274_v6  ;;  %v3107_v20 = vld [vmem:[%s26259_s5 + $0x1e8] sm:$0xff]  ;;  %v16433_v42 = vcombine.low %v3270_v41, %v3274_v6  ;;  %v3250_v57 = vld [vmem:[%s26259_s5 + $0x660] sm:$0xff] }
 0x498   : > { %6814 = vmatpush1.bf16.msra.mxu1 %v16337_v11  ;;  %6770 = vmatprep.subr.bf16.mxu0 %v16298_v50  ;;  %v3262_v11 = vld [vmem:[%s26259_s5 + $0x6c0] sm:$0xff]  ;;  %v16268_v63 = vcombine.high %v3103_v60, %v3107_v20  ;;  %v3079_v6 = vld [vmem:[%s26259_s5 + $0x108] sm:$0xff] }
 0x499   : > { %6815 = vmatprep.subr.bf16.mxu1 %v16458_v12  ;;  %v3266_v50 = vld [vmem:[%s26259_s5 + $0x6e0] sm:$0xff]  ;;  %v16273_v12 = vcombine.low %v3110_v19, %v3114_v52 }
 0x49a   : > { %v16426_v7 = vcombine.high %v3262_v11, %v3266_v50  ;;  %v16425_v28 = vcombine.low %v3262_v11, %v3266_v50 }
 0x49b   : > { %6771 = vmatpush2.bf16.msra.mxu0 %v16297_v32  ;;  %v3099_v32 = vld [vmem:[%s26259_s5 + $0x1a8] sm:$0xff] }
 0x49c   : > { %6816 = vmatpush2.bf16.msra.mxu1 %v16457_v46  ;;  %6772 = vmatprep.subr.bf16.mxu0 %v16290_v45  ;;  %v3254_v46 = vld [vmem:[%s26259_s5 + $0x680] sm:$0xff]  ;;  %v16260_v33 = vcombine.high %v3095_v4, %v3099_v32 }
 0x49d   : > { %6817 = vmatprep.subr.bf16.mxu1 %v16450_v1  ;;  %v3258_v45 = vld [vmem:[%s26259_s5 + $0x6a0] sm:$0xff]  ;;  %v16267_v1 = vcombine.low %v3103_v60, %v3107_v20 }
 0x49e   : > { %v16418_v54 = vcombine.high %v3254_v46, %v3258_v45  ;;  %v16417_v19 = vcombine.low %v3254_v46, %v3258_v45 }
 0x49f   : > { %6773 = vmatpush2.bf16.msra.mxu0 %v16289_v30  ;;  %v3087_v30 = vld [vmem:[%s26259_s5 + $0x148] sm:$0xff] }
 0x4a0   : > { %6818 = vmatpush2.bf16.msra.mxu1 %v16449_v16  ;;  %6774 = vmatprep.subr.bf16.mxu0 %v16282_v24  ;;  %v3091_v16 = vld [vmem:[%s26259_s5 + $0x168] sm:$0xff]  ;;  %v3246_v24 = vld [vmem:[%s26259_s5 + $0x640] sm:$0xff] }
 0x4a1   : > { %6819 = vmatprep.subr.bf16.mxu1 %v16442_v22  ;;  %v16259_v22 = vcombine.low %v3095_v4, %v3099_v32  ;;  %v16252_v52 = vcombine.high %v3087_v30, %v3091_v16  ;;  %v16410_v41 = vcombine.high %v3246_v24, %v3250_v57  ;;  %v16251_v60 = vcombine.low %v3087_v30, %v3091_v16  ;;  %v3227_v30 = vld [vmem:[%s26259_s5 + $0x5a8] sm:$0xff] }
 0x4a2   : > { %v16409_v20 = vcombine.low %v3246_v24, %v3250_v57 }
 0x4a3   : > { %6775 = vmatpush2.bf16.msra.mxu0 %v16281_v40  ;;  %v3083_v40 = vld [vmem:[%s26259_s5 + $0x128] sm:$0xff] }
 0x4a4   : > { %6820 = vmatpush2.bf16.msra.mxu1 %v16441_v14  ;;  %6776 = vmatprep.subr.bf16.mxu0 %v16274_v9  ;;  %v3238_v14 = vld [vmem:[%s26259_s5 + $0x600] sm:$0xff]  ;;  %v16244_v11 = vcombine.high %v3079_v6, %v3083_v40  ;;  %v16243_v32 = vcombine.low %v3079_v6, %v3083_v40  ;;  %v3059_v6 = vld [vmem:[%s26259_s5 + $0x68] sm:$0xff]  ;;  %v22604_v40 = vpack.c.bf16 %v21727_v18, %v21715_v38 }
 0x4a5   : > { %6821 = vmatprep.subr.bf16.mxu1 %v16434_v39  ;;  %v3242_v9 = vld [vmem:[%s26259_s5 + $0x620] sm:$0xff] }
 0x4a6   : > { %v16402_v50 = vcombine.high %v3238_v14, %v3242_v9  ;;  %v16401_v46 = vcombine.low %v3238_v14, %v3242_v9  ;;  %v3215_v14 = vld [vmem:[%s26259_s5 + $0x548] sm:$0xff] }
 0x4a7   : > { %6777 = vmatpush2.bf16.msra.mxu0 %v16273_v12  ;;  %v3071_v12 = vld [vmem:[%s26259_s5 + $0xc8] sm:$0xff] }
 0x4a8   : > { %6822 = vmatpush2.bf16.msra.mxu1 %v16433_v42  ;;  %6852 = vmatprep.subr.bf16.mxu0 %v16268_v63  ;;  %v3075_v42 = vld [vmem:[%s26259_s5 + $0xe8] sm:$0xff] }
 0x4a9   : > { %6823 = vmatprep.subr.bf16.mxu1 %v16426_v7  ;;  %v3231_v63 = vld [vmem:[%s26259_s5 + $0x5c8] sm:$0xff]  ;;  %v16236_v45 = vcombine.high %v3071_v12, %v3075_v42  ;;  %v16235_v24 = vcombine.low %v3071_v12, %v3075_v42 }
 0x4aa   : > { %6779 = vmatmul.mubr.bf16.vlgmr.msra.gmra.mxu0 %v21683_v43  ;;  %v5182_v39 = vpop.f32.mrf.mxu0  ;;  %v3235_v7 = vld [vmem:[%s26259_s5 + $0x5e8] sm:$0xff] }
 0x4ab   : > { %6788 = vmatprep.mubr.bf16.mxu0 %v22538_v25  ;;  %6853 = vmatpush1.bf16.msra.mxu0 %v16267_v1  ;;  %v16396_v1 = vcombine.high %v3231_v63, %v3235_v7  ;;  %v16395_v57 = vcombine.low %v3231_v63, %v3235_v7  ;;  %v3219_v9 = vld [vmem:[%s26259_s5 + $0x568] sm:$0xff] }
 0x4ac   : > { %6824 = vmatpush2.bf16.msra.mxu1 %v16425_v28  ;;  %6854 = vmatprep.subr.bf16.mxu0 %v16260_v33  ;;  %v5184_v4 = vpop.f32.mrf.mxu0  ;;  %v3063_v28 = vld [vmem:[%s26259_s5 + $0x88] sm:$0xff]  ;;  %v16380_v42 = vcombine.high %v3215_v14, %v3219_v9 }
 0x4ad   : > { %6825 = vmatprep.subr.bf16.mxu1 %v16418_v54  ;;  %v3067_v33 = vld [vmem:[%s26259_s5 + $0xa8] sm:$0xff] }
 0x4ae   : > { %v3223_v54 = vld [vmem:[%s26259_s5 + $0x588] sm:$0xff]  ;;  %v5186_v16 = vpop.f32.mrf.mxu0 }
 0x4af   : > { %6855 = vmatpush1.bf16.msra.mxu0 %v16259_v22  ;;  %v22594_v22 = vpop.f32.mrf.mxu1  ;;  %v16387_v38 = vcombine.low %v3223_v54, %v3227_v30  ;;  %v3047_v63 = vld [vmem:[%s26259_s5 + $0x8] sm:$0xff] }
 0x4b0   : > { %6826 = vmatpush2.bf16.msra.mxu1 %v16417_v19  ;;  %6856 = vmatprep.subr.bf16.mxu0 %v16252_v52  ;;  %26522 = vst [vmem:[#allocation15_spill] sm:$0xff] %v22594_v22  ;;  %v16228_v19 = vcombine.high %v3063_v28, %v3067_v33  ;;  %v16388_v52 = vcombine.high %v3223_v54, %v3227_v30 }
 0x4b1   : > { %6827 = vmatprep.subr.bf16.mxu1 %v16410_v41  ;;  %v3055_v41 = vld [vmem:[%s26259_s5 + $0x48] sm:$0xff] }
 0x4b2   : > { %6789 = vmatmul.mubr.bf16.gmra.mxu0 %v21685_v15  ;;  %v16220_v18 = vcombine.high %v3055_v41, %v3059_v6 }
 0x4b3   : > { %6857 = vmatpush1.bf16.msra.mxu0 %v16251_v60  ;;  %6884 = vmatprep.mubr.bf16.mxu0 %v22340_v34  ;;  %v22612_v60 = vpop.f32.mrf.mxu0 }
 0x4b4   : > { %6828 = vmatpush2.bf16.msra.mxu1 %v16409_v20  ;;  %6858 = vmatprep.subr.bf16.mxu0 %v16244_v11  ;;  %26523 = vst [vmem:[#allocation55_spill] sm:$0xff] %v22612_v60  ;;  %v16227_v11 = vcombine.low %v3063_v28, %v3067_v33  ;;  %v16219_v28 = vcombine.low %v3055_v41, %v3059_v6  ;;  %v3060_v60 = vld [vmem:[%s26259_s5 + $0x70] sm:$0xff] }
 0x4b5   : > { %6829 = vmatprep.subr.bf16.mxu1 %v16402_v50 }
 0x4b7   : > { %6859 = vmatpush1.bf16.msra.mxu0 %v16243_v32  ;;  %v3207_v32 = vld [vmem:[%s26259_s5 + $0x508] sm:$0xff] }
 0x4b8   : > { %6830 = vmatpush2.bf16.msra.mxu1 %v16401_v46  ;;  %6860 = vmatprep.subr.bf16.mxu0 %v16236_v45  ;;  %v3211_v46 = vld [vmem:[%s26259_s5 + $0x528] sm:$0xff]  ;;  %v5192_v45 = vpop.f32.mrf.mxu0 }
 0x4b9   : > { %6905 = vmatprep.subr.bf16.mxu1 %v16396_v1 }
 0x4ba   : > { %v5194_v41 = vpop.f32.mrf.mxu0 }
 0x4bb   : > { %v5235_v20 = vpop.f32.mrf.mxu1  ;;  %6832 = vmatmul.mubr.bf16.vlgmr.msra.gmra.mxu1 %v21699_v27  ;;  %6861 = vmatpush1.bf16.msra.mxu0 %v16235_v24  ;;  %v16372_v24 = vcombine.high %v3207_v32, %v3211_v46 }
 0x4bc   : > { %v22615_v50 = vadd.f32 %v5235_v20, %v5182_v39  ;;  %6841 = vmatprep.mubr.bf16.mxu1 %v22604_v40  ;;  %6906 = vmatpush1.bf16.msra.mxu1 %v16395_v57  ;;  %v3051_v39 = vld [vmem:[%s26259_s5 + $0x28] sm:$0xff]  ;;  %v16371_v20 = vcombine.low %v3207_v32, %v3211_v46  ;;  %v5196_v46 = vpop.f32.mrf.mxu0 }
 0x4bd   : > { %v5237_v12 = vpop.f32.mrf.mxu1  ;;  %6862 = vmatprep.subr.bf16.mxu0 %v16228_v19  ;;  %6907 = vmatprep.subr.bf16.mxu1 %v16388_v52  ;;  %v16212_v30 = vcombine.high %v3047_v63, %v3051_v39  ;;  %v3167_v57 = vld [vmem:[%s26259_s5 + $0x3c8] sm:$0xff] }
 0x4be   : > { %v22621_v7 = vadd.f32 %v5237_v12, %v5184_v4  ;;  %v16379_v4 = vcombine.low %v3215_v14, %v3219_v9  ;;  %v3171_v19 = vld [vmem:[%s26259_s5 + $0x3e8] sm:$0xff]  ;;  %v16211_v14 = vcombine.low %v3047_v63, %v3051_v39 }
 0x4bf   : > { %v5239_v1 = vpop.f32.mrf.mxu1  ;;  %6863 = vmatpush1.bf16.msra.mxu0 %v16227_v11  ;;  %v3203_v52 = vld [vmem:[%s26259_s5 + $0x4e8] sm:$0xff]  ;;  %v16332_v11 = vcombine.high %v3167_v57, %v3171_v19 }
 0x4c0   : > { %v22632_v33 = vadd.f32 %v5239_v1, %v5186_v16  ;;  %6908 = vmatpush1.bf16.msra.mxu1 %v16387_v38  ;;  %6864 = vmatprep.subr.bf16.mxu0 %v16220_v18  ;;  %v3199_v16 = vld [vmem:[%s26259_s5 + $0x4c8] sm:$0xff]  ;;  %v16331_v1 = vcombine.low %v3167_v57, %v3171_v19 }
 0x4c1   : > { %v22634_v54 = vpop.f32.mrf.mxu1  ;;  %6909 = vmatprep.subr.bf16.mxu1 %v16380_v42  ;;  %v16364_v18 = vcombine.high %v3199_v16, %v3203_v52  ;;  %v3159_v12 = vld [vmem:[%s26259_s5 + $0x388] sm:$0xff] }
 0x4c2   : > { %26524 = vst [vmem:[#allocation16_spill] sm:$0xff] %v22634_v54  ;;  %v3163_v42 = vld [vmem:[%s26259_s5 + $0x3a8] sm:$0xff]  ;;  %v3056_v54 = vld [vmem:[%s26259_s5 + $0x50] sm:$0xff] }
 0x4c3   : > { %v5245_v6 = vpop.f32.mrf.mxu1  ;;  %6842 = vmatmul.mubr.bf16.gmra.mxu1 %v21723_v59  ;;  %6865 = vmatpush1.bf16.msra.mxu0 %v16219_v28  ;;  %v3191_v39 = vld [vmem:[%s26259_s5 + $0x488] sm:$0xff] }
 0x4c4   : > { %v22649_v9 = vadd.f32 %v5245_v6, %v5192_v45  ;;  %6910 = vmatpush1.bf16.msra.mxu1 %v16379_v4  ;;  %6937 = vmatprep.mubr.bf16.mxu1 %v22412_v37  ;;  %v3195_v32 = vld [vmem:[%s26259_s5 + $0x4a8] sm:$0xff]  ;;  %v16363_v4 = vcombine.low %v3199_v16, %v3203_v52  ;;  %v16323_v16 = vcombine.low %v3159_v12, %v3163_v42 }
 0x4c5   : > { %v5247_v38 = vpop.f32.mrf.mxu1  ;;  %6866 = vmatprep.subr.bf16.mxu0 %v16212_v30  ;;  %6911 = vmatprep.subr.bf16.mxu1 %v16372_v24  ;;  %v16324_v30 = vcombine.high %v3159_v12, %v3163_v42  ;;  %v16356_v24 = vcombine.high %v3191_v39, %v3195_v32  ;;  %v3155_v6 = vld [vmem:[%s26259_s5 + $0x368] sm:$0xff]  ;;  %v16355_v52 = vcombine.low %v3191_v39, %v3195_v32 }
 0x4c6   : > { %v22658_v63 = vadd.f32 %v5247_v38, %v5194_v41  ;;  %v3151_v41 = vld [vmem:[%s26259_s5 + $0x348] sm:$0xff] }
 0x4c7   : > { %v5249_v45 = vpop.f32.mrf.mxu1  ;;  %6867 = vmatpush1.bf16.msra.mxu0 %v16211_v14  ;;  %v3183_v57 = vld [vmem:[%s26259_s5 + $0x448] sm:$0xff]  ;;  %v16316_v14 = vcombine.high %v3151_v41, %v3155_v6  ;;  %v16315_v42 = vcombine.low %v3151_v41, %v3155_v6 }
 0x4c8   : > { %v22666_v28 = vadd.f32 %v5249_v45, %v5196_v46  ;;  %6912 = vmatpush1.bf16.msra.mxu1 %v16371_v20  ;;  %6868 = vmatprep.subr.bf16.mxu0 %v16332_v11  ;;  %v3187_v19 = vld [vmem:[%s26259_s5 + $0x468] sm:$0xff] }
 0x4c9   : > { %6913 = vmatprep.subr.bf16.mxu1 %v16364_v18  ;;  %v16348_v20 = vcombine.high %v3183_v57, %v3187_v19  ;;  %v3143_v11 = vld [vmem:[%s26259_s5 + $0x308] sm:$0xff]  ;;  %v16347_v39 = vcombine.low %v3183_v57, %v3187_v19 }
 0x4ca   : > { %v3147_v38 = vld [vmem:[%s26259_s5 + $0x328] sm:$0xff] }
 0x4cb   : > { %6869 = vmatpush2.bf16.msra.mxu0 %v16331_v1  ;;  %v3175_v18 = vld [vmem:[%s26259_s5 + $0x408] sm:$0xff]  ;;  %v16308_v32 = vcombine.high %v3143_v11, %v3147_v38 }
 0x4cc   : > { %6914 = vmatpush1.bf16.msra.mxu1 %v16363_v4  ;;  %6870 = vmatprep.subr.bf16.mxu0 %v16324_v30  ;;  %v3179_v12 = vld [vmem:[%s26259_s5 + $0x428] sm:$0xff] }
 0x4cd   : > { %6915 = vmatprep.subr.bf16.mxu1 %v16356_v24  ;;  %v16340_v46 = vcombine.high %v3175_v18, %v3179_v12  ;;  %v3135_v45 = vld [vmem:[%s26259_s5 + $0x2c8] sm:$0xff]  ;;  %v16307_v24 = vcombine.low %v3143_v11, %v3147_v38  ;;  %v16339_v41 = vcombine.low %v3175_v18, %v3179_v12 }
 0x4ce   : > { %v3139_v1 = vld [vmem:[%s26259_s5 + $0x2e8] sm:$0xff] }
 0x4cf   : > { %6871 = vmatpush2.bf16.msra.mxu0 %v16323_v16  ;;  %v3295_v4 = vld [vmem:[%s26259_s5 + $0x7c8] sm:$0xff]  ;;  %v16300_v6 = vcombine.high %v3135_v45, %v3139_v1 }
 0x4d0   : > { %6916 = vmatpush1.bf16.msra.mxu1 %v16355_v52  ;;  %6872 = vmatprep.subr.bf16.mxu0 %v16316_v14  ;;  %v3299_v30 = vld [vmem:[%s26259_s5 + $0x7e8] sm:$0xff] }
 0x4d1   : > { %6917 = vmatprep.subr.bf16.mxu1 %v16348_v20  ;;  %v16460_v57 = vcombine.high %v3295_v4, %v3299_v30  ;;  %v3127_v19 = vld [vmem:[%s26259_s5 + $0x288] sm:$0xff]  ;;  %v16299_v20 = vcombine.low %v3135_v45, %v3139_v1  ;;  %v16459_v11 = vcombine.low %v3295_v4, %v3299_v30 }
 0x4d2   : > { %v3131_v16 = vld [vmem:[%s26259_s5 + $0x2a8] sm:$0xff] }
 0x4d3   : > { %6873 = vmatpush2.bf16.msra.mxu0 %v16315_v42  ;;  %v3287_v52 = vld [vmem:[%s26259_s5 + $0x788] sm:$0xff]  ;;  %v16292_v38 = vcombine.high %v3127_v19, %v3131_v16 }
 0x4d4   : > { %6918 = vmatpush1.bf16.msra.mxu1 %v16347_v39  ;;  %6874 = vmatprep.subr.bf16.mxu0 %v16308_v32  ;;  %v3291_v14 = vld [vmem:[%s26259_s5 + $0x7a8] sm:$0xff] }
 0x4d5   : > { %6919 = vmatprep.subr.bf16.mxu1 %v16340_v46  ;;  %v16452_v18 = vcombine.high %v3287_v52, %v3291_v14  ;;  %v3119_v12 = vld [vmem:[%s26259_s5 + $0x248] sm:$0xff]  ;;  %v16291_v46 = vcombine.low %v3127_v19, %v3131_v16  ;;  %v16451_v45 = vcombine.low %v3287_v52, %v3291_v14  ;;  %v3104_v14 = vld [vmem:[%s26259_s5 + $0x1d0] sm:$0xff] }
 0x4d6   : > { %v3123_v42 = vld [vmem:[%s26259_s5 + $0x268] sm:$0xff] }
 0x4d7   : > { %6875 = vmatpush2.bf16.msra.mxu0 %v16307_v24  ;;  %v3279_v39 = vld [vmem:[%s26259_s5 + $0x748] sm:$0xff]  ;;  %v16284_v1 = vcombine.high %v3119_v12, %v3123_v42 }
 0x4d8   : > { %6920 = vmatpush1.bf16.msra.mxu1 %v16339_v41  ;;  %6876 = vmatprep.subr.bf16.mxu0 %v16300_v6  ;;  %v3283_v32 = vld [vmem:[%s26259_s5 + $0x768] sm:$0xff] }
 0x4d9   : > { %6921 = vmatprep.subr.bf16.mxu1 %v16460_v57  ;;  %v16444_v4 = vcombine.high %v3279_v39, %v3283_v32  ;;  %v3111_v30 = vld [vmem:[%s26259_s5 + $0x208] sm:$0xff]  ;;  %v16283_v57 = vcombine.low %v3119_v12, %v3123_v42  ;;  %v16443_v19 = vcombine.low %v3279_v39, %v3283_v32  ;;  %v3096_v32 = vld [vmem:[%s26259_s5 + $0x190] sm:$0xff] }
 0x4da   : > { %v3115_v24 = vld [vmem:[%s26259_s5 + $0x228] sm:$0xff] }
 0x4db   : > { %6877 = vmatpush2.bf16.msra.mxu0 %v16299_v20  ;;  %v3271_v41 = vld [vmem:[%s26259_s5 + $0x708] sm:$0xff]  ;;  %v16276_v16 = vcombine.high %v3111_v30, %v3115_v24  ;;  %v3108_v20 = vld [vmem:[%s26259_s5 + $0x1f0] sm:$0xff] }
 0x4dc   : > { %6922 = vmatpush2.bf16.msra.mxu1 %v16459_v11  ;;  %6878 = vmatprep.subr.bf16.mxu0 %v16292_v38  ;;  %v3275_v6 = vld [vmem:[%s26259_s5 + $0x728] sm:$0xff]  ;;  %v16270_v42 = vcombine.high %v3104_v14, %v3108_v20 }
 0x4dd   : > { %6923 = vmatprep.subr.bf16.mxu1 %v16452_v18  ;;  %v16436_v52 = vcombine.high %v3271_v41, %v3275_v6  ;;  %v3263_v11 = vld [vmem:[%s26259_s5 + $0x6c8] sm:$0xff]  ;;  %v16275_v18 = vcombine.low %v3111_v30, %v3115_v24  ;;  %v16435_v12 = vcombine.low %v3271_v41, %v3275_v6  ;;  %v3088_v6 = vld [vmem:[%s26259_s5 + $0x150] sm:$0xff] }
 0x4de   : > { %v3267_v38 = vld [vmem:[%s26259_s5 + $0x6e8] sm:$0xff] }
 0x4df   : > { %6879 = vmatpush2.bf16.msra.mxu0 %v16291_v46  ;;  %v16428_v39 = vcombine.high %v3263_v11, %v3267_v38  ;;  %v3100_v46 = vld [vmem:[%s26259_s5 + $0x1b0] sm:$0xff]  ;;  %v16427_v30 = vcombine.low %v3263_v11, %v3267_v38  ;;  %v22778_v11 = vpop.f32.mrf.mxu0 }
 0x4e0   : > { %6924 = vmatpush2.bf16.msra.mxu1 %v16451_v45  ;;  %6880 = vmatprep.subr.bf16.mxu0 %v16284_v1  ;;  %v3255_v45 = vld [vmem:[%s26259_s5 + $0x688] sm:$0xff]  ;;  %v16262_v24 = vcombine.high %v3096_v32, %v3100_v46  ;;  %26525 = vst [vmem:[#allocation56_spill] sm:$0xff] %v22778_v11 }
 0x4e1   : > { %6925 = vmatprep.subr.bf16.mxu1 %v16444_v4  ;;  %v3259_v1 = vld [vmem:[%s26259_s5 + $0x6a8] sm:$0xff]  ;;  %v16269_v4 = vcombine.low %v3104_v14, %v3108_v20 }
 0x4e2   : > { %v16420_v41 = vcombine.high %v3255_v45, %v3259_v1  ;;  %v16419_v14 = vcombine.low %v3255_v45, %v3259_v1 }
 0x4e3   : > { %6881 = vmatpush2.bf16.msra.mxu0 %v16283_v57  ;;  %v3092_v57 = vld [vmem:[%s26259_s5 + $0x170] sm:$0xff] }
 0x4e4   : > { %6926 = vmatpush2.bf16.msra.mxu1 %v16443_v19  ;;  %6882 = vmatprep.subr.bf16.mxu0 %v16276_v16  ;;  %v3247_v19 = vld [vmem:[%s26259_s5 + $0x648] sm:$0xff]  ;;  %v16254_v20 = vcombine.high %v3088_v6, %v3092_v57 }
 0x4e5   : > { %6927 = vmatprep.subr.bf16.mxu1 %v16436_v52  ;;  %v3251_v16 = vld [vmem:[%s26259_s5 + $0x668] sm:$0xff]  ;;  %v16261_v52 = vcombine.low %v3096_v32, %v3100_v46  ;;  %v16253_v46 = vcombine.low %v3088_v6, %v3092_v57  ;;  %v3236_v6 = vld [vmem:[%s26259_s5 + $0x5f0] sm:$0xff] }
 0x4e6   : > { %v16412_v38 = vcombine.high %v3247_v19, %v3251_v16  ;;  %v16411_v45 = vcombine.low %v3247_v19, %v3251_v16 }
 0x4e7   : > { %6883 = vmatpush2.bf16.msra.mxu0 %v16275_v18  ;;  %v3080_v18 = vld [vmem:[%s26259_s5 + $0x110] sm:$0xff] }
 0x4e8   : > { %6928 = vmatpush2.bf16.msra.mxu1 %v16435_v12  ;;  %6958 = vmatprep.subr.bf16.mxu0 %v16270_v42  ;;  %v3084_v12 = vld [vmem:[%s26259_s5 + $0x130] sm:$0xff]  ;;  %v3239_v42 = vld [vmem:[%s26259_s5 + $0x608] sm:$0xff] }
 0x4e9   : > { %6929 = vmatprep.subr.bf16.mxu1 %v16428_v39  ;;  %v3243_v39 = vld [vmem:[%s26259_s5 + $0x628] sm:$0xff]  ;;  %v16246_v1 = vcombine.high %v3080_v18, %v3084_v12  ;;  %v16245_v19 = vcombine.low %v3080_v18, %v3084_v12  ;;  %v3228_v18 = vld [vmem:[%s26259_s5 + $0x5b0] sm:$0xff] }
 0x4ea   : > { %6885 = vmatmul.mubr.bf16.vlgmr.msra.gmra.mxu0 %v21683_v43  ;;  %v5288_v32 = vpop.f32.mrf.mxu0  ;;  %v16403_v16 = vcombine.low %v3239_v42, %v3243_v39 }
 0x4eb   : > { %6894 = vmatprep.mubr.bf16.mxu0 %v22538_v25  ;;  %6959 = vmatpush1.bf16.msra.mxu0 %v16269_v4  ;;  %v16404_v4 = vcombine.high %v3239_v42, %v3243_v39 }
 0x4ec   : > { %6930 = vmatpush2.bf16.msra.mxu1 %v16427_v30  ;;  %6960 = vmatprep.subr.bf16.mxu0 %v16262_v24  ;;  %v3072_v30 = vld [vmem:[%s26259_s5 + $0xd0] sm:$0xff]  ;;  %v5290_v57 = vpop.f32.mrf.mxu0 }
 0x4ed   : > { %6931 = vmatprep.subr.bf16.mxu1 %v16420_v41  ;;  %v3076_v24 = vld [vmem:[%s26259_s5 + $0xf0] sm:$0xff] }
 0x4ee   : > { %v3232_v41 = vld [vmem:[%s26259_s5 + $0x5d0] sm:$0xff]  ;;  %v5292_v12 = vpop.f32.mrf.mxu0  ;;  %v16237_v42 = vcombine.low %v3072_v30, %v3076_v24 }
 0x4ef   : > { %6961 = vmatpush1.bf16.msra.mxu0 %v16261_v52  ;;  %v16238_v52 = vcombine.high %v3072_v30, %v3076_v24  ;;  %v16397_v39 = vcombine.low %v3232_v41, %v3236_v6  ;;  %v3216_v30 = vld [vmem:[%s26259_s5 + $0x550] sm:$0xff] }
 0x4f0   : > { %6932 = vmatpush2.bf16.msra.mxu1 %v16419_v14  ;;  %6962 = vmatprep.subr.bf16.mxu0 %v16254_v20  ;;  %v16398_v14 = vcombine.high %v3232_v41, %v3236_v6  ;;  %v3064_v20 = vld [vmem:[%s26259_s5 + $0x90] sm:$0xff]  ;;  %v22832_v41 = vpop.f32.mrf.mxu0 }
 0x4f1   : > { %6933 = vmatprep.subr.bf16.mxu1 %v16412_v38  ;;  %v3068_v38 = vld [vmem:[%s26259_s5 + $0xb0] sm:$0xff]  ;;  %26527 = vst [vmem:[#allocation57_spill] sm:$0xff] %v22832_v41 }
 0x4f2   : > { %6895 = vmatmul.mubr.bf16.gmra.mxu0 %v21685_v15  ;;  %v3220_v24 = vld [vmem:[%s26259_s5 + $0x570] sm:$0xff] }
 0x4f3   : > { %6963 = vmatpush1.bf16.msra.mxu0 %v16253_v46  ;;  %6990 = vmatprep.mubr.bf16.mxu0 %v22340_v34  ;;  %v3224_v46 = vld [vmem:[%s26259_s5 + $0x590] sm:$0xff]  ;;  %v16382_v11 = vcombine.high %v3216_v30, %v3220_v24 }
 0x4f4   : > { %6934 = vmatpush2.bf16.msra.mxu1 %v16411_v45  ;;  %6964 = vmatprep.subr.bf16.mxu0 %v16246_v1  ;;  %v22818_v45 = vpop.f32.mrf.mxu1  ;;  %v16230_v1 = vcombine.high %v3064_v20, %v3068_v38  ;;  %v3048_v41 = vld [vmem:[%s26259_s5 + $0x10] sm:$0xff] }
 0x4f5   : > { %6935 = vmatprep.subr.bf16.mxu1 %v16404_v4  ;;  %26526 = vst [vmem:[#allocation17_spill] sm:$0xff] %v22818_v45  ;;  %v16390_v4 = vcombine.high %v3224_v46, %v3228_v18 }
 0x4f7   : > { %6965 = vmatpush1.bf16.msra.mxu0 %v16245_v19  ;;  %v16229_v19 = vcombine.low %v3064_v20, %v3068_v38  ;;  %v3208_v20 = vld [vmem:[%s26259_s5 + $0x510] sm:$0xff] }
 0x4f8   : > { %6936 = vmatpush2.bf16.msra.mxu1 %v16403_v16  ;;  %6966 = vmatprep.subr.bf16.mxu0 %v16238_v52  ;;  %v16389_v52 = vcombine.low %v3224_v46, %v3228_v18  ;;  %v3212_v38 = vld [vmem:[%s26259_s5 + $0x530] sm:$0xff]  ;;  %v5298_v46 = vpop.f32.mrf.mxu0 }
 0x4f9   : > { %7011 = vmatprep.subr.bf16.mxu1 %v16398_v14  ;;  %v16222_v14 = vcombine.high %v3056_v54, %v3060_v60 }
 0x4fb   : > { %v5341_v6 = vpop.f32.mrf.mxu1  ;;  %6938 = vmatmul.mubr.bf16.vlgmr.msra.gmra.mxu1 %v21699_v27  ;;  %6967 = vmatpush1.bf16.msra.mxu0 %v16237_v42  ;;  %v16221_v42 = vcombine.low %v3056_v54, %v3060_v60  ;;  %v3200_v60 = vld [vmem:[%s26259_s5 + $0x4d0] sm:$0xff] }
 0x4fc   : > { %v22835_v16 = vadd.f32 %v5341_v6, %v5288_v32  ;;  %6947 = vmatprep.mubr.bf16.mxu1 %v22604_v40  ;;  %7012 = vmatpush1.bf16.msra.mxu1 %v16397_v39  ;;  %v3052_v32 = vld [vmem:[%s26259_s5 + $0x30] sm:$0xff] }
 0x4fd   : > { %v5343_v45 = vpop.f32.mrf.mxu1  ;;  %6968 = vmatprep.subr.bf16.mxu0 %v16230_v1  ;;  %7013 = vmatprep.subr.bf16.mxu1 %v16390_v4  ;;  %v16214_v1 = vcombine.high %v3048_v41, %v3052_v32  ;;  %v16374_v4 = vcombine.high %v3208_v20, %v3212_v38  ;;  %v3168_v6 = vld [vmem:[%s26259_s5 + $0x3d0] sm:$0xff] }
 0x4fe   : > { %v22841_v22 = vadd.f32 %v5343_v45, %v5290_v57  ;;  %v16381_v57 = vcombine.low %v3216_v30, %v3220_v24  ;;  %v3204_v54 = vld [vmem:[%s26259_s5 + $0x4f0] sm:$0xff]  ;;  %v16213_v30 = vcombine.low %v3048_v41, %v3052_v32 }
 0x4ff   : > { %v5345_v18 = vpop.f32.mrf.mxu1  ;;  %6969 = vmatpush1.bf16.msra.mxu0 %v16229_v19  ;;  %v16373_v19 = vcombine.low %v3208_v20, %v3212_v38  ;;  %v3192_v32 = vld [vmem:[%s26259_s5 + $0x490] sm:$0xff] }
 0x500   : > { %v22852_v39 = vadd.f32 %v5345_v18, %v5292_v12  ;;  %7014 = vmatpush1.bf16.msra.mxu1 %v16389_v52  ;;  %6970 = vmatprep.subr.bf16.mxu0 %v16222_v14  ;;  %v5300_v12 = vpop.f32.mrf.mxu0  ;;  %v16334_v52 = vcombine.high %v3168_v6, %v3172_v31  ;;  %v16366_v18 = vcombine.high %v3200_v60, %v3204_v54  ;;  %v3196_v20 = vld [vmem:[%s26259_s5 + $0x4b0] sm:$0xff] }
 0x501   : > { %v22854_v45 = vpop.f32.mrf.mxu1  ;;  %7015 = vmatprep.subr.bf16.mxu1 %v16382_v11 }
 0x502   : > { %26528 = vst [vmem:[#allocation18_spill] sm:$0xff] %v22854_v45  ;;  %v3160_v45 = vld [vmem:[%s26259_s5 + $0x390] sm:$0xff]  ;;  %v5302_v38 = vpop.f32.mrf.mxu0 }
 0x503   : > { %v5351_v11 = vpop.f32.mrf.mxu1  ;;  %6948 = vmatmul.mubr.bf16.gmra.mxu1 %v21723_v59  ;;  %6971 = vmatpush1.bf16.msra.mxu0 %v16221_v42  ;;  %v3164_v42 = vld [vmem:[%s26259_s5 + $0x3b0] sm:$0xff] }
 0x504   : > { %v22869_v24 = vadd.f32 %v5351_v11, %v5298_v46  ;;  %7016 = vmatpush1.bf16.msra.mxu1 %v16381_v57  ;;  %7043 = vmatprep.mubr.bf16.mxu1 %v22412_v37  ;;  %v16333_v57 = vcombine.low %v3168_v6, %v3172_v31  ;;  %v16326_v11 = vcombine.high %v3160_v45, %v3164_v42  ;;  %v3184_v31 = vld [vmem:[%s26259_s5 + $0x450] sm:$0xff] }
 0x505   : > { %v5353_v14 = vpop.f32.mrf.mxu1  ;;  %6972 = vmatprep.subr.bf16.mxu0 %v16214_v1  ;;  %7017 = vmatprep.subr.bf16.mxu1 %v16374_v4  ;;  %v16365_v4 = vcombine.low %v3200_v60, %v3204_v54  ;;  %v3188_v6 = vld [vmem:[%s26259_s5 + $0x470] sm:$0xff]  ;;  %v16325_v60 = vcombine.low %v3160_v45, %v3164_v42  ;;  %v16357_v54 = vcombine.low %v3192_v32, %v3196_v20 }
 0x506   : > { %v22878_v41 = vadd.f32 %v5353_v14, %v5300_v12  ;;  %v16358_v12 = vcombine.high %v3192_v32, %v3196_v20  ;;  %v3152_v14 = vld [vmem:[%s26259_s5 + $0x350] sm:$0xff]  ;;  %v16349_v32 = vcombine.low %v3184_v31, %v3188_v6 }
 0x507   : > { %v5355_v46 = vpop.f32.mrf.mxu1  ;;  %6973 = vmatpush1.bf16.msra.mxu0 %v16213_v30  ;;  %v16318_v30 = vcombine.high %v3152_v14, %v3156_v56  ;;  %v3180_v45 = vld [vmem:[%s26259_s5 + $0x430] sm:$0xff]  ;;  %v16317_v42 = vcombine.low %v3152_v14, %v3156_v56 }
 0x508   : > { %26529 = vst [vmem:[#allocation58_spill] sm:$0xff] %v22878_v41  ;;  %v22886_v1 = vadd.f32 %v5355_v46, %v5302_v38  ;;  %7018 = vmatpush1.bf16.msra.mxu1 %v16373_v19  ;;  %6974 = vmatprep.subr.bf16.mxu0 %v16334_v52  ;;  %v16350_v19 = vcombine.high %v3184_v31, %v3188_v6  ;;  %v3144_v52 = vld [vmem:[%s26259_s5 + $0x310] sm:$0xff] }
 0x509   : > { %7019 = vmatprep.subr.bf16.mxu1 %v16366_v18  ;;  %v3148_v18 = vld [vmem:[%s26259_s5 + $0x330] sm:$0xff] }
 0x50a   : > { %26530 = vst [vmem:[#allocation19_spill] sm:$0xff] %v22886_v1  ;;  %v3176_v38 = vld [vmem:[%s26259_s5 + $0x410] sm:$0xff]  ;;  %v16310_v20 = vcombine.high %v3144_v52, %v3148_v18 }
 0x50b   : > { %6975 = vmatpush2.bf16.msra.mxu0 %v16333_v57  ;;  %v16342_v46 = vcombine.high %v3176_v38, %v3180_v45  ;;  %v3136_v57 = vld [vmem:[%s26259_s5 + $0x2d0] sm:$0xff]  ;;  %v16341_v14 = vcombine.low %v3176_v38, %v3180_v45 }
 0x50c   : > { %7020 = vmatpush1.bf16.msra.mxu1 %v16365_v4  ;;  %6976 = vmatprep.subr.bf16.mxu0 %v16326_v11  ;;  %v3140_v4 = vld [vmem:[%s26259_s5 + $0x2f0] sm:$0xff] }
 0x50d   : > { %7021 = vmatprep.subr.bf16.mxu1 %v16358_v12  ;;  %v3296_v11 = vld [vmem:[%s26259_s5 + $0x7d0] sm:$0xff]  ;;  %v16309_v12 = vcombine.low %v3144_v52, %v3148_v18  ;;  %v16302_v31 = vcombine.high %v3136_v57, %v3140_v4  ;;  %v16301_v52 = vcombine.low %v3136_v57, %v3140_v4 }
 0x50e   : > { %v3300_v56 = vld [vmem:[%s26259_s5 + $0x7f0] sm:$0xff] }
 0x50f   : > { %6977 = vmatpush2.bf16.msra.mxu0 %v16325_v60  ;;  %v16462_v6 = vcombine.high %v3296_v11, %v3300_v56  ;;  %v3128_v60 = vld [vmem:[%s26259_s5 + $0x290] sm:$0xff]  ;;  %v16461_v18 = vcombine.low %v3296_v11, %v3300_v56 }
 0x510   : > { %7022 = vmatpush1.bf16.msra.mxu1 %v16357_v54  ;;  %6978 = vmatprep.subr.bf16.mxu0 %v16318_v30  ;;  %v3132_v54 = vld [vmem:[%s26259_s5 + $0x2b0] sm:$0xff] }
 0x511   : > { %7023 = vmatprep.subr.bf16.mxu1 %v16350_v19  ;;  %v3288_v30 = vld [vmem:[%s26259_s5 + $0x790] sm:$0xff]  ;;  %v16294_v38 = vcombine.high %v3128_v60, %v3132_v54  ;;  %v16293_v57 = vcombine.low %v3128_v60, %v3132_v54 }
 0x512   : > { %v3292_v19 = vld [vmem:[%s26259_s5 + $0x7b0] sm:$0xff] }
 0x513   : > { %6979 = vmatpush2.bf16.msra.mxu0 %v16317_v42  ;;  %v16454_v45 = vcombine.high %v3288_v30, %v3292_v19  ;;  %v3120_v42 = vld [vmem:[%s26259_s5 + $0x250] sm:$0xff]  ;;  %v16453_v4 = vcombine.low %v3288_v30, %v3292_v19 }
 0x514   : > { %7024 = vmatpush1.bf16.msra.mxu1 %v16349_v32  ;;  %6980 = vmatprep.subr.bf16.mxu0 %v16310_v20  ;;  %v3124_v32 = vld [vmem:[%s26259_s5 + $0x270] sm:$0xff] }
 0x515   : > { %7025 = vmatprep.subr.bf16.mxu1 %v16342_v46  ;;  %v3280_v20 = vld [vmem:[%s26259_s5 + $0x750] sm:$0xff]  ;;  %v16286_v11 = vcombine.high %v3120_v42, %v3124_v32  ;;  %v16285_v60 = vcombine.low %v3120_v42, %v3124_v32 }
 0x516   : > { %v3284_v46 = vld [vmem:[%s26259_s5 + $0x770] sm:$0xff] }
 0x517   : > { %6981 = vmatpush2.bf16.msra.mxu0 %v16309_v12  ;;  %v16446_v56 = vcombine.high %v3280_v20, %v3284_v46  ;;  %v3112_v12 = vld [vmem:[%s26259_s5 + $0x210] sm:$0xff]  ;;  %v16445_v54 = vcombine.low %v3280_v20, %v3284_v46 }
 0x518   : > { %7026 = vmatpush1.bf16.msra.mxu1 %v16341_v14  ;;  %6982 = vmatprep.subr.bf16.mxu0 %v16302_v31  ;;  %v3116_v14 = vld [vmem:[%s26259_s5 + $0x230] sm:$0xff] }
 0x519   : > { %7027 = vmatprep.subr.bf16.mxu1 %v16462_v6  ;;  %v3272_v31 = vld [vmem:[%s26259_s5 + $0x710] sm:$0xff]  ;;  %v16278_v30 = vcombine.high %v3112_v12, %v3116_v14  ;;  %v16277_v42 = vcombine.low %v3112_v12, %v3116_v14 }
 0x51a   : > { %v3276_v6 = vld [vmem:[%s26259_s5 + $0x730] sm:$0xff] }
 0x51b   : > { %6983 = vmatpush2.bf16.msra.mxu0 %v16301_v52  ;;  %v16438_v19 = vcombine.high %v3272_v31, %v3276_v6  ;;  %v3105_v52 = vld [vmem:[%s26259_s5 + $0x1d8] sm:$0xff]  ;;  %v16437_v32 = vcombine.low %v3272_v31, %v3276_v6 }
 0x51c   : > { %7028 = vmatpush2.bf16.msra.mxu1 %v16461_v18  ;;  %6984 = vmatprep.subr.bf16.mxu0 %v16294_v38  ;;  %v3109_v18 = vld [vmem:[%s26259_s5 + $0x1f8] sm:$0xff]  ;;  %v3264_v38 = vld [vmem:[%s26259_s5 + $0x6d0] sm:$0xff] }
 0x51d   : > { %7029 = vmatprep.subr.bf16.mxu1 %v16454_v45  ;;  %v3268_v45 = vld [vmem:[%s26259_s5 + $0x6f0] sm:$0xff]  ;;  %v16272_v20 = vcombine.high %v3105_v52, %v3109_v18  ;;  %v16271_v12 = vcombine.low %v3105_v52, %v3109_v18 }
 0x51e   : > { %v16430_v46 = vcombine.high %v3264_v38, %v3268_v45  ;;  %v16429_v14 = vcombine.low %v3264_v38, %v3268_v45  ;;  %v22998_v45 = vpop.f32.mrf.mxu0 }
 0x51f   : > { %6985 = vmatpush2.bf16.msra.mxu0 %v16293_v57  ;;  %v3097_v57 = vld [vmem:[%s26259_s5 + $0x198] sm:$0xff]  ;;  %26531 = vst [vmem:[#allocation59_spill] sm:$0xff] %v22998_v45 }
 0x520   : > { %7030 = vmatpush2.bf16.msra.mxu1 %v16453_v4  ;;  %6986 = vmatprep.subr.bf16.mxu0 %v16286_v11  ;;  %v3101_v4 = vld [vmem:[%s26259_s5 + $0x1b8] sm:$0xff]  ;;  %v3256_v11 = vld [vmem:[%s26259_s5 + $0x690] sm:$0xff] }
 0x521   : > { %7031 = vmatprep.subr.bf16.mxu1 %v16446_v56  ;;  %v3260_v56 = vld [vmem:[%s26259_s5 + $0x6b0] sm:$0xff]  ;;  %v16264_v31 = vcombine.high %v3097_v57, %v3101_v4  ;;  %v16263_v52 = vcombine.low %v3097_v57, %v3101_v4  ;;  %v3069_v45 = vld [vmem:[%s26259_s5 + $0xb8] sm:$0xff] }
 0x522   : > { %v16422_v6 = vcombine.high %v3256_v11, %v3260_v56  ;;  %v16421_v18 = vcombine.low %v3256_v11, %v3260_v56  ;;  %v3244_v57 = vld [vmem:[%s26259_s5 + $0x630] sm:$0xff] }
 0x523   : > { %6987 = vmatpush2.bf16.msra.mxu0 %v16285_v60  ;;  %v3089_v60 = vld [vmem:[%s26259_s5 + $0x158] sm:$0xff] }
 0x524   : > { %7032 = vmatpush2.bf16.msra.mxu1 %v16445_v54  ;;  %6988 = vmatprep.subr.bf16.mxu0 %v16278_v30  ;;  %v3093_v54 = vld [vmem:[%s26259_s5 + $0x178] sm:$0xff]  ;;  %v3248_v30 = vld [vmem:[%s26259_s5 + $0x650] sm:$0xff] }
 0x525   : > { %7033 = vmatprep.subr.bf16.mxu1 %v16438_v19  ;;  %v3252_v19 = vld [vmem:[%s26259_s5 + $0x670] sm:$0xff]  ;;  %v16256_v38 = vcombine.high %v3089_v60, %v3093_v54  ;;  %v16255_v11 = vcombine.low %v3089_v60, %v3093_v54  ;;  %v3233_v60 = vld [vmem:[%s26259_s5 + $0x5d8] sm:$0xff] }
 0x526   : > { %v16413_v56 = vcombine.low %v3248_v30, %v3252_v19  ;;  %v3237_v54 = vld [vmem:[%s26259_s5 + $0x5f8] sm:$0xff] }
 0x527   : > { %6989 = vmatpush2.bf16.msra.mxu0 %v16277_v42  ;;  %v16414_v42 = vcombine.high %v3248_v30, %v3252_v19 }
 0x528   : > { %7034 = vmatpush2.bf16.msra.mxu1 %v16437_v32  ;;  %7064 = vmatprep.subr.bf16.mxu0 %v16272_v20  ;;  %v3081_v32 = vld [vmem:[%s26259_s5 + $0x118] sm:$0xff] }
 0x529   : > { %7035 = vmatprep.subr.bf16.mxu1 %v16430_v46  ;;  %v3085_v20 = vld [vmem:[%s26259_s5 + $0x138] sm:$0xff]  ;;  %v3240_v46 = vld [vmem:[%s26259_s5 + $0x610] sm:$0xff] }
 0x52a   : > { %6991 = vmatmul.mubr.bf16.vlgmr.msra.gmra.mxu0 %v21683_v43  ;;  %v5394_v4 = vpop.f32.mrf.mxu0  ;;  %v16247_v19 = vcombine.low %v3081_v32, %v3085_v20 }
 0x52b   : > { %7000 = vmatprep.mubr.bf16.mxu0 %v22538_v25  ;;  %7065 = vmatpush1.bf16.msra.mxu0 %v16271_v12  ;;  %v16248_v12 = vcombine.high %v3081_v32, %v3085_v20 }
 0x52c   : > { %7036 = vmatpush2.bf16.msra.mxu1 %v16429_v14  ;;  %7066 = vmatprep.subr.bf16.mxu0 %v16264_v31  ;;  %v16406_v14 = vcombine.high %v3240_v46, %v3244_v57  ;;  %v3073_v31 = vld [vmem:[%s26259_s5 + $0xd8] sm:$0xff]  ;;  %v5396_v30 = vpop.f32.mrf.mxu0 }
 0x52d   : > { %7037 = vmatprep.subr.bf16.mxu1 %v16422_v6  ;;  %v3077_v6 = vld [vmem:[%s26259_s5 + $0xf8] sm:$0xff] }
 0x52e   : > { %v5398_v32 = vpop.f32.mrf.mxu0  ;;  %v16239_v20 = vcombine.low %v3073_v31, %v3077_v6 }
 0x52f   : > { %7067 = vmatpush1.bf16.msra.mxu0 %v16263_v52  ;;  %v16405_v52 = vcombine.low %v3240_v46, %v3244_v57  ;;  %v16399_v46 = vcombine.low %v3233_v60, %v3237_v54  ;;  %v23038_v57 = vpop.f32.mrf.mxu1 }
 0x530   : > { %7038 = vmatpush2.bf16.msra.mxu1 %v16421_v18  ;;  %7068 = vmatprep.subr.bf16.mxu0 %v16256_v38  ;;  %v16240_v18 = vcombine.high %v3073_v31, %v3077_v6  ;;  %v16400_v38 = vcombine.high %v3233_v60, %v3237_v54  ;;  %26532 = vst [vmem:[#allocation20_spill] sm:$0xff] %v23038_v57  ;;  %v3217_v31 = vld [vmem:[%s26259_s5 + $0x558] sm:$0xff]  ;;  %v23052_v60 = vpop.f32.mrf.mxu0 }
 0x531   : > { %7039 = vmatprep.subr.bf16.mxu1 %v16414_v42  ;;  %v3065_v42 = vld [vmem:[%s26259_s5 + $0x98] sm:$0xff]  ;;  %26533 = vst [vmem:[#allocation60_spill] sm:$0xff] %v23052_v60 }
 0x532   : > { %7001 = vmatmul.mubr.bf16.gmra.mxu0 %v21685_v15  ;;  %v3221_v6 = vld [vmem:[%s26259_s5 + $0x578] sm:$0xff] }
 0x533   : > { %7069 = vmatpush1.bf16.msra.mxu0 %v16255_v11  ;;  %7096 = vmatprep.mubr.bf16.mxu0 %v22340_v34  ;;  %v3225_v11 = vld [vmem:[%s26259_s5 + $0x598] sm:$0xff]  ;;  %v16384_v1 = vcombine.high %v3217_v31, %v3221_v6 }
 0x534   : > { %7040 = vmatpush2.bf16.msra.mxu1 %v16413_v56  ;;  %7070 = vmatprep.subr.bf16.mxu0 %v16248_v12  ;;  %v3229_v34 = vld [vmem:[%s26259_s5 + $0x5b8] sm:$0xff]  ;;  %v16232_v56 = vcombine.high %v3065_v42, %v3069_v45 }
 0x535   : > { %7041 = vmatprep.subr.bf16.mxu1 %v16406_v14  ;;  %v16392_v12 = vcombine.high %v3225_v11, %v3229_v34  ;;  %v3057_v14 = vld [vmem:[%s26259_s5 + $0x58] sm:$0xff] }
 0x536   : > { %v3049_v60 = vld [vmem:[%s26259_s5 + $0x18] sm:$0xff] }
 0x537   : > { %7071 = vmatpush1.bf16.msra.mxu0 %v16247_v19  ;;  %v16231_v19 = vcombine.low %v3065_v42, %v3069_v45  ;;  %v3053_v45 = vld [vmem:[%s26259_s5 + $0x38] sm:$0xff] }
 0x538   : > { %7042 = vmatpush2.bf16.msra.mxu1 %v16405_v52  ;;  %7072 = vmatprep.subr.bf16.mxu0 %v16240_v18  ;;  %v16391_v18 = vcombine.low %v3225_v11, %v3229_v34  ;;  %v3213_v42 = vld [vmem:[%s26259_s5 + $0x538] sm:$0xff]  ;;  %v5404_v11 = vpop.f32.mrf.mxu0 }
 0x539   : > { %7117 = vmatprep.subr.bf16.mxu1 %v16400_v38  ;;  %v16224_v38 = vcombine.high %v3057_v14, %v3061_v58 }
 0x53b   : > { %v5447_v54 = vpop.f32.mrf.mxu1  ;;  %7044 = vmatmul.mubr.bf16.vlgmr.msra.gmra.mxu1 %v21699_v27  ;;  %7073 = vmatpush1.bf16.msra.mxu0 %v16239_v20  ;;  %v16223_v20 = vcombine.low %v3057_v14, %v3061_v58  ;;  %v3201_v58 = vld [vmem:[%s26259_s5 + $0x4d8] sm:$0xff]  ;;  %v5406_v14 = vpop.f32.mrf.mxu0 }
 0x53c   : > { %v23055_v52 = vadd.f32 %v5447_v54, %v5394_v4  ;;  %7053 = vmatprep.mubr.bf16.mxu1 %v22604_v40  ;;  %7118 = vmatpush1.bf16.msra.mxu1 %v16399_v46  ;;  %v3209_v4 = vld [vmem:[%s26259_s5 + $0x518] sm:$0xff] }
 0x53d   : > { %v5449_v57 = vpop.f32.mrf.mxu1  ;;  %7074 = vmatprep.subr.bf16.mxu0 %v16232_v56  ;;  %7119 = vmatprep.subr.bf16.mxu1 %v16392_v12  ;;  %v16216_v56 = vcombine.high %v3049_v60, %v3053_v45  ;;  %v16376_v12 = vcombine.high %v3209_v4, %v3213_v42  ;;  %v3169_v54 = vld [vmem:[%s26259_s5 + $0x3d8] sm:$0xff] }
 0x53e   : > { %v23061_v41 = vadd.f32 %v5449_v57, %v5396_v30  ;;  %v16383_v30 = vcombine.low %v3217_v31, %v3221_v6  ;;  %v16215_v31 = vcombine.low %v3049_v60, %v3053_v45  ;;  %v3197_v45 = vld [vmem:[%s26259_s5 + $0x4b8] sm:$0xff] }
 0x53f   : > { %v5451_v34 = vpop.f32.mrf.mxu1  ;;  %7075 = vmatpush1.bf16.msra.mxu0 %v16231_v19  ;;  %v16375_v19 = vcombine.low %v3209_v4, %v3213_v42  ;;  %v5408_v4 = vpop.f32.mrf.mxu0 }
 0x540   : > { %26534 = vst [vmem:[#allocation21_spill] sm:$0xff] %v23061_v41  ;;  %v23072_v46 = vadd.f32 %v5451_v34, %v5398_v32  ;;  %7120 = vmatpush1.bf16.msra.mxu1 %v16391_v18  ;;  %7076 = vmatprep.subr.bf16.mxu0 %v16224_v38  ;;  %v3173_v41 = vld [vmem:[%s26259_s5 + $0x3f8] sm:$0xff] }
 0x541   : > { %v23074_v57 = vpop.f32.mrf.mxu1  ;;  %7121 = vmatprep.subr.bf16.mxu1 %v16384_v1  ;;  %v3205_v32 = vld [vmem:[%s26259_s5 + $0x4f8] sm:$0xff]  ;;  %v16336_v18 = vcombine.high %v3169_v54, %v3173_v41 }
 0x542   : > { %26535 = vst [vmem:[#allocation61_spill] sm:$0xff] %v23074_v57  ;;  %v16368_v34 = vcombine.high %v3201_v58, %v3205_v32  ;;  %v3161_v57 = vld [vmem:[%s26259_s5 + $0x398] sm:$0xff] }
 0x543   : > { %v5457_v1 = vpop.f32.mrf.mxu1  ;;  %7054 = vmatmul.mubr.bf16.gmra.mxu1 %v21723_v59  ;;  %7077 = vmatpush1.bf16.msra.mxu0 %v16223_v20  ;;  %v3165_v20 = vld [vmem:[%s26259_s5 + $0x3b8] sm:$0xff] }
 0x544   : > { %v23089_v6 = vadd.f32 %v5457_v1, %v5404_v11  ;;  %7122 = vmatpush1.bf16.msra.mxu1 %v16383_v30  ;;  %7149 = vmatprep.mubr.bf16.mxu1 %v22412_v37  ;;  %v3193_v37 = vld [vmem:[%s26259_s5 + $0x498] sm:$0xff]  ;;  %v16335_v11 = vcombine.low %v3169_v54, %v3173_v41 }
 0x545   : > { %v5459_v38 = vpop.f32.mrf.mxu1  ;;  %7078 = vmatprep.subr.bf16.mxu0 %v16216_v56  ;;  %7123 = vmatprep.subr.bf16.mxu1 %v16376_v12  ;;  %v16367_v56 = vcombine.low %v3201_v58, %v3205_v32  ;;  %v16328_v12 = vcombine.high %v3161_v57, %v3165_v20  ;;  %v3153_v1 = vld [vmem:[%s26259_s5 + $0x358] sm:$0xff]  ;;  %v16327_v58 = vcombine.low %v3161_v57, %v3165_v20 }
 0x546   : > { %v23098_v60 = vadd.f32 %v5459_v38, %v5406_v14  ;;  %v16360_v14 = vcombine.high %v3193_v37, %v3197_v45  ;;  %v3157_v38 = vld [vmem:[%s26259_s5 + $0x378] sm:$0xff]  ;;  %v16359_v32 = vcombine.low %v3193_v37, %v3197_v45 }
 0x547   : > { %v5461_v42 = vpop.f32.mrf.mxu1  ;;  %7079 = vmatpush1.bf16.msra.mxu0 %v16215_v31  ;;  %v3185_v41 = vld [vmem:[%s26259_s5 + $0x458] sm:$0xff]  ;;  %v16320_v31 = vcombine.high %v3153_v1, %v3157_v38  ;;  %v16319_v20 = vcombine.low %v3153_v1, %v3157_v38 }
 0x548   : > { %v23106_v30 = vadd.f32 %v5461_v42, %v5408_v4  ;;  %7124 = vmatpush1.bf16.msra.mxu1 %v16375_v19  ;;  %7080 = vmatprep.subr.bf16.mxu0 %v16336_v18  ;;  %v3189_v54 = vld [vmem:[%s26259_s5 + $0x478] sm:$0xff] }
 0x549   : > { %7125 = vmatprep.subr.bf16.mxu1 %v16368_v34  ;;  %v16352_v19 = vcombine.high %v3185_v41, %v3189_v54  ;;  %v3145_v18 = vld [vmem:[%s26259_s5 + $0x318] sm:$0xff]  ;;  %v16351_v37 = vcombine.low %v3185_v41, %v3189_v54 }
 0x54a   : > { %v3149_v34 = vld [vmem:[%s26259_s5 + $0x338] sm:$0xff] }
 0x54b   : > { %7081 = vmatpush2.bf16.msra.mxu0 %v16335_v11  ;;  %v3177_v4 = vld [vmem:[%s26259_s5 + $0x418] sm:$0xff]  ;;  %v16312_v45 = vcombine.high %v3145_v18, %v3149_v34  ;;  %v16311_v1 = vcombine.low %v3145_v18, %v3149_v34 }
 0x54c   : > { %7126 = vmatpush1.bf16.msra.mxu1 %v16367_v56  ;;  %7082 = vmatprep.subr.bf16.mxu0 %v16328_v12  ;;  %v3181_v57 = vld [vmem:[%s26259_s5 + $0x438] sm:$0xff] }
 0x54d   : > { %7127 = vmatprep.subr.bf16.mxu1 %v16360_v14  ;;  %v16344_v42 = vcombine.high %v3177_v4, %v3181_v57  ;;  %v3137_v11 = vld [vmem:[%s26259_s5 + $0x2d8] sm:$0xff]  ;;  %v16343_v38 = vcombine.low %v3177_v4, %v3181_v57 }
 0x54e   : > { %v3141_v56 = vld [vmem:[%s26259_s5 + $0x2f8] sm:$0xff] }
 0x54f   : > { %7083 = vmatpush2.bf16.msra.mxu0 %v16327_v58  ;;  %v3297_v12 = vld [vmem:[%s26259_s5 + $0x7d8] sm:$0xff]  ;;  %v16304_v41 = vcombine.high %v3137_v11, %v3141_v56  ;;  %v16303_v18 = vcombine.low %v3137_v11, %v3141_v56 }
 0x550   : > { %7128 = vmatpush1.bf16.msra.mxu1 %v16359_v32  ;;  %7084 = vmatprep.subr.bf16.mxu0 %v16320_v31  ;;  %v3301_v14 = vld [vmem:[%s26259_s5 + $0x7f8] sm:$0xff] }
 0x551   : > { %7129 = vmatprep.subr.bf16.mxu1 %v16352_v19  ;;  %v16464_v54 = vcombine.high %v3297_v12, %v3301_v14  ;;  %v3129_v58 = vld [vmem:[%s26259_s5 + $0x298] sm:$0xff]  ;;  %v16463_v34 = vcombine.low %v3297_v12, %v3301_v14 }
 0x552   : > { %v3133_v32 = vld [vmem:[%s26259_s5 + $0x2b8] sm:$0xff] }
 0x553   : > { %7085 = vmatpush2.bf16.msra.mxu0 %v16319_v20  ;;  %v3289_v31 = vld [vmem:[%s26259_s5 + $0x798] sm:$0xff]  ;;  %v16296_v4 = vcombine.high %v3129_v58, %v3133_v32  ;;  %v16295_v11 = vcombine.low %v3129_v58, %v3133_v32 }
 0x554   : > { %7130 = vmatpush1.bf16.msra.mxu1 %v16351_v37  ;;  %7086 = vmatprep.subr.bf16.mxu0 %v16312_v45  ;;  %v3293_v19 = vld [vmem:[%s26259_s5 + $0x7b8] sm:$0xff] }
 0x555   : > { %7131 = vmatprep.subr.bf16.mxu1 %v16344_v42  ;;  %v16456_v57 = vcombine.high %v3289_v31, %v3293_v19  ;;  %v3121_v20 = vld [vmem:[%s26259_s5 + $0x258] sm:$0xff]  ;;  %v16455_v56 = vcombine.low %v3289_v31, %v3293_v19 }
 0x556   : > { %v3125_v37 = vld [vmem:[%s26259_s5 + $0x278] sm:$0xff] }
 0x557   : > { %7087 = vmatpush2.bf16.msra.mxu0 %v16311_v1  ;;  %v3281_v45 = vld [vmem:[%s26259_s5 + $0x758] sm:$0xff]  ;;  %v16288_v12 = vcombine.high %v3121_v20, %v3125_v37  ;;  %v16287_v58 = vcombine.low %v3121_v20, %v3125_v37 }
 0x558   : > { %7132 = vmatpush1.bf16.msra.mxu1 %v16343_v38  ;;  %7088 = vmatprep.subr.bf16.mxu0 %v16304_v41  ;;  %v3285_v42 = vld [vmem:[%s26259_s5 + $0x778] sm:$0xff] }
 0x559   : > { %7133 = vmatprep.subr.bf16.mxu1 %v16464_v54  ;;  %v16448_v14 = vcombine.high %v3281_v45, %v3285_v42  ;;  %v3113_v1 = vld [vmem:[%s26259_s5 + $0x218] sm:$0xff]  ;;  %v16447_v32 = vcombine.low %v3281_v45, %v3285_v42  ;;  %v23192_v42 = vpop.f32.mrf.mxu0 }
 0x55a   : > { %v3117_v38 = vld [vmem:[%s26259_s5 + $0x238] sm:$0xff]  ;;  %26536 = vst [vmem:[#allocation22_spill] sm:$0xff] %v23192_v42 }
 0x55b   : > { %7089 = vmatpush2.bf16.msra.mxu0 %v16303_v18  ;;  %v3273_v41 = vld [vmem:[%s26259_s5 + $0x718] sm:$0xff]  ;;  %v16280_v31 = vcombine.high %v3113_v1, %v3117_v38 }
 0x55c   : > { %7134 = vmatpush2.bf16.msra.mxu1 %v16463_v34  ;;  %7090 = vmatprep.subr.bf16.mxu0 %v16296_v4  ;;  %v3277_v54 = vld [vmem:[%s26259_s5 + $0x738] sm:$0xff]  ;;  %v16279_v4 = vcombine.low %v3113_v1, %v3117_v38 }
 0x55d   : > { %7135 = vmatprep.subr.bf16.mxu1 %v16456_v57  ;;  %v16440_v19 = vcombine.high %v3273_v41, %v3277_v54  ;;  %v3265_v18 = vld [vmem:[%s26259_s5 + $0x6d8] sm:$0xff]  ;;  %v16439_v57 = vcombine.low %v3273_v41, %v3277_v54 }
 0x55e   : > { %v3269_v34 = vld [vmem:[%s26259_s5 + $0x6f8] sm:$0xff] }
 0x55f   : > { %7091 = vmatpush2.bf16.msra.mxu0 %v16295_v11  ;;  %v16432_v20 = vcombine.high %v3265_v18, %v3269_v34  ;;  %v3257_v37 = vld [vmem:[%s26259_s5 + $0x698] sm:$0xff]  ;;  %v16431_v11 = vcombine.low %v3265_v18, %v3269_v34  ;;  %v23229_v18 = vpop.f32.mrf.mxu1 }
 0x560   : > { %7136 = vmatpush2.bf16.msra.mxu1 %v16455_v56  ;;  %7092 = vmatprep.subr.bf16.mxu0 %v16288_v12  ;;  %v3261_v45 = vld [vmem:[%s26259_s5 + $0x6b8] sm:$0xff]  ;;  %26537 = vst [vmem:[#allocation62_spill] sm:$0xff] %v23229_v18 }
 0x561   : > { %7137 = vmatprep.subr.bf16.mxu1 %v16448_v14  ;;  %v16424_v56 = vcombine.high %v3257_v37, %v3261_v45  ;;  %v3249_v14 = vld [vmem:[%s26259_s5 + $0x658] sm:$0xff]  ;;  %v16423_v41 = vcombine.low %v3257_v37, %v3261_v45 }
 0x562   : > { %v3253_v1 = vld [vmem:[%s26259_s5 + $0x678] sm:$0xff] }
 0x563   : > { %7093 = vmatpush2.bf16.msra.mxu0 %v16287_v58  ;;  %v16416_v54 = vcombine.high %v3249_v14, %v3253_v1 }
 0x564   : > { %7138 = vmatpush2.bf16.msra.mxu1 %v16447_v32  ;;  %7094 = vmatprep.subr.bf16.mxu0 %v16280_v31 }
 0x565   : > { %7139 = vmatprep.subr.bf16.mxu1 %v16440_v19 }
 0x567   : > { %7095 = vmatpush2.bf16.msra.mxu0 %v16279_v4 }
 0x568   : > { %7140 = vmatpush2.bf16.msra.mxu1 %v16439_v57  ;;  %7211 = vmatprep.subr.mxu0 %v21312_v53 }
 0x569   : > { %7141 = vmatprep.subr.bf16.mxu1 %v16432_v20  ;;  %v16525_v20 = vld [vmem:[%s26259_s5 + $0x1180] sm:$0xff] }
 0x56a   : > { %v6780_v12 = vpop.f32.mrf.mxu0  ;;  %7097 = vmatmul.mubr.bf16.vlgmr.msra.gmra.mxu0 %v21683_v43 }
 0x56b   : > { %v6781_v38 = vadd.f32 %v6780_v12, %v22381_v36  ;;  %7106 = vmatprep.mubr.bf16.mxu0 %v22538_v25  ;;  %7212 = vmatpush1.msra.mxu0 %v21314_v17  ;;  %v3241_v36 = vld [vmem:[%s26259_s5 + $0x618] sm:$0xff] }
 0x56c   : > { %7142 = vmatpush2.bf16.msra.mxu1 %v16431_v11  ;;  %v6782_v53 = vpop.f32.mrf.mxu0  ;;  %7213 = vmatprep.subr.mxu0 %v21316_v62  ;;  %v3245_v17 = vld [vmem:[%s26259_s5 + $0x638] sm:$0xff] }
 0x56d   : > { %v6783_v43 = vadd.f32 %v6782_v53, %v22389_v8  ;;  %7214 = vmatpush1.msra.mxu0 %v21320_v29  ;;  %7143 = vmatprep.subr.bf16.mxu1 %v16424_v56  ;;  %v16415_v29 = vcombine.low %v3249_v14, %v3253_v1  ;;  %v16517_v14 = vld [vmem:[%s26259_s5 + $0x1140] sm:$0xff] }
 0x56e   : > { %v6784_v58 = vpop.f32.mrf.mxu0  ;;  %7215 = vmatprep.subr.mxu0 %v21324_v2  ;;  %v16408_v2 = vcombine.high %v3241_v36, %v3245_v17  ;;  %v16521_v1 = vld [vmem:[%s26259_s5 + $0x1160] sm:$0xff] }
 0x56f   : > { %v6785_v62 = vadd.f32 %v6784_v58, %v22400_v26  ;;  %7216 = vmatpush1.msra.mxu0 %v21328_v35  ;;  %v16407_v35 = vcombine.low %v3241_v36, %v3245_v17  ;;  %v16774_v53 = vcombine.high %v16517_v14, %v16521_v1  ;;  %v16505_v36 = vld [vmem:[%s26259_s5 + $0x10e0] sm:$0xff] }
 0x570   : > { %7144 = vmatpush2.bf16.msra.mxu1 %v16423_v41  ;;  %v23217_v8 = vpop.f32.mrf.mxu0  ;;  %7217 = vmatprep.subr.mxu0 %v21332_v13  ;;  %v16509_v41 = vld [vmem:[%s26259_s5 + $0x1100] sm:$0xff] }
 0x571   : > { %7218 = vmatpush1.msra.mxu0 %v21336_v61  ;;  %7145 = vmatprep.subr.bf16.mxu1 %v16416_v54  ;;  %v16465_v61 = vld [vmem:[%s26258_s4 + $0x40] sm:$0xff] }
 0x572   : > { %v6790_v25 = vpop.f32.mrf.mxu0  ;;  %7107 = vmatmul.mubr.bf16.gmra.mxu0 %v21685_v15  ;;  %v16501_v54 = vld [vmem:[%s26259_s5 + $0x10c0] sm:$0xff] }
 0x573   : > { %v6791_v32 = vadd.f32 %v6790_v25, %v22422_v23  ;;  %7251 = vmatprep.mubr.f32.mxu0 %v26518_v3  ;;  %v23238_v23 = vld [vmem:[%s26258_s4 + $0x48] sm:$0xff]  ;;  %v16661_v17 = vld [vmem:[%s26259_s5 + $0x15c0] sm:$0xff] }
 0x574   : > { %7146 = vmatpush2.bf16.msra.mxu1 %v16415_v29  ;;  %v6792_v26 = vpop.f32.mrf.mxu0 }
 0x575   : > { %v6793_v31 = vadd.f32 %v6792_v26, %v22436_v21  ;;  %7147 = vmatprep.subr.bf16.mxu1 %v16408_v2  ;;  %v16653_v2 = vld [vmem:[%s26259_s5 + $0x1580] sm:$0xff] }
 0x576   : > { %v6794_v19 = vpop.f32.mrf.mxu0  ;;  %v16657_v26 = vld [vmem:[%s26259_s5 + $0x15a0] sm:$0xff] }
 0x577   : > { %v6795_v13 = vadd.f32 %v6794_v19, %v22438_v0  ;;  %v16645_v19 = vld [vmem:[%s26259_s5 + $0x1540] sm:$0xff] }
 0x578   : > { %7148 = vmatpush2.bf16.msra.mxu1 %v16407_v35  ;;  %v16758_v35 = vcombine.high %v16501_v54, %v16505_v36 }
 0x579   : > { %7300 = vmatprep.subr.mxu1 %v21350_v49 }
 0x57a   : > { %16469 = vmatmul.mubr.msk.f32.vlgmr.msra.gmra.mxu0 %vm2847_vm3, %v16465_v61 }
 0x57b   : > { %v6833_v15 = vpop.f32.mrf.mxu1  ;;  %7150 = vmatmul.mubr.bf16.vlgmr.msra.gmra.mxu1 %v21699_v27  ;;  %7257 = vmatprep.mubr.f32.mxu0 %v26518_v3 }
 0x57c   : > { %v23240_v21 = vadd.f32 %v6833_v15, %v6781_v38  ;;  %7159 = vmatprep.mubr.bf16.mxu1 %v22604_v40  ;;  %7301 = vmatpush1.msra.mxu1 %v21354_v5  ;;  %v23255_v40 = vld [vmem:[%s26258_s4 + $0x50] sm:$0xff]  ;;  %v16773_v38 = vcombine.low %v16517_v14, %v16521_v1  ;;  %v16497_v15 = vld [vmem:[%s26259_s5 + $0x10a0] sm:$0xff] }
 0x57d   : > { %v6835_v0 = vpop.f32.mrf.mxu1  ;;  %7302 = vmatprep.subr.mxu1 %v21359_v10  ;;  %v16481_v14 = vld [vmem:[%s26259_s5 + $0x1020] sm:$0xff] }
 0x57e   : > { %v23245_v49 = vadd.f32 %v6835_v0, %v6783_v43  ;;  %7303 = vmatpush1.msra.mxu1 %v21365_v47  ;;  %16470 = vmatmul.mubr.msk.f32.gmra.mxu0 %vm2847_vm3, %v23238_v23  ;;  %v16533_v47 = vld [vmem:[%s26259_s5 + $0x11c0] sm:$0xff]  ;;  %v16909_v0 = vcombine.low %v16653_v2, %v16657_v26 }
 0x57f   : > { %v6837_v27 = vpop.f32.mrf.mxu1  ;;  %7304 = vmatprep.subr.mxu1 %v21380_v44  ;;  %7263 = vmatprep.mubr.f32.mxu0 %v26518_v3  ;;  %v16537_v44 = vld [vmem:[%s26259_s5 + $0x11e0] sm:$0xff] }
 0x580   : > { %v23257_v5 = vadd.f32 %v6837_v27, %v6785_v62  ;;  %7305 = vmatpush1.msra.mxu1 %v21385_v55  ;;  %v16790_v34 = vcombine.high %v16533_v47, %v16537_v44  ;;  %v23277_v55 = vld [vmem:[%s26258_s4 + $0x58] sm:$0xff]  ;;  %v16513_v43 = vld [vmem:[%s26259_s5 + $0x1120] sm:$0xff]  ;;  %v16757_v27 = vcombine.low %v16501_v54, %v16505_v36 }
 0x581   : > { %v23260_v10 = vpop.f32.mrf.mxu1  ;;  %7306 = vmatprep.subr.mxu1 %v21391_v51  ;;  %v16789_v51 = vcombine.low %v16533_v47, %v16537_v44  ;;  %v16766_v58 = vcombine.high %v16509_v41, %v16513_v43  ;;  %v16665_v62 = vld [vmem:[%s26259_s5 + $0x15e0] sm:$0xff]  ;;  %v16765_v25 = vcombine.low %v16509_v41, %v16513_v43 }
 0x582   : > { %7307 = vmatpush1.msra.mxu1 %v21397_v48  ;;  %16471 = vmatmul.mubr.msk.f32.gmra.mxu0 %vm2847_vm3, %v23255_v40  ;;  %v16917_v29 = vcombine.low %v16661_v17, %v16665_v62  ;;  %v16625_v43 = vld [vmem:[%s26259_s5 + $0x14a0] sm:$0xff] }
 0x583   : > { %v6843_v4 = vpop.f32.mrf.mxu1  ;;  %7160 = vmatmul.mubr.bf16.gmra.mxu1 %v21723_v59  ;;  %7269 = vmatprep.mubr.f32.mxu0 %v26518_v3  ;;  %v16529_v59 = vld [vmem:[%s26259_s5 + $0x11a0] sm:$0xff] }
 0x584   : > { %v23279_v57 = vadd.f32 %v6843_v4, %v6791_v32  ;;  %7340 = vmatprep.mubr.f32.mxu1 %v26518_v3  ;;  %8910 = vmatprep.subr.bf16.mxu0 %v16790_v34  ;;  %v16782_v45 = vcombine.high %v16525_v20, %v16529_v59  ;;  %v16781_v56 = vcombine.low %v16525_v20, %v16529_v59  ;;  %v16641_v34 = vld [vmem:[%s26259_s5 + $0x1520] sm:$0xff] }
 0x585   : > { %v6845_v48 = vpop.f32.mrf.mxu1  ;;  %8911 = vmatpush1.bf16.msra.mxu0 %v16789_v51  ;;  %v16918_v32 = vcombine.high %v16661_v17, %v16665_v62  ;;  %v16485_v4 = vld [vmem:[%s26259_s5 + $0x1040] sm:$0xff] }
 0x586   : > { %v23288_v37 = vadd.f32 %v6845_v48, %v6793_v31  ;;  %16472 = vmatmul.mubr.msk.f32.gmra.mxu0 %vm2847_vm3, %v23277_v55  ;;  %8912 = vmatprep.subr.bf16.mxu0 %v16782_v45  ;;  %v16910_v31 = vcombine.high %v16653_v2, %v16657_v26  ;;  %v16489_v51 = vld [vmem:[%s26259_s5 + $0x1060] sm:$0xff] }
 0x587   : > { %v6847_v11 = vpop.f32.mrf.mxu1  ;;  %8963 = vmatprep.subr.bf16.mxu1 %v16918_v32  ;;  %v16742_v45 = vcombine.high %v16485_v4, %v16489_v51  ;;  %v16597_v54 = vld [vmem:[%s26259_s5 + $0x13c0] sm:$0xff] }
 0x588   : > { %v23292_v12 = vadd.f32 %v6847_v11, %v6795_v13  ;;  %v16649_v13 = vld [vmem:[%s26259_s5 + $0x1560] sm:$0xff] }
 0x589   : > { %8913 = vmatpush1.bf16.msra.mxu0 %v16781_v56  ;;  %v16902_v47 = vcombine.high %v16645_v19, %v16649_v13  ;;  %v16901_v48 = vcombine.low %v16645_v19, %v16649_v13  ;;  %v16633_v11 = vld [vmem:[%s26259_s5 + $0x14e0] sm:$0xff]  ;;  %v23388_v19 = vpop.f32.mrf.mxu0 }
 0x58a   : > { %8914 = vmatprep.subr.bf16.mxu0 %v16774_v53  ;;  %v16477_v56 = vld [vmem:[%s26259_s5 + $0x1000] sm:$0xff] }
 0x58b   : > { %16473 = vmatmul.mubr.msk.f32.vlgmr.msra.gmra.mxu1 %vm2847_vm3, %v16465_v61  ;;  %v16493_v61 = vld [vmem:[%s26259_s5 + $0x1080] sm:$0xff]  ;;  %v16734_v41 = vcombine.high %v16477_v56, %v16481_v14  ;;  %v16733_v17 = vcombine.low %v16477_v56, %v16481_v14 }
 0x58c   : > { %7346 = vmatprep.mubr.f32.mxu1 %v26518_v3  ;;  %8964 = vmatpush1.bf16.msra.mxu1 %v16917_v29  ;;  %v16750_v44 = vcombine.high %v16493_v61, %v16497_v15  ;;  %v16749_v20 = vcombine.low %v16493_v61, %v16497_v15  ;;  %v16589_v2 = vld [vmem:[%s26259_s5 + $0x1380] sm:$0xff] }
 0x58d   : > { %8915 = vmatpush1.bf16.msra.mxu0 %v16773_v38  ;;  %8965 = vmatprep.subr.bf16.mxu1 %v16910_v31  ;;  %v16741_v38 = vcombine.low %v16485_v4, %v16489_v51  ;;  %v16581_v13 = vld [vmem:[%s26259_s5 + $0x1340] sm:$0xff] }
 0x58e   : > { %8916 = vmatprep.subr.bf16.mxu0 %v16766_v58  ;;  %v16601_v58 = vld [vmem:[%s26259_s5 + $0x13e0] sm:$0xff] }
 0x58f   : > { %16474 = vmatmul.mubr.msk.f32.gmra.mxu1 %vm2847_vm3, %v23238_v23  ;;  %v16637_v23 = vld [vmem:[%s26259_s5 + $0x1500] sm:$0xff]  ;;  %v16854_v29 = vcombine.high %v16597_v54, %v16601_v58  ;;  %v16853_v26 = vcombine.low %v16597_v54, %v16601_v58 }
 0x590   : > { %7352 = vmatprep.mubr.f32.mxu1 %v26518_v3  ;;  %8966 = vmatpush1.bf16.msra.mxu1 %v16909_v0  ;;  %v16894_v59 = vcombine.high %v16637_v23, %v16641_v34  ;;  %v16893_v1 = vcombine.low %v16637_v23, %v16641_v34  ;;  %v16585_v61 = vld [vmem:[%s26259_s5 + $0x1360] sm:$0xff] }
 0x591   : > { %8917 = vmatpush1.bf16.msra.mxu0 %v16765_v25  ;;  %8967 = vmatprep.subr.bf16.mxu1 %v16902_v47  ;;  %v16593_v25 = vld [vmem:[%s26259_s5 + $0x13a0] sm:$0xff]  ;;  %v16837_v23 = vcombine.low %v16581_v13, %v16585_v61 }
 0x592   : > { %8918 = vmatprep.subr.bf16.mxu0 %v16758_v35  ;;  %v16846_v35 = vcombine.high %v16589_v2, %v16593_v25  ;;  %v16845_v31 = vcombine.low %v16589_v2, %v16593_v25  ;;  %v16613_v15 = vld [vmem:[%s26259_s5 + $0x1440] sm:$0xff] }
 0x593   : > { %16475 = vmatmul.mubr.msk.f32.gmra.mxu1 %vm2847_vm3, %v23255_v40  ;;  %v16629_v40 = vld [vmem:[%s26259_s5 + $0x14c0] sm:$0xff] }
 0x594   : > { %7358 = vmatprep.mubr.f32.mxu1 %v26518_v3  ;;  %8968 = vmatpush1.bf16.msra.mxu1 %v16901_v48  ;;  %v16886_v53 = vcombine.high %v16629_v40, %v16633_v11  ;;  %v16885_v36 = vcombine.low %v16629_v40, %v16633_v11  ;;  %v16617_v47 = vld [vmem:[%s26259_s5 + $0x1460] sm:$0xff] }
 0x595   : > { %8919 = vmatpush1.bf16.msra.mxu0 %v16757_v27  ;;  %8969 = vmatprep.subr.bf16.mxu1 %v16894_v59  ;;  %v16838_v27 = vcombine.high %v16581_v13, %v16585_v61  ;;  %v16869_v34 = vcombine.low %v16613_v15, %v16617_v47  ;;  %v16870_v4 = vcombine.high %v16613_v15, %v16617_v47  ;;  %v16577_v59 = vld [vmem:[%s26259_s5 + $0x1320] sm:$0xff] }
 0x596   : > { %8920 = vmatprep.subr.bf16.mxu0 %v16750_v44  ;;  %v16729_v54 = vld [vmem:[%s26259_s5 + $0x17e0] sm:$0xff] }
 0x597   : > { %16476 = vmatmul.mubr.msk.f32.gmra.mxu1 %vm2847_vm3, %v23277_v55  ;;  %v16621_v55 = vld [vmem:[%s26259_s5 + $0x1480] sm:$0xff] }
 0x598   : > { %8970 = vmatpush1.bf16.msra.mxu1 %v16893_v1  ;;  %v16878_v62 = vcombine.high %v16621_v55, %v16625_v43  ;;  %v16877_v32 = vcombine.low %v16621_v55, %v16625_v43  ;;  %v16557_v25 = vld [vmem:[%s26259_s5 + $0x1280] sm:$0xff] }
 0x599   : > { %8921 = vmatpush1.bf16.msra.mxu0 %v16749_v20  ;;  %8971 = vmatprep.subr.bf16.mxu1 %v16886_v53  ;;  %v16573_v20 = vld [vmem:[%s26259_s5 + $0x1300] sm:$0xff] }
 0x59a   : > { %8922 = vmatprep.subr.bf16.mxu0 %v16742_v45  ;;  %v16830_v40 = vcombine.high %v16573_v20, %v16577_v59  ;;  %v16829_v56 = vcombine.low %v16573_v20, %v16577_v59  ;;  %v16565_v53 = vld [vmem:[%s26259_s5 + $0x12c0] sm:$0xff] }
 0x59b   : > { %v16553_v47 = vld [vmem:[%s26259_s5 + $0x1260] sm:$0xff] }
 0x59c   : > { %8972 = vmatpush1.bf16.msra.mxu1 %v16885_v36 }
 0x59d   : > { %8923 = vmatpush1.bf16.msra.mxu0 %v16741_v38  ;;  %8973 = vmatprep.subr.bf16.mxu1 %v16878_v62 }
 0x59e   : > { %8924 = vmatprep.subr.bf16.mxu0 %v16734_v41  ;;  %v16569_v41 = vld [vmem:[%s26259_s5 + $0x12e0] sm:$0xff] }
 0x59f   : > { %v16822_v43 = vcombine.high %v16565_v53, %v16569_v41  ;;  %v16821_v36 = vcombine.low %v16565_v53, %v16569_v41 }
 0x5a0   : > { %8974 = vmatpush1.bf16.msra.mxu1 %v16877_v32  ;;  %v16561_v32 = vld [vmem:[%s26259_s5 + $0x12a0] sm:$0xff] }
 0x5a1   : > { %8925 = vmatpush1.bf16.msra.mxu0 %v16733_v17  ;;  %8975 = vmatprep.subr.bf16.mxu1 %v16870_v4  ;;  %v16813_v13 = vcombine.low %v16557_v25, %v16561_v32 }
 0x5a2   : > { %8926 = vmatprep.subr.bf16.mxu0 %v16854_v29 }
 0x5a4   : > { %8976 = vmatpush1.bf16.msra.mxu1 %v16869_v34  ;;  %v16713_v34 = vld [vmem:[%s26259_s5 + $0x1760] sm:$0xff] }
 0x5a5   : > { %8927 = vmatpush2.bf16.msra.mxu0 %v16853_v26 }
 0x5a6   : > { %8928 = vmatprep.subr.bf16.mxu0 %v16846_v35  ;;  %v16814_v35 = vcombine.high %v16557_v25, %v16561_v32 }
 0x5a9   : > { %8929 = vmatpush2.bf16.msra.mxu0 %v16845_v31 }
 0x5aa   : > { %v6886_v0 = vpop.f32.mrf.mxu0  ;;  %8930 = vmatprep.subr.bf16.mxu0 %v16838_v27  ;;  %v16549_v27 = vld [vmem:[%s26259_s5 + $0x1240] sm:$0xff] }
 0x5ab   : > { %v23403_v44 = vadd.f32 %v6886_v0, %v22615_v50  ;;  %v16605_v50 = vld [vmem:[%s26259_s5 + $0x1400] sm:$0xff]  ;;  %v23456_v0 = vpop.f32.mrf.mxu1 }
 0x5ac   : > { %v6888_v51 = vpop.f32.mrf.mxu0 }
 0x5ad   : > { %v23406_v48 = vadd.f32 %v6888_v51, %v22621_v7  ;;  %8931 = vmatpush2.bf16.msra.mxu0 %v16837_v23  ;;  %v16609_v7 = vld [vmem:[%s26259_s5 + $0x1420] sm:$0xff]  ;;  %v16806_v23 = vcombine.high %v16549_v27, %v16553_v47  ;;  %v16805_v51 = vcombine.low %v16549_v27, %v16553_v47 }
 0x5ae   : > { %v6890_v45 = vpop.f32.mrf.mxu0  ;;  %v16861_v14 = vcombine.low %v16605_v50, %v16609_v7  ;;  %v16862_v1 = vcombine.high %v16605_v50, %v16609_v7  ;;  %8932 = vmatprep.subr.bf16.mxu0 %v16830_v40  ;;  %v16541_v40 = vld [vmem:[%s26259_s5 + $0x1200] sm:$0xff] }
 0x5af   : > { %v23421_v11 = vadd.f32 %v6890_v45, %v22632_v33  ;;  %v16725_v33 = vld [vmem:[%s26259_s5 + $0x17c0] sm:$0xff] }
 0x5b0   : > { %v23423_v38 = vpop.f32.mrf.mxu0  ;;  %8977 = vmatprep.subr.bf16.mxu1 %v16862_v1  ;;  %v16981_v17 = vcombine.low %v16725_v33, %v16729_v54  ;;  %v16982_v62 = vcombine.high %v16725_v33, %v16729_v54  ;;  %v16545_v7 = vld [vmem:[%s26259_s5 + $0x1220] sm:$0xff] }
 0x5b1   : > { %26538 = vst [vmem:[#allocation23_spill] sm:$0xff] %v23423_v38  ;;  %8933 = vmatpush2.bf16.msra.mxu0 %v16829_v56  ;;  %8978 = vmatpush1.bf16.msra.mxu1 %v16861_v14  ;;  %v16701_v56 = vld [vmem:[%s26259_s5 + $0x1700] sm:$0xff]  ;;  %v16797_v41 = vcombine.low %v16541_v40, %v16545_v7 }
 0x5b2   : > { %v6896_v55 = vpop.f32.mrf.mxu0  ;;  %8934 = vmatprep.subr.bf16.mxu0 %v16822_v43  ;;  %8979 = vmatprep.subr.bf16.mxu1 %v16982_v62  ;;  %v16705_v1 = vld [vmem:[%s26259_s5 + $0x1720] sm:$0xff]  ;;  %v23507_v62 = vld [vmem:[%s26259_s5 + $0x11e8] sm:$0xff] }
 0x5b3   : > { %v23438_v58 = vadd.f32 %v6896_v55, %v22649_v9  ;;  %v16717_v9 = vld [vmem:[%s26259_s5 + $0x1780] sm:$0xff]  ;;  %v16957_v33 = vcombine.low %v16701_v56, %v16705_v1  ;;  %v16958_v55 = vcombine.high %v16701_v56, %v16705_v1 }
 0x5b4   : > { %v6898_v29 = vpop.f32.mrf.mxu0 }
 0x5b5   : > { %v23441_v2 = vadd.f32 %v6898_v29, %v22658_v63  ;;  %8935 = vmatpush2.bf16.msra.mxu0 %v16821_v36  ;;  %8980 = vmatpush2.bf16.msra.mxu1 %v16981_v17  ;;  %v16721_v63 = vld [vmem:[%s26259_s5 + $0x17a0] sm:$0xff]  ;;  %v23502_v17 = vld [vmem:[%s26259_s5 + $0x11c8] sm:$0xff] }
 0x5b6   : > { %v6900_v26 = vpop.f32.mrf.mxu0  ;;  %v16973_v61 = vcombine.low %v16717_v9, %v16721_v63  ;;  %v16974_v15 = vcombine.high %v16717_v9, %v16721_v63  ;;  %8936 = vmatprep.subr.bf16.mxu0 %v16814_v35  ;;  %v16697_v36 = vld [vmem:[%s26259_s5 + $0x16e0] sm:$0xff]  ;;  %v16791_v32 = vcombine.low %v23502_v17, %v23507_v62  ;;  %v16792_v9 = vcombine.high %v23502_v17, %v23507_v62 }
 0x5b7   : > { %v6901_v31 = vadd.f32 %v6900_v26, %v22666_v28  ;;  %v16709_v28 = vld [vmem:[%s26259_s5 + $0x1740] sm:$0xff] }
 0x5b8   : > { %8981 = vmatprep.subr.bf16.mxu1 %v16974_v15  ;;  %v16965_v20 = vcombine.low %v16709_v28, %v16713_v34  ;;  %v16966_v59 = vcombine.high %v16709_v28, %v16713_v34  ;;  %v16685_v63 = vld [vmem:[%s26259_s5 + $0x1680] sm:$0xff]  ;;  %v23553_v56 = vpop.f32.mrf.mxu0 }
 0x5b9   : > { %8937 = vmatpush2.bf16.msra.mxu0 %v16813_v13  ;;  %8982 = vmatpush2.bf16.msra.mxu1 %v16973_v61  ;;  %v16689_v13 = vld [vmem:[%s26259_s5 + $0x16a0] sm:$0xff]  ;;  %26540 = vst [vmem:[#allocation24_spill] sm:$0xff] %v23553_v56 }
 0x5ba   : > { %8938 = vmatprep.subr.bf16.mxu0 %v16806_v23  ;;  %8983 = vmatprep.subr.bf16.mxu1 %v16966_v59  ;;  %v16942_v15 = vcombine.high %v16685_v63, %v16689_v13  ;;  %v16941_v47 = vcombine.low %v16685_v63, %v16689_v13  ;;  %v16677_v28 = vld [vmem:[%s26259_s5 + $0x1640] sm:$0xff]  ;;  %v23542_v59 = vld [vmem:[%s26259_s5 + $0x15c8] sm:$0xff] }
 0x5bb   : > { %v6939_v4 = vpop.f32.mrf.mxu1  ;;  %v16681_v23 = vld [vmem:[%s26259_s5 + $0x1660] sm:$0xff] }
 0x5bc   : > { %v23471_v50 = vadd.f32 %v6939_v4, %v23403_v44  ;;  %v16798_v44 = vcombine.high %v16541_v40, %v16545_v7  ;;  %v16934_v34 = vcombine.high %v16677_v28, %v16681_v23  ;;  %v16933_v4 = vcombine.low %v16677_v28, %v16681_v23  ;;  %v26542_v63 = vld [vmem:[#allocation19_spill] sm:$0xff] }
 0x5bd   : > { %v6941_v45 = vpop.f32.mrf.mxu1  ;;  %8939 = vmatpush2.bf16.msra.mxu0 %v16805_v51  ;;  %8984 = vmatpush2.bf16.msra.mxu1 %v16965_v20 }
 0x5be   : > { %v23483_v14 = vadd.f32 %v6941_v45, %v23406_v48  ;;  %8940 = vmatprep.subr.bf16.mxu0 %v16798_v44  ;;  %8985 = vmatprep.subr.bf16.mxu1 %v16958_v55  ;;  %v16693_v48 = vld [vmem:[%s26259_s5 + $0x16c0] sm:$0xff]  ;;  %v23547_v45 = vld [vmem:[%s26259_s5 + $0x15e8] sm:$0xff] }
 0x5bf   : > { %v6943_v53 = vpop.f32.mrf.mxu1  ;;  %v16949_v25 = vcombine.low %v16693_v48, %v16697_v36  ;;  %v16920_v7 = vcombine.high %v23542_v59, %v23547_v45 }
 0x5c0   : > { %v23489_v43 = vadd.f32 %v6943_v53, %v23421_v11  ;;  %v16950_v11 = vcombine.high %v16693_v48, %v16697_v36 }
 0x5c1   : > { %v23491_v54 = vpop.f32.mrf.mxu1  ;;  %8941 = vmatpush2.bf16.msra.mxu0 %v16797_v41  ;;  %8986 = vmatpush2.bf16.msra.mxu1 %v16957_v33 }
 0x5c2   : > { %26539 = vst [vmem:[#allocation63_spill] sm:$0xff] %v23491_v54  ;;  %8987 = vmatprep.subr.bf16.mxu1 %v16950_v11  ;;  %9016 = vmatprep.subr.bf16.mxu0 %v16792_v9 }
 0x5c3   : > { %v6949_v29 = vpop.f32.mrf.mxu1 }
 0x5c4   : > { %v23514_v26 = vadd.f32 %v6949_v29, %v23438_v58 }
 0x5c5   : > { %v6951_v35 = vpop.f32.mrf.mxu1  ;;  %8988 = vmatpush2.bf16.msra.mxu1 %v16949_v25  ;;  %v26541_v25 = vld [vmem:[#allocation58_spill] sm:$0xff] }
 0x5c6   : > { %v23523_v61 = vadd.f32 %v6951_v35, %v23441_v2  ;;  %8989 = vmatprep.subr.bf16.mxu1 %v16942_v15  ;;  %v16669_v2 = vld [vmem:[%s26259_s5 + $0x1600] sm:$0xff] }
 0x5c7   : > { %v6953_v27 = vpop.f32.mrf.mxu1 }
 0x5c8   : > { %v23525_v58 = vadd.f32 %v6953_v27, %v6901_v31  ;;  %v16673_v31 = vld [vmem:[%s26259_s5 + $0x1620] sm:$0xff] }
 0x5c9   : > { %8990 = vmatpush2.bf16.msra.mxu1 %v16941_v47  ;;  %v16926_v51 = vcombine.high %v16669_v2, %v16673_v31  ;;  %v16925_v20 = vcombine.low %v16669_v2, %v16673_v31  ;;  %v23563_v15 = vpop.f32.mrf.mxu1 }
 0x5ca   : > { %8991 = vmatprep.subr.bf16.mxu1 %v16934_v34  ;;  %26543 = vst [vmem:[#allocation64_spill] sm:$0xff] %v23563_v15 }
 0x5cd   : > { %8992 = vmatpush2.bf16.msra.mxu1 %v16933_v4 }
 0x5ce   : > { %8993 = vmatprep.subr.bf16.mxu1 %v16926_v51 }
 0x5d1   : > { %8994 = vmatpush2.bf16.msra.mxu1 %v16925_v20 }
 0x5d2   : > { %9069 = vmatprep.subr.bf16.mxu1 %v16920_v7 }
 0x5ea   : > { %v6992_v44 = vpop.f32.mrf.mxu0 }
 0x5eb   : > { %v6993_v1 = vadd.f32 %v6992_v44, %v22835_v16 }
 0x5ec   : > { %v6994_v53 = vpop.f32.mrf.mxu0 }
 0x5ed   : > { %v6995_v41 = vadd.f32 %v6994_v53, %v22841_v22  ;;  %v26544_v53 = vld [vmem:[#allocation21_spill] sm:$0xff] }
 0x5ee   : > { %v6996_v33 = vpop.f32.mrf.mxu0 }
 0x5ef   : > { %v6997_v55 = vadd.f32 %v6996_v33, %v22852_v39 }
 0x5f0   : > { %v23558_v48 = vpop.f32.mrf.mxu0 }
 0x5f2   : > { %v7002_v36 = vpop.f32.mrf.mxu0 }
 0x5f3   : > { %v7003_v11 = vadd.f32 %v7002_v36, %v22869_v24 }
 0x5f4   : > { %v7004_v29 = vpop.f32.mrf.mxu0 }
 0x5f5   : > { %v7005_v9 = vadd.f32 %v7004_v29, %v26541_v25 }
 0x5f6   : > { %v7006_v35 = vpop.f32.mrf.mxu0 }
 0x5f7   : > { %v7007_v13 = vadd.f32 %v7006_v35, %v26542_v63 }
 0x5f8   : > { %v23579_v20 = vpop.f32.mrf.mxu0 }
 0x5fb   : > { %v7045_v16 = vpop.f32.mrf.mxu1 }
 0x5fc   : > { %v23565_v27 = vadd.f32 %v7045_v16, %v6993_v1 }
 0x5fd   : > { %v7047_v22 = vpop.f32.mrf.mxu1 }
 0x5fe   : > { %v23567_v47 = vadd.f32 %v7047_v22, %v6995_v41 }
 0x5ff   : > { %v7049_v39 = vpop.f32.mrf.mxu1 }
 0x600   : > { %v23569_v28 = vadd.f32 %v7049_v39, %v6997_v55 }
 0x601   : > { %v23571_v23 = vpop.f32.mrf.mxu1 }
 0x603   : > { %v7055_v24 = vpop.f32.mrf.mxu1 }
 0x604   : > { %v23573_v34 = vadd.f32 %v7055_v24, %v7003_v11 }
 0x605   : > { %v7057_v4 = vpop.f32.mrf.mxu1 }
 0x606   : > { %v23575_v2 = vadd.f32 %v7057_v4, %v7005_v9 }
 0x607   : > { %v7059_v31 = vpop.f32.mrf.mxu1 }
 0x608   : > { %v23577_v51 = vadd.f32 %v7059_v31, %v7007_v13 }
 0x62a   : > { %v7098_v7 = vpop.f32.mrf.mxu0 }
 0x62b   : > { %v7099_v44 = vadd.f32 %v7098_v7, %v23055_v52  ;;  %v23591_v52 = vpop.f32.mrf.mxu1 }
 0x62c   : > { %v7100_v1 = vpop.f32.mrf.mxu0 }
 0x62d   : > { %v7101_v41 = vadd.f32 %v7100_v1, %v26544_v53 }
 0x62e   : > { %v7102_v33 = vpop.f32.mrf.mxu0 }
 0x62f   : > { %v7103_v55 = vadd.f32 %v7102_v33, %v23072_v46 }
 0x630   : > { %v23584_v36 = vpop.f32.mrf.mxu0 }
 0x631   : > { %26545 = vst [vmem:[#allocation25_spill] sm:$0xff] %v23584_v36  ;;  %v16482_v36 = vld [vmem:[%s26259_s5 + $0x1028] sm:$0xff] }
 0x632   : > { %v7108_v11 = vpop.f32.mrf.mxu0 }
 0x633   : > { %v7109_v29 = vadd.f32 %v7108_v11, %v23089_v6 }
 0x634   : > { %v7110_v25 = vpop.f32.mrf.mxu0 }
 0x635   : > { %v7111_v9 = vadd.f32 %v7110_v25, %v23098_v60  ;;  %v16526_v60 = vld [vmem:[%s26259_s5 + $0x1188] sm:$0xff] }
 0x636   : > { %v7112_v35 = vpop.f32.mrf.mxu0 }
 0x637   : > { %v7113_v63 = vadd.f32 %v7112_v35, %v23106_v30  ;;  %v16530_v30 = vld [vmem:[%s26259_s5 + $0x11a8] sm:$0xff] }
 0x638   : > { %v23589_v13 = vpop.f32.mrf.mxu0  ;;  %v16518_v35 = vld [vmem:[%s26259_s5 + $0x1148] sm:$0xff] }
 0x639   : > { %26546 = vst [vmem:[#allocation65_spill] sm:$0xff] %v23589_v13  ;;  %v16478_v13 = vld [vmem:[%s26259_s5 + $0x1008] sm:$0xff] }
 0x63a   : > { %v7253_v16 = vpop.f32.mrf.mxu0 }
 0x63b   : > { %v7151_v22 = vpop.f32.mrf.mxu1 }
 0x63c   : > { %v23593_v39 = vadd.f32 %v7151_v22, %v7099_v44  ;;  %v7255_v46 = vpop.f32.mrf.mxu0 }
 0x63d   : > { %v7153_v24 = vpop.f32.mrf.mxu1 }
 0x63e   : > { %v23595_v4 = vadd.f32 %v7153_v24, %v7101_v41  ;;  %v7259_v31 = vpop.f32.mrf.mxu0  ;;  %v16784_v41 = vcombine.high %v16526_v60, %v16530_v30  ;;  %v16783_v24 = vcombine.low %v16526_v60, %v16530_v30 }
 0x63f   : > { %v7155_v6 = vpop.f32.mrf.mxu1  ;;  %v23605_v1 = vpack.c.bf16 %v7259_v31, %v7253_v16 }
 0x640   : > { %v23603_v7 = vadd.f32 %v7155_v6, %v7103_v55  ;;  %v7261_v44 = vpop.f32.mrf.mxu0  ;;  %v16522_v55 = vld [vmem:[%s26259_s5 + $0x1168] sm:$0xff] }
 0x641   : > { %v23607_v53 = vpop.f32.mrf.mxu1  ;;  %v23609_v33 = vpack.c.bf16 %v7261_v44, %v7255_v46  ;;  %v16776_v6 = vcombine.high %v16518_v35, %v16522_v55 }
 0x642   : > { %26547 = vst [vmem:[#allocation26_spill] sm:$0xff] %v23603_v7  ;;  %26548 = vst [vmem:[#allocation66_spill] sm:$0xff] %v23607_v53  ;;  %v7265_v11 = vpop.f32.mrf.mxu0 }
 0x643   : > { %v7161_v25 = vpop.f32.mrf.mxu1  ;;  %8942 = vmatprep.mubr.bf16.mxu0 %v23609_v33 }
 0x644   : > { %v23618_v16 = vadd.f32 %v7161_v25, %v7109_v29  ;;  %8943 = vmatmul.mubr.bf16.vlgmr.msra.gmra.mxu0 %v23605_v1  ;;  %v7267_v22 = vpop.f32.mrf.mxu0  ;;  %v16510_v29 = vld [vmem:[%s26259_s5 + $0x1108] sm:$0xff] }
 0x645   : > { %v7163_v46 = vpop.f32.mrf.mxu1  ;;  %9017 = vmatpush1.bf16.msra.mxu0 %v16791_v32  ;;  %v16514_v25 = vld [vmem:[%s26259_s5 + $0x1128] sm:$0xff]  ;;  %v16775_v32 = vcombine.low %v16518_v35, %v16522_v55 }
 0x646   : > { %26549 = vst [vmem:[#allocation27_spill] sm:$0xff] %v23618_v16  ;;  %v23624_v31 = vadd.f32 %v7163_v46, %v7111_v9  ;;  %9018 = vmatprep.subr.bf16.mxu0 %v16784_v41  ;;  %v7271_v44 = vpop.f32.mrf.mxu0  ;;  %v16768_v60 = vcombine.high %v16510_v29, %v16514_v25  ;;  %v16502_v41 = vld [vmem:[%s26259_s5 + $0x10c8] sm:$0xff] }
 0x647   : > { %v7165_v40 = vpop.f32.mrf.mxu1  ;;  %v23634_v16 = vpack.c.bf16 %v7271_v44, %v7265_v11  ;;  %v16767_v11 = vcombine.low %v16510_v29, %v16514_v25  ;;  %v16498_v46 = vld [vmem:[%s26259_s5 + $0x10a8] sm:$0xff] }
 0x648   : > { %26550 = vst [vmem:[#allocation67_spill] sm:$0xff] %v23624_v31  ;;  %v23632_v54 = vadd.f32 %v7165_v40, %v7113_v63  ;;  %v7273_v17 = vpop.f32.mrf.mxu0  ;;  %v16506_v40 = vld [vmem:[%s26259_s5 + $0x10e8] sm:$0xff] }
 0x649   : > { %v23636_v62 = vpop.f32.mrf.mxu1  ;;  %9019 = vmatpush1.bf16.msra.mxu0 %v16783_v24  ;;  %v23638_v9 = vpack.c.bf16 %v7273_v17, %v7267_v22  ;;  %v16760_v35 = vcombine.high %v16502_v41, %v16506_v40  ;;  %v16494_v22 = vld [vmem:[%s26259_s5 + $0x1088] sm:$0xff]  ;;  %v16759_v29 = vcombine.low %v16502_v41, %v16506_v40 }
 0x64a   : > { %26551 = vst [vmem:[#allocation28_spill] sm:$0xff] %v23632_v54  ;;  %26552 = vst [vmem:[#allocation68_spill] sm:$0xff] %v23636_v62  ;;  %9020 = vmatprep.subr.bf16.mxu0 %v16776_v6  ;;  %v16654_v24 = vld [vmem:[%s26259_s5 + $0x1588] sm:$0xff]  ;;  %v16752_v17 = vcombine.high %v16494_v22, %v16498_v46 }
 0x64b   : > { %v7342_v30 = vpop.f32.mrf.mxu1  ;;  %8952 = vmatprep.mubr.bf16.mxu0 %v23638_v9  ;;  %v16658_v6 = vld [vmem:[%s26259_s5 + $0x15a8] sm:$0xff] }
 0x64c   : > { %8953 = vmatmul.mubr.bf16.gmra.mxu0 %v23634_v16  ;;  %v16912_v54 = vcombine.high %v16654_v24, %v16658_v6  ;;  %v16486_v62 = vld [vmem:[%s26259_s5 + $0x1048] sm:$0xff] }
 0x64d   : > { %v7344_v63 = vpop.f32.mrf.mxu1  ;;  %9021 = vmatpush1.bf16.msra.mxu0 %v16775_v32  ;;  %9048 = vmatprep.mubr.bf16.mxu0 %v23609_v33  ;;  %v16490_v31 = vld [vmem:[%s26259_s5 + $0x1068] sm:$0xff] }
 0x64e   : > { %9022 = vmatprep.subr.bf16.mxu0 %v16768_v60  ;;  %v16646_v41 = vld [vmem:[%s26259_s5 + $0x1548] sm:$0xff] }
 0x64f   : > { %v7348_v55 = vpop.f32.mrf.mxu1 }
 0x650   : > { %v23663_v32 = vpack.c.bf16 %v7348_v55, %v7342_v30  ;;  %v16650_v30 = vld [vmem:[%s26259_s5 + $0x1568] sm:$0xff]  ;;  %v16744_v55 = vcombine.high %v16486_v62, %v16490_v31 }
 0x651   : > { %v7350_v44 = vpop.f32.mrf.mxu1  ;;  %9023 = vmatpush1.bf16.msra.mxu0 %v16767_v11  ;;  %v26553_v11 = vcombine.low %v23542_v59, %v23547_v45  ;;  %v16904_v53 = vcombine.high %v16646_v41, %v16650_v30  ;;  %v16642_v59 = vld [vmem:[%s26259_s5 + $0x1528] sm:$0xff] }
 0x652   : > { %v23661_v25 = vpack.c.bf16 %v7350_v44, %v7344_v63  ;;  %9024 = vmatprep.subr.bf16.mxu0 %v16760_v35  ;;  %v16751_v63 = vcombine.low %v16494_v22, %v16498_v46  ;;  %v16911_v35 = vcombine.low %v16654_v24, %v16658_v6  ;;  %v16638_v22 = vld [vmem:[%s26259_s5 + $0x1508] sm:$0xff]  ;;  %v16743_v46 = vcombine.low %v16486_v62, %v16490_v31 }
 0x653   : > { %v7354_v60 = vpop.f32.mrf.mxu1  ;;  %v16903_v6 = vcombine.low %v16646_v41, %v16650_v30  ;;  %v16630_v31 = vld [vmem:[%s26259_s5 + $0x14c8] sm:$0xff]  ;;  %v16735_v62 = vcombine.low %v16478_v13, %v16482_v36  ;;  %v16895_v41 = vcombine.low %v16638_v22, %v16642_v59 }
 0x654   : > { %8995 = vmatprep.mubr.bf16.mxu1 %v23661_v25 }
 0x655   : > { %v7356_v40 = vpop.f32.mrf.mxu1  ;;  %8996 = vmatmul.mubr.bf16.vlgmr.msra.gmra.mxu1 %v23663_v32  ;;  %9025 = vmatpush1.bf16.msra.mxu0 %v16759_v29  ;;  %v16736_v29 = vcombine.high %v16478_v13, %v16482_v36  ;;  %v16622_v36 = vld [vmem:[%s26259_s5 + $0x1488] sm:$0xff] }
 0x656   : > { %9070 = vmatpush1.bf16.msra.mxu1 %v26553_v11  ;;  %9026 = vmatprep.subr.bf16.mxu0 %v16752_v17  ;;  %v16896_v17 = vcombine.high %v16638_v22, %v16642_v59  ;;  %v16598_v11 = vld [vmem:[%s26259_s5 + $0x13c8] sm:$0xff] }
 0x657   : > { %v7360_v44 = vpop.f32.mrf.mxu1  ;;  %9071 = vmatprep.subr.bf16.mxu1 %v16912_v54  ;;  %v16626_v13 = vld [vmem:[%s26259_s5 + $0x14a8] sm:$0xff] }
 0x658   : > { %v23694_v45 = vpack.c.bf16 %v7360_v44, %v7354_v60  ;;  %v16602_v60 = vld [vmem:[%s26259_s5 + $0x13e8] sm:$0xff]  ;;  %v16880_v59 = vcombine.high %v16622_v36, %v16626_v13 }
 0x659   : > { %v7362_v54 = vpop.f32.mrf.mxu1  ;;  %9027 = vmatpush1.bf16.msra.mxu0 %v16751_v63  ;;  %v16856_v30 = vcombine.high %v16598_v11, %v16602_v60  ;;  %v16590_v63 = vld [vmem:[%s26259_s5 + $0x1388] sm:$0xff] }
 0x65a   : > { %v23696_v24 = vpack.c.bf16 %v7362_v54, %v7356_v40  ;;  %9072 = vmatpush1.bf16.msra.mxu1 %v16911_v35  ;;  %9028 = vmatprep.subr.bf16.mxu0 %v16744_v55  ;;  %v16594_v35 = vld [vmem:[%s26259_s5 + $0x13a8] sm:$0xff]  ;;  %v16855_v55 = vcombine.low %v16598_v11, %v16602_v60  ;;  %v16879_v11 = vcombine.low %v16622_v36, %v16626_v13 }
 0x65b   : > { %9073 = vmatprep.subr.bf16.mxu1 %v16904_v53  ;;  %v16634_v53 = vld [vmem:[%s26259_s5 + $0x14e8] sm:$0xff]  ;;  %v16848_v22 = vcombine.high %v16590_v63, %v16594_v35 }
 0x65c   : > { %9005 = vmatprep.mubr.bf16.mxu1 %v23696_v24  ;;  %v16888_v40 = vcombine.high %v16630_v31, %v16634_v53  ;;  %v16887_v44 = vcombine.low %v16630_v31, %v16634_v53  ;;  %v16582_v54 = vld [vmem:[%s26259_s5 + $0x1348] sm:$0xff] }
 0x65d   : > { %9006 = vmatmul.mubr.bf16.gmra.mxu1 %v23694_v45  ;;  %9029 = vmatpush1.bf16.msra.mxu0 %v16743_v46  ;;  %v16586_v46 = vld [vmem:[%s26259_s5 + $0x1368] sm:$0xff] }
 0x65e   : > { %9074 = vmatpush1.bf16.msra.mxu1 %v16903_v6  ;;  %9101 = vmatprep.mubr.bf16.mxu1 %v23661_v25  ;;  %v16614_v6 = vld [vmem:[%s26259_s5 + $0x1448] sm:$0xff]  ;;  %v16840_v60 = vcombine.high %v16582_v54, %v16586_v46 }
 0x65f   : > { %9030 = vmatprep.subr.bf16.mxu0 %v16736_v29  ;;  %9075 = vmatprep.subr.bf16.mxu1 %v16896_v17  ;;  %v16618_v29 = vld [vmem:[%s26259_s5 + $0x1468] sm:$0xff]  ;;  %v16847_v17 = vcombine.low %v16590_v63, %v16594_v35 }
 0x660   : > { %v16872_v31 = vcombine.high %v16614_v6, %v16618_v29  ;;  %v16574_v53 = vld [vmem:[%s26259_s5 + $0x1308] sm:$0xff]  ;;  %v16871_v63 = vcombine.low %v16614_v6, %v16618_v29 }
 0x661   : > { %9031 = vmatpush1.bf16.msra.mxu0 %v16735_v62  ;;  %v16578_v62 = vld [vmem:[%s26259_s5 + $0x1328] sm:$0xff] }
 0x662   : > { %9076 = vmatpush1.bf16.msra.mxu1 %v16895_v41  ;;  %9032 = vmatprep.subr.bf16.mxu0 %v16856_v30  ;;  %v16606_v41 = vld [vmem:[%s26259_s5 + $0x1408] sm:$0xff]  ;;  %v16832_v35 = vcombine.high %v16574_v53, %v16578_v62 }
 0x663   : > { %9077 = vmatprep.subr.bf16.mxu1 %v16888_v40  ;;  %v16610_v30 = vld [vmem:[%s26259_s5 + $0x1428] sm:$0xff]  ;;  %v16839_v40 = vcombine.low %v16582_v54, %v16586_v46 }
 0x664   : > { %v16864_v36 = vcombine.high %v16606_v41, %v16610_v30  ;;  %v16566_v13 = vld [vmem:[%s26259_s5 + $0x12c8] sm:$0xff]  ;;  %v16863_v54 = vcombine.low %v16606_v41, %v16610_v30 }
 0x665   : > { %9033 = vmatpush2.bf16.msra.mxu0 %v16855_v55  ;;  %v16570_v55 = vld [vmem:[%s26259_s5 + $0x12e8] sm:$0xff] }
 0x666   : > { %9078 = vmatpush1.bf16.msra.mxu1 %v16887_v44  ;;  %9034 = vmatprep.subr.bf16.mxu0 %v16848_v22  ;;  %v16726_v44 = vld [vmem:[%s26259_s5 + $0x17c8] sm:$0xff]  ;;  %v16824_v46 = vcombine.high %v16566_v13, %v16570_v55 }
 0x667   : > { %9079 = vmatprep.subr.bf16.mxu1 %v16880_v59  ;;  %v16730_v22 = vld [vmem:[%s26259_s5 + $0x17e8] sm:$0xff]  ;;  %v16831_v59 = vcombine.low %v16574_v53, %v16578_v62 }
 0x668   : > { %v16984_v6 = vcombine.high %v16726_v44, %v16730_v22  ;;  %v16558_v29 = vld [vmem:[%s26259_s5 + $0x1288] sm:$0xff]  ;;  %v16983_v53 = vcombine.low %v16726_v44, %v16730_v22 }
 0x669   : > { %9035 = vmatpush2.bf16.msra.mxu0 %v16847_v17  ;;  %v16562_v17 = vld [vmem:[%s26259_s5 + $0x12a8] sm:$0xff] }
 0x66a   : > { %9080 = vmatpush1.bf16.msra.mxu1 %v16879_v11  ;;  %9036 = vmatprep.subr.bf16.mxu0 %v16840_v60  ;;  %v16718_v11 = vld [vmem:[%s26259_s5 + $0x1788] sm:$0xff]  ;;  %v16816_v62 = vcombine.high %v16558_v29, %v16562_v17 }
 0x66b   : > { %9081 = vmatprep.subr.bf16.mxu1 %v16872_v31  ;;  %v16722_v60 = vld [vmem:[%s26259_s5 + $0x17a8] sm:$0xff]  ;;  %v16823_v31 = vcombine.low %v16566_v13, %v16570_v55 }
 0x66c   : > { %v16976_v41 = vcombine.high %v16718_v11, %v16722_v60  ;;  %v16550_v30 = vld [vmem:[%s26259_s5 + $0x1248] sm:$0xff]  ;;  %v16975_v13 = vcombine.low %v16718_v11, %v16722_v60  ;;  %v16535_v60 = vld [vmem:[%s26259_s5 + $0x11d0] sm:$0xff] }
 0x66d   : > { %9037 = vmatpush2.bf16.msra.mxu0 %v16839_v40  ;;  %v16554_v40 = vld [vmem:[%s26259_s5 + $0x1268] sm:$0xff] }
 0x66e   : > { %9082 = vmatpush1.bf16.msra.mxu1 %v16871_v63  ;;  %9038 = vmatprep.subr.bf16.mxu0 %v16832_v35  ;;  %v16710_v63 = vld [vmem:[%s26259_s5 + $0x1748] sm:$0xff]  ;;  %v16808_v55 = vcombine.high %v16550_v30, %v16554_v40 }
 0x66f   : > { %9083 = vmatprep.subr.bf16.mxu1 %v16864_v36  ;;  %v16714_v35 = vld [vmem:[%s26259_s5 + $0x1768] sm:$0xff]  ;;  %v16815_v36 = vcombine.low %v16558_v29, %v16562_v17 }
 0x670   : > { %v16968_v44 = vcombine.high %v16710_v63, %v16714_v35  ;;  %v16542_v22 = vld [vmem:[%s26259_s5 + $0x1208] sm:$0xff]  ;;  %v16967_v29 = vcombine.low %v16710_v63, %v16714_v35  ;;  %v16527_v35 = vld [vmem:[%s26259_s5 + $0x1190] sm:$0xff] }
 0x671   : > { %9039 = vmatpush2.bf16.msra.mxu0 %v16831_v59  ;;  %v16546_v59 = vld [vmem:[%s26259_s5 + $0x1228] sm:$0xff] }
 0x672   : > { %9084 = vmatpush1.bf16.msra.mxu1 %v16863_v54  ;;  %9040 = vmatprep.subr.bf16.mxu0 %v16824_v46  ;;  %v16702_v54 = vld [vmem:[%s26259_s5 + $0x1708] sm:$0xff]  ;;  %v16800_v17 = vcombine.high %v16542_v22, %v16546_v59 }
 0x673   : > { %9085 = vmatprep.subr.bf16.mxu1 %v16984_v6  ;;  %v16706_v46 = vld [vmem:[%s26259_s5 + $0x1728] sm:$0xff]  ;;  %v16807_v6 = vcombine.low %v16550_v30, %v16554_v40 }
 0x674   : > { %v16960_v11 = vcombine.high %v16702_v54, %v16706_v46  ;;  %v16959_v30 = vcombine.low %v16702_v54, %v16706_v46  ;;  %v16519_v46 = vld [vmem:[%s26259_s5 + $0x1150] sm:$0xff] }
 0x675   : > { %9041 = vmatpush2.bf16.msra.mxu0 %v16823_v31  ;;  %v16539_v31 = vld [vmem:[%s26259_s5 + $0x11f0] sm:$0xff] }
 0x676   : > { %9086 = vmatpush2.bf16.msra.mxu1 %v16983_v53  ;;  %9042 = vmatprep.subr.bf16.mxu0 %v16816_v62  ;;  %v16694_v53 = vld [vmem:[%s26259_s5 + $0x16c8] sm:$0xff]  ;;  %v16794_v40 = vcombine.high %v16535_v60, %v16539_v31 }
 0x677   : > { %9087 = vmatprep.subr.bf16.mxu1 %v16976_v41  ;;  %v16698_v62 = vld [vmem:[%s26259_s5 + $0x16e8] sm:$0xff]  ;;  %v16799_v41 = vcombine.low %v16542_v22, %v16546_v59 }
 0x678   : > { %v16952_v63 = vcombine.high %v16694_v53, %v16698_v62  ;;  %v16951_v22 = vcombine.low %v16694_v53, %v16698_v62  ;;  %v16511_v62 = vld [vmem:[%s26259_s5 + $0x1110] sm:$0xff] }
 0x679   : > { %9043 = vmatpush2.bf16.msra.mxu0 %v16815_v36  ;;  %v16531_v36 = vld [vmem:[%s26259_s5 + $0x11b0] sm:$0xff] }
 0x67a   : > { %9088 = vmatpush2.bf16.msra.mxu1 %v16975_v13  ;;  %9044 = vmatprep.subr.bf16.mxu0 %v16808_v55  ;;  %v16686_v13 = vld [vmem:[%s26259_s5 + $0x1688] sm:$0xff]  ;;  %v16786_v59 = vcombine.high %v16527_v35, %v16531_v36 }
 0x67b   : > { %9089 = vmatprep.subr.bf16.mxu1 %v16968_v44  ;;  %v16690_v55 = vld [vmem:[%s26259_s5 + $0x16a8] sm:$0xff]  ;;  %v16793_v44 = vcombine.low %v16535_v60, %v16539_v31 }
 0x67c   : > { %v16944_v54 = vcombine.high %v16686_v13, %v16690_v55  ;;  %v16943_v60 = vcombine.low %v16686_v13, %v16690_v55  ;;  %v16503_v55 = vld [vmem:[%s26259_s5 + $0x10d0] sm:$0xff] }
 0x67d   : > { %9045 = vmatpush2.bf16.msra.mxu0 %v16807_v6  ;;  %v16523_v6 = vld [vmem:[%s26259_s5 + $0x1170] sm:$0xff] }
 0x67e   : > { %9090 = vmatpush2.bf16.msra.mxu1 %v16967_v29  ;;  %9046 = vmatprep.subr.bf16.mxu0 %v16800_v17  ;;  %v16678_v29 = vld [vmem:[%s26259_s5 + $0x1648] sm:$0xff]  ;;  %v16778_v31 = vcombine.high %v16519_v46, %v16523_v6 }
 0x67f   : > { %9091 = vmatprep.subr.bf16.mxu1 %v16960_v11  ;;  %v16682_v17 = vld [vmem:[%s26259_s5 + $0x1668] sm:$0xff]  ;;  %v16785_v11 = vcombine.low %v16527_v35, %v16531_v36 }
 0x680   : > { %v16936_v53 = vcombine.high %v16678_v29, %v16682_v17  ;;  %v16935_v35 = vcombine.low %v16678_v29, %v16682_v17  ;;  %v16495_v17 = vld [vmem:[%s26259_s5 + $0x1090] sm:$0xff] }
 0x681   : > { %9047 = vmatpush2.bf16.msra.mxu0 %v16799_v41  ;;  %v16515_v41 = vld [vmem:[%s26259_s5 + $0x1130] sm:$0xff] }
 0x682   : > { %9092 = vmatpush2.bf16.msra.mxu1 %v16959_v30  ;;  %9122 = vmatprep.subr.bf16.mxu0 %v16794_v40  ;;  %v16670_v30 = vld [vmem:[%s26259_s5 + $0x1608] sm:$0xff]  ;;  %v16770_v36 = vcombine.high %v16511_v62, %v16515_v41 }
 0x683   : > { %9093 = vmatprep.subr.bf16.mxu1 %v16952_v63  ;;  %v16674_v40 = vld [vmem:[%s26259_s5 + $0x1628] sm:$0xff]  ;;  %v16777_v63 = vcombine.low %v16519_v46, %v16523_v6 }
 0x684   : > { %9049 = vmatmul.mubr.bf16.vlgmr.msra.gmra.mxu0 %v23605_v1  ;;  %v16928_v13 = vcombine.high %v16670_v30, %v16674_v40  ;;  %v16927_v46 = vcombine.low %v16670_v30, %v16674_v40  ;;  %v16487_v40 = vld [vmem:[%s26259_s5 + $0x1050] sm:$0xff] }
 0x685   : > { %9123 = vmatpush1.bf16.msra.mxu0 %v16793_v44  ;;  %9058 = vmatprep.mubr.bf16.mxu0 %v23638_v9  ;;  %v16507_v44 = vld [vmem:[%s26259_s5 + $0x10f0] sm:$0xff] }
 0x686   : > { %9094 = vmatpush2.bf16.msra.mxu1 %v16951_v22  ;;  %9124 = vmatprep.subr.bf16.mxu0 %v16786_v59  ;;  %v16663_v22 = vld [vmem:[%s26259_s5 + $0x15d0] sm:$0xff]  ;;  %v16762_v6 = vcombine.high %v16503_v55, %v16507_v44 }
 0x687   : > { %9095 = vmatprep.subr.bf16.mxu1 %v16944_v54  ;;  %v16667_v59 = vld [vmem:[%s26259_s5 + $0x15f0] sm:$0xff]  ;;  %v16769_v54 = vcombine.low %v16511_v62, %v16515_v41 }
 0x688   : > { %v16922_v29 = vcombine.high %v16663_v22, %v16667_v59  ;;  %v16921_v62 = vcombine.low %v16663_v22, %v16667_v59  ;;  %v16479_v59 = vld [vmem:[%s26259_s5 + $0x1010] sm:$0xff] }
 0x689   : > { %9125 = vmatpush1.bf16.msra.mxu0 %v16785_v11  ;;  %v16499_v11 = vld [vmem:[%s26259_s5 + $0x10b0] sm:$0xff] }
 0x68a   : > { %9096 = vmatpush2.bf16.msra.mxu1 %v16943_v60  ;;  %9126 = vmatprep.subr.bf16.mxu0 %v16778_v31  ;;  %v16655_v60 = vld [vmem:[%s26259_s5 + $0x1590] sm:$0xff]  ;;  %v16754_v41 = vcombine.high %v16495_v17, %v16499_v11 }
 0x68b   : > { %9097 = vmatprep.subr.bf16.mxu1 %v16936_v53  ;;  %v16659_v31 = vld [vmem:[%s26259_s5 + $0x15b0] sm:$0xff]  ;;  %v16761_v53 = vcombine.low %v16503_v55, %v16507_v44 }
 0x68c   : > { %9059 = vmatmul.mubr.bf16.gmra.mxu0 %v23634_v16  ;;  %v16914_v30 = vcombine.high %v16655_v60, %v16659_v31  ;;  %v16913_v55 = vcombine.low %v16655_v60, %v16659_v31  ;;  %v16599_v31 = vld [vmem:[%s26259_s5 + $0x13d0] sm:$0xff] }
 0x68d   : > { %9127 = vmatpush1.bf16.msra.mxu0 %v16777_v63  ;;  %9154 = vmatprep.mubr.bf16.mxu0 %v23609_v33  ;;  %v16491_v63 = vld [vmem:[%s26259_s5 + $0x1070] sm:$0xff] }
 0x68e   : > { %9098 = vmatpush2.bf16.msra.mxu1 %v16935_v35  ;;  %9128 = vmatprep.subr.bf16.mxu0 %v16770_v36  ;;  %v16647_v35 = vld [vmem:[%s26259_s5 + $0x1550] sm:$0xff]  ;;  %v16746_v44 = vcombine.high %v16487_v40, %v16491_v63 }
 0x68f   : > { %9099 = vmatprep.subr.bf16.mxu1 %v16928_v13  ;;  %v16651_v36 = vld [vmem:[%s26259_s5 + $0x1570] sm:$0xff]  ;;  %v16753_v13 = vcombine.low %v16495_v17, %v16499_v11 }
 0x690   : > { %v16906_v22 = vcombine.high %v16647_v35, %v16651_v36  ;;  %v16905_v17 = vcombine.low %v16647_v35, %v16651_v36  ;;  %v16591_v36 = vld [vmem:[%s26259_s5 + $0x1390] sm:$0xff] }
 0x691   : > { %9129 = vmatpush1.bf16.msra.mxu0 %v16769_v54  ;;  %v16483_v54 = vld [vmem:[%s26259_s5 + $0x1030] sm:$0xff] }
 0x692   : > { %9100 = vmatpush2.bf16.msra.mxu1 %v16927_v46  ;;  %9130 = vmatprep.subr.bf16.mxu0 %v16762_v6  ;;  %v16639_v46 = vld [vmem:[%s26259_s5 + $0x1510] sm:$0xff]  ;;  %v16738_v11 = vcombine.high %v16479_v59, %v16483_v54 }
 0x693   : > { %9175 = vmatprep.subr.bf16.mxu1 %v16922_v29  ;;  %v16643_v6 = vld [vmem:[%s26259_s5 + $0x1530] sm:$0xff]  ;;  %v16745_v29 = vcombine.low %v16487_v40, %v16491_v63 }
 0x694   : > { %v16898_v60 = vcombine.high %v16639_v46, %v16643_v6  ;;  %v16897_v40 = vcombine.low %v16639_v46, %v16643_v6  ;;  %v16583_v6 = vld [vmem:[%s26259_s5 + $0x1350] sm:$0xff] }
 0x695   : > { %9102 = vmatmul.mubr.bf16.vlgmr.msra.gmra.mxu1 %v23663_v32  ;;  %9131 = vmatpush1.bf16.msra.mxu0 %v16761_v53  ;;  %v16603_v53 = vld [vmem:[%s26259_s5 + $0x13f0] sm:$0xff] }
 0x696   : > { %9111 = vmatprep.mubr.bf16.mxu1 %v23696_v24  ;;  %9176 = vmatpush1.bf16.msra.mxu1 %v16921_v62  ;;  %v16631_v62 = vld [vmem:[%s26259_s5 + $0x14d0] sm:$0xff]  ;;  %v16858_v63 = vcombine.high %v16599_v31, %v16603_v53 }
 0x697   : > { %9132 = vmatprep.subr.bf16.mxu0 %v16754_v41  ;;  %9177 = vmatprep.subr.bf16.mxu1 %v16914_v30  ;;  %v16635_v41 = vld [vmem:[%s26259_s5 + $0x14f0] sm:$0xff]  ;;  %v16737_v30 = vcombine.low %v16479_v59, %v16483_v54 }
 0x698   : > { %v16890_v35 = vcombine.high %v16631_v62, %v16635_v41  ;;  %v16889_v59 = vcombine.low %v16631_v62, %v16635_v41  ;;  %v16575_v41 = vld [vmem:[%s26259_s5 + $0x1310] sm:$0xff] }
 0x699   : > { %9133 = vmatpush1.bf16.msra.mxu0 %v16753_v13  ;;  %v16595_v13 = vld [vmem:[%s26259_s5 + $0x13b0] sm:$0xff] }
 0x69a   : > { %9178 = vmatpush1.bf16.msra.mxu1 %v16913_v55  ;;  %9134 = vmatprep.subr.bf16.mxu0 %v16746_v44  ;;  %v16623_v55 = vld [vmem:[%s26259_s5 + $0x1490] sm:$0xff]  ;;  %v16850_v54 = vcombine.high %v16591_v36, %v16595_v13 }
 0x69b   : > { %9179 = vmatprep.subr.bf16.mxu1 %v16906_v22  ;;  %v16627_v44 = vld [vmem:[%s26259_s5 + $0x14b0] sm:$0xff]  ;;  %v16857_v22 = vcombine.low %v16599_v31, %v16603_v53 }
 0x69c   : > { %v16882_v46 = vcombine.high %v16623_v55, %v16627_v44  ;;  %v16881_v31 = vcombine.low %v16623_v55, %v16627_v44  ;;  %v16567_v44 = vld [vmem:[%s26259_s5 + $0x12d0] sm:$0xff] }
 0x69d   : > { %9112 = vmatmul.mubr.bf16.gmra.mxu1 %v23694_v45  ;;  %9135 = vmatpush1.bf16.msra.mxu0 %v16745_v29  ;;  %v16587_v29 = vld [vmem:[%s26259_s5 + $0x1370] sm:$0xff] }
 0x69e   : > { %9180 = vmatpush1.bf16.msra.mxu1 %v16905_v17  ;;  %9207 = vmatprep.mubr.bf16.mxu1 %v23661_v25  ;;  %v16615_v17 = vld [vmem:[%s26259_s5 + $0x1450] sm:$0xff]  ;;  %v16842_v53 = vcombine.high %v16583_v6, %v16587_v29 }
 0x69f   : > { %9136 = vmatprep.subr.bf16.mxu0 %v16738_v11  ;;  %9181 = vmatprep.subr.bf16.mxu1 %v16898_v60  ;;  %v16619_v11 = vld [vmem:[%s26259_s5 + $0x1470] sm:$0xff]  ;;  %v16849_v60 = vcombine.low %v16591_v36, %v16595_v13 }
 0x6a0   : > { %v16874_v62 = vcombine.high %v16615_v17, %v16619_v11  ;;  %v16873_v36 = vcombine.low %v16615_v17, %v16619_v11  ;;  %v16559_v11 = vld [vmem:[%s26259_s5 + $0x1290] sm:$0xff] }
 0x6a1   : > { %9137 = vmatpush1.bf16.msra.mxu0 %v16737_v30  ;;  %v16579_v30 = vld [vmem:[%s26259_s5 + $0x1330] sm:$0xff] }
 0x6a2   : > { %9182 = vmatpush1.bf16.msra.mxu1 %v16897_v40  ;;  %9138 = vmatprep.subr.bf16.mxu0 %v16858_v63  ;;  %v16607_v40 = vld [vmem:[%s26259_s5 + $0x1410] sm:$0xff]  ;;  %v16834_v13 = vcombine.high %v16575_v41, %v16579_v30 }
 0x6a3   : > { %9183 = vmatprep.subr.bf16.mxu1 %v16890_v35  ;;  %v16611_v63 = vld [vmem:[%s26259_s5 + $0x1430] sm:$0xff]  ;;  %v16841_v35 = vcombine.low %v16583_v6, %v16587_v29 }
 0x6a4   : > { %v16866_v55 = vcombine.high %v16607_v40, %v16611_v63  ;;  %v16865_v6 = vcombine.low %v16607_v40, %v16611_v63  ;;  %v16551_v63 = vld [vmem:[%s26259_s5 + $0x1250] sm:$0xff] }
 0x6a5   : > { %9139 = vmatpush2.bf16.msra.mxu0 %v16857_v22  ;;  %v16571_v22 = vld [vmem:[%s26259_s5 + $0x12f0] sm:$0xff] }
 0x6a6   : > { %9184 = vmatpush1.bf16.msra.mxu1 %v16889_v59  ;;  %9140 = vmatprep.subr.bf16.mxu0 %v16850_v54  ;;  %v16727_v59 = vld [vmem:[%s26259_s5 + $0x17d0] sm:$0xff]  ;;  %v16826_v29 = vcombine.high %v16567_v44, %v16571_v22 }
 0x6a7   : > { %9185 = vmatprep.subr.bf16.mxu1 %v16882_v46  ;;  %v16731_v54 = vld [vmem:[%s26259_s5 + $0x17f0] sm:$0xff]  ;;  %v16833_v46 = vcombine.low %v16575_v41, %v16579_v30 }
 0x6a8   : > { %v16986_v17 = vcombine.high %v16727_v59, %v16731_v54  ;;  %v16985_v41 = vcombine.low %v16727_v59, %v16731_v54  ;;  %v16543_v54 = vld [vmem:[%s26259_s5 + $0x1210] sm:$0xff] }
 0x6a9   : > { %9141 = vmatpush2.bf16.msra.mxu0 %v16849_v60  ;;  %v16563_v60 = vld [vmem:[%s26259_s5 + $0x12b0] sm:$0xff] }
 0x6aa   : > { %9186 = vmatpush1.bf16.msra.mxu1 %v16881_v31  ;;  %9142 = vmatprep.subr.bf16.mxu0 %v16842_v53  ;;  %v16719_v31 = vld [vmem:[%s26259_s5 + $0x1790] sm:$0xff]  ;;  %v16818_v30 = vcombine.high %v16559_v11, %v16563_v60 }
 0x6ab   : > { %9187 = vmatprep.subr.bf16.mxu1 %v16874_v62  ;;  %v16723_v53 = vld [vmem:[%s26259_s5 + $0x17b0] sm:$0xff]  ;;  %v16825_v62 = vcombine.low %v16567_v44, %v16571_v22 }
 0x6ac   : > { %v16978_v40 = vcombine.high %v16719_v31, %v16723_v53  ;;  %v16977_v44 = vcombine.low %v16719_v31, %v16723_v53  ;;  %v16536_v53 = vld [vmem:[%s26259_s5 + $0x11d8] sm:$0xff] }
 0x6ad   : > { %9143 = vmatpush2.bf16.msra.mxu0 %v16841_v35  ;;  %v16555_v35 = vld [vmem:[%s26259_s5 + $0x1270] sm:$0xff] }
 0x6ae   : > { %9188 = vmatpush1.bf16.msra.mxu1 %v16873_v36  ;;  %9144 = vmatprep.subr.bf16.mxu0 %v16834_v13  ;;  %v16711_v36 = vld [vmem:[%s26259_s5 + $0x1750] sm:$0xff]  ;;  %v16810_v22 = vcombine.high %v16551_v63, %v16555_v35 }
 0x6af   : > { %9189 = vmatprep.subr.bf16.mxu1 %v16866_v55  ;;  %v16715_v13 = vld [vmem:[%s26259_s5 + $0x1770] sm:$0xff]  ;;  %v16817_v55 = vcombine.low %v16559_v11, %v16563_v60 }
 0x6b0   : > { %v16970_v59 = vcombine.high %v16711_v36, %v16715_v13  ;;  %v16969_v11 = vcombine.low %v16711_v36, %v16715_v13  ;;  %v16528_v13 = vld [vmem:[%s26259_s5 + $0x1198] sm:$0xff] }
 0x6b1   : > { %9145 = vmatpush2.bf16.msra.mxu0 %v16833_v46  ;;  %v16547_v46 = vld [vmem:[%s26259_s5 + $0x1230] sm:$0xff] }
 0x6b2   : > { %9190 = vmatpush1.bf16.msra.mxu1 %v16865_v6  ;;  %9146 = vmatprep.subr.bf16.mxu0 %v16826_v29  ;;  %v16703_v6 = vld [vmem:[%s26259_s5 + $0x1710] sm:$0xff]  ;;  %v16802_v60 = vcombine.high %v16543_v54, %v16547_v46 }
 0x6b3   : > { %9191 = vmatprep.subr.bf16.mxu1 %v16986_v17  ;;  %v16707_v29 = vld [vmem:[%s26259_s5 + $0x1730] sm:$0xff]  ;;  %v16809_v17 = vcombine.low %v16551_v63, %v16555_v35 }
 0x6b4   : > { %v16962_v31 = vcombine.high %v16703_v6, %v16707_v29  ;;  %v16961_v63 = vcombine.low %v16703_v6, %v16707_v29  ;;  %v16520_v29 = vld [vmem:[%s26259_s5 + $0x1158] sm:$0xff] }
 0x6b5   : > { %9147 = vmatpush2.bf16.msra.mxu0 %v16825_v62  ;;  %v16540_v62 = vld [vmem:[%s26259_s5 + $0x11f8] sm:$0xff] }
 0x6b6   : > { %9192 = vmatpush2.bf16.msra.mxu1 %v16985_v41  ;;  %9148 = vmatprep.subr.bf16.mxu0 %v16818_v30  ;;  %v16695_v41 = vld [vmem:[%s26259_s5 + $0x16d0] sm:$0xff]  ;;  %v16796_v35 = vcombine.high %v16536_v53, %v16540_v62 }
 0x6b7   : > { %9193 = vmatprep.subr.bf16.mxu1 %v16978_v40  ;;  %v16699_v30 = vld [vmem:[%s26259_s5 + $0x16f0] sm:$0xff]  ;;  %v16801_v40 = vcombine.low %v16543_v54, %v16547_v46 }
 0x6b8   : > { %v16954_v36 = vcombine.high %v16695_v41, %v16699_v30  ;;  %v16953_v54 = vcombine.low %v16695_v41, %v16699_v30  ;;  %v16512_v30 = vld [vmem:[%s26259_s5 + $0x1118] sm:$0xff] }
 0x6b9   : > { %9149 = vmatpush2.bf16.msra.mxu0 %v16817_v55  ;;  %v16532_v55 = vld [vmem:[%s26259_s5 + $0x11b8] sm:$0xff] }
 0x6ba   : > { %9194 = vmatpush2.bf16.msra.mxu1 %v16977_v44  ;;  %9150 = vmatprep.subr.bf16.mxu0 %v16810_v22  ;;  %v16687_v44 = vld [vmem:[%s26259_s5 + $0x1690] sm:$0xff]  ;;  %v16788_v46 = vcombine.high %v16528_v13, %v16532_v55 }
 0x6bb   : > { %9195 = vmatprep.subr.bf16.mxu1 %v16970_v59  ;;  %v16691_v22 = vld [vmem:[%s26259_s5 + $0x16b0] sm:$0xff]  ;;  %v16795_v59 = vcombine.low %v16536_v53, %v16540_v62 }
 0x6bc   : > { %v16946_v6 = vcombine.high %v16687_v44, %v16691_v22  ;;  %v16945_v53 = vcombine.low %v16687_v44, %v16691_v22  ;;  %v16504_v22 = vld [vmem:[%s26259_s5 + $0x10d8] sm:$0xff] }
 0x6bd   : > { %9151 = vmatpush2.bf16.msra.mxu0 %v16809_v17  ;;  %v16524_v17 = vld [vmem:[%s26259_s5 + $0x1178] sm:$0xff] }
 0x6be   : > { %9196 = vmatpush2.bf16.msra.mxu1 %v16969_v11  ;;  %9152 = vmatprep.subr.bf16.mxu0 %v16802_v60  ;;  %v16679_v11 = vld [vmem:[%s26259_s5 + $0x1650] sm:$0xff]  ;;  %v16780_v62 = vcombine.high %v16520_v29, %v16524_v17 }
 0x6bf   : > { %9197 = vmatprep.subr.bf16.mxu1 %v16962_v31  ;;  %v16683_v60 = vld [vmem:[%s26259_s5 + $0x1670] sm:$0xff]  ;;  %v16787_v31 = vcombine.low %v16528_v13, %v16532_v55 }
 0x6c0   : > { %v16938_v41 = vcombine.high %v16679_v11, %v16683_v60  ;;  %v16937_v13 = vcombine.low %v16679_v11, %v16683_v60  ;;  %v16496_v60 = vld [vmem:[%s26259_s5 + $0x1098] sm:$0xff] }
 0x6c1   : > { %9153 = vmatpush2.bf16.msra.mxu0 %v16801_v40  ;;  %v16516_v40 = vld [vmem:[%s26259_s5 + $0x1138] sm:$0xff] }
 0x6c2   : > { %9198 = vmatpush2.bf16.msra.mxu1 %v16961_v63  ;;  %9228 = vmatprep.subr.bf16.mxu0 %v16796_v35  ;;  %v16671_v63 = vld [vmem:[%s26259_s5 + $0x1610] sm:$0xff]  ;;  %v16772_v55 = vcombine.high %v16512_v30, %v16516_v40 }
 0x6c3   : > { %9199 = vmatprep.subr.bf16.mxu1 %v16954_v36  ;;  %v16675_v35 = vld [vmem:[%s26259_s5 + $0x1630] sm:$0xff]  ;;  %v16779_v36 = vcombine.low %v16520_v29, %v16524_v17 }
 0x6c4   : > { %9155 = vmatmul.mubr.bf16.vlgmr.msra.gmra.mxu0 %v23605_v1  ;;  %v16930_v44 = vcombine.high %v16671_v63, %v16675_v35  ;;  %v16929_v29 = vcombine.low %v16671_v63, %v16675_v35  ;;  %v16488_v63 = vld [vmem:[%s26259_s5 + $0x1058] sm:$0xff] }
 0x6c5   : > { %9164 = vmatprep.mubr.bf16.mxu0 %v23638_v9  ;;  %9229 = vmatpush1.bf16.msra.mxu0 %v16795_v59  ;;  %v16508_v59 = vld [vmem:[%s26259_s5 + $0x10f8] sm:$0xff] }
 0x6c6   : > { %9200 = vmatpush2.bf16.msra.mxu1 %v16953_v54  ;;  %9230 = vmatprep.subr.bf16.mxu0 %v16788_v46  ;;  %v16664_v54 = vld [vmem:[%s26259_s5 + $0x15d8] sm:$0xff]  ;;  %v16764_v17 = vcombine.high %v16504_v22, %v16508_v59 }
 0x6c7   : > { %9201 = vmatprep.subr.bf16.mxu1 %v16946_v6  ;;  %v16668_v46 = vld [vmem:[%s26259_s5 + $0x15f8] sm:$0xff]  ;;  %v16771_v6 = vcombine.low %v16512_v30, %v16516_v40 }
 0x6c8   : > { %v16924_v11 = vcombine.high %v16664_v54, %v16668_v46  ;;  %v16492_v35 = vld [vmem:[%s26259_s5 + $0x1078] sm:$0xff] }
 0x6c9   : > { %9231 = vmatpush1.bf16.msra.mxu0 %v16787_v31  ;;  %v16500_v31 = vld [vmem:[%s26259_s5 + $0x10b8] sm:$0xff] }
 0x6ca   : > { %9202 = vmatpush2.bf16.msra.mxu1 %v16945_v53  ;;  %9232 = vmatprep.subr.bf16.mxu0 %v16780_v62  ;;  %v16656_v53 = vld [vmem:[%s26259_s5 + $0x1598] sm:$0xff]  ;;  %v16763_v62 = vcombine.low %v16504_v22, %v16508_v59  ;;  %v16756_v30 = vcombine.high %v16496_v60, %v16500_v31  ;;  %v16748_v22 = vcombine.high %v16488_v63, %v16492_v35 }
 0x6cb   : > { %9203 = vmatprep.subr.bf16.mxu1 %v16938_v41  ;;  %v16923_v41 = vcombine.low %v16664_v54, %v16668_v46  ;;  %v16480_v54 = vld [vmem:[%s26259_s5 + $0x1018] sm:$0xff] }
 0x6cc   : > { %9165 = vmatmul.mubr.bf16.gmra.mxu0 %v23634_v16  ;;  %v16484_v46 = vld [vmem:[%s26259_s5 + $0x1038] sm:$0xff] }
 0x6cd   : > { %9233 = vmatpush1.bf16.msra.mxu0 %v16779_v36  ;;  %9260 = vmatprep.mubr.bf16.mxu0 %v23609_v33  ;;  %v16660_v33 = vld [vmem:[%s26259_s5 + $0x15b8] sm:$0xff] }
 0x6ce   : > { %9204 = vmatpush2.bf16.msra.mxu1 %v16937_v13  ;;  %9234 = vmatprep.subr.bf16.mxu0 %v16772_v55  ;;  %v16916_v40 = vcombine.high %v16656_v53, %v16660_v33  ;;  %v16648_v36 = vld [vmem:[%s26259_s5 + $0x1558] sm:$0xff]  ;;  %v16755_v55 = vcombine.low %v16496_v60, %v16500_v31  ;;  %v16740_v60 = vcombine.high %v16480_v54, %v16484_v46 }
 0x6cf   : > { %9205 = vmatprep.subr.bf16.mxu1 %v16930_v44  ;;  %v16652_v13 = vld [vmem:[%s26259_s5 + $0x1578] sm:$0xff]  ;;  %v16915_v44 = vcombine.low %v16656_v53, %v16660_v33 }
 0x6d0   : > { %v16908_v59 = vcombine.high %v16648_v36, %v16652_v13  ;;  %v16600_v53 = vld [vmem:[%s26259_s5 + $0x13d8] sm:$0xff] }
 0x6d1   : > { %9235 = vmatpush1.bf16.msra.mxu0 %v16771_v6  ;;  %v16640_v6 = vld [vmem:[%s26259_s5 + $0x1518] sm:$0xff] }
 0x6d2   : > { %9206 = vmatpush2.bf16.msra.mxu1 %v16929_v29  ;;  %9236 = vmatprep.subr.bf16.mxu0 %v16764_v17  ;;  %v16644_v29 = vld [vmem:[%s26259_s5 + $0x1538] sm:$0xff]  ;;  %v16747_v17 = vcombine.low %v16488_v63, %v16492_v35 }
 0x6d3   : > { %9281 = vmatprep.subr.bf16.mxu1 %v16924_v11  ;;  %v16907_v11 = vcombine.low %v16648_v36, %v16652_v13  ;;  %v16900_v31 = vcombine.high %v16640_v6, %v16644_v29  ;;  %v16604_v33 = vld [vmem:[%s26259_s5 + $0x13f8] sm:$0xff] }
 0x6d4   : > { %v16860_v63 = vcombine.high %v16600_v53, %v16604_v33  ;;  %v16592_v36 = vld [vmem:[%s26259_s5 + $0x1398] sm:$0xff] }
 0x6d5   : > { %9208 = vmatmul.mubr.bf16.vlgmr.msra.gmra.mxu1 %v23663_v32  ;;  %9237 = vmatpush1.bf16.msra.mxu0 %v16763_v62  ;;  %v16632_v62 = vld [vmem:[%s26259_s5 + $0x14d8] sm:$0xff] }
 0x6d6   : > { %9217 = vmatprep.mubr.bf16.mxu1 %v23696_v24  ;;  %9282 = vmatpush1.bf16.msra.mxu1 %v16923_v41  ;;  %v16636_v41 = vld [vmem:[%s26259_s5 + $0x14f8] sm:$0xff] }
 0x6d7   : > { %9238 = vmatprep.subr.bf16.mxu0 %v16756_v30  ;;  %9283 = vmatprep.subr.bf16.mxu1 %v16916_v40  ;;  %v16739_v30 = vcombine.low %v16480_v54, %v16484_v46  ;;  %v16899_v40 = vcombine.low %v16640_v6, %v16644_v29  ;;  %v16892_v35 = vcombine.high %v16632_v62, %v16636_v41  ;;  %v16596_v13 = vld [vmem:[%s26259_s5 + $0x13b8] sm:$0xff] }
 0x6d8   : > { %v16584_v46 = vld [vmem:[%s26259_s5 + $0x1358] sm:$0xff] }
 0x6d9   : > { %9239 = vmatpush1.bf16.msra.mxu0 %v16755_v55  ;;  %v16624_v55 = vld [vmem:[%s26259_s5 + $0x1498] sm:$0xff] }
 0x6da   : > { %9284 = vmatpush1.bf16.msra.mxu1 %v16915_v44  ;;  %9240 = vmatprep.subr.bf16.mxu0 %v16748_v22  ;;  %v16859_v44 = vcombine.low %v16600_v53, %v16604_v33  ;;  %v16891_v22 = vcombine.low %v16632_v62, %v16636_v41  ;;  %v16588_v6 = vld [vmem:[%s26259_s5 + $0x1378] sm:$0xff] }
 0x6db   : > { %9285 = vmatprep.subr.bf16.mxu1 %v16908_v59  ;;  %v16852_v59 = vcombine.high %v16592_v36, %v16596_v13  ;;  %v16616_v29 = vld [vmem:[%s26259_s5 + $0x1458] sm:$0xff] }
 0x6dc   : > { %v16576_v33 = vld [vmem:[%s26259_s5 + $0x1318] sm:$0xff] }
 0x6dd   : > { %9218 = vmatmul.mubr.bf16.gmra.mxu1 %v23694_v45  ;;  %9241 = vmatpush1.bf16.msra.mxu0 %v16747_v17  ;;  %v16620_v17 = vld [vmem:[%s26259_s5 + $0x1478] sm:$0xff] }
 0x6de   : > { %9286 = vmatpush1.bf16.msra.mxu1 %v16907_v11  ;;  %9313 = vmatprep.mubr.bf16.mxu1 %v23661_v25  ;;  %v16628_v25 = vld [vmem:[%s26259_s5 + $0x14b8] sm:$0xff]  ;;  %v16851_v11 = vcombine.low %v16592_v36, %v16596_v13  ;;  %v16876_v53 = vcombine.high %v16616_v29, %v16620_v17 }
 0x6df   : > { %9242 = vmatprep.subr.bf16.mxu0 %v16740_v60  ;;  %9287 = vmatprep.subr.bf16.mxu1 %v16900_v31  ;;  %v16884_v54 = vcombine.high %v16624_v55, %v16628_v25  ;;  %v16883_v60 = vcombine.low %v16624_v55, %v16628_v25  ;;  %v16844_v31 = vcombine.high %v16584_v46, %v16588_v6  ;;  %v16580_v62 = vld [vmem:[%s26259_s5 + $0x1338] sm:$0xff] }
 0x6e0   : > { %v16608_v41 = vld [vmem:[%s26259_s5 + $0x1418] sm:$0xff] }
 0x6e1   : > { %9243 = vmatpush1.bf16.msra.mxu0 %v16739_v30  ;;  %v16612_v30 = vld [vmem:[%s26259_s5 + $0x1438] sm:$0xff] }
 0x6e2   : > { %9288 = vmatpush1.bf16.msra.mxu1 %v16899_v40  ;;  %9244 = vmatprep.subr.bf16.mxu0 %v16860_v63  ;;  %v16843_v40 = vcombine.low %v16584_v46, %v16588_v6  ;;  %v16875_v63 = vcombine.low %v16616_v29, %v16620_v17  ;;  %v16868_v36 = vcombine.high %v16608_v41, %v16612_v30  ;;  %v16568_v13 = vld [vmem:[%s26259_s5 + $0x12d8] sm:$0xff] }
 0x6e3   : > { %9289 = vmatprep.subr.bf16.mxu1 %v16892_v35  ;;  %v16836_v35 = vcombine.high %v16576_v33, %v16580_v62  ;;  %v16572_v55 = vld [vmem:[%s26259_s5 + $0x12f8] sm:$0xff] }
 0x6e4   : > { %v16728_v25 = vld [vmem:[%s26259_s5 + $0x17d8] sm:$0xff] }
 0x6e5   : > { %9245 = vmatpush2.bf16.msra.mxu0 %v16859_v44  ;;  %v16732_v44 = vld [vmem:[%s26259_s5 + $0x17f8] sm:$0xff] }
 0x6e6   : > { %9290 = vmatpush1.bf16.msra.mxu1 %v16891_v22  ;;  %9246 = vmatprep.subr.bf16.mxu0 %v16852_v59  ;;  %v16835_v22 = vcombine.low %v16576_v33, %v16580_v62  ;;  %v16867_v59 = vcombine.low %v16608_v41, %v16612_v30  ;;  %v16988_v46 = vcombine.high %v16728_v25, %v16732_v44  ;;  %v16560_v6 = vld [vmem:[%s26259_s5 + $0x1298] sm:$0xff] }
 0x6e7   : > { %9291 = vmatprep.subr.bf16.mxu1 %v16884_v54  ;;  %v16828_v54 = vcombine.high %v16568_v13, %v16572_v55  ;;  %v16564_v29 = vld [vmem:[%s26259_s5 + $0x12b8] sm:$0xff] }
 0x6e8   : > { %v16720_v17 = vld [vmem:[%s26259_s5 + $0x1798] sm:$0xff] }
 0x6e9   : > { %9247 = vmatpush2.bf16.msra.mxu0 %v16851_v11  ;;  %v16724_v11 = vld [vmem:[%s26259_s5 + $0x17b8] sm:$0xff] }
 0x6ea   : > { %9292 = vmatpush1.bf16.msra.mxu1 %v16883_v60  ;;  %9248 = vmatprep.subr.bf16.mxu0 %v16844_v31  ;;  %v16827_v60 = vcombine.low %v16568_v13, %v16572_v55  ;;  %v16987_v31 = vcombine.low %v16728_v25, %v16732_v44  ;;  %v16980_v33 = vcombine.high %v16720_v17, %v16724_v11  ;;  %v16552_v62 = vld [vmem:[%s26259_s5 + $0x1258] sm:$0xff] }
 0x6eb   : > { %9293 = vmatprep.subr.bf16.mxu1 %v16876_v53  ;;  %v16820_v53 = vcombine.high %v16560_v6, %v16564_v29  ;;  %v16556_v41 = vld [vmem:[%s26259_s5 + $0x1278] sm:$0xff] }
 0x6ec   : > { %v16712_v30 = vld [vmem:[%s26259_s5 + $0x1758] sm:$0xff] }
 0x6ed   : > { %9249 = vmatpush2.bf16.msra.mxu0 %v16843_v40  ;;  %v16716_v40 = vld [vmem:[%s26259_s5 + $0x1778] sm:$0xff] }
 0x6ee   : > { %9294 = vmatpush1.bf16.msra.mxu1 %v16875_v63  ;;  %9250 = vmatprep.subr.bf16.mxu0 %v16836_v35  ;;  %v16819_v63 = vcombine.low %v16560_v6, %v16564_v29  ;;  %v16979_v35 = vcombine.low %v16720_v17, %v16724_v11  ;;  %v16972_v13 = vcombine.high %v16712_v30, %v16716_v40  ;;  %v16544_v55 = vld [vmem:[%s26259_s5 + $0x1218] sm:$0xff] }
 0x6ef   : > { %9295 = vmatprep.subr.bf16.mxu1 %v16868_v36  ;;  %v16812_v36 = vcombine.high %v16552_v62, %v16556_v41  ;;  %v16548_v25 = vld [vmem:[%s26259_s5 + $0x1238] sm:$0xff] }
 0x6f0   : > { %v16704_v44 = vld [vmem:[%s26259_s5 + $0x1718] sm:$0xff]  ;;  %v16803_v11 = vcombine.low %v16544_v55, %v16548_v25 }
 0x6f1   : > { %9251 = vmatpush2.bf16.msra.mxu0 %v16835_v22  ;;  %v16708_v22 = vld [vmem:[%s26259_s5 + $0x1738] sm:$0xff] }
 0x6f2   : > { %9296 = vmatpush1.bf16.msra.mxu1 %v16867_v59  ;;  %9252 = vmatprep.subr.bf16.mxu0 %v16828_v54  ;;  %v16811_v59 = vcombine.low %v16552_v62, %v16556_v41  ;;  %v16971_v54 = vcombine.low %v16712_v30, %v16716_v40  ;;  %v16964_v6 = vcombine.high %v16704_v44, %v16708_v22  ;;  %v16696_v29 = vld [vmem:[%s26259_s5 + $0x16d8] sm:$0xff] }
 0x6f3   : > { %9297 = vmatprep.subr.bf16.mxu1 %v16988_v46  ;;  %v16804_v46 = vcombine.high %v16544_v55, %v16548_v25  ;;  %v16700_v17 = vld [vmem:[%s26259_s5 + $0x16f8] sm:$0xff] }
 0x6f4   : > { %v16955_v62 = vcombine.low %v16696_v29, %v16700_v17  ;;  %v16680_v30 = vld [vmem:[%s26259_s5 + $0x1658] sm:$0xff] }
 0x6f5   : > { %9253 = vmatpush2.bf16.msra.mxu0 %v16827_v60  ;;  %v16963_v60 = vcombine.low %v16704_v44, %v16708_v22  ;;  %v16684_v40 = vld [vmem:[%s26259_s5 + $0x1678] sm:$0xff] }
 0x6f6   : > { %9298 = vmatpush2.bf16.msra.mxu1 %v16987_v31  ;;  %9254 = vmatprep.subr.bf16.mxu0 %v16820_v53  ;;  %v16956_v31 = vcombine.high %v16696_v29, %v16700_v17  ;;  %v16688_v53 = vld [vmem:[%s26259_s5 + $0x1698] sm:$0xff] }
 0x6f7   : > { %9299 = vmatprep.subr.bf16.mxu1 %v16980_v33  ;;  %v16692_v33 = vld [vmem:[%s26259_s5 + $0x16b8] sm:$0xff] }
 0x6f8   : > { %v16948_v41 = vcombine.high %v16688_v53, %v16692_v33 }
 0x6f9   : > { %9255 = vmatpush2.bf16.msra.mxu0 %v16819_v63  ;;  %v16947_v63 = vcombine.low %v16688_v53, %v16692_v33 }
 0x6fa   : > { %9300 = vmatpush2.bf16.msra.mxu1 %v16979_v35  ;;  %9256 = vmatprep.subr.bf16.mxu0 %v16812_v36  ;;  %v16940_v35 = vcombine.high %v16680_v30, %v16684_v40  ;;  %v16672_v36 = vld [vmem:[%s26259_s5 + $0x1618] sm:$0xff] }
 0x6fb   : > { %9301 = vmatprep.subr.bf16.mxu1 %v16972_v13  ;;  %v16939_v13 = vcombine.low %v16680_v30, %v16684_v40 }
 0x6fd   : > { %9257 = vmatpush2.bf16.msra.mxu0 %v16811_v59 }
 0x6fe   : > { %9302 = vmatpush2.bf16.msra.mxu1 %v16971_v54  ;;  %9258 = vmatprep.subr.bf16.mxu0 %v16804_v46 }
 0x6ff   : > { %9303 = vmatprep.subr.bf16.mxu1 %v16964_v6 }
 0x701   : > { %9259 = vmatpush2.bf16.msra.mxu0 %v16803_v11 }
 0x702   : > { %9304 = vmatpush2.bf16.msra.mxu1 %v16963_v60 }
 0x703   : > { %9305 = vmatprep.subr.bf16.mxu1 %v16956_v31 }
 0x704   : > { %9261 = vmatmul.mubr.bf16.vlgmr.msra.gmra.mxu0 %v23605_v1  ;;  %v16676_v1 = vld [vmem:[%s26259_s5 + $0x1638] sm:$0xff]  ;;  %v8944_v25 = vpop.f32.mrf.mxu0 }
 0x705   : > { %9270 = vmatprep.mubr.bf16.mxu0 %v23638_v9  ;;  %v16932_v55 = vcombine.high %v16672_v36, %v16676_v1  ;;  %v16931_v9 = vcombine.low %v16672_v36, %v16676_v1 }
 0x706   : > { %9306 = vmatpush2.bf16.msra.mxu1 %v16955_v62  ;;  %v8946_v44 = vpop.f32.mrf.mxu0 }
 0x707   : > { %9307 = vmatprep.subr.bf16.mxu1 %v16948_v41 }
 0x708   : > { %v8948_v22 = vpop.f32.mrf.mxu0 }
 0x70a   : > { %9308 = vmatpush2.bf16.msra.mxu1 %v16947_v63  ;;  %v24229_v54 = vpop.f32.mrf.mxu0 }
 0x70b   : > { %9309 = vmatprep.subr.bf16.mxu1 %v16940_v35 }
 0x70c   : > { %9271 = vmatmul.mubr.bf16.gmra.mxu0 %v23634_v16  ;;  %v24231_v16 = vpop.f32.mrf.mxu0 }
 0x70d   : > { %9560 = vmatprep.mubr.f32.mxu0 %v26518_v3 }
 0x70e   : > { %9310 = vmatpush2.bf16.msra.mxu1 %v16939_v13  ;;  %v24233_v6 = vpop.f32.mrf.mxu0 }
 0x70f   : > { %9311 = vmatprep.subr.bf16.mxu1 %v16932_v55 }
 0x710   : > { %v24235_v17 = vpop.f32.mrf.mxu0 }
 0x712   : > { %9312 = vmatpush2.bf16.msra.mxu1 %v16931_v9 }
 0x715   : > { %9314 = vmatmul.mubr.bf16.vlgmr.msra.gmra.mxu1 %v23663_v32  ;;  %v8997_v59 = vpop.f32.mrf.mxu1 }
 0x716   : > { %9323 = vmatprep.mubr.bf16.mxu1 %v23696_v24  ;;  %v24239_v24 = vpop.f32.mrf.mxu0 }
 0x717   : > { %v8999_v46 = vpop.f32.mrf.mxu1 }
 0x719   : > { %v9001_v29 = vpop.f32.mrf.mxu1 }
 0x71b   : > { %v24237_v32 = vpop.f32.mrf.mxu1 }
 0x71d   : > { %9324 = vmatmul.mubr.bf16.gmra.mxu1 %v23694_v45  ;;  %v9007_v45 = vpop.f32.mrf.mxu1 }
 0x71e   : > { %9637 = vmatprep.mubr.f32.mxu1 %v26518_v3 }
 0x71f   : > { %v9009_v60 = vpop.f32.mrf.mxu1 }
 0x721   : > { %v24241_v53 = vpop.f32.mrf.mxu1 }
 0x723   : > { %v24243_v62 = vpop.f32.mrf.mxu1 }
 0x744   : > { %v9050_v11 = vpop.f32.mrf.mxu0 }
 0x746   : > { %v9052_v31 = vpop.f32.mrf.mxu0 }
 0x748   : > { %v9054_v33 = vpop.f32.mrf.mxu0 }
 0x74a   : > { %v9056_v41 = vpop.f32.mrf.mxu0 }
 0x74c   : > { %v9060_v63 = vpop.f32.mrf.mxu0 }
 0x74e   : > { %v9062_v15 = vpop.f32.mrf.mxu0 }
 0x755   : > { %v9103_v30 = vpop.f32.mrf.mxu1 }
 0x756   : > { %v9104_v40 = vadd.f32 %v9103_v30, %v9050_v11  ;;  %v9064_v30 = vpop.f32.mrf.mxu0 }
 0x757   : > { %v9105_v35 = vpop.f32.mrf.mxu1 }
 0x758   : > { %v24246_v36 = vadd.f32 %v9104_v40, %v23471_v50  ;;  %v9106_v1 = vadd.f32 %v9105_v35, %v9052_v31  ;;  %v9066_v35 = vpop.f32.mrf.mxu0 }
 0x759   : > { %v9107_v13 = vpop.f32.mrf.mxu1 }
 0x75a   : > { %v24249_v55 = vadd.f32 %v9106_v1, %v23483_v14  ;;  %v9108_v9 = vadd.f32 %v9107_v13, %v9054_v33  ;;  %v8998_v13 = vadd.f32 %v8997_v59, %v8944_v25 }
 0x75b   : > { %v9109_v38 = vpop.f32.mrf.mxu1 }
 0x75c   : > { %v24252_v18 = vadd.f32 %v9108_v9, %v23489_v43  ;;  %v24254_v42 = vadd.f32 %v9109_v38, %v9056_v41  ;;  %v9334_v9 = vadd.f32 %v8998_v13, %v23240_v21 }
 0x75d   : > { %v9113_v7 = vpop.f32.mrf.mxu1 }
 0x75e   : > { %26554 = vst [vmem:[#allocation29_spill] sm:$0xff] %v24254_v42  ;;  %v9114_v11 = vadd.f32 %v9113_v7, %v9060_v63  ;;  %v26569_v42 = vld [vmem:[#allocation59_spill] sm:$0xff] }
 0x75f   : > { %v9115_v56 = vpop.f32.mrf.mxu1 }
 0x760   : > { %v24257_v50 = vadd.f32 %v9114_v11, %v23514_v26  ;;  %v9116_v31 = vadd.f32 %v9115_v56, %v9062_v15  ;;  %v24270_v26 = vld [vmem:[%s26260_s6] sm:$0xff]  ;;  %v9000_v56 = vadd.f32 %v8999_v46, %v8946_v44  ;;  %v26559_v11 = vld [vmem:[#allocation70_spill] sm:$0xff] }
 0x761   : > { %v9117_v40 = vpop.f32.mrf.mxu1  ;;  %v26564_v46 = vsub.s32 4, %v26559_v11 }
 0x762   : > { %26555 = vst [vmem:[#allocation69_spill] sm:$0xff] %v24257_v50  ;;  %v24260_v14 = vadd.f32 %v9116_v31, %v23523_v61  ;;  %v9118_v33 = vadd.f32 %v9117_v40, %v9064_v30  ;;  %v9002_v61 = vadd.f32 %v9001_v29, %v8948_v22  ;;  %v26560_v30 = vsub.s32 0, %v26559_v11  ;;  %v26565_v29 = vld [vmem:[#allocation54_spill] sm:$0xff] }
 0x763   : > { %v9119_v1 = vpop.f32.mrf.mxu1  ;;  %v9335_v31 = vadd.f32 %v9000_v56, %v23245_v49  ;;  %v26561_v40 = vsub.s32 1, %v26559_v11  ;;  %v24289_v21 = vrot.slane %v24270_v26, %v26564_v46  ;;  %v26568_v49 = vld [vmem:[#allocation18_spill] sm:$0xff] }
 0x764   : > { %26556 = vst [vmem:[#allocation30_spill] sm:$0xff] %v24260_v14  ;;  %v24263_v43 = vadd.f32 %v9118_v33, %v23525_v58  ;;  %v24265_v38 = vadd.f32 %v9119_v1, %v9066_v35  ;;  %v24276_v58 = vrot.slane %v24270_v26, %v26560_v30  ;;  %v26562_v33 = vld [vmem:[#allocation53_spill] sm:$0xff]  ;;  %v26563_v35 = vld [vmem:[#allocation14_spill] sm:$0xff]  ;;  %v26566_v1 = vld [vmem:[#allocation15_spill] sm:$0xff] }
 0x765   : > { %v24282_v25 = vrot.slane %v24270_v26, %v26561_v40  ;;  %v5136_v44 = vadd.f32 %v26563_v35, %v26562_v33  ;;  %v5146_v13 = vadd.f32 %v26566_v1, %v26565_v29  ;;  %v26567_v30 = vld [vmem:[#allocation57_spill] sm:$0xff]  ;;  %v26571_v35 = vsub.s32 5, %v26559_v11 }
 0x766   : > { %26557 = vst [vmem:[#allocation71_spill] sm:$0xff] %v24263_v43  ;;  %26558 = vst [vmem:[#allocation31_spill] sm:$0xff] %v24265_v38  ;;  %v5348_v56 = vadd.f32 %v26568_v49, %v26567_v30  ;;  %v26570_v43 = vld [vmem:[#allocation20_spill] sm:$0xff]  ;;  %v9342_v38 = vadd.f32 %v9002_v61, %v23257_v5  ;;  %v9010_v5 = vadd.f32 %v9009_v60, %v24233_v6 }
 0x767   : > { %v5358_v40 = vadd.f32 %v26570_v43, %v26569_v42  ;;  %v24303_v46 = vrot.slane %v24270_v26, %v26571_v35  ;;  %v6797_v29 = vadd.f32 %v23388_v19, %v5146_v13  ;;  %v9409_v1 = vadd.f32 %v24282_v25, %v9335_v31 }
 0x768   : > { %v9008_v42 = vadd.f32 %v9007_v45, %v24231_v16  ;;  %v6787_v61 = vadd.f32 %v23217_v8, %v5136_v44  ;;  %v9416_v19 = vadd.f32 %v24276_v58, %v9342_v38  ;;  %v9012_v31 = vadd.f32 %v24241_v53, %v24235_v17 }
 0x769   : > { %v9014_v38 = vadd.f32 %v24243_v62, %v24239_v24  ;;  %v9004_v24 = vadd.f32 %v24237_v32, %v24229_v54 }
 0x784   : > { %v9156_v41 = vpop.f32.mrf.mxu0 }
 0x786   : > { %v9158_v7 = vpop.f32.mrf.mxu0 }
 0x788   : > { %v9160_v63 = vpop.f32.mrf.mxu0 }
 0x78a   : > { %v9162_v15 = vpop.f32.mrf.mxu0 }
 0x78c   : > { %v9166_v14 = vpop.f32.mrf.mxu0 }
 0x78e   : > { %v9168_v16 = vpop.f32.mrf.mxu0 }
 0x795   : > { %v9209_v59 = vpop.f32.mrf.mxu1 }
 0x796   : > { %v9210_v22 = vadd.f32 %v9209_v59, %v9156_v41  ;;  %v9408_v41 = vadd.f32 %v24276_v58, %v9334_v9 }
 0x797   : > { %v9211_v50 = vpop.f32.mrf.mxu1 }
 0x798   : > { %v9338_v59 = vadd.f32 %v9210_v22, %v23565_v27  ;;  %v9212_v33 = vadd.f32 %v9211_v50, %v9158_v7  ;;  %v6850_v7 = vadd.f32 %v23456_v0, %v6797_v29  ;;  %v6999_v22 = vadd.f32 %v23558_v48, %v5348_v56 }
 0x799   : > { %v9213_v43 = vpop.f32.mrf.mxu1  ;;  %v9440_v6 = vmax.f32 %v9408_v41, 0.0  ;;  %v9350_v0 = vadd.f32 %v9008_v42, %v23279_v57  ;;  %v9351_v48 = vadd.f32 %v9010_v5, %v23288_v37  ;;  %v9448_v56 = vmax.f32 %v9416_v19, 0.0 }
 0x79a   : > { %v9412_v9 = vadd.f32 %v24289_v21, %v9338_v59  ;;  %v9339_v27 = vadd.f32 %v9212_v33, %v23567_v47  ;;  %v9214_v50 = vadd.f32 %v9213_v43, %v9160_v63  ;;  %v7009_v47 = vadd.f32 %v23579_v20, %v5358_v40  ;;  %v9170_v20 = vpop.f32.mrf.mxu0 }
 0x79b   : > { %v9215_v45 = vpop.f32.mrf.mxu1  ;;  %v9441_v63 = vmax.f32 %v9409_v1, 0.0  ;;  %v7052_v49 = vadd.f32 %v23571_v23, %v6999_v22  ;;  %v9424_v62 = vadd.f32 %v24276_v58, %v9350_v0  ;;  %v9425_v35 = vadd.f32 %v24282_v25, %v9351_v48 }
 0x79c   : > { %v9444_v60 = vmax.f32 %v9412_v9, 0.0  ;;  %v9413_v8 = vadd.f32 %v24303_v46, %v9339_v27  ;;  %v9346_v44 = vadd.f32 %v9214_v50, %v23569_v28  ;;  %v9358_v28 = vadd.f32 %v9012_v31, %v23292_v12  ;;  %v9172_v9 = vpop.f32.mrf.mxu0 }
 0x79d   : > { %v9219_v13 = vpop.f32.mrf.mxu1  ;;  %v9216_v59 = vadd.f32 %v9215_v45, %v9162_v15  ;;  %v9359_v1 = vadd.f32 %v9014_v38, %v6850_v7  ;;  %v6840_v15 = vadd.f32 %v23260_v10, %v6787_v61  ;;  %v7062_v5 = vadd.f32 %v23591_v52, %v7009_v47 }
 0x79e   : > { %v24324_v17 = vmax.f32 %v9440_v6, %v9444_v60  ;;  %v9445_v53 = vmax.f32 %v9413_v8, 0.0  ;;  %v9420_v30 = vadd.f32 %v24289_v21, %v9346_v44  ;;  %v9220_v40 = vadd.f32 %v9219_v13, %v9166_v14 }
 0x79f   : > { %v9221_v41 = vpop.f32.mrf.mxu1  ;;  %v9432_v43 = vadd.f32 %v24276_v58, %v9358_v28  ;;  %v9347_v27 = vadd.f32 %v9216_v59, %v7052_v49  ;;  %v9343_v22 = vadd.f32 %v9004_v24, %v6840_v15  ;;  %v9456_v19 = vmax.f32 %v9424_v62, 0.0  ;;  %v19271_v49 = vld [vmem:[%s26262_s8 + $0x138] sm:$0xff]   ;;  %v19277_v59 = vld [vmem:[%s26262_s8 + $0x120] sm:$0xff]  }
 0x7a0   : > { %v9452_v57 = vmax.f32 %v9420_v30, 0.0  ;;  %v9222_v37 = vadd.f32 %v9221_v41, %v9168_v16  ;;  %v24329_v33 = vmax.f32 %v9441_v63, %v9445_v53  ;;  %v9354_v23 = vadd.f32 %v9220_v40, %v23573_v34  ;;  %v19270_v53 = vld [vmem:[%s26262_s8 + $0x178] sm:$0xff]   ;;  %v24372_v30 = vld [vmem:[%s26261_s7 + $0x10] sm:$0xff]  ;;  %v19275_v40 = vld [vmem:[%s26262_s8 + $0x128] sm:$0xff]  }
 0x7a1   : > { %v9223_v29 = vpop.f32.mrf.mxu1  ;;  %v9433_v10 = vadd.f32 %v24282_v25, %v9359_v1  ;;  %v9464_v16 = vmax.f32 %v9432_v43, 0.0  ;;  %v9421_v6 = vadd.f32 %v24303_v46, %v9347_v27  ;;  %v24388_v28 = vld [vmem:[%s26261_s7 + $0x18] sm:$0xff]  ;;  %v19276_v41 = vld [vmem:[%s26262_s8 + $0x160] sm:$0xff]   ;;  %v26572_v62 = vsub.s32 2, %v26559_v11 }
 0x7a2   : > { %v9476_v12 = vmax.f32 %v9448_v56, %v9452_v57  ;;  %v9355_v14 = vadd.f32 %v9222_v37, %v23575_v2  ;;  %v9224_v42 = vadd.f32 %v9223_v29, %v9170_v20  ;;  %v9428_v54 = vadd.f32 %v24289_v21, %v9354_v23  ;;  %v19272_v56 = vld [vmem:[%s26262_s8 + $0x170] sm:$0xff]  }
 0x7a3   : > { %v9225_v32 = vpop.f32.mrf.mxu1  ;;  %v9457_v2 = vmax.f32 %v9425_v35, 0.0  ;;  %v9465_v47 = vmax.f32 %v9433_v10, 0.0  ;;  %v9453_v48 = vmax.f32 %v9421_v6, 0.0  ;;  %v19273_v20 = vld [vmem:[%s26262_s8 + $0x130] sm:$0xff]   ;;  %v9379_v35 = vrot.slane %v24270_v26, %v26572_v62  ;;  %v26578_v10 = vld [vmem:[#allocation55_spill] sm:$0xff] }
 0x7a4   : > { %v9429_v50 = vadd.f32 %v24303_v46, %v9355_v14  ;;  %v9362_v34 = vadd.f32 %v9224_v42, %v23577_v51  ;;  %v9226_v7 = vadd.f32 %v9225_v32, %v9172_v9  ;;  %v9460_v31 = vmax.f32 %v9428_v54, 0.0 }
 0x7a5   : > { %v9417_v51 = vadd.f32 %v24282_v25, %v9343_v22  ;;  %v24361_v25 = vld [vmem:[%s26261_s7 + $0x8] sm:$0xff]  ;;  %v26573_v29 = vsub.s32 3, %v26559_v11  ;;  %v26574_v14 = vsub.s32 6, %v26559_v11  ;;  %v9410_v43 = vadd.f32 %v9379_v35, %v24246_v36 }
 0x7a6   : > { %v9461_v61 = vmax.f32 %v9429_v50, 0.0  ;;  %v9436_v52 = vadd.f32 %v24289_v21, %v9362_v34  ;;  %v9363_v58 = vadd.f32 %v9226_v7, %v7062_v5  ;;  %v9480_v45 = vmax.f32 %v9456_v19, %v9460_v31  ;;  %v26576_v50 = vld [vmem:[#allocation56_spill] sm:$0xff]  ;;  %v26577_v34 = vld [vmem:[#allocation17_spill] sm:$0xff] }
 0x7a7   : > { %v9449_v38 = vmax.f32 %v9417_v51, 0.0  ;;  %v24413_v1 = vrot.slane %v24270_v26, %v26573_v29  ;;  %v24418_v42 = vrot.slane %v24270_v26, %v26574_v14  ;;  %v26575_v32 = vsub.s32 7, %v26559_v11  ;;  %v26583_v51 = vld [vmem:[#allocation61_spill] sm:$0xff] }
 0x7a8   : > { %v9468_v60 = vmax.f32 %v9436_v52, 0.0  ;;  %v9437_v8 = vadd.f32 %v24303_v46, %v9363_v58  ;;  %v9481_v44 = vmax.f32 %v9457_v2, %v9461_v61  ;;  %v24351_v46 = vld [vmem:[%s26261_s7] sm:$0xff]  ;;  %v5252_v7 = vadd.f32 %v26577_v34, %v26576_v50 }
 0x7a9   : > { %v9477_v21 = vmax.f32 %v9449_v38, %v9453_v48  ;;  %v24425_v27 = vrot.slane %v24270_v26, %v26575_v32  ;;  %v9411_v19 = vadd.f32 %v24413_v1, %v24249_v55  ;;  %v26580_v52 = vld [vmem:[#allocation24_spill] sm:$0xff]  ;;  %v9418_v26 = vadd.f32 %v9379_v35, %v24252_v18  ;;  %v26586_v48 = vld [vmem:[#allocation23_spill] sm:$0xff]  ;;  %v26592_v32 = vld [vmem:[#allocation30_spill] sm:$0xff] }
 0x7aa   : > { %v9484_v63 = vmax.f32 %v9464_v16, %v9468_v60  ;;  %v9469_v0 = vmax.f32 %v9437_v8, 0.0  ;;  %v6903_v11 = vadd.f32 %v26580_v52, %v5252_v7  ;;  %v26581_v8 = vld [vmem:[#allocation26_spill] sm:$0xff]  ;;  %v26587_v38 = vld [vmem:[#allocation64_spill] sm:$0xff]  ;;  %v9427_v50 = vadd.f32 %v24413_v1, %v26592_v32  ;;  %v26593_v34 = vld [vmem:[#allocation27_spill] sm:$0xff] }
 0x7ab   : > { %v9443_v18 = vmax.f32 %v9411_v19, 0.0  ;;  %v26594_v19 = vld [vmem:[#allocation31_spill] sm:$0xff] }
 0x7ac   : > { %v9485_v13 = vmax.f32 %v9465_v47, %v9469_v0  ;;  %v19314_v32 = vld [vmem:[%s26262_s8 + $0x1e0] sm:$0xff]  }
 0x7ae   : > { %9520 = vmatprep.subr.mxu0 %v9485_v13 }
 0x7af   : > { %9521 = vmatpush1.msra.mxu0 %v9484_v63 }
 0x7b0   : > { %9522 = vmatprep.subr.mxu0 %v9481_v44 }
 0x7b1   : > { %9523 = vmatpush1.msra.mxu0 %v9480_v45 }
 0x7b2   : > { %9524 = vmatprep.subr.mxu0 %v9477_v21 }
 0x7b3   : > { %9525 = vmatpush1.msra.mxu0 %v9476_v12 }
 0x7b4   : > { %9526 = vmatprep.subr.mxu0 %v24329_v33 }
 0x7b5   : > { %9527 = vmatpush1.msra.mxu0 %v24324_v17 }
 0x7b6   : > { %16989 = vmatmul.mubr.msk.f32.vlgmr.msra.gmra.mxu0 %vm2847_vm3, %v24351_v46  ;;  %9683 = vmatprep.subr.mxu0 %v9485_v13 }
 0x7b7   : > { %9684 = vmatpush1.msra.mxu0 %v9484_v63  ;;  %9566 = vmatprep.mubr.f32.mxu0 %v26518_v3  ;;  %v26585_v63 = vld [vmem:[#allocation62_spill] sm:$0xff] }
 0x7b8   : > { %9685 = vmatprep.subr.mxu0 %v9481_v44  ;;  %v26582_v44 = vld [vmem:[#allocation60_spill] sm:$0xff] }
 0x7b9   : > { %9686 = vmatpush1.msra.mxu0 %v9480_v45  ;;  %v9442_v45 = vmax.f32 %v9410_v43, 0.0  ;;  %v5454_v47 = vadd.f32 %v26583_v51, %v26582_v44  ;;  %v26600_v51 = vld [vmem:[#allocation29_spill] sm:$0xff] }
 0x7ba   : > { %16990 = vmatmul.mubr.msk.f32.gmra.mxu0 %vm2847_vm3, %v24361_v25  ;;  %9687 = vmatprep.subr.mxu0 %v9477_v21  ;;  %v6956_v21 = vadd.f32 %v26587_v38, %v6903_v11  ;;  %v26598_v11 = vld [vmem:[#allocation71_spill] sm:$0xff] }
 0x7bb   : > { %9688 = vmatpush1.msra.mxu0 %v9476_v12  ;;  %9723 = vmatprep.mubr.f32.mxu0 %v26518_v3 }
 0x7bc   : > { %9689 = vmatprep.subr.mxu0 %v24329_v33 }
 0x7bd   : > { %9690 = vmatpush1.msra.mxu0 %v24324_v17  ;;  %v19274_v17 = vld [vmem:[%s26262_s8 + $0x168] sm:$0xff]  }
 0x7be   : > { %16995 = vmatmul.mubr.msk.f32.vlgmr.msra.gmra.mxu0 %vm2847_vm3, %v24372_v30  ;;  %18475 = vmatprep.subr.bf16.mxu0 %v19270_v53 }
 0x7bf   : > { %9729 = vmatprep.mubr.f32.mxu0 %v26518_v3  ;;  %18476 = vmatpush3.bf16.msra.mxu0 %v19271_v49 }
 0x7c0   : > { %18477 = vmatprep.subr.bf16.mxu0 %v19272_v56 }
 0x7c2   : > { %16996 = vmatmul.mubr.msk.f32.gmra.mxu0 %vm2847_vm3, %v24388_v28 }
 0x7c3   : > { %18478 = vmatpush3.bf16.msra.mxu0 %v19273_v20 }
 0x7c4   : > { %18479 = vmatprep.subr.bf16.mxu0 %v19274_v17  ;;  %v9262_v57 = vpop.f32.mrf.mxu0  ;;  %v26588_v17 = vld [vmem:[#allocation25_spill] sm:$0xff] }
 0x7c6   : > { %v9264_v37 = vpop.f32.mrf.mxu0 }
 0x7c7   : > { %18480 = vmatpush3.bf16.msra.mxu0 %v19275_v40  ;;  %v7105_v40 = vadd.f32 %v26588_v17, %v5454_v47 }
 0x7c8   : > { %18481 = vmatprep.subr.bf16.mxu0 %v19276_v41  ;;  %v9266_v33 = vpop.f32.mrf.mxu0  ;;  %v26589_v41 = vld [vmem:[#allocation65_spill] sm:$0xff] }
 0x7ca   : > { %v9268_v24 = vpop.f32.mrf.mxu0 }
 0x7cb   : > { %18482 = vmatpush3.bf16.msra.mxu0 %v19277_v59  ;;  %v9450_v59 = vmax.f32 %v9418_v26, 0.0  ;;  %v9434_v26 = vadd.f32 %v9379_v35, %v26598_v11 }
 0x7cc   : > { %v9272_v15 = vpop.f32.mrf.mxu0 }
 0x7ce   : > { %v9274_v58 = vpop.f32.mrf.mxu0 }
 0x7d5   : > { %v9315_v23 = vpop.f32.mrf.mxu1 }
 0x7d6   : > { %v9316_v12 = vadd.f32 %v9315_v23, %v9262_v57 }
 0x7d7   : > { %v9317_v5 = vpop.f32.mrf.mxu1 }
 0x7d8   : > { %v9340_v9 = vadd.f32 %v9316_v12, %v23593_v39  ;;  %v9318_v54 = vadd.f32 %v9317_v5, %v9264_v37  ;;  %v26579_v39 = vld [vmem:[#allocation16_spill] sm:$0xff]  ;;  %v9276_v37 = vpop.f32.mrf.mxu0  ;;  %v26590_v5 = vld [vmem:[#allocation66_spill] sm:$0xff] }
 0x7d9   : > { %v9319_v22 = vpop.f32.mrf.mxu1  ;;  %v5242_v61 = vadd.f32 %v26579_v39, %v26578_v10  ;;  %v7158_v43 = vadd.f32 %v26590_v5, %v7105_v40  ;;  %v19306_v5 = vld [vmem:[%s26262_s8 + $0x1f0] sm:$0xff]  }
 0x7da   : > { %v9414_v2 = vadd.f32 %v24418_v42, %v9340_v9  ;;  %v9341_v31 = vadd.f32 %v9318_v54, %v23595_v4  ;;  %v9320_v36 = vadd.f32 %v9319_v22, %v9266_v33  ;;  %v26584_v4 = vld [vmem:[#allocation22_spill] sm:$0xff]  ;;  %v26591_v9 = vld [vmem:[#allocation69_spill] sm:$0xff] }
 0x7db   : > { %v9321_v16 = vpop.f32.mrf.mxu1  ;;  %v5464_v0 = vadd.f32 %v26585_v63, %v26584_v4  ;;  %v6893_v13 = vadd.f32 %v26586_v48, %v5242_v61  ;;  %v9426_v54 = vadd.f32 %v9379_v35, %v26591_v9  ;;  %v26597_v61 = vld [vmem:[#allocation68_spill] sm:$0xff]  ;;  %v9459_v63 = vmax.f32 %v9427_v50, 0.0 }
 0x7dc   : > { %v9446_v6 = vmax.f32 %v9414_v2, 0.0  ;;  %v9415_v60 = vadd.f32 %v24425_v27, %v9341_v31  ;;  %v9348_v55 = vadd.f32 %v9320_v36, %v26581_v8  ;;  %v9322_v29 = vadd.f32 %v9321_v16, %v9268_v24  ;;  %v26596_v24 = vld [vmem:[#allocation63_spill] sm:$0xff]  ;;  %v26599_v8 = vld [vmem:[#allocation28_spill] sm:$0xff] }
 0x7dd   : > { %v9325_v53 = vpop.f32.mrf.mxu1  ;;  %v7115_v57 = vadd.f32 %v26589_v41, %v5464_v0  ;;  %v9361_v2 = vadd.f32 %v26594_v19, %v6956_v21  ;;  %v6946_v39 = vadd.f32 %v26596_v24, %v6893_v13  ;;  %v9458_v4 = vmax.f32 %v9426_v54, 0.0  ;;  %v19310_v9 = vld [vmem:[%s26262_s8 + $0x1e8] sm:$0xff]   ;;  %v19316_v50 = vld [vmem:[%s26262_s8 + $0x1a0] sm:$0xff]   ;;  %v19324_v19 = vld [vmem:[%s26262_s8 + $0x190] sm:$0xff]  }
 0x7de   : > { %v24445_v49 = vmax.f32 %v9442_v45, %v9446_v6  ;;  %v9447_v56 = vmax.f32 %v9415_v60, 0.0  ;;  %v9422_v20 = vadd.f32 %v24418_v42, %v9348_v55  ;;  %v9326_v33 = vadd.f32 %v9325_v53, %v9272_v15  ;;  %v26595_v15 = vld [vmem:[#allocation67_spill] sm:$0xff]  ;;  %v19312_v54 = vld [vmem:[%s26262_s8 + $0x1a8] sm:$0xff]  }
 0x7df   : > { %v9327_v62 = vpop.f32.mrf.mxu1  ;;  %v7168_v52 = vadd.f32 %v26597_v61, %v7115_v57  ;;  %v9349_v6 = vadd.f32 %v9322_v29, %v7158_v43  ;;  %v9345_v47 = vadd.f32 %v26600_v51, %v6946_v39  ;;  %v9435_v48 = vadd.f32 %v24413_v1, %v9361_v2  ;;  %v19283_v29 = vld [vmem:[%s26262_s8 + $0x108] sm:$0xff]   ;;  %v19308_v43 = vld [vmem:[%s26262_s8 + $0x1b0] sm:$0xff]  }
 0x7e0   : > { %v9454_v23 = vmax.f32 %v9422_v20, 0.0  ;;  %v9328_v12 = vadd.f32 %v9327_v62, %v9274_v58  ;;  %v24450_v14 = vmax.f32 %v9443_v18, %v9447_v56  ;;  %v9356_v7 = vadd.f32 %v9326_v33, %v26593_v34  ;;  %v9278_v58 = vpop.f32.mrf.mxu0  ;;  %v19318_v34 = vld [vmem:[%s26262_s8 + $0x1d8] sm:$0xff]   ;;  %v19326_v2 = vld [vmem:[%s26262_s8 + $0x1c8] sm:$0xff]  }
 0x7e1   : > { %v9329_v22 = vpop.f32.mrf.mxu1  ;;  %v9466_v21 = vmax.f32 %v9434_v26, 0.0  ;;  %v9423_v18 = vadd.f32 %v24425_v27, %v9349_v6  ;;  %v9419_v40 = vadd.f32 %v24413_v1, %v9345_v47  ;;  %v9467_v41 = vmax.f32 %v9435_v48, 0.0  ;;  %v19278_v1 = vld [vmem:[%s26262_s8 + $0x158] sm:$0xff]   ;;  %v19289_v47 = vld [vmem:[%s26262_s8 + $0x330] sm:$0xff]   ;;  %v19293_v48 = vld [vmem:[%s26262_s8 + $0x320] sm:$0xff]  }
 0x7e2   : > { %v9478_v31 = vmax.f32 %v9450_v59, %v9454_v23  ;;  %v9357_v36 = vadd.f32 %v9328_v12, %v26595_v15  ;;  %v9330_v10 = vadd.f32 %v9329_v22, %v9276_v37  ;;  %v9430_v16 = vadd.f32 %v24418_v42, %v9356_v7  ;;  %18483 = vmatprep.subr.bf16.mxu0 %v19278_v1  ;;  %v19281_v23 = vld [vmem:[%s26262_s8 + $0x110] sm:$0xff]   ;;  %v19286_v12 = vld [vmem:[%s26262_s8 + $0x378] sm:$0xff]   ;;  %v19330_v15 = vld [vmem:[%s26262_s8 + $0x1c0] sm:$0xff]  }
 0x7e3   : > { %v9331_v45 = vpop.f32.mrf.mxu1  ;;  %v9455_v37 = vmax.f32 %v9423_v18, 0.0  ;;  %v9451_v62 = vmax.f32 %v9419_v40, 0.0  ;;  %v19320_v7 = vld [vmem:[%s26262_s8 + $0x198] sm:$0xff]   ;;  %v19322_v22 = vld [vmem:[%s26262_s8 + $0x1d0] sm:$0xff]   ;;  %v19299_v18 = vld [vmem:[%s26262_s8 + $0x308] sm:$0xff]  }
 0x7e4   : > { %v9431_v60 = vadd.f32 %v24425_v27, %v9357_v36  ;;  %v9364_v55 = vadd.f32 %v9330_v10, %v26599_v8  ;;  %v9332_v44 = vadd.f32 %v9331_v45, %v9278_v58  ;;  %v9462_v0 = vmax.f32 %v9430_v16, 0.0  ;;  %v19332_v36 = vld [vmem:[%s26262_s8 + $0x180] sm:$0xff]   ;;  %v19334_v10 = vld [vmem:[%s26262_s8 + $0x3f8] sm:$0xff]  }
 0x7e5   : > { %v19317_v1 = vld [vmem:[%s26262_s8 + $0x520] sm:$0xff]  }
 0x7e6   : > { %v9463_v13 = vmax.f32 %v9431_v60, 0.0  ;;  %v9438_v35 = vadd.f32 %v24418_v42, %v9364_v55  ;;  %v9365_v38 = vadd.f32 %v9332_v44, %v7168_v52  ;;  %v9482_v53 = vmax.f32 %v9458_v4, %v9462_v0  ;;  %v19287_v55 = vld [vmem:[%s26262_s8 + $0x338] sm:$0xff]   ;;  %v19288_v44 = vld [vmem:[%s26262_s8 + $0x370] sm:$0xff]   ;;  %v19290_v4 = vld [vmem:[%s26262_s8 + $0x368] sm:$0xff]  }
 0x7e7   : > { %v9479_v42 = vmax.f32 %v9451_v62, %v9455_v37  ;;  %v19292_v0 = vld [vmem:[%s26262_s8 + $0x360] sm:$0xff]   ;;  %v19309_v37 = vld [vmem:[%s26262_s8 + $0x530] sm:$0xff]   ;;  %v19313_v62 = vld [vmem:[%s26262_s8 + $0x528] sm:$0xff]  }
 0x7e8   : > { %v9470_v56 = vmax.f32 %v9438_v35, 0.0  ;;  %v9439_v20 = vadd.f32 %v24425_v27, %v9365_v38  ;;  %v9483_v17 = vmax.f32 %v9459_v63, %v9463_v13  ;;  %v19279_v27 = vld [vmem:[%s26262_s8 + $0x118] sm:$0xff]   ;;  %v19291_v63 = vld [vmem:[%s26262_s8 + $0x328] sm:$0xff]   ;;  %v19296_v38 = vld [vmem:[%s26262_s8 + $0x350] sm:$0xff]  }
 0x7e9   : > { %18484 = vmatpush3.bf16.msra.mxu0 %v19279_v27  ;;  %v19294_v13 = vld [vmem:[%s26262_s8 + $0x358] sm:$0xff]  }
 0x7ea   : > { %v9486_v57 = vmax.f32 %v9466_v21, %v9470_v56  ;;  %v9471_v59 = vmax.f32 %v9439_v20, 0.0  ;;  %v19295_v35 = vld [vmem:[%s26262_s8 + $0x318] sm:$0xff]   ;;  %v19297_v21 = vld [vmem:[%s26262_s8 + $0x310] sm:$0xff]   ;;  %v19300_v56 = vld [vmem:[%s26262_s8 + $0x340] sm:$0xff]  }
 0x7eb   : > { %v19301_v20 = vld [vmem:[%s26262_s8 + $0x300] sm:$0xff]   ;;  %v19319_v27 = vld [vmem:[%s26262_s8 + $0x558] sm:$0xff]  }
 0x7ec   : > { %v9487_v33 = vmax.f32 %v9467_v41, %v9471_v59  ;;  %v19305_v41 = vld [vmem:[%s26262_s8 + $0x538] sm:$0xff]   ;;  %v19307_v59 = vld [vmem:[%s26262_s8 + $0x570] sm:$0xff]  }
 0x7ee   : > { %9597 = vmatprep.subr.mxu1 %v9487_v33 }
 0x7ef   : > { %9598 = vmatpush1.msra.mxu1 %v9486_v57 }
 0x7f0   : > { %9599 = vmatprep.subr.mxu1 %v9483_v17 }
 0x7f1   : > { %9600 = vmatpush1.msra.mxu1 %v9482_v53 }
 0x7f2   : > { %9601 = vmatprep.subr.mxu1 %v9479_v42 }
 0x7f3   : > { %9602 = vmatpush1.msra.mxu1 %v9478_v31 }
 0x7f4   : > { %9603 = vmatprep.subr.mxu1 %v24450_v14 }
 0x7f5   : > { %9604 = vmatpush1.msra.mxu1 %v24445_v49 }
 0x7f6   : > { %16991 = vmatmul.mubr.msk.f32.vlgmr.msra.gmra.mxu1 %vm2847_vm3, %v24351_v46  ;;  %9760 = vmatprep.subr.mxu1 %v9487_v33  ;;  %v19280_v46 = vld [vmem:[%s26262_s8 + $0x150] sm:$0xff]   ;;  %v19311_v33 = vld [vmem:[%s26262_s8 + $0x568] sm:$0xff]  }
 0x7f7   : > { %9761 = vmatpush1.msra.mxu1 %v9486_v57  ;;  %9643 = vmatprep.mubr.f32.mxu1 %v26518_v3 }
 0x7f8   : > { %9762 = vmatprep.subr.mxu1 %v9483_v17  ;;  %18485 = vmatprep.subr.bf16.mxu0 %v19280_v46  ;;  %v19303_v17 = vld [vmem:[%s26262_s8 + $0x578] sm:$0xff]  }
 0x7f9   : > { %9763 = vmatpush1.msra.mxu1 %v9482_v53  ;;  %18486 = vmatpush3.bf16.msra.mxu0 %v19281_v23  ;;  %v19298_v53 = vld [vmem:[%s26262_s8 + $0x348] sm:$0xff]   ;;  %v19321_v46 = vld [vmem:[%s26262_s8 + $0x518] sm:$0xff]  }
 0x7fa   : > { %16992 = vmatmul.mubr.msk.f32.gmra.mxu1 %vm2847_vm3, %v24361_v25  ;;  %9764 = vmatprep.subr.mxu1 %v9479_v42  ;;  %v19282_v25 = vld [vmem:[%s26262_s8 + $0x148] sm:$0xff]   ;;  %v19315_v42 = vld [vmem:[%s26262_s8 + $0x560] sm:$0xff]  }
 0x7fb   : > { %9765 = vmatpush1.msra.mxu1 %v9478_v31  ;;  %9800 = vmatprep.mubr.f32.mxu1 %v26518_v3  ;;  %v19328_v31 = vld [vmem:[%s26262_s8 + $0x188] sm:$0xff]  }
 0x7fc   : > { %9766 = vmatprep.subr.mxu1 %v24450_v14  ;;  %18487 = vmatprep.subr.bf16.mxu0 %v19282_v25  ;;  %v19302_v14 = vld [vmem:[%s26262_s8 + $0x1f8] sm:$0xff]   ;;  %v19323_v25 = vld [vmem:[%s26262_s8 + $0x550] sm:$0xff]  }
 0x7fd   : > { %9767 = vmatpush1.msra.mxu1 %v24445_v49  ;;  %18488 = vmatpush3.bf16.msra.mxu0 %v19283_v29  ;;  %v19284_v49 = vld [vmem:[%s26262_s8 + $0x140] sm:$0xff]  }
 0x7fe   : > { %16997 = vmatmul.mubr.msk.f32.vlgmr.msra.gmra.mxu1 %vm2847_vm3, %v24372_v30  ;;  %v19285_v30 = vld [vmem:[%s26262_s8 + $0x100] sm:$0xff]   ;;  %18489 = vmatprep.subr.bf16.mxu0 %v19284_v49  ;;  %v19325_v49 = vld [vmem:[%s26262_s8 + $0x510] sm:$0xff]  }
 0x7ff   : > { %9806 = vmatprep.mubr.f32.mxu1 %v26518_v3  ;;  %18497 = vmatprep.subr.bf16.mxu1 %v19302_v14 }
 0x801   : > { %18490 = vmatpush3.bf16.msra.mxu0 %v19285_v30 }
 0x802   : > { %16998 = vmatmul.mubr.msk.f32.gmra.mxu1 %vm2847_vm3, %v24388_v28  ;;  %18519 = vmatprep.subr.bf16.mxu0 %v19286_v12  ;;  %v19304_v28 = vld [vmem:[%s26262_s8 + $0x1b8] sm:$0xff]   ;;  %v19327_v12 = vld [vmem:[%s26262_s8 + $0x548] sm:$0xff]  }
 0x803   : > { %18498 = vmatpush3.bf16.msra.mxu1 %v19304_v28  ;;  %v19329_v28 = vld [vmem:[%s26262_s8 + $0x508] sm:$0xff]  }
 0x804   : > { %18499 = vmatprep.subr.bf16.mxu1 %v19306_v5 }
 0x807   : > { %18500 = vmatpush3.bf16.msra.mxu1 %v19308_v43  ;;  %v19331_v43 = vld [vmem:[%s26262_s8 + $0x540] sm:$0xff]  }
 0x808   : > { %18501 = vmatprep.subr.bf16.mxu1 %v19310_v9 }
 0x80b   : > { %18502 = vmatpush3.bf16.msra.mxu1 %v19312_v54 }
 0x80c   : > { %18503 = vmatprep.subr.bf16.mxu1 %v19314_v32 }
 0x80f   : > { %18504 = vmatpush3.bf16.msra.mxu1 %v19316_v50  ;;  %v19333_v50 = vld [vmem:[%s26262_s8 + $0x500] sm:$0xff]  }
 0x810   : > { %18505 = vmatprep.subr.bf16.mxu1 %v19318_v34 }
 0x813   : > { %18506 = vmatpush3.bf16.msra.mxu1 %v19320_v7  ;;  %v19335_v7 = vld [vmem:[%s26262_s8 + $0x778] sm:$0xff]  }
 0x814   : > { %18507 = vmatprep.subr.bf16.mxu1 %v19322_v22 }
 0x817   : > { %18508 = vmatpush3.bf16.msra.mxu1 %v19324_v19 }
 0x818   : > { %18509 = vmatprep.subr.bf16.mxu1 %v19326_v2  ;;  %v19336_v2 = vld [vmem:[%s26262_s8 + $0x3b8] sm:$0xff]  }
 0x81b   : > { %18510 = vmatpush3.bf16.msra.mxu1 %v19328_v31  ;;  %v19337_v31 = vld [vmem:[%s26262_s8 + $0x738] sm:$0xff]  }
 0x81c   : > { %18511 = vmatprep.subr.bf16.mxu1 %v19330_v15 }
 0x81f   : > { %18512 = vmatpush3.bf16.msra.mxu1 %v19332_v36 }
 0x820   : > { %18541 = vmatprep.subr.bf16.mxu1 %v19334_v10  ;;  %v19338_v10 = vld [vmem:[%s26262_s8 + $0x3f0] sm:$0xff]  }
 0x876   : > { %v9562_v24 = vpop.f32.mrf.mxu0 }
 0x878   : > { %v9564_v39 = vpop.f32.mrf.mxu0 }
 0x87a   : > { %v24564_v61 = vpop.f32.mrf.mxu0 }
 0x87c   : > { %v24566_v52 = vpop.f32.mrf.mxu0 }
 0x87e   : > { %v9725_v11 = vpop.f32.mrf.mxu0 }
 0x87f   : > { %v9813_v26 = vmax.f32 %v9562_v24, %v9725_v11  ;;  %v19339_v24 = vld [vmem:[%s26262_s8 + $0x770] sm:$0xff]  }
 0x880   : > { %v9727_v58 = vpop.f32.mrf.mxu0  ;;  %v19340_v11 = vld [vmem:[%s26262_s8 + $0x3b0] sm:$0xff]  }
 0x881   : > { %v24568_v16 = vpack.c.bf16 %v9813_v26, %v9813_v26  ;;  %v9814_v45 = vmax.f32 %v9564_v39, %v9727_v58  ;;  %v19341_v26 = vld [vmem:[%s26262_s8 + $0x730] sm:$0xff]  }
 0x883   : > { %v24570_v6 = vpack.c.bf16 %v9814_v45, %v9814_v45  ;;  %v24573_v60 = vshrl.u32 %v24568_v16, 16  ;;  %v19342_v45 = vld [vmem:[%s26262_s8 + $0x3e8] sm:$0xff]  }
 0x885   : > { %v24576_v8 = vshrl.u32 %v24570_v6, 16  ;;  %v10372_v40 = vrot.slane %v24573_v60, 1  ;;  %v10782_v36 = vrot.slane %v24573_v60, 2 }
 0x887   : > { %10194 = vmatprep.mubr.bf16.mxu0 %v24576_v8  ;;  %v10373_v51 = vrot.slane %v24576_v8, 1  ;;  %v10783_v57 = vrot.slane %v24576_v8, 2  ;;  %v11193_v58 = vrot.slane %v24576_v8, 3  ;;  %v19345_v8 = vld [vmem:[%s26262_s8 + $0x728] sm:$0xff]  }
 0x888   : > { %10195 = vmatmul.mubr.bf16.vlgmr.msra.gmra.mxu0 %v24573_v60 }
 0x889   : > { %18520 = vmatpush3.bf16.msra.mxu0 %v19287_v55  ;;  %10604 = vmatprep.mubr.bf16.mxu0 %v10373_v51  ;;  %v19343_v55 = vld [vmem:[%s26262_s8 + $0x768] sm:$0xff]   ;;  %v19346_v51 = vld [vmem:[%s26262_s8 + $0x3e0] sm:$0xff]  }
 0x88a   : > { %18521 = vmatprep.subr.bf16.mxu0 %v19288_v44  ;;  %v19344_v44 = vld [vmem:[%s26262_s8 + $0x3a8] sm:$0xff]  }
 0x88d   : > { %18522 = vmatpush3.bf16.msra.mxu0 %v19289_v47  ;;  %v19347_v47 = vld [vmem:[%s26262_s8 + $0x760] sm:$0xff]  }
 0x88e   : > { %18523 = vmatprep.subr.bf16.mxu0 %v19290_v4  ;;  %v19348_v4 = vld [vmem:[%s26262_s8 + $0x3a0] sm:$0xff]  }
 0x891   : > { %18524 = vmatpush3.bf16.msra.mxu0 %v19291_v63  ;;  %v19349_v63 = vld [vmem:[%s26262_s8 + $0x720] sm:$0xff]  }
 0x892   : > { %18525 = vmatprep.subr.bf16.mxu0 %v19292_v0  ;;  %v19350_v0 = vld [vmem:[%s26262_s8 + $0x3d8] sm:$0xff]  }
 0x895   : > { %18526 = vmatpush3.bf16.msra.mxu0 %v19293_v48  ;;  %v19351_v48 = vld [vmem:[%s26262_s8 + $0x758] sm:$0xff]  }
 0x896   : > { %18527 = vmatprep.subr.bf16.mxu0 %v19294_v13  ;;  %v19352_v13 = vld [vmem:[%s26262_s8 + $0x398] sm:$0xff]  }
 0x899   : > { %18528 = vmatpush3.bf16.msra.mxu0 %v19295_v35  ;;  %v19353_v35 = vld [vmem:[%s26262_s8 + $0x718] sm:$0xff]  }
 0x89a   : > { %18529 = vmatprep.subr.bf16.mxu0 %v19296_v38  ;;  %v19354_v38 = vld [vmem:[%s26262_s8 + $0x3d0] sm:$0xff]  }
 0x89d   : > { %18530 = vmatpush3.bf16.msra.mxu0 %v19297_v21  ;;  %v19355_v21 = vld [vmem:[%s26262_s8 + $0x750] sm:$0xff]  }
 0x89e   : > { %18531 = vmatprep.subr.bf16.mxu0 %v19298_v53  ;;  %v24758_v53 = vpop.f32.mrf.mxu0 }
 0x8a1   : > { %18532 = vmatpush3.bf16.msra.mxu0 %v19299_v18  ;;  %v19356_v18 = vld [vmem:[%s26262_s8 + $0x390] sm:$0xff]  }
 0x8a2   : > { %18533 = vmatprep.subr.bf16.mxu0 %v19300_v56  ;;  %v19357_v56 = vld [vmem:[%s26262_s8 + $0x710] sm:$0xff]  }
 0x8a5   : > { %18534 = vmatpush3.bf16.msra.mxu0 %v19301_v20  ;;  %v19358_v20 = vld [vmem:[%s26262_s8 + $0x3c8] sm:$0xff]  }
 0x8a6   : > { %18563 = vmatprep.subr.bf16.mxu0 %v19303_v17  ;;  %v19359_v17 = vld [vmem:[%s26262_s8 + $0x748] sm:$0xff]  }
 0x8a8   : > { %10605 = vmatmul.mubr.bf16.vlgmr.msra.gmra.mxu0 %v10372_v40  ;;  %v9733_v40 = vpop.f32.mrf.mxu0 }
 0x8a9   : > { %18564 = vmatpush3.bf16.msra.mxu0 %v19305_v41  ;;  %11014 = vmatprep.mubr.bf16.mxu0 %v10783_v57  ;;  %v19360_v41 = vld [vmem:[%s26262_s8 + $0x388] sm:$0xff]  }
 0x8aa   : > { %18565 = vmatprep.subr.bf16.mxu0 %v19307_v59  ;;  %v19361_v57 = vld [vmem:[%s26262_s8 + $0x708] sm:$0xff]   ;;  %v19362_v59 = vld [vmem:[%s26262_s8 + $0x3c0] sm:$0xff]  }
 0x8ad   : > { %18566 = vmatpush3.bf16.msra.mxu0 %v19309_v37  ;;  %v19363_v37 = vld [vmem:[%s26262_s8 + $0x740] sm:$0xff]  }
 0x8ae   : > { %18567 = vmatprep.subr.bf16.mxu0 %v19311_v33  ;;  %v9818_v33 = vmax.f32 %v24566_v52, %v9733_v40  ;;  %v19367_v52 = vld [vmem:[%s26262_s8 + $0x978] sm:$0xff]   ;;  %v19403_v40 = vld [vmem:[%s26262_s8 + $0xb70] sm:$0xff]  }
 0x8b1   : > { %18568 = vmatpush3.bf16.msra.mxu0 %v19313_v62  ;;  %v19364_v62 = vld [vmem:[%s26262_s8 + $0x380] sm:$0xff]  }
 0x8b2   : > { %18569 = vmatprep.subr.bf16.mxu0 %v19315_v42  ;;  %v19365_v42 = vld [vmem:[%s26262_s8 + $0x700] sm:$0xff]  }
 0x8b5   : > { %18570 = vmatpush3.bf16.msra.mxu0 %v19317_v1  ;;  %v19366_v1 = vld [vmem:[%s26262_s8 + $0x5f8] sm:$0xff]  }
 0x8b6   : > { %v9639_v23 = vpop.f32.mrf.mxu1  ;;  %18571 = vmatprep.subr.bf16.mxu0 %v19319_v27  ;;  %v24797_v27 = vpack.c.bf16 %v9818_v33, %v9818_v33  ;;  %v19408_v33 = vld [vmem:[%s26262_s8 + $0x7a8] sm:$0xff]  }
 0x8b8   : > { %v9641_v29 = vpop.f32.mrf.mxu1 }
 0x8b9   : > { %18572 = vmatpush3.bf16.msra.mxu0 %v19321_v46  ;;  %v19368_v46 = vld [vmem:[%s26262_s8 + $0x5b8] sm:$0xff]  }
 0x8ba   : > { %v24664_v30 = vpop.f32.mrf.mxu1  ;;  %18573 = vmatprep.subr.bf16.mxu0 %v19323_v25  ;;  %v11192_v25 = vrot.slane %v24573_v60, 3  ;;  %v19372_v60 = vld [vmem:[%s26262_s8 + $0x5b0] sm:$0xff]  }
 0x8bc   : > { %v24669_v14 = vpop.f32.mrf.mxu1 }
 0x8bd   : > { %18574 = vmatpush3.bf16.msra.mxu0 %v19325_v49 }
 0x8be   : > { %v9802_v5 = vpop.f32.mrf.mxu1  ;;  %18575 = vmatprep.subr.bf16.mxu0 %v19327_v12  ;;  %v19370_v12 = vld [vmem:[%s26262_s8 + $0x5f0] sm:$0xff]  }
 0x8bf   : > { %v9815_v9 = vmax.f32 %v9639_v23, %v9802_v5  ;;  %v24815_v5 = vshrl.u32 %v24797_v27, 16 }
 0x8c0   : > { %v9804_v54 = vpop.f32.mrf.mxu1 }
 0x8c1   : > { %v9816_v32 = vmax.f32 %v9641_v29, %v9804_v54  ;;  %18576 = vmatpush3.bf16.msra.mxu0 %v19329_v28  ;;  %v24680_v34 = vpack.c.bf16 %v9815_v9, %v9815_v9  ;;  %v19369_v29 = vld [vmem:[%s26262_s8 + $0x938] sm:$0xff]   ;;  %v19371_v28 = vld [vmem:[%s26262_s8 + $0x970] sm:$0xff]   ;;  %v19374_v9 = vld [vmem:[%s26262_s8 + $0x5e8] sm:$0xff]  }
 0x8c2   : > { %18577 = vmatprep.subr.bf16.mxu0 %v19331_v43  ;;  %v19373_v43 = vld [vmem:[%s26262_s8 + $0x930] sm:$0xff]   ;;  %v19375_v54 = vld [vmem:[%s26262_s8 + $0x968] sm:$0xff]  }
 0x8c3   : > { %v24685_v22 = vpack.c.bf16 %v9816_v32, %v9816_v32  ;;  %v24697_v15 = vshrl.u32 %v24680_v34, 16  ;;  %v19376_v32 = vld [vmem:[%s26262_s8 + $0x5a8] sm:$0xff]  }
 0x8c5   : > { %18578 = vmatpush3.bf16.msra.mxu0 %v19333_v50  ;;  %v24688_v19 = vshrl.u32 %v24685_v22, 16  ;;  %v10374_v23 = vrot.slane %v24697_v15, 1  ;;  %v19377_v50 = vld [vmem:[%s26262_s8 + $0x928] sm:$0xff]  }
 0x8c6   : > { %18607 = vmatprep.subr.bf16.mxu0 %v19335_v7  ;;  %v19378_v7 = vld [vmem:[%s26262_s8 + $0x5e0] sm:$0xff]  }
 0x8c7   : > { %10234 = vmatprep.mubr.bf16.mxu1 %v24688_v19  ;;  %v10375_v39 = vrot.slane %v24688_v19, 1  ;;  %v10785_v49 = vrot.slane %v24688_v19, 2 }
 0x8c8   : > { %10235 = vmatmul.mubr.bf16.vlgmr.msra.gmra.mxu1 %v24697_v15  ;;  %11015 = vmatmul.mubr.bf16.vlgmr.msra.gmra.mxu0 %v10782_v36  ;;  %v19381_v36 = vld [vmem:[%s26262_s8 + $0x920] sm:$0xff]  }
 0x8c9   : > { %18542 = vmatpush3.bf16.msra.mxu1 %v19336_v2  ;;  %18608 = vmatpush3.bf16.msra.mxu0 %v19337_v31  ;;  %v19379_v2 = vld [vmem:[%s26262_s8 + $0x960] sm:$0xff]  }
 0x8ca   : > { %18543 = vmatprep.subr.bf16.mxu1 %v19338_v10  ;;  %18609 = vmatprep.subr.bf16.mxu0 %v19339_v24  ;;  %v19380_v31 = vld [vmem:[%s26262_s8 + $0x5a0] sm:$0xff]   ;;  %v19382_v10 = vld [vmem:[%s26262_s8 + $0x5d8] sm:$0xff]  }
 0x8cb   : > { %11424 = vmatprep.mubr.bf16.mxu0 %v11193_v58  ;;  %10644 = vmatprep.mubr.bf16.mxu1 %v10375_v39  ;;  %v19383_v24 = vld [vmem:[%s26262_s8 + $0x958] sm:$0xff]   ;;  %v19387_v58 = vld [vmem:[%s26262_s8 + $0x950] sm:$0xff]  }
 0x8cc   : > { %v19384_v39 = vld [vmem:[%s26262_s8 + $0x598] sm:$0xff]  }
 0x8cd   : > { %18544 = vmatpush3.bf16.msra.mxu1 %v19340_v11  ;;  %18610 = vmatpush3.bf16.msra.mxu0 %v19341_v26  ;;  %v19385_v11 = vld [vmem:[%s26262_s8 + $0x918] sm:$0xff]   ;;  %v19386_v26 = vld [vmem:[%s26262_s8 + $0x5d0] sm:$0xff]  }
 0x8ce   : > { %18545 = vmatprep.subr.bf16.mxu1 %v19342_v45  ;;  %18611 = vmatprep.subr.bf16.mxu0 %v19343_v55  ;;  %v19388_v45 = vld [vmem:[%s26262_s8 + $0x590] sm:$0xff]  }
 0x8cf   : > { %v19389_v55 = vld [vmem:[%s26262_s8 + $0x910] sm:$0xff]  }
 0x8d1   : > { %18546 = vmatpush3.bf16.msra.mxu1 %v19344_v44  ;;  %18612 = vmatpush3.bf16.msra.mxu0 %v19345_v8  ;;  %v19390_v44 = vld [vmem:[%s26262_s8 + $0x5c8] sm:$0xff]  }
 0x8d2   : > { %18547 = vmatprep.subr.bf16.mxu1 %v19346_v51  ;;  %18613 = vmatprep.subr.bf16.mxu0 %v19347_v47  ;;  %v19391_v8 = vld [vmem:[%s26262_s8 + $0x948] sm:$0xff]  }
 0x8d3   : > { %v19392_v51 = vld [vmem:[%s26262_s8 + $0x588] sm:$0xff]  }
 0x8d4   : > { %v19393_v47 = vld [vmem:[%s26262_s8 + $0x908] sm:$0xff]  }
 0x8d5   : > { %18548 = vmatpush3.bf16.msra.mxu1 %v19348_v4  ;;  %18614 = vmatpush3.bf16.msra.mxu0 %v19349_v63  ;;  %v19394_v4 = vld [vmem:[%s26262_s8 + $0x5c0] sm:$0xff]   ;;  %v9817_v63 = vmax.f32 %v24564_v61, %v24758_v53  ;;  %v19398_v61 = vld [vmem:[%s26262_s8 + $0x7f8] sm:$0xff]   ;;  %v10784_v53 = vrot.slane %v24697_v15, 2 }
 0x8d6   : > { %18549 = vmatprep.subr.bf16.mxu1 %v19350_v0  ;;  %18615 = vmatprep.subr.bf16.mxu0 %v19351_v48  ;;  %v19395_v0 = vld [vmem:[%s26262_s8 + $0x940] sm:$0xff]  }
 0x8d7   : > { %v19396_v48 = vld [vmem:[%s26262_s8 + $0x580] sm:$0xff]  }
 0x8d9   : > { %18550 = vmatpush3.bf16.msra.mxu1 %v19352_v13  ;;  %18616 = vmatpush3.bf16.msra.mxu0 %v19353_v35  ;;  %v19397_v13 = vld [vmem:[%s26262_s8 + $0x900] sm:$0xff]   ;;  %v24901_v35 = vpack.c.bf16 %v9817_v63, %v9817_v63  ;;  %v19437_v63 = vld [vmem:[%s26262_s8 + $0xd30] sm:$0xff]  }
 0x8da   : > { %18551 = vmatprep.subr.bf16.mxu1 %v19354_v38  ;;  %18617 = vmatprep.subr.bf16.mxu0 %v19355_v21  ;;  %v19399_v38 = vld [vmem:[%s26262_s8 + $0xb78] sm:$0xff]  }
 0x8db   : > { %v19400_v21 = vld [vmem:[%s26262_s8 + $0x7b8] sm:$0xff]  }
 0x8dd   : > { %18552 = vmatpush3.bf16.msra.mxu1 %v19356_v18  ;;  %18618 = vmatpush3.bf16.msra.mxu0 %v19357_v56  ;;  %v19401_v18 = vld [vmem:[%s26262_s8 + $0xb38] sm:$0xff]   ;;  %v24914_v56 = vshrl.u32 %v24901_v35, 16 }
 0x8de   : > { %18553 = vmatprep.subr.bf16.mxu1 %v19358_v20  ;;  %18619 = vmatprep.subr.bf16.mxu0 %v19359_v17  ;;  %v19402_v20 = vld [vmem:[%s26262_s8 + $0x7f0] sm:$0xff]   ;;  %v11195_v17 = vrot.slane %v24688_v19, 3  ;;  %v19406_v19 = vld [vmem:[%s26262_s8 + $0x7e8] sm:$0xff]  }
 0x8e1   : > { %18554 = vmatpush3.bf16.msra.mxu1 %v19360_v41  ;;  %18620 = vmatpush3.bf16.msra.mxu0 %v19361_v57  ;;  %v12025_v41 = vrot.slane %v24815_v5, 1  ;;  %v19404_v57 = vld [vmem:[%s26262_s8 + $0x7b0] sm:$0xff]  }
 0x8e2   : > { %18555 = vmatprep.subr.bf16.mxu1 %v19362_v59  ;;  %18621 = vmatprep.subr.bf16.mxu0 %v19363_v37  ;;  %v19405_v59 = vld [vmem:[%s26262_s8 + $0xb30] sm:$0xff]   ;;  %v19407_v37 = vld [vmem:[%s26262_s8 + $0xb68] sm:$0xff]  }
 0x8e5   : > { %18556 = vmatpush3.bf16.msra.mxu1 %v19364_v62  ;;  %18622 = vmatpush3.bf16.msra.mxu0 %v19365_v42  ;;  %v19409_v62 = vld [vmem:[%s26262_s8 + $0xb28] sm:$0xff]   ;;  %v19410_v42 = vld [vmem:[%s26262_s8 + $0x7e0] sm:$0xff]  }
 0x8e6   : > { %18585 = vmatprep.subr.bf16.mxu1 %v19366_v1  ;;  %18651 = vmatprep.subr.bf16.mxu0 %v19367_v52  ;;  %v19411_v1 = vld [vmem:[%s26262_s8 + $0xb60] sm:$0xff]  }
 0x8e7   : > { %v19412_v52 = vld [vmem:[%s26262_s8 + $0x7a0] sm:$0xff]  }
 0x8e8   : > { %10645 = vmatmul.mubr.bf16.vlgmr.msra.gmra.mxu1 %v10374_v23  ;;  %11425 = vmatmul.mubr.bf16.vlgmr.msra.gmra.mxu0 %v11192_v25  ;;  %v19414_v23 = vld [vmem:[%s26262_s8 + $0x7d8] sm:$0xff]  }
 0x8e9   : > { %18586 = vmatpush3.bf16.msra.mxu1 %v19368_v46  ;;  %11054 = vmatprep.mubr.bf16.mxu1 %v10785_v49  ;;  %v19413_v46 = vld [vmem:[%s26262_s8 + $0xb20] sm:$0xff]   ;;  %v19415_v25 = vld [vmem:[%s26262_s8 + $0xb58] sm:$0xff]  }
 0x8ea   : > { %18652 = vmatpush3.bf16.msra.mxu0 %v19369_v29  ;;  %11846 = vmatprep.mubr.bf16.mxu0 %v24815_v5  ;;  %v19416_v29 = vld [vmem:[%s26262_s8 + $0x798] sm:$0xff]  }
 0x8eb   : > { %18587 = vmatprep.subr.bf16.mxu1 %v19370_v12  ;;  %18653 = vmatprep.subr.bf16.mxu0 %v19371_v28  ;;  %v19417_v49 = vld [vmem:[%s26262_s8 + $0xb18] sm:$0xff]   ;;  %v19418_v12 = vld [vmem:[%s26262_s8 + $0x7d0] sm:$0xff]  }
 0x8ec   : > { %v19419_v28 = vld [vmem:[%s26262_s8 + $0xb50] sm:$0xff]  }
 0x8ed   : > { %18588 = vmatpush3.bf16.msra.mxu1 %v19372_v60  ;;  %v24973_v60 = vpop.f32.mrf.mxu1 }
 0x8ee   : > { %18654 = vmatpush3.bf16.msra.mxu0 %v19373_v43  ;;  %18589 = vmatprep.subr.bf16.mxu1 %v19374_v9  ;;  %v19420_v43 = vld [vmem:[%s26262_s8 + $0x790] sm:$0xff]  }
 0x8ef   : > { %18655 = vmatprep.subr.bf16.mxu0 %v19375_v54  ;;  %v19421_v9 = vld [vmem:[%s26262_s8 + $0xb10] sm:$0xff]   ;;  %v19422_v54 = vld [vmem:[%s26262_s8 + $0x7c8] sm:$0xff]  }
 0x8f1   : > { %18590 = vmatpush3.bf16.msra.mxu1 %v19376_v32  ;;  %v19423_v32 = vld [vmem:[%s26262_s8 + $0xb48] sm:$0xff]  }
 0x8f2   : > { %18656 = vmatpush3.bf16.msra.mxu0 %v19377_v50  ;;  %18591 = vmatprep.subr.bf16.mxu1 %v19378_v7  ;;  %v9810_v50 = vpop.f32.mrf.mxu1  ;;  %v19424_v7 = vld [vmem:[%s26262_s8 + $0x788] sm:$0xff]  }
 0x8f3   : > { %18657 = vmatprep.subr.bf16.mxu0 %v19379_v2  ;;  %v19425_v2 = vld [vmem:[%s26262_s8 + $0xb08] sm:$0xff]  }
 0x8f5   : > { %18592 = vmatpush3.bf16.msra.mxu1 %v19380_v31  ;;  %v19426_v31 = vld [vmem:[%s26262_s8 + $0x7c0] sm:$0xff]  }
 0x8f6   : > { %18658 = vmatpush3.bf16.msra.mxu0 %v19381_v36  ;;  %18593 = vmatprep.subr.bf16.mxu1 %v19382_v10  ;;  %v19427_v36 = vld [vmem:[%s26262_s8 + $0xb40] sm:$0xff]   ;;  %v9820_v10 = vmax.f32 %v24669_v14, %v9810_v50  ;;  %v19431_v14 = vld [vmem:[%s26262_s8 + $0xd78] sm:$0xff]   ;;  %v19467_v50 = vld [vmem:[%s26262_s8 + $0xf70] sm:$0xff]  }
 0x8f7   : > { %18659 = vmatprep.subr.bf16.mxu0 %v19383_v24  ;;  %v19428_v24 = vld [vmem:[%s26262_s8 + $0x780] sm:$0xff]  }
 0x8f9   : > { %18594 = vmatpush3.bf16.msra.mxu1 %v19384_v39  ;;  %v19429_v39 = vld [vmem:[%s26262_s8 + $0xb00] sm:$0xff]  }
 0x8fa   : > { %18660 = vmatpush3.bf16.msra.mxu0 %v19385_v11  ;;  %18595 = vmatprep.subr.bf16.mxu1 %v19386_v26  ;;  %v19430_v11 = vld [vmem:[%s26262_s8 + $0x9f8] sm:$0xff]   ;;  %v25012_v26 = vpack.c.bf16 %v9820_v10, %v9820_v10  ;;  %v19470_v10 = vld [vmem:[%s26262_s8 + $0xbe8] sm:$0xff]  }
 0x8fb   : > { %18661 = vmatprep.subr.bf16.mxu0 %v19387_v58  ;;  %v19432_v58 = vld [vmem:[%s26262_s8 + $0x9b8] sm:$0xff]  }
 0x8fd   : > { %18596 = vmatpush3.bf16.msra.mxu1 %v19388_v45  ;;  %v11194_v45 = vrot.slane %v24697_v15, 3  ;;  %v19435_v15 = vld [vmem:[%s26262_s8 + $0xd70] sm:$0xff]  }
 0x8fe   : > { %18662 = vmatpush3.bf16.msra.mxu0 %v19389_v55  ;;  %18597 = vmatprep.subr.bf16.mxu1 %v19390_v44  ;;  %v19433_v55 = vld [vmem:[%s26262_s8 + $0xd38] sm:$0xff]   ;;  %v12024_v44 = vrot.slane %v24914_v56, 1 }
 0x8ff   : > { %18663 = vmatprep.subr.bf16.mxu0 %v19391_v8  ;;  %v19434_v8 = vld [vmem:[%s26262_s8 + $0x9f0] sm:$0xff]  }
 0x901   : > { %18598 = vmatpush3.bf16.msra.mxu1 %v19392_v51  ;;  %v25026_v51 = vshrl.u32 %v25012_v26, 16 }
 0x902   : > { %18664 = vmatpush3.bf16.msra.mxu0 %v19393_v47  ;;  %18599 = vmatprep.subr.bf16.mxu1 %v19394_v4  ;;  %v12435_v47 = vrot.slane %v24815_v5, 2  ;;  %v19436_v4 = vld [vmem:[%s26262_s8 + $0x9b0] sm:$0xff]  }
 0x903   : > { %18665 = vmatprep.subr.bf16.mxu0 %v19395_v0  ;;  %v19438_v0 = vld [vmem:[%s26262_s8 + $0x9e8] sm:$0xff]  }
 0x905   : > { %18600 = vmatpush3.bf16.msra.mxu1 %v19396_v48  ;;  %v19439_v48 = vld [vmem:[%s26262_s8 + $0xd68] sm:$0xff]  }
 0x906   : > { %18666 = vmatpush3.bf16.msra.mxu0 %v19397_v13  ;;  %18629 = vmatprep.subr.bf16.mxu1 %v19398_v61  ;;  %v19440_v13 = vld [vmem:[%s26262_s8 + $0x9a8] sm:$0xff]  }
 0x907   : > { %18695 = vmatprep.subr.bf16.mxu0 %v19399_v38  ;;  %v19441_v61 = vld [vmem:[%s26262_s8 + $0xd28] sm:$0xff]   ;;  %v19442_v38 = vld [vmem:[%s26262_s8 + $0x9e0] sm:$0xff]  }
 0x908   : > { %11055 = vmatmul.mubr.bf16.vlgmr.msra.gmra.mxu1 %v10784_v53  ;;  %v19444_v53 = vld [vmem:[%s26262_s8 + $0x9a0] sm:$0xff]  }
 0x909   : > { %11847 = vmatmul.mubr.bf16.vlgmr.msra.gmra.mxu0 %v24914_v56  ;;  %18630 = vmatpush3.bf16.msra.mxu1 %v19400_v21  ;;  %v19443_v21 = vld [vmem:[%s26262_s8 + $0xd60] sm:$0xff]  }
 0x90a   : > { %11464 = vmatprep.mubr.bf16.mxu1 %v11195_v17  ;;  %18696 = vmatpush3.bf16.msra.mxu0 %v19401_v18  ;;  %v19445_v18 = vld [vmem:[%s26262_s8 + $0xd20] sm:$0xff]   ;;  %v19447_v17 = vld [vmem:[%s26262_s8 + $0xd58] sm:$0xff]  }
 0x90b   : > { %12256 = vmatprep.mubr.bf16.mxu0 %v12025_v41  ;;  %18631 = vmatprep.subr.bf16.mxu1 %v19402_v20  ;;  %v19446_v20 = vld [vmem:[%s26262_s8 + $0x9d8] sm:$0xff]  }
 0x90c   : > { %18697 = vmatprep.subr.bf16.mxu0 %v19403_v40  ;;  %v19448_v40 = vld [vmem:[%s26262_s8 + $0x998] sm:$0xff]  }
 0x90d   : > { %18632 = vmatpush3.bf16.msra.mxu1 %v19404_v57  ;;  %v19449_v41 = vld [vmem:[%s26262_s8 + $0xd18] sm:$0xff]   ;;  %v19450_v57 = vld [vmem:[%s26262_s8 + $0x9d0] sm:$0xff]  }
 0x90e   : > { %18698 = vmatpush3.bf16.msra.mxu0 %v19405_v59  ;;  %18633 = vmatprep.subr.bf16.mxu1 %v19406_v19  ;;  %v19451_v59 = vld [vmem:[%s26262_s8 + $0xd50] sm:$0xff]  }
 0x90f   : > { %18699 = vmatprep.subr.bf16.mxu0 %v19407_v37  ;;  %v19452_v19 = vld [vmem:[%s26262_s8 + $0x990] sm:$0xff]  }
 0x910   : > { %v19453_v37 = vld [vmem:[%s26262_s8 + $0xd10] sm:$0xff]  }
 0x911   : > { %18634 = vmatpush3.bf16.msra.mxu1 %v19408_v33  ;;  %v19454_v33 = vld [vmem:[%s26262_s8 + $0x9c8] sm:$0xff]  }
 0x912   : > { %18700 = vmatpush3.bf16.msra.mxu0 %v19409_v62  ;;  %18635 = vmatprep.subr.bf16.mxu1 %v19410_v42  ;;  %v19455_v62 = vld [vmem:[%s26262_s8 + $0xd48] sm:$0xff]  }
 0x913   : > { %18701 = vmatprep.subr.bf16.mxu0 %v19411_v1  ;;  %v19456_v42 = vld [vmem:[%s26262_s8 + $0x988] sm:$0xff]   ;;  %v9819_v1 = vmax.f32 %v24664_v30, %v24973_v60  ;;  %v19460_v30 = vld [vmem:[%s26262_s8 + $0x980] sm:$0xff]  }
 0x915   : > { %18636 = vmatpush3.bf16.msra.mxu1 %v19412_v52  ;;  %v19457_v52 = vld [vmem:[%s26262_s8 + $0xd08] sm:$0xff]  }
 0x916   : > { %18702 = vmatpush3.bf16.msra.mxu0 %v19413_v46  ;;  %18637 = vmatprep.subr.bf16.mxu1 %v19414_v23  ;;  %v19458_v46 = vld [vmem:[%s26262_s8 + $0x9c0] sm:$0xff]  }
 0x917   : > { %18703 = vmatprep.subr.bf16.mxu0 %v19415_v25  ;;  %v19459_v23 = vld [vmem:[%s26262_s8 + $0xd40] sm:$0xff]   ;;  %v25110_v25 = vpack.c.bf16 %v9819_v1, %v9819_v1  ;;  %v19498_v1 = vld [vmem:[%s26262_s8 + $0xdf0] sm:$0xff]  }
 0x919   : > { %18638 = vmatpush3.bf16.msra.mxu1 %v19416_v29  ;;  %v19461_v29 = vld [vmem:[%s26262_s8 + $0xd00] sm:$0xff]   ;;  %v25125_v60 = vshrl.u32 %v25110_v25, 16 }
 0x91a   : > { %18704 = vmatpush3.bf16.msra.mxu0 %v19417_v49  ;;  %18639 = vmatprep.subr.bf16.mxu1 %v19418_v12  ;;  %v19462_v49 = vld [vmem:[%s26262_s8 + $0xbf8] sm:$0xff]  }
 0x91b   : > { %18705 = vmatprep.subr.bf16.mxu0 %v19419_v28  ;;  %v19463_v12 = vld [vmem:[%s26262_s8 + $0xf78] sm:$0xff]  }
 0x91c   : > { %v19464_v28 = vld [vmem:[%s26262_s8 + $0xbb8] sm:$0xff]  }
 0x91d   : > { %18640 = vmatpush3.bf16.msra.mxu1 %v19420_v43  ;;  %v19465_v43 = vld [vmem:[%s26262_s8 + $0xf38] sm:$0xff]  }
 0x91e   : > { %18706 = vmatpush3.bf16.msra.mxu0 %v19421_v9  ;;  %18641 = vmatprep.subr.bf16.mxu1 %v19422_v54  ;;  %v12434_v9 = vrot.slane %v24914_v56, 2  ;;  %v19466_v54 = vld [vmem:[%s26262_s8 + $0xbf0] sm:$0xff]  }
 0x91f   : > { %18707 = vmatprep.subr.bf16.mxu0 %v19423_v32  ;;  %v12027_v32 = vrot.slane %v25026_v51, 1 }
 0x921   : > { %18642 = vmatpush3.bf16.msra.mxu1 %v19424_v7 }
 0x922   : > { %18708 = vmatpush3.bf16.msra.mxu0 %v19425_v2  ;;  %18643 = vmatprep.subr.bf16.mxu1 %v19426_v31  ;;  %v12845_v2 = vrot.slane %v24815_v5, 3  ;;  %v19468_v31 = vld [vmem:[%s26262_s8 + $0xbb0] sm:$0xff]   ;;  %v19471_v5 = vld [vmem:[%s26262_s8 + $0xf68] sm:$0xff]  }
 0x923   : > { %18709 = vmatprep.subr.bf16.mxu0 %v19427_v36  ;;  %v19469_v36 = vld [vmem:[%s26262_s8 + $0xf30] sm:$0xff]  }
 0x925   : > { %18644 = vmatpush3.bf16.msra.mxu1 %v19428_v24 }
 0x926   : > { %18710 = vmatpush3.bf16.msra.mxu0 %v19429_v39  ;;  %18673 = vmatprep.subr.bf16.mxu1 %v19430_v11 }
 0x927   : > { %18739 = vmatprep.subr.bf16.mxu0 %v19431_v14  ;;  %v19472_v14 = vld [vmem:[%s26262_s8 + $0xba8] sm:$0xff]  }
 0x928   : > { %11465 = vmatmul.mubr.bf16.vlgmr.msra.gmra.mxu1 %v11194_v45  ;;  %v19474_v45 = vld [vmem:[%s26262_s8 + $0xbe0] sm:$0xff]  }
 0x929   : > { %12257 = vmatmul.mubr.bf16.vlgmr.msra.gmra.mxu0 %v12024_v44  ;;  %18674 = vmatpush3.bf16.msra.mxu1 %v19432_v58  ;;  %v19473_v58 = vld [vmem:[%s26262_s8 + $0xf28] sm:$0xff]   ;;  %v19475_v44 = vld [vmem:[%s26262_s8 + $0xf60] sm:$0xff]  }
 0x92a   : > { %11886 = vmatprep.mubr.bf16.mxu1 %v25026_v51  ;;  %18740 = vmatpush3.bf16.msra.mxu0 %v19433_v55 }
 0x92b   : > { %12666 = vmatprep.mubr.bf16.mxu0 %v12435_v47  ;;  %18675 = vmatprep.subr.bf16.mxu1 %v19434_v8  ;;  %v19476_v8 = vld [vmem:[%s26262_s8 + $0xba0] sm:$0xff]   ;;  %v19478_v47 = vld [vmem:[%s26262_s8 + $0xbd8] sm:$0xff]  }
 0x92c   : > { %18741 = vmatprep.subr.bf16.mxu0 %v19435_v15  ;;  %v19477_v15 = vld [vmem:[%s26262_s8 + $0xf20] sm:$0xff]  }
 0x92d   : > { %18676 = vmatpush3.bf16.msra.mxu1 %v19436_v4  ;;  %v19479_v4 = vld [vmem:[%s26262_s8 + $0xf58] sm:$0xff]  }
 0x92e   : > { %18742 = vmatpush3.bf16.msra.mxu0 %v19437_v63  ;;  %18677 = vmatprep.subr.bf16.mxu1 %v19438_v0  ;;  %v19480_v63 = vld [vmem:[%s26262_s8 + $0xb98] sm:$0xff]  }
 0x92f   : > { %18743 = vmatprep.subr.bf16.mxu0 %v19439_v48  ;;  %v19481_v0 = vld [vmem:[%s26262_s8 + $0xf18] sm:$0xff]   ;;  %v19482_v48 = vld [vmem:[%s26262_s8 + $0xbd0] sm:$0xff]  }
 0x931   : > { %18678 = vmatpush3.bf16.msra.mxu1 %v19440_v13  ;;  %v19483_v13 = vld [vmem:[%s26262_s8 + $0xf50] sm:$0xff]  }
 0x932   : > { %18744 = vmatpush3.bf16.msra.mxu0 %v19441_v61  ;;  %18679 = vmatprep.subr.bf16.mxu1 %v19442_v38  ;;  %v19484_v61 = vld [vmem:[%s26262_s8 + $0xb90] sm:$0xff]  }
 0x933   : > { %18745 = vmatprep.subr.bf16.mxu0 %v19443_v21  ;;  %v19485_v38 = vld [vmem:[%s26262_s8 + $0xf10] sm:$0xff]   ;;  %v19486_v21 = vld [vmem:[%s26262_s8 + $0xbc8] sm:$0xff]  }
 0x935   : > { %18680 = vmatpush3.bf16.msra.mxu1 %v19444_v53  ;;  %v19487_v53 = vld [vmem:[%s26262_s8 + $0xf48] sm:$0xff]  }
 0x936   : > { %18746 = vmatpush3.bf16.msra.mxu0 %v19445_v18  ;;  %18681 = vmatprep.subr.bf16.mxu1 %v19446_v20  ;;  %v19488_v18 = vld [vmem:[%s26262_s8 + $0xb88] sm:$0xff]  }
 0x937   : > { %18747 = vmatprep.subr.bf16.mxu0 %v19447_v17  ;;  %v19489_v20 = vld [vmem:[%s26262_s8 + $0xf08] sm:$0xff]   ;;  %v19490_v17 = vld [vmem:[%s26262_s8 + $0xbc0] sm:$0xff]  }
 0x939   : > { %18682 = vmatpush3.bf16.msra.mxu1 %v19448_v40  ;;  %v19491_v40 = vld [vmem:[%s26262_s8 + $0xf40] sm:$0xff]  }
 0x93a   : > { %18748 = vmatpush3.bf16.msra.mxu0 %v19449_v41  ;;  %18683 = vmatprep.subr.bf16.mxu1 %v19450_v57  ;;  %v19492_v41 = vld [vmem:[%s26262_s8 + $0xb80] sm:$0xff]  }
 0x93b   : > { %18749 = vmatprep.subr.bf16.mxu0 %v19451_v59  ;;  %v19493_v57 = vld [vmem:[%s26262_s8 + $0xf00] sm:$0xff]   ;;  %v19494_v59 = vld [vmem:[%s26262_s8 + $0xdf8] sm:$0xff]  }
 0x93d   : > { %18684 = vmatpush3.bf16.msra.mxu1 %v19452_v19  ;;  %v19495_v19 = vld [vmem:[%s26262_s8 + $0x78] sm:$0xff]  }
 0x93e   : > { %18750 = vmatpush3.bf16.msra.mxu0 %v19453_v37  ;;  %18685 = vmatprep.subr.bf16.mxu1 %v19454_v33  ;;  %v19496_v37 = vld [vmem:[%s26262_s8 + $0xdb8] sm:$0xff]   ;;  %v12026_v33 = vrot.slane %v25125_v60, 1 }
 0x93f   : > { %18751 = vmatprep.subr.bf16.mxu0 %v19455_v62  ;;  %v19497_v62 = vld [vmem:[%s26262_s8 + $0x38] sm:$0xff]  }
 0x941   : > { %18686 = vmatpush3.bf16.msra.mxu1 %v19456_v42  ;;  %v12844_v42 = vrot.slane %v24914_v56, 3  ;;  %v19501_v56 = vld [vmem:[%s26262_s8 + $0x30] sm:$0xff]  }
 0x942   : > { %18752 = vmatpush3.bf16.msra.mxu0 %v19457_v52  ;;  %18687 = vmatprep.subr.bf16.mxu1 %v19458_v46  ;;  %v12437_v52 = vrot.slane %v25026_v51, 2  ;;  %v19499_v46 = vld [vmem:[%s26262_s8 + $0x70] sm:$0xff]  }
 0x943   : > { %18753 = vmatprep.subr.bf16.mxu0 %v19459_v23 }
 0x945   : > { %18688 = vmatpush3.bf16.msra.mxu1 %v19460_v30  ;;  %v19500_v30 = vld [vmem:[%s26262_s8 + $0xdb0] sm:$0xff]  }
 0x946   : > { %18754 = vmatpush3.bf16.msra.mxu0 %v19461_v29  ;;  %18717 = vmatprep.subr.bf16.mxu1 %v19462_v49  ;;  %v19502_v29 = vld [vmem:[%s26262_s8 + $0xde8] sm:$0xff]  }
 0x947   : > { %18783 = vmatprep.subr.bf16.mxu0 %v19463_v12  ;;  %v19503_v12 = vld [vmem:[%s26262_s8 + $0x68] sm:$0xff]  }
 0x948   : > { %11887 = vmatmul.mubr.bf16.vlgmr.msra.gmra.mxu1 %v25125_v60  ;;  %v18491_v7 = vpop.f32.mrf.mxu0 }
 0x949   : > { %12667 = vmatmul.mubr.bf16.vlgmr.msra.gmra.mxu0 %v12434_v9  ;;  %18718 = vmatpush3.bf16.msra.mxu1 %v19464_v28  ;;  %v19504_v9 = vld [vmem:[%s26262_s8 + $0xda8] sm:$0xff]  }
 0x94a   : > { %12296 = vmatprep.mubr.bf16.mxu1 %v12027_v32  ;;  %18784 = vmatpush3.bf16.msra.mxu0 %v19465_v43  ;;  %v18492_v24 = vpop.f32.mrf.mxu0  ;;  %v19506_v32 = vld [vmem:[%s26262_s8 + $0xde0] sm:$0xff]  }
 0x94b   : > { %13076 = vmatprep.mubr.bf16.mxu0 %v12845_v2  ;;  %18719 = vmatprep.subr.bf16.mxu1 %v19466_v54  ;;  %v25152_v39 = vadd.f32 %v18492_v24, %v18491_v7  ;;  %v19505_v54 = vld [vmem:[%s26262_s8 + $0x28] sm:$0xff]   ;;  %v19507_v7 = vld [vmem:[%s26262_s8 + $0x60] sm:$0xff]   ;;  %v19512_v24 = vld [vmem:[%s26262_s8 + $0xd98] sm:$0xff]  }
 0x94c   : > { %18785 = vmatprep.subr.bf16.mxu0 %v19467_v50  ;;  %v18494_v11 = vpop.f32.mrf.mxu0  ;;  %v19508_v2 = vld [vmem:[%s26262_s8 + $0xda0] sm:$0xff]  }
 0x94d   : > { %18720 = vmatpush3.bf16.msra.mxu1 %v19468_v31  ;;  %v19509_v31 = vld [vmem:[%s26262_s8 + $0x20] sm:$0xff]   ;;  %v19514_v11 = vld [vmem:[%s26262_s8 + $0xdd0] sm:$0xff]  }
 0x94e   : > { %18786 = vmatpush3.bf16.msra.mxu0 %v19469_v36  ;;  %18721 = vmatprep.subr.bf16.mxu1 %v19470_v10  ;;  %v18495_v55 = vpop.f32.mrf.mxu0  ;;  %v19510_v36 = vld [vmem:[%s26262_s8 + $0xdd8] sm:$0xff]  }
 0x94f   : > { %18787 = vmatprep.subr.bf16.mxu0 %v19471_v5  ;;  %v19511_v10 = vld [vmem:[%s26262_s8 + $0x58] sm:$0xff]   ;;  %v19518_v55 = vld [vmem:[%s26262_s8 + $0xdc8] sm:$0xff]  }
 0x950   : > { %v19513_v5 = vld [vmem:[%s26262_s8 + $0x18] sm:$0xff]  }
 0x951   : > { %18722 = vmatpush3.bf16.msra.mxu1 %v19472_v14  ;;  %v19515_v14 = vld [vmem:[%s26262_s8 + $0x50] sm:$0xff]  }
 0x952   : > { %18788 = vmatpush3.bf16.msra.mxu0 %v19473_v58  ;;  %18723 = vmatprep.subr.bf16.mxu1 %v19474_v45  ;;  %v19516_v58 = vld [vmem:[%s26262_s8 + $0xd90] sm:$0xff]  }
 0x953   : > { %18789 = vmatprep.subr.bf16.mxu0 %v19475_v44  ;;  %v19517_v45 = vld [vmem:[%s26262_s8 + $0x10] sm:$0xff]   ;;  %v19519_v44 = vld [vmem:[%s26262_s8 + $0x48] sm:$0xff]  }
 0x955   : > { %18724 = vmatpush3.bf16.msra.mxu1 %v19476_v8  ;;  %v19520_v8 = vld [vmem:[%s26262_s8 + $0xd88] sm:$0xff]  }
 0x956   : > { %18790 = vmatpush3.bf16.msra.mxu0 %v19477_v15  ;;  %18725 = vmatprep.subr.bf16.mxu1 %v19478_v47  ;;  %v19521_v15 = vld [vmem:[%s26262_s8 + $0x8] sm:$0xff]   ;;  %v19522_v47 = vld [vmem:[%s26262_s8 + $0xdc0] sm:$0xff]  }
 0x957   : > { %18791 = vmatprep.subr.bf16.mxu0 %v19479_v4  ;;  %v19523_v4 = vld [vmem:[%s26262_s8 + $0x40] sm:$0xff]  }
 0x959   : > { %18726 = vmatpush3.bf16.msra.mxu1 %v19480_v63  ;;  %v19524_v63 = vld [vmem:[%s26262_s8 + $0xd80] sm:$0xff]  }
 0x95a   : > { %18792 = vmatpush3.bf16.msra.mxu0 %v19481_v0  ;;  %18727 = vmatprep.subr.bf16.mxu1 %v19482_v48  ;;  %v19525_v0 = vld [vmem:[%s26262_s8] sm:$0xff]   ;;  %v19526_v48 = vld [vmem:[%s26262_s8 + $0xff8] sm:$0xff]  }
 0x95b   : > { %18793 = vmatprep.subr.bf16.mxu0 %v19483_v13  ;;  %v19527_v13 = vld [vmem:[%s26262_s8 + $0x278] sm:$0xff]  }
 0x95d   : > { %18728 = vmatpush3.bf16.msra.mxu1 %v19484_v61  ;;  %v19528_v61 = vld [vmem:[%s26262_s8 + $0xfb8] sm:$0xff]  }
 0x95e   : > { %18794 = vmatpush3.bf16.msra.mxu0 %v19485_v38  ;;  %18729 = vmatprep.subr.bf16.mxu1 %v19486_v21  ;;  %v12436_v38 = vrot.slane %v25125_v60, 2  ;;  %v19529_v21 = vld [vmem:[%s26262_s8 + $0x238] sm:$0xff]  }
 0x95f   : > { %18795 = vmatprep.subr.bf16.mxu0 %v19487_v53  ;;  %v19530_v53 = vld [vmem:[%s26262_s8 + $0xff0] sm:$0xff]  }
 0x961   : > { %18730 = vmatpush3.bf16.msra.mxu1 %v19488_v18 }
 0x962   : > { %18796 = vmatpush3.bf16.msra.mxu0 %v19489_v20  ;;  %18731 = vmatprep.subr.bf16.mxu1 %v19490_v17  ;;  %v12847_v17 = vrot.slane %v25026_v51, 3  ;;  %v19533_v51 = vld [vmem:[%s26262_s8 + $0x230] sm:$0xff]  }
 0x963   : > { %18797 = vmatprep.subr.bf16.mxu0 %v19491_v40  ;;  %v19531_v40 = vld [vmem:[%s26262_s8 + $0x270] sm:$0xff]  }
 0x965   : > { %18732 = vmatpush3.bf16.msra.mxu1 %v19492_v41  ;;  %v13401_v41 = vrot.slane %v24570_v6, 1 }
 0x966   : > { %18798 = vmatpush3.bf16.msra.mxu0 %v19493_v57  ;;  %18761 = vmatprep.subr.bf16.mxu1 %v19494_v59  ;;  %v19532_v57 = vld [vmem:[%s26262_s8 + $0xfb0] sm:$0xff]  }
 0x967   : > { %18827 = vmatprep.subr.bf16.mxu0 %v19495_v19 }
 0x968   : > { %12297 = vmatmul.mubr.bf16.vlgmr.msra.gmra.mxu1 %v12026_v33  ;;  %v18535_v23 = vpop.f32.mrf.mxu0 }
 0x969   : > { %13077 = vmatmul.mubr.bf16.vlgmr.msra.gmra.mxu0 %v12844_v42  ;;  %18762 = vmatpush3.bf16.msra.mxu1 %v19496_v37  ;;  %v19534_v37 = vld [vmem:[%s26262_s8 + $0xfe8] sm:$0xff]  }
 0x96a   : > { %12706 = vmatprep.mubr.bf16.mxu1 %v12437_v52  ;;  %18828 = vmatpush3.bf16.msra.mxu0 %v19497_v62  ;;  %v18536_v49 = vpop.f32.mrf.mxu0  ;;  %v19535_v42 = vld [vmem:[%s26262_s8 + $0x268] sm:$0xff]  }
 0x96b   : > { %13348 = vmatprep.mubr.bf16.mxu0 %v24570_v6  ;;  %18763 = vmatprep.subr.bf16.mxu1 %v19498_v1  ;;  %v25254_v28 = vadd.f32 %v18536_v49, %v18535_v23  ;;  %v19536_v23 = vld [vmem:[%s26262_s8 + $0xfa8] sm:$0xff]   ;;  %v19538_v49 = vld [vmem:[%s26262_s8 + $0xfe0] sm:$0xff]  }
 0x96c   : > { %18829 = vmatprep.subr.bf16.mxu0 %v19499_v46  ;;  %v18538_v43 = vpop.f32.mrf.mxu0 }
 0x96d   : > { %18764 = vmatpush3.bf16.msra.mxu1 %v19500_v30  ;;  %v19541_v43 = vld [vmem:[%s26262_s8 + $0x220] sm:$0xff]  }
 0x96e   : > { %18830 = vmatpush3.bf16.msra.mxu0 %v19501_v56  ;;  %18765 = vmatprep.subr.bf16.mxu1 %v19502_v29  ;;  %v18539_v50 = vpop.f32.mrf.mxu0  ;;  %v19537_v29 = vld [vmem:[%s26262_s8 + $0x228] sm:$0xff]  }
 0x96f   : > { %18831 = vmatprep.subr.bf16.mxu0 %v19503_v12  ;;  %v19540_v12 = vld [vmem:[%s26262_s8 + $0xfa0] sm:$0xff]   ;;  %v19545_v50 = vld [vmem:[%s26262_s8 + $0x218] sm:$0xff]  }
 0x971   : > { %18766 = vmatpush3.bf16.msra.mxu1 %v19504_v9  ;;  %v19542_v9 = vld [vmem:[%s26262_s8 + $0xfd8] sm:$0xff]  }
 0x972   : > { %18832 = vmatpush3.bf16.msra.mxu0 %v19505_v54  ;;  %18767 = vmatprep.subr.bf16.mxu1 %v19506_v32  ;;  %v19543_v54 = vld [vmem:[%s26262_s8 + $0x258] sm:$0xff]  }
 0x973   : > { %18833 = vmatprep.subr.bf16.mxu0 %v19507_v7  ;;  %v19544_v32 = vld [vmem:[%s26262_s8 + $0xf98] sm:$0xff]   ;;  %v19546_v7 = vld [vmem:[%s26262_s8 + $0xfd0] sm:$0xff]  }
 0x975   : > { %18768 = vmatpush3.bf16.msra.mxu1 %v19508_v2  ;;  %v19547_v2 = vld [vmem:[%s26262_s8 + $0x250] sm:$0xff]  }
 0x976   : > { %18834 = vmatpush3.bf16.msra.mxu0 %v19509_v31  ;;  %18769 = vmatprep.subr.bf16.mxu1 %v19510_v36  ;;  %v19548_v31 = vld [vmem:[%s26262_s8 + $0xf90] sm:$0xff]  }
 0x977   : > { %18835 = vmatprep.subr.bf16.mxu0 %v19511_v10  ;;  %v19549_v36 = vld [vmem:[%s26262_s8 + $0x210] sm:$0xff]   ;;  %v19550_v10 = vld [vmem:[%s26262_s8 + $0xfc8] sm:$0xff]  }
 0x979   : > { %18770 = vmatpush3.bf16.msra.mxu1 %v19512_v24  ;;  %v19551_v24 = vld [vmem:[%s26262_s8 + $0x248] sm:$0xff]  }
 0x97a   : > { %18836 = vmatpush3.bf16.msra.mxu0 %v19513_v5  ;;  %18771 = vmatprep.subr.bf16.mxu1 %v19514_v11  ;;  %v19552_v5 = vld [vmem:[%s26262_s8 + $0xf88] sm:$0xff]  }
 0x97b   : > { %18837 = vmatprep.subr.bf16.mxu0 %v19515_v14  ;;  %v19553_v11 = vld [vmem:[%s26262_s8 + $0x208] sm:$0xff]   ;;  %v19554_v14 = vld [vmem:[%s26262_s8 + $0xfc0] sm:$0xff]  }
 0x97d   : > { %18772 = vmatpush3.bf16.msra.mxu1 %v19516_v58  ;;  %v19555_v58 = vld [vmem:[%s26262_s8 + $0x240] sm:$0xff]  }
 0x97e   : > { %18838 = vmatpush3.bf16.msra.mxu0 %v19517_v45  ;;  %18773 = vmatprep.subr.bf16.mxu1 %v19518_v55  ;;  %v19556_v45 = vld [vmem:[%s26262_s8 + $0xf80] sm:$0xff]  }
 0x97f   : > { %18839 = vmatprep.subr.bf16.mxu0 %v19519_v44  ;;  %v19557_v55 = vld [vmem:[%s26262_s8 + $0x200] sm:$0xff]   ;;  %v19558_v44 = vld [vmem:[%s26262_s8 + $0xf8] sm:$0xff]  }
 0x981   : > { %18774 = vmatpush3.bf16.msra.mxu1 %v19520_v8  ;;  %v19559_v8 = vld [vmem:[%s26262_s8 + $0x478] sm:$0xff]  }
 0x982   : > { %18840 = vmatpush3.bf16.msra.mxu0 %v19521_v15  ;;  %18775 = vmatprep.subr.bf16.mxu1 %v19522_v47  ;;  %v19560_v15 = vld [vmem:[%s26262_s8 + $0xb8] sm:$0xff]   ;;  %v12846_v47 = vrot.slane %v25125_v60, 3  ;;  %v13681_v60 = vrot.slane %v24570_v6, 2 }
 0x983   : > { %18841 = vmatprep.subr.bf16.mxu0 %v19523_v4  ;;  %v19561_v4 = vld [vmem:[%s26262_s8 + $0x438] sm:$0xff]  }
 0x985   : > { %18776 = vmatpush3.bf16.msra.mxu1 %v19524_v63  ;;  %v13400_v63 = vrot.slane %v24568_v16, 1 }
 0x986   : > { %18842 = vmatpush3.bf16.msra.mxu0 %v19525_v0  ;;  %18805 = vmatprep.subr.bf16.mxu1 %v19526_v48  ;;  %v19562_v0 = vld [vmem:[%s26262_s8 + $0xf0] sm:$0xff]  }
 0x987   : > { %18871 = vmatprep.subr.bf16.mxu0 %v19527_v13 }
 0x988   : > { %12707 = vmatmul.mubr.bf16.vlgmr.msra.gmra.mxu1 %v12436_v38  ;;  %v18513_v18 = vpop.f32.mrf.mxu1  ;;  %v18579_v20 = vpop.f32.mrf.mxu0  ;;  %v19564_v38 = vld [vmem:[%s26262_s8 + $0xb0] sm:$0xff]  }
 0x989   : > { %13349 = vmatmul.mubr.bf16.vlgmr.msra.gmra.mxu0 %v24568_v16  ;;  %18806 = vmatpush3.bf16.msra.mxu1 %v19528_v61  ;;  %v19563_v61 = vld [vmem:[%s26262_s8 + $0x470] sm:$0xff]  }
 0x98a   : > { %13116 = vmatprep.mubr.bf16.mxu1 %v12847_v17  ;;  %18872 = vmatpush3.bf16.msra.mxu0 %v19529_v21  ;;  %v18514_v59 = vpop.f32.mrf.mxu1  ;;  %v18580_v19 = vpop.f32.mrf.mxu0 }
 0x98b   : > { %13632 = vmatprep.mubr.bf16.mxu0 %v13401_v41  ;;  %v18515_v33 = vadd.f32 %v18514_v59, %v18513_v18  ;;  %v25353_v62 = vadd.f32 %v18580_v19, %v18579_v20  ;;  %18807 = vmatprep.subr.bf16.mxu1 %v19530_v53  ;;  %v19565_v18 = vld [vmem:[%s26262_s8 + $0x430] sm:$0xff]   ;;  %v19566_v20 = vld [vmem:[%s26262_s8 + $0xe8] sm:$0xff]  }
 0x98c   : > { %18873 = vmatprep.subr.bf16.mxu0 %v19531_v40  ;;  %v18516_v1 = vpop.f32.mrf.mxu1  ;;  %v18582_v52 = vpop.f32.mrf.mxu0  ;;  %v19567_v41 = vld [vmem:[%s26262_s8 + $0x468] sm:$0xff]  }
 0x98d   : > { %v25359_v46 = vadd.f32 %v18515_v33, %v25152_v39  ;;  %18808 = vmatpush3.bf16.msra.mxu1 %v19532_v57  ;;  %v19539_v39 = vld [vmem:[%s26262_s8 + $0x260] sm:$0xff]  }
 0x98e   : > { %18874 = vmatpush3.bf16.msra.mxu0 %v19533_v51  ;;  %v18517_v30 = vpop.f32.mrf.mxu1  ;;  %v18583_v56 = vpop.f32.mrf.mxu0  ;;  %18809 = vmatprep.subr.bf16.mxu1 %v19534_v37  ;;  %v19568_v51 = vld [vmem:[%s26262_s8 + $0xa8] sm:$0xff]   ;;  %v19570_v1 = vld [vmem:[%s26262_s8 + $0xe0] sm:$0xff]  }
 0x98f   : > { %18875 = vmatprep.subr.bf16.mxu0 %v19535_v42  ;;  %v19569_v42 = vld [vmem:[%s26262_s8 + $0x428] sm:$0xff]   ;;  %v19572_v52 = vld [vmem:[%s26262_s8 + $0xa0] sm:$0xff]   ;;  %v19574_v30 = vld [vmem:[%s26262_s8 + $0xd8] sm:$0xff]  }
 0x990   : > { %v19575_v56 = vld [vmem:[%s26262_s8 + $0x458] sm:$0xff]  }
 0x991   : > { %18810 = vmatpush3.bf16.msra.mxu1 %v19536_v23  ;;  %v19573_v23 = vld [vmem:[%s26262_s8 + $0x420] sm:$0xff]  }
 0x992   : > { %18876 = vmatpush3.bf16.msra.mxu0 %v19537_v29  ;;  %18811 = vmatprep.subr.bf16.mxu1 %v19538_v49  ;;  %v19576_v29 = vld [vmem:[%s26262_s8 + $0x98] sm:$0xff]  }
 0x993   : > { %18877 = vmatprep.subr.bf16.mxu0 %v19539_v39  ;;  %v19577_v49 = vld [vmem:[%s26262_s8 + $0x418] sm:$0xff]   ;;  %v19578_v39 = vld [vmem:[%s26262_s8 + $0xd0] sm:$0xff]  }
 0x995   : > { %18812 = vmatpush3.bf16.msra.mxu1 %v19540_v12  ;;  %v19579_v12 = vld [vmem:[%s26262_s8 + $0x450] sm:$0xff]  }
 0x996   : > { %18878 = vmatpush3.bf16.msra.mxu0 %v19541_v43  ;;  %18813 = vmatprep.subr.bf16.mxu1 %v19542_v9  ;;  %v19580_v43 = vld [vmem:[%s26262_s8 + $0x90] sm:$0xff]  }
 0x997   : > { %18879 = vmatprep.subr.bf16.mxu0 %v19543_v54  ;;  %v19581_v9 = vld [vmem:[%s26262_s8 + $0x410] sm:$0xff]   ;;  %v19582_v54 = vld [vmem:[%s26262_s8 + $0xc8] sm:$0xff]  }
 0x999   : > { %18814 = vmatpush3.bf16.msra.mxu1 %v19544_v32  ;;  %v19583_v32 = vld [vmem:[%s26262_s8 + $0x448] sm:$0xff]  }
 0x99a   : > { %18880 = vmatpush3.bf16.msra.mxu0 %v19545_v50  ;;  %18815 = vmatprep.subr.bf16.mxu1 %v19546_v7  ;;  %v19584_v50 = vld [vmem:[%s26262_s8 + $0x88] sm:$0xff]  }
 0x99b   : > { %18881 = vmatprep.subr.bf16.mxu0 %v19547_v2  ;;  %v19585_v7 = vld [vmem:[%s26262_s8 + $0x408] sm:$0xff]   ;;  %v19586_v2 = vld [vmem:[%s26262_s8 + $0xc0] sm:$0xff]  }
 0x99d   : > { %18816 = vmatpush3.bf16.msra.mxu1 %v19548_v31  ;;  %v19587_v31 = vld [vmem:[%s26262_s8 + $0x440] sm:$0xff]  }
 0x99e   : > { %18882 = vmatpush3.bf16.msra.mxu0 %v19549_v36  ;;  %18817 = vmatprep.subr.bf16.mxu1 %v19550_v10  ;;  %v19588_v36 = vld [vmem:[%s26262_s8 + $0x80] sm:$0xff]  }
 0x99f   : > { %18883 = vmatprep.subr.bf16.mxu0 %v19551_v24  ;;  %v19589_v10 = vld [vmem:[%s26262_s8 + $0x400] sm:$0xff]   ;;  %v19590_v24 = vld [vmem:[%s26262_s8 + $0x2f8] sm:$0xff]  }
 0x9a1   : > { %18818 = vmatpush3.bf16.msra.mxu1 %v19552_v5  ;;  %v19591_v5 = vld [vmem:[%s26262_s8 + $0x678] sm:$0xff]  }
 0x9a2   : > { %18884 = vmatpush3.bf16.msra.mxu0 %v19553_v11  ;;  %18819 = vmatprep.subr.bf16.mxu1 %v19554_v14  ;;  %v19592_v11 = vld [vmem:[%s26262_s8 + $0x2b8] sm:$0xff]  }
 0x9a3   : > { %18885 = vmatprep.subr.bf16.mxu0 %v19555_v58  ;;  %v19593_v14 = vld [vmem:[%s26262_s8 + $0x638] sm:$0xff]   ;;  %v13680_v58 = vrot.slane %v24568_v16, 2 }
 0x9a5   : > { %18820 = vmatpush3.bf16.msra.mxu1 %v19556_v45  ;;  %v19594_v45 = vld [vmem:[%s26262_s8 + $0x2f0] sm:$0xff]  }
 0x9a6   : > { %18886 = vmatpush3.bf16.msra.mxu0 %v19557_v55  ;;  %18849 = vmatprep.subr.bf16.mxu1 %v19558_v44  ;;  %v13403_v44 = vrot.slane %v24685_v22, 1 }
 0x9a7   : > { %18915 = vmatprep.subr.bf16.mxu0 %v19559_v8  ;;  %v19595_v8 = vld [vmem:[%s26262_s8 + $0x670] sm:$0xff]  }
 0x9a8   : > { %v18557_v48 = vpop.f32.mrf.mxu1  ;;  %v18623_v13 = vpop.f32.mrf.mxu0  ;;  %13117 = vmatmul.mubr.bf16.vlgmr.msra.gmra.mxu1 %v12846_v47  ;;  %v13961_v47 = vrot.slane %v24570_v6, 3  ;;  %v19599_v6 = vld [vmem:[%s26262_s8 + $0x668] sm:$0xff]  }
 0x9a9   : > { %13633 = vmatmul.mubr.bf16.vlgmr.msra.gmra.mxu0 %v13400_v63  ;;  %18850 = vmatpush3.bf16.msra.mxu1 %v19560_v15 }
 0x9aa   : > { %13388 = vmatprep.mubr.bf16.mxu1 %v24685_v22  ;;  %18916 = vmatpush3.bf16.msra.mxu0 %v19561_v4  ;;  %v18558_v21 = vpop.f32.mrf.mxu1  ;;  %v18624_v53 = vpop.f32.mrf.mxu0  ;;  %v19596_v4 = vld [vmem:[%s26262_s8 + $0x2b0] sm:$0xff]  }
 0x9ab   : > { %13912 = vmatprep.mubr.bf16.mxu0 %v13681_v60  ;;  %v18559_v17 = vadd.f32 %v18558_v21, %v18557_v48  ;;  %v25458_v40 = vadd.f32 %v18624_v53, %v18623_v13  ;;  %18851 = vmatprep.subr.bf16.mxu1 %v19562_v0  ;;  %v19597_v0 = vld [vmem:[%s26262_s8 + $0x630] sm:$0xff]   ;;  %v19598_v48 = vld [vmem:[%s26262_s8 + $0x2e8] sm:$0xff]  }
 0x9ac   : > { %v18560_v57 = vpop.f32.mrf.mxu1  ;;  %v18626_v59 = vpop.f32.mrf.mxu0  ;;  %18917 = vmatprep.subr.bf16.mxu0 %v19563_v61 }
 0x9ad   : > { %v25464_v19 = vadd.f32 %v18559_v17, %v25254_v28  ;;  %18852 = vmatpush3.bf16.msra.mxu1 %v19564_v38  ;;  %v19571_v28 = vld [vmem:[%s26262_s8 + $0x460] sm:$0xff]   ;;  %v19601_v17 = vld [vmem:[%s26262_s8 + $0x628] sm:$0xff]  }
 0x9ae   : > { %18918 = vmatpush3.bf16.msra.mxu0 %v19565_v18  ;;  %v18561_v37 = vpop.f32.mrf.mxu1  ;;  %v18627_v33 = vpop.f32.mrf.mxu0  ;;  %18853 = vmatprep.subr.bf16.mxu1 %v19566_v20  ;;  %v19600_v18 = vld [vmem:[%s26262_s8 + $0x2a8] sm:$0xff]   ;;  %v19604_v59 = vld [vmem:[%s26262_s8 + $0x2a0] sm:$0xff]  }
 0x9af   : > { %18919 = vmatprep.subr.bf16.mxu0 %v19567_v41  ;;  %v19602_v41 = vld [vmem:[%s26262_s8 + $0x2e0] sm:$0xff]   ;;  %v19606_v37 = vld [vmem:[%s26262_s8 + $0x2d8] sm:$0xff]  }
 0x9b0   : > { %v19607_v33 = vld [vmem:[%s26262_s8 + $0x658] sm:$0xff]  }
 0x9b1   : > { %18854 = vmatpush3.bf16.msra.mxu1 %v19568_v51  ;;  %v19605_v51 = vld [vmem:[%s26262_s8 + $0x620] sm:$0xff]  }
 0x9b2   : > { %18920 = vmatpush3.bf16.msra.mxu0 %v19569_v42  ;;  %18855 = vmatprep.subr.bf16.mxu1 %v19570_v1  ;;  %v19608_v42 = vld [vmem:[%s26262_s8 + $0x298] sm:$0xff]  }
 0x9b3   : > { %18921 = vmatprep.subr.bf16.mxu0 %v19571_v28  ;;  %v19609_v1 = vld [vmem:[%s26262_s8 + $0x618] sm:$0xff]   ;;  %v19610_v28 = vld [vmem:[%s26262_s8 + $0x2d0] sm:$0xff]  }
 0x9b5   : > { %18856 = vmatpush3.bf16.msra.mxu1 %v19572_v52  ;;  %v19611_v52 = vld [vmem:[%s26262_s8 + $0x650] sm:$0xff]  }
 0x9b6   : > { %18922 = vmatpush3.bf16.msra.mxu0 %v19573_v23  ;;  %18857 = vmatprep.subr.bf16.mxu1 %v19574_v30  ;;  %v19612_v23 = vld [vmem:[%s26262_s8 + $0x290] sm:$0xff]  }
 0x9b7   : > { %18923 = vmatprep.subr.bf16.mxu0 %v19575_v56  ;;  %v19613_v30 = vld [vmem:[%s26262_s8 + $0x610] sm:$0xff]   ;;  %v19614_v56 = vld [vmem:[%s26262_s8 + $0x2c8] sm:$0xff]  }
 0x9b9   : > { %18858 = vmatpush3.bf16.msra.mxu1 %v19576_v29  ;;  %v19615_v29 = vld [vmem:[%s26262_s8 + $0x648] sm:$0xff]  }
 0x9ba   : > { %18924 = vmatpush3.bf16.msra.mxu0 %v19577_v49  ;;  %18859 = vmatprep.subr.bf16.mxu1 %v19578_v39  ;;  %v19616_v49 = vld [vmem:[%s26262_s8 + $0x288] sm:$0xff]  }
 0x9bb   : > { %18925 = vmatprep.subr.bf16.mxu0 %v19579_v12  ;;  %v19617_v39 = vld [vmem:[%s26262_s8 + $0x608] sm:$0xff]   ;;  %v19618_v12 = vld [vmem:[%s26262_s8 + $0x2c0] sm:$0xff]  }
 0x9bd   : > { %18860 = vmatpush3.bf16.msra.mxu1 %v19580_v43  ;;  %v19619_v43 = vld [vmem:[%s26262_s8 + $0x640] sm:$0xff]  }
 0x9be   : > { %18926 = vmatpush3.bf16.msra.mxu0 %v19581_v9  ;;  %18861 = vmatprep.subr.bf16.mxu1 %v19582_v54  ;;  %v19620_v9 = vld [vmem:[%s26262_s8 + $0x280] sm:$0xff]  }
 0x9bf   : > { %18927 = vmatprep.subr.bf16.mxu0 %v19583_v32  ;;  %v19621_v54 = vld [vmem:[%s26262_s8 + $0x600] sm:$0xff]   ;;  %v19622_v32 = vld [vmem:[%s26262_s8 + $0x4f8] sm:$0xff]  }
 0x9c1   : > { %18862 = vmatpush3.bf16.msra.mxu1 %v19584_v50  ;;  %v19623_v50 = vld [vmem:[%s26262_s8 + $0x878] sm:$0xff]  }
 0x9c2   : > { %18928 = vmatpush3.bf16.msra.mxu0 %v19585_v7  ;;  %18863 = vmatprep.subr.bf16.mxu1 %v19586_v2  ;;  %v19624_v7 = vld [vmem:[%s26262_s8 + $0x4b8] sm:$0xff]   ;;  %v13402_v2 = vrot.slane %v24680_v34, 1 }
 0x9c3   : > { %18929 = vmatprep.subr.bf16.mxu0 %v19587_v31  ;;  %v19625_v31 = vld [vmem:[%s26262_s8 + $0x838] sm:$0xff]  }
 0x9c5   : > { %18864 = vmatpush3.bf16.msra.mxu1 %v19588_v36  ;;  %v13960_v36 = vrot.slane %v24568_v16, 3  ;;  %v19628_v16 = vld [vmem:[%s26262_s8 + $0x4b0] sm:$0xff]  }
 0x9c6   : > { %18930 = vmatpush3.bf16.msra.mxu0 %v19589_v10  ;;  %18893 = vmatprep.subr.bf16.mxu1 %v19590_v24  ;;  %v19626_v10 = vld [vmem:[%s26262_s8 + $0x4f0] sm:$0xff]  }
 0x9c7   : > { %18959 = vmatprep.subr.bf16.mxu0 %v19591_v5  ;;  %v13683_v5 = vrot.slane %v24685_v22, 2 }
 0x9c8   : > { %v18601_v55 = vpop.f32.mrf.mxu1  ;;  %13389 = vmatmul.mubr.bf16.vlgmr.msra.gmra.mxu1 %v24680_v34 }
 0x9c9   : > { %v18667_v15 = vpop.f32.mrf.mxu0  ;;  %13913 = vmatmul.mubr.bf16.vlgmr.msra.gmra.mxu0 %v13680_v58  ;;  %18894 = vmatpush3.bf16.msra.mxu1 %v19592_v11  ;;  %v19627_v11 = vld [vmem:[%s26262_s8 + $0x870] sm:$0xff]  }
 0x9ca   : > { %13672 = vmatprep.mubr.bf16.mxu1 %v13403_v44  ;;  %18960 = vmatpush3.bf16.msra.mxu0 %v19593_v14  ;;  %v18602_v63 = vpop.f32.mrf.mxu1 }
 0x9cb   : > { %14192 = vmatprep.mubr.bf16.mxu0 %v13961_v47  ;;  %v18603_v13 = vadd.f32 %v18602_v63, %v18601_v55  ;;  %v18668_v61 = vpop.f32.mrf.mxu0  ;;  %18895 = vmatprep.subr.bf16.mxu1 %v19594_v45  ;;  %v19629_v45 = vld [vmem:[%s26262_s8 + $0x830] sm:$0xff]   ;;  %v19630_v55 = vld [vmem:[%s26262_s8 + $0x4e8] sm:$0xff]  }
 0x9cc   : > { %v25566_v60 = vadd.f32 %v18668_v61, %v18667_v15  ;;  %v18604_v38 = vpop.f32.mrf.mxu1  ;;  %18961 = vmatprep.subr.bf16.mxu0 %v19595_v8  ;;  %v19631_v15 = vld [vmem:[%s26262_s8 + $0x868] sm:$0xff]  }
 0x9cd   : > { %v25569_v21 = vadd.f32 %v18603_v13, %v25353_v62  ;;  %v18670_v53 = vpop.f32.mrf.mxu0  ;;  %18896 = vmatpush3.bf16.msra.mxu1 %v19596_v4  ;;  %v19603_v62 = vld [vmem:[%s26262_s8 + $0x660] sm:$0xff]   ;;  %v19633_v61 = vld [vmem:[%s26262_s8 + $0x828] sm:$0xff]  }
 0x9ce   : > { %18962 = vmatpush3.bf16.msra.mxu0 %v19597_v0  ;;  %v18605_v20 = vpop.f32.mrf.mxu1  ;;  %18897 = vmatprep.subr.bf16.mxu1 %v19598_v48  ;;  %v19632_v48 = vld [vmem:[%s26262_s8 + $0x4a8] sm:$0xff]   ;;  %v19636_v53 = vld [vmem:[%s26262_s8 + $0x4a0] sm:$0xff]  }
 0x9cf   : > { %v18671_v57 = vpop.f32.mrf.mxu0  ;;  %18963 = vmatprep.subr.bf16.mxu0 %v19599_v6  ;;  %v19634_v6 = vld [vmem:[%s26262_s8 + $0x4e0] sm:$0xff]   ;;  %v19638_v20 = vld [vmem:[%s26262_s8 + $0x4d8] sm:$0xff]  }
 0x9d0   : > { %v19641_v57 = vld [vmem:[%s26262_s8 + $0x818] sm:$0xff]  }
 0x9d1   : > { %18898 = vmatpush3.bf16.msra.mxu1 %v19600_v18  ;;  %v19637_v18 = vld [vmem:[%s26262_s8 + $0x820] sm:$0xff]  }
 0x9d2   : > { %18964 = vmatpush3.bf16.msra.mxu0 %v19601_v17  ;;  %18899 = vmatprep.subr.bf16.mxu1 %v19602_v41  ;;  %v19639_v17 = vld [vmem:[%s26262_s8 + $0x858] sm:$0xff]  }
 0x9d3   : > { %18965 = vmatprep.subr.bf16.mxu0 %v19603_v62  ;;  %v19640_v41 = vld [vmem:[%s26262_s8 + $0x498] sm:$0xff]   ;;  %v19642_v62 = vld [vmem:[%s26262_s8 + $0x4d0] sm:$0xff]  }
 0x9d5   : > { %18900 = vmatpush3.bf16.msra.mxu1 %v19604_v59  ;;  %v19643_v59 = vld [vmem:[%s26262_s8 + $0x850] sm:$0xff]  }
 0x9d6   : > { %18966 = vmatpush3.bf16.msra.mxu0 %v19605_v51  ;;  %18901 = vmatprep.subr.bf16.mxu1 %v19606_v37  ;;  %v19644_v51 = vld [vmem:[%s26262_s8 + $0x490] sm:$0xff]  }
 0x9d7   : > { %18967 = vmatprep.subr.bf16.mxu0 %v19607_v33  ;;  %v19645_v37 = vld [vmem:[%s26262_s8 + $0x810] sm:$0xff]   ;;  %v19646_v33 = vld [vmem:[%s26262_s8 + $0x4c8] sm:$0xff]  }
 0x9d9   : > { %18902 = vmatpush3.bf16.msra.mxu1 %v19608_v42  ;;  %v19647_v42 = vld [vmem:[%s26262_s8 + $0x848] sm:$0xff]  }
 0x9da   : > { %18968 = vmatpush3.bf16.msra.mxu0 %v19609_v1  ;;  %18903 = vmatprep.subr.bf16.mxu1 %v19610_v28  ;;  %v19648_v1 = vld [vmem:[%s26262_s8 + $0x488] sm:$0xff]  }
 0x9db   : > { %18969 = vmatprep.subr.bf16.mxu0 %v19611_v52  ;;  %v19649_v28 = vld [vmem:[%s26262_s8 + $0x808] sm:$0xff]   ;;  %v19650_v52 = vld [vmem:[%s26262_s8 + $0x4c0] sm:$0xff]  }
 0x9dd   : > { %18904 = vmatpush3.bf16.msra.mxu1 %v19612_v23  ;;  %v19651_v23 = vld [vmem:[%s26262_s8 + $0x840] sm:$0xff]  }
 0x9de   : > { %18970 = vmatpush3.bf16.msra.mxu0 %v19613_v30  ;;  %18905 = vmatprep.subr.bf16.mxu1 %v19614_v56  ;;  %v19652_v30 = vld [vmem:[%s26262_s8 + $0x480] sm:$0xff]  }
 0x9df   : > { %18971 = vmatprep.subr.bf16.mxu0 %v19615_v29  ;;  %v19653_v56 = vld [vmem:[%s26262_s8 + $0x800] sm:$0xff]   ;;  %v19654_v29 = vld [vmem:[%s26262_s8 + $0x6f8] sm:$0xff]  }
 0x9e1   : > { %18906 = vmatpush3.bf16.msra.mxu1 %v19616_v49  ;;  %v19655_v49 = vld [vmem:[%s26262_s8 + $0xa78] sm:$0xff]  }
 0x9e2   : > { %18972 = vmatpush3.bf16.msra.mxu0 %v19617_v39  ;;  %18907 = vmatprep.subr.bf16.mxu1 %v19618_v12  ;;  %v19656_v39 = vld [vmem:[%s26262_s8 + $0x6b8] sm:$0xff]   ;;  %v13682_v12 = vrot.slane %v24680_v34, 2 }
 0x9e3   : > { %18973 = vmatprep.subr.bf16.mxu0 %v19619_v43  ;;  %v19657_v43 = vld [vmem:[%s26262_s8 + $0xa38] sm:$0xff]  }
 0x9e5   : > { %18908 = vmatpush3.bf16.msra.mxu1 %v19620_v9  ;;  %v19658_v9 = vld [vmem:[%s26262_s8 + $0x6f0] sm:$0xff]  }
 0x9e6   : > { %18974 = vmatpush3.bf16.msra.mxu0 %v19621_v54  ;;  %18937 = vmatprep.subr.bf16.mxu1 %v19622_v32  ;;  %v13963_v32 = vrot.slane %v24685_v22, 3  ;;  %v19661_v22 = vld [vmem:[%s26262_s8 + $0xa30] sm:$0xff]  }
 0x9e7   : > { %19003 = vmatprep.subr.bf16.mxu0 %v19623_v50  ;;  %v19659_v50 = vld [vmem:[%s26262_s8 + $0xa70] sm:$0xff]  }
 0x9e8   : > { %v18645_v24 = vpop.f32.mrf.mxu1  ;;  %13673 = vmatmul.mubr.bf16.vlgmr.msra.gmra.mxu1 %v13402_v2  ;;  %v14517_v2 = vrot.slane %v24797_v27, 1 }
 0x9e9   : > { %v18711_v14 = vpop.f32.mrf.mxu0  ;;  %14193 = vmatmul.mubr.bf16.vlgmr.msra.gmra.mxu0 %v13960_v36  ;;  %18938 = vmatpush3.bf16.msra.mxu1 %v19624_v7 }
 0x9ea   : > { %13952 = vmatprep.mubr.bf16.mxu1 %v13683_v5  ;;  %19004 = vmatpush3.bf16.msra.mxu0 %v19625_v31  ;;  %v18646_v58 = vpop.f32.mrf.mxu1  ;;  %v19660_v31 = vld [vmem:[%s26262_s8 + $0x6b0] sm:$0xff]  }
 0x9eb   : > { %14464 = vmatprep.mubr.bf16.mxu0 %v24797_v27  ;;  %v18647_v44 = vadd.f32 %v18646_v58, %v18645_v24  ;;  %v18712_v8 = vpop.f32.mrf.mxu0  ;;  %18939 = vmatprep.subr.bf16.mxu1 %v19626_v10  ;;  %v19662_v10 = vld [vmem:[%s26262_s8 + $0x6e8] sm:$0xff]  }
 0x9ec   : > { %v25671_v47 = vadd.f32 %v18712_v8, %v18711_v14  ;;  %v18648_v4 = vpop.f32.mrf.mxu1  ;;  %19005 = vmatprep.subr.bf16.mxu0 %v19627_v11  ;;  %v19663_v11 = vld [vmem:[%s26262_s8 + $0xa68] sm:$0xff]  }
 0x9ed   : > { %v25674_v63 = vadd.f32 %v18647_v44, %v25458_v40  ;;  %v18714_v0 = vpop.f32.mrf.mxu0  ;;  %18940 = vmatpush3.bf16.msra.mxu1 %v19628_v16  ;;  %v19635_v40 = vld [vmem:[%s26262_s8 + $0x860] sm:$0xff]   ;;  %v19665_v8 = vld [vmem:[%s26262_s8 + $0xa28] sm:$0xff]  }
 0x9ee   : > { %19006 = vmatpush3.bf16.msra.mxu0 %v19629_v45  ;;  %v18649_v13 = vpop.f32.mrf.mxu1  ;;  %18941 = vmatprep.subr.bf16.mxu1 %v19630_v55  ;;  %v19664_v55 = vld [vmem:[%s26262_s8 + $0x6a8] sm:$0xff]   ;;  %v19668_v0 = vld [vmem:[%s26262_s8 + $0x6a0] sm:$0xff]  }
 0x9ef   : > { %v18715_v38 = vpop.f32.mrf.mxu0  ;;  %19007 = vmatprep.subr.bf16.mxu0 %v19631_v15  ;;  %v19666_v15 = vld [vmem:[%s26262_s8 + $0x6e0] sm:$0xff]   ;;  %v19670_v13 = vld [vmem:[%s26262_s8 + $0x6d8] sm:$0xff]  }
 0x9f0   : > { %v19673_v38 = vld [vmem:[%s26262_s8 + $0xa18] sm:$0xff]  }
 0x9f1   : > { %18942 = vmatpush3.bf16.msra.mxu1 %v19632_v48  ;;  %v19669_v48 = vld [vmem:[%s26262_s8 + $0xa20] sm:$0xff]  }
 0x9f2   : > { %19008 = vmatpush3.bf16.msra.mxu0 %v19633_v61  ;;  %18943 = vmatprep.subr.bf16.mxu1 %v19634_v6  ;;  %v19671_v61 = vld [vmem:[%s26262_s8 + $0xa58] sm:$0xff]  }
 0x9f3   : > { %19009 = vmatprep.subr.bf16.mxu0 %v19635_v40  ;;  %v19672_v6 = vld [vmem:[%s26262_s8 + $0x698] sm:$0xff]   ;;  %v19674_v40 = vld [vmem:[%s26262_s8 + $0x6d0] sm:$0xff]  }
 0x9f5   : > { %18944 = vmatpush3.bf16.msra.mxu1 %v19636_v53  ;;  %v19675_v53 = vld [vmem:[%s26262_s8 + $0xa50] sm:$0xff]  }
 0x9f6   : > { %19010 = vmatpush3.bf16.msra.mxu0 %v19637_v18  ;;  %18945 = vmatprep.subr.bf16.mxu1 %v19638_v20  ;;  %v19676_v18 = vld [vmem:[%s26262_s8 + $0x690] sm:$0xff]  }
 0x9f7   : > { %19011 = vmatprep.subr.bf16.mxu0 %v19639_v17  ;;  %v19677_v20 = vld [vmem:[%s26262_s8 + $0xa10] sm:$0xff]   ;;  %v19678_v17 = vld [vmem:[%s26262_s8 + $0x6c8] sm:$0xff]  }
 0x9f9   : > { %18946 = vmatpush3.bf16.msra.mxu1 %v19640_v41  ;;  %v19679_v41 = vld [vmem:[%s26262_s8 + $0xa48] sm:$0xff]  }
 0x9fa   : > { %19012 = vmatpush3.bf16.msra.mxu0 %v19641_v57  ;;  %18947 = vmatprep.subr.bf16.mxu1 %v19642_v62  ;;  %v19680_v57 = vld [vmem:[%s26262_s8 + $0x688] sm:$0xff]  }
 0x9fb   : > { %19013 = vmatprep.subr.bf16.mxu0 %v19643_v59  ;;  %v19681_v62 = vld [vmem:[%s26262_s8 + $0xa08] sm:$0xff]   ;;  %v19682_v59 = vld [vmem:[%s26262_s8 + $0x6c0] sm:$0xff]  }
 0x9fd   : > { %18948 = vmatpush3.bf16.msra.mxu1 %v19644_v51  ;;  %v19683_v51 = vld [vmem:[%s26262_s8 + $0xa40] sm:$0xff]  }
 0x9fe   : > { %19014 = vmatpush3.bf16.msra.mxu0 %v19645_v37  ;;  %18949 = vmatprep.subr.bf16.mxu1 %v19646_v33  ;;  %v19684_v37 = vld [vmem:[%s26262_s8 + $0x680] sm:$0xff]  }
 0x9ff   : > { %19015 = vmatprep.subr.bf16.mxu0 %v19647_v42  ;;  %v19685_v33 = vld [vmem:[%s26262_s8 + $0xa00] sm:$0xff]   ;;  %v19686_v42 = vld [vmem:[%s26262_s8 + $0x8f8] sm:$0xff]  }
 0xa01   : > { %18950 = vmatpush3.bf16.msra.mxu1 %v19648_v1  ;;  %v19687_v1 = vld [vmem:[%s26262_s8 + $0xc78] sm:$0xff]  }
 0xa02   : > { %19016 = vmatpush3.bf16.msra.mxu0 %v19649_v28  ;;  %18951 = vmatprep.subr.bf16.mxu1 %v19650_v52  ;;  %v19688_v28 = vld [vmem:[%s26262_s8 + $0x8b8] sm:$0xff]   ;;  %v13962_v52 = vrot.slane %v24680_v34, 3  ;;  %v14797_v34 = vrot.slane %v24797_v27, 2 }
 0xa03   : > { %19017 = vmatprep.subr.bf16.mxu0 %v19651_v23  ;;  %v19689_v23 = vld [vmem:[%s26262_s8 + $0xc38] sm:$0xff]  }
 0xa05   : > { %18952 = vmatpush3.bf16.msra.mxu1 %v19652_v30  ;;  %v14516_v30 = vrot.slane %v24901_v35, 1 }
 0xa06   : > { %19018 = vmatpush3.bf16.msra.mxu0 %v19653_v56  ;;  %18981 = vmatprep.subr.bf16.mxu1 %v19654_v29  ;;  %v19690_v56 = vld [vmem:[%s26262_s8 + $0x8f0] sm:$0xff]  }
 0xa07   : > { %19047 = vmatprep.subr.bf16.mxu0 %v19655_v49  ;;  %v19691_v49 = vld [vmem:[%s26262_s8 + $0xc70] sm:$0xff]  }
 0xa08   : > { %v18689_v54 = vpop.f32.mrf.mxu1  ;;  %13953 = vmatmul.mubr.bf16.vlgmr.msra.gmra.mxu1 %v13682_v12  ;;  %v19692_v12 = vld [vmem:[%s26262_s8 + $0x8b0] sm:$0xff]  }
 0xa09   : > { %v18755_v7 = vpop.f32.mrf.mxu0  ;;  %14465 = vmatmul.mubr.bf16.vlgmr.msra.gmra.mxu0 %v24901_v35  ;;  %18982 = vmatpush3.bf16.msra.mxu1 %v19656_v39 }
 0xa0a   : > { %14232 = vmatprep.mubr.bf16.mxu1 %v13963_v32  ;;  %19048 = vmatpush3.bf16.msra.mxu0 %v19657_v43  ;;  %v18690_v36 = vpop.f32.mrf.mxu1 }
 0xa0b   : > { %14748 = vmatprep.mubr.bf16.mxu0 %v14517_v2  ;;  %v18691_v24 = vadd.f32 %v18690_v36, %v18689_v54  ;;  %v18756_v5 = vpop.f32.mrf.mxu0  ;;  %18983 = vmatprep.subr.bf16.mxu1 %v19658_v9  ;;  %v19693_v9 = vld [vmem:[%s26262_s8 + $0xc30] sm:$0xff]   ;;  %v19694_v54 = vld [vmem:[%s26262_s8 + $0x8e8] sm:$0xff]  }
 0xa0c   : > { %v25776_v14 = vadd.f32 %v18756_v5, %v18755_v7  ;;  %v18692_v16 = vpop.f32.mrf.mxu1  ;;  %19049 = vmatprep.subr.bf16.mxu0 %v19659_v50  ;;  %v19695_v7 = vld [vmem:[%s26262_s8 + $0xc68] sm:$0xff]  }
 0xa0d   : > { %v25779_v58 = vadd.f32 %v18691_v24, %v25566_v60  ;;  %v18758_v45 = vpop.f32.mrf.mxu0  ;;  %18984 = vmatpush3.bf16.msra.mxu1 %v19660_v31  ;;  %v19667_v60 = vld [vmem:[%s26262_s8 + $0xa60] sm:$0xff]   ;;  %v19697_v5 = vld [vmem:[%s26262_s8 + $0xc28] sm:$0xff]  }
 0xa0e   : > { %19050 = vmatpush3.bf16.msra.mxu0 %v19661_v22  ;;  %v18693_v44 = vpop.f32.mrf.mxu1  ;;  %18985 = vmatprep.subr.bf16.mxu1 %v19662_v10  ;;  %v19696_v10 = vld [vmem:[%s26262_s8 + $0x8a8] sm:$0xff]   ;;  %v19700_v45 = vld [vmem:[%s26262_s8 + $0x8a0] sm:$0xff]  }
 0xa0f   : > { %v18759_v4 = vpop.f32.mrf.mxu0  ;;  %19051 = vmatprep.subr.bf16.mxu0 %v19663_v11  ;;  %v19698_v11 = vld [vmem:[%s26262_s8 + $0x8e0] sm:$0xff]   ;;  %v19702_v44 = vld [vmem:[%s26262_s8 + $0x8d8] sm:$0xff]  }
 0xa10   : > { %v19705_v4 = vld [vmem:[%s26262_s8 + $0xc18] sm:$0xff]  }
 0xa11   : > { %18986 = vmatpush3.bf16.msra.mxu1 %v19664_v55  ;;  %v19701_v55 = vld [vmem:[%s26262_s8 + $0xc20] sm:$0xff]  }
 0xa12   : > { %19052 = vmatpush3.bf16.msra.mxu0 %v19665_v8  ;;  %18987 = vmatprep.subr.bf16.mxu1 %v19666_v15  ;;  %v19703_v8 = vld [vmem:[%s26262_s8 + $0xc58] sm:$0xff]  }
 0xa13   : > { %19053 = vmatprep.subr.bf16.mxu0 %v19667_v60  ;;  %v19704_v15 = vld [vmem:[%s26262_s8 + $0x898] sm:$0xff]   ;;  %v19706_v60 = vld [vmem:[%s26262_s8 + $0x8d0] sm:$0xff]  }
 0xa15   : > { %18988 = vmatpush3.bf16.msra.mxu1 %v19668_v0  ;;  %v19707_v0 = vld [vmem:[%s26262_s8 + $0xc50] sm:$0xff]  }
 0xa16   : > { %19054 = vmatpush3.bf16.msra.mxu0 %v19669_v48  ;;  %18989 = vmatprep.subr.bf16.mxu1 %v19670_v13  ;;  %v19708_v48 = vld [vmem:[%s26262_s8 + $0x890] sm:$0xff]  }
 0xa17   : > { %19055 = vmatprep.subr.bf16.mxu0 %v19671_v61  ;;  %v19709_v13 = vld [vmem:[%s26262_s8 + $0xc10] sm:$0xff]   ;;  %v19710_v61 = vld [vmem:[%s26262_s8 + $0x8c8] sm:$0xff]  }
 0xa19   : > { %18990 = vmatpush3.bf16.msra.mxu1 %v19672_v6  ;;  %v19711_v6 = vld [vmem:[%s26262_s8 + $0xc48] sm:$0xff]  }
 0xa1a   : > { %19056 = vmatpush3.bf16.msra.mxu0 %v19673_v38  ;;  %18991 = vmatprep.subr.bf16.mxu1 %v19674_v40  ;;  %v19712_v38 = vld [vmem:[%s26262_s8 + $0x888] sm:$0xff]  }
 0xa1b   : > { %19057 = vmatprep.subr.bf16.mxu0 %v19675_v53  ;;  %v19713_v40 = vld [vmem:[%s26262_s8 + $0xc08] sm:$0xff]   ;;  %v19714_v53 = vld [vmem:[%s26262_s8 + $0x8c0] sm:$0xff]  }
 0xa1d   : > { %18992 = vmatpush3.bf16.msra.mxu1 %v19676_v18  ;;  %v19715_v18 = vld [vmem:[%s26262_s8 + $0xc40] sm:$0xff]  }
 0xa1e   : > { %19058 = vmatpush3.bf16.msra.mxu0 %v19677_v20  ;;  %18993 = vmatprep.subr.bf16.mxu1 %v19678_v17  ;;  %v19716_v20 = vld [vmem:[%s26262_s8 + $0x880] sm:$0xff]  }
 0xa1f   : > { %19059 = vmatprep.subr.bf16.mxu0 %v19679_v41  ;;  %v19717_v17 = vld [vmem:[%s26262_s8 + $0xc00] sm:$0xff]   ;;  %v19718_v41 = vld [vmem:[%s26262_s8 + $0xaf8] sm:$0xff]  }
 0xa21   : > { %18994 = vmatpush3.bf16.msra.mxu1 %v19680_v57  ;;  %v19719_v57 = vld [vmem:[%s26262_s8 + $0xe78] sm:$0xff]  }
 0xa22   : > { %19060 = vmatpush3.bf16.msra.mxu0 %v19681_v62  ;;  %18995 = vmatprep.subr.bf16.mxu1 %v19682_v59  ;;  %v19720_v62 = vld [vmem:[%s26262_s8 + $0xab8] sm:$0xff]  }
 0xa23   : > { %19061 = vmatprep.subr.bf16.mxu0 %v19683_v51  ;;  %v19721_v59 = vld [vmem:[%s26262_s8 + $0xe38] sm:$0xff]   ;;  %v14796_v51 = vrot.slane %v24901_v35, 2 }
 0xa25   : > { %18996 = vmatpush3.bf16.msra.mxu1 %v19684_v37  ;;  %v19722_v37 = vld [vmem:[%s26262_s8 + $0xaf0] sm:$0xff]  }
 0xa26   : > { %19062 = vmatpush3.bf16.msra.mxu0 %v19685_v33  ;;  %19025 = vmatprep.subr.bf16.mxu1 %v19686_v42  ;;  %v14519_v42 = vrot.slane %v25012_v26, 1 }
 0xa27   : > { %19091 = vmatprep.subr.bf16.mxu0 %v19687_v1  ;;  %v19723_v1 = vld [vmem:[%s26262_s8 + $0xe70] sm:$0xff]  }
 0xa28   : > { %v18733_v29 = vpop.f32.mrf.mxu1  ;;  %14233 = vmatmul.mubr.bf16.vlgmr.msra.gmra.mxu1 %v13962_v52  ;;  %v15077_v52 = vrot.slane %v24797_v27, 3  ;;  %v19727_v27 = vld [vmem:[%s26262_s8 + $0xe68] sm:$0xff]  }
 0xa29   : > { %v18799_v39 = vpop.f32.mrf.mxu0  ;;  %14749 = vmatmul.mubr.bf16.vlgmr.msra.gmra.mxu0 %v14516_v30  ;;  %19026 = vmatpush3.bf16.msra.mxu1 %v19688_v28 }
 0xa2a   : > { %14504 = vmatprep.mubr.bf16.mxu1 %v25012_v26  ;;  %19092 = vmatpush3.bf16.msra.mxu0 %v19689_v23  ;;  %v18734_v43 = vpop.f32.mrf.mxu1  ;;  %v19724_v23 = vld [vmem:[%s26262_s8 + $0xab0] sm:$0xff]  }
 0xa2b   : > { %15028 = vmatprep.mubr.bf16.mxu0 %v14797_v34  ;;  %v18735_v32 = vadd.f32 %v18734_v43, %v18733_v29  ;;  %v18800_v50 = vpop.f32.mrf.mxu0  ;;  %19027 = vmatprep.subr.bf16.mxu1 %v19690_v56  ;;  %v19725_v56 = vld [vmem:[%s26262_s8 + $0xe30] sm:$0xff]   ;;  %v19726_v29 = vld [vmem:[%s26262_s8 + $0xae8] sm:$0xff]  }
 0xa2c   : > { %v25881_v2 = vadd.f32 %v18800_v50, %v18799_v39  ;;  %v18736_v31 = vpop.f32.mrf.mxu1  ;;  %19093 = vmatprep.subr.bf16.mxu0 %v19691_v49 }
 0xa2d   : > { %v25884_v36 = vadd.f32 %v18735_v32, %v25671_v47  ;;  %v18802_v22 = vpop.f32.mrf.mxu0  ;;  %19028 = vmatpush3.bf16.msra.mxu1 %v19692_v12  ;;  %v19699_v47 = vld [vmem:[%s26262_s8 + $0xc60] sm:$0xff]  }
 0xa2e   : > { %19094 = vmatpush3.bf16.msra.mxu0 %v19693_v9  ;;  %v18737_v24 = vpop.f32.mrf.mxu1  ;;  %19029 = vmatprep.subr.bf16.mxu1 %v19694_v54  ;;  %v19728_v54 = vld [vmem:[%s26262_s8 + $0xaa8] sm:$0xff]   ;;  %v19731_v22 = vld [vmem:[%s26262_s8 + $0xe60] sm:$0xff]  }
 0xa2f   : > { %v18803_v16 = vpop.f32.mrf.mxu0  ;;  %19095 = vmatprep.subr.bf16.mxu0 %v19695_v7  ;;  %v19729_v7 = vld [vmem:[%s26262_s8 + $0xe28] sm:$0xff]   ;;  %v19734_v24 = vld [vmem:[%s26262_s8 + $0xad8] sm:$0xff]  }
 0xa30   : > { %v19737_v16 = vld [vmem:[%s26262_s8 + $0xe18] sm:$0xff]  }
 0xa31   : > { %19030 = vmatpush3.bf16.msra.mxu1 %v19696_v10  ;;  %v19733_v10 = vld [vmem:[%s26262_s8 + $0xe20] sm:$0xff]  }
 0xa32   : > { %19096 = vmatpush3.bf16.msra.mxu0 %v19697_v5  ;;  %19031 = vmatprep.subr.bf16.mxu1 %v19698_v11  ;;  %v19735_v5 = vld [vmem:[%s26262_s8 + $0xe58] sm:$0xff]  }
 0xa33   : > { %19097 = vmatprep.subr.bf16.mxu0 %v19699_v47  ;;  %v19736_v11 = vld [vmem:[%s26262_s8 + $0xa98] sm:$0xff]   ;;  %v19738_v47 = vld [vmem:[%s26262_s8 + $0xad0] sm:$0xff]  }
 0xa35   : > { %19032 = vmatpush3.bf16.msra.mxu1 %v19700_v45  ;;  %v19739_v45 = vld [vmem:[%s26262_s8 + $0xe50] sm:$0xff]  }
 0xa36   : > { %19098 = vmatpush3.bf16.msra.mxu0 %v19701_v55  ;;  %19033 = vmatprep.subr.bf16.mxu1 %v19702_v44  ;;  %v19740_v55 = vld [vmem:[%s26262_s8 + $0xa90] sm:$0xff]  }
 0xa37   : > { %19099 = vmatprep.subr.bf16.mxu0 %v19703_v8  ;;  %v19741_v44 = vld [vmem:[%s26262_s8 + $0xe10] sm:$0xff]   ;;  %v19742_v8 = vld [vmem:[%s26262_s8 + $0xac8] sm:$0xff]  }
 0xa39   : > { %19034 = vmatpush3.bf16.msra.mxu1 %v19704_v15  ;;  %v19743_v15 = vld [vmem:[%s26262_s8 + $0xe48] sm:$0xff]  }
 0xa3a   : > { %19100 = vmatpush3.bf16.msra.mxu0 %v19705_v4  ;;  %19035 = vmatprep.subr.bf16.mxu1 %v19706_v60  ;;  %v19744_v4 = vld [vmem:[%s26262_s8 + $0xa88] sm:$0xff]  }
 0xa3b   : > { %19101 = vmatprep.subr.bf16.mxu0 %v19707_v0  ;;  %v19745_v60 = vld [vmem:[%s26262_s8 + $0xe08] sm:$0xff]   ;;  %v19746_v0 = vld [vmem:[%s26262_s8 + $0xac0] sm:$0xff]  }
 0xa3d   : > { %19036 = vmatpush3.bf16.msra.mxu1 %v19708_v48  ;;  %v19747_v48 = vld [vmem:[%s26262_s8 + $0xe40] sm:$0xff]  }
 0xa3e   : > { %19102 = vmatpush3.bf16.msra.mxu0 %v19709_v13  ;;  %19037 = vmatprep.subr.bf16.mxu1 %v19710_v61  ;;  %v19748_v13 = vld [vmem:[%s26262_s8 + $0xa80] sm:$0xff]  }
 0xa3f   : > { %19103 = vmatprep.subr.bf16.mxu0 %v19711_v6  ;;  %v19749_v61 = vld [vmem:[%s26262_s8 + $0xe00] sm:$0xff]   ;;  %v19750_v6 = vld [vmem:[%s26262_s8 + $0xcf8] sm:$0xff]  }
 0xa41   : > { %19038 = vmatpush3.bf16.msra.mxu1 %v19712_v38  ;;  %v19751_v38 = vld [vmem:[%s26262_s8 + $0xcb8] sm:$0xff]  }
 0xa42   : > { %19104 = vmatpush3.bf16.msra.mxu0 %v19713_v40  ;;  %19039 = vmatprep.subr.bf16.mxu1 %v19714_v53  ;;  %v14518_v40 = vrot.slane %v25110_v25, 1  ;;  %v19752_v53 = vld [vmem:[%s26262_s8 + $0xcf0] sm:$0xff]  }
 0xa43   : > { %19105 = vmatprep.subr.bf16.mxu0 %v19715_v18  ;;  %v15076_v18 = vrot.slane %v24901_v35, 3  ;;  %v19754_v35 = vld [vmem:[%s26262_s8 + $0xce8] sm:$0xff]  }
 0xa45   : > { %19040 = vmatpush3.bf16.msra.mxu1 %v19716_v20 }
 0xa46   : > { %19106 = vmatpush3.bf16.msra.mxu0 %v19717_v17  ;;  %19069 = vmatprep.subr.bf16.mxu1 %v19718_v41  ;;  %v14799_v17 = vrot.slane %v25012_v26, 2 }
 0xa47   : > { %19135 = vmatprep.subr.bf16.mxu0 %v19719_v57  ;;  %v19753_v57 = vld [vmem:[%s26262_s8 + $0xcb0] sm:$0xff]  }
 0xa48   : > { %v18777_v33 = vpop.f32.mrf.mxu1  ;;  %14505 = vmatmul.mubr.bf16.vlgmr.msra.gmra.mxu1 %v25110_v25 }
 0xa49   : > { %v18843_v28 = vpop.f32.mrf.mxu0  ;;  %15029 = vmatmul.mubr.bf16.vlgmr.msra.gmra.mxu0 %v14796_v51  ;;  %19070 = vmatpush3.bf16.msra.mxu1 %v19720_v62 }
 0xa4a   : > { %14788 = vmatprep.mubr.bf16.mxu1 %v14519_v42  ;;  %19136 = vmatpush3.bf16.msra.mxu0 %v19721_v59  ;;  %v18778_v30 = vpop.f32.mrf.mxu1 }
 0xa4b   : > { %15308 = vmatprep.mubr.bf16.mxu0 %v15077_v52  ;;  %v18779_v49 = vadd.f32 %v18778_v30, %v18777_v33  ;;  %v18844_v39 = vpop.f32.mrf.mxu0  ;;  %19071 = vmatprep.subr.bf16.mxu1 %v19722_v37  ;;  %v19756_v30 = vld [vmem:[%s26262_s8 + $0xce0] sm:$0xff]  }
 0xa4c   : > { %v18845_v34 = vadd.f32 %v18844_v39, %v18843_v28  ;;  %v18780_v12 = vpop.f32.mrf.mxu1  ;;  %19137 = vmatprep.subr.bf16.mxu0 %v19723_v1  ;;  %v19755_v28 = vld [vmem:[%s26262_s8 + $0xca8] sm:$0xff]   ;;  %v19761_v39 = vld [vmem:[%s26262_s8 + $0xc90] sm:$0xff]  }
 0xa4d   : > { %v25987_v43 = vadd.f32 %v18779_v49, %v25776_v14  ;;  %v18846_v9 = vpop.f32.mrf.mxu0  ;;  %19072 = vmatpush3.bf16.msra.mxu1 %v19724_v23  ;;  %v19730_v14 = vld [vmem:[%s26262_s8 + $0xae0] sm:$0xff]   ;;  %v19760_v49 = vld [vmem:[%s26262_s8 + $0xcd0] sm:$0xff]  }
 0xa4e   : > { %v25993_v32 = vadd.f32 %v18845_v34, %v25359_v46  ;;  %19138 = vmatpush3.bf16.msra.mxu0 %v19725_v56  ;;  %v18781_v50 = vpop.f32.mrf.mxu1  ;;  %19073 = vmatprep.subr.bf16.mxu1 %v19726_v29  ;;  %v19732_v46 = vld [vmem:[%s26262_s8 + $0xaa0] sm:$0xff]   ;;  %v19758_v29 = vld [vmem:[%s26262_s8 + $0xcd8] sm:$0xff]   ;;  %v19763_v34 = vld [vmem:[%s26262_s8 + $0xc88] sm:$0xff]  }
 0xa4f   : > { %v18847_v31 = vpop.f32.mrf.mxu0  ;;  %19139 = vmatprep.subr.bf16.mxu0 %v19727_v27  ;;  %v19762_v27 = vld [vmem:[%s26262_s8 + $0xcc8] sm:$0xff]   ;;  %v19764_v12 = vld [vmem:[%s26262_s8 + $0xcc0] sm:$0xff]   ;;  %v19767_v50 = vld [vmem:[%s26262_s8 + $0xeb8] sm:$0xff]  }
 0xa50   : > { %v19765_v9 = vld [vmem:[%s26262_s8 + $0xc80] sm:$0xff]   ;;  %v15079_v31 = vrot.slane %v25012_v26, 3 }
 0xa51   : > { %19074 = vmatpush3.bf16.msra.mxu1 %v19728_v54  ;;  %v19766_v54 = vld [vmem:[%s26262_s8 + $0xef8] sm:$0xff]  }
 0xa52   : > { %19140 = vmatpush3.bf16.msra.mxu0 %v19729_v7  ;;  %19075 = vmatprep.subr.bf16.mxu1 %v19730_v14  ;;  %v14798_v7 = vrot.slane %v25110_v25, 2  ;;  %v19768_v14 = vld [vmem:[%s26262_s8 + $0xef0] sm:$0xff]  }
 0xa53   : > { %19141 = vmatprep.subr.bf16.mxu0 %v19731_v22 }
 0xa55   : > { %19076 = vmatpush3.bf16.msra.mxu1 %v19732_v46 }
 0xa56   : > { %19142 = vmatpush3.bf16.msra.mxu0 %v19733_v10  ;;  %19077 = vmatprep.subr.bf16.mxu1 %v19734_v24  ;;  %v19769_v10 = vld [vmem:[%s26262_s8 + $0xeb0] sm:$0xff]  }
 0xa57   : > { %19143 = vmatprep.subr.bf16.mxu0 %v19735_v5  ;;  %v19770_v5 = vld [vmem:[%s26262_s8 + $0xee8] sm:$0xff]  }
 0xa59   : > { %19078 = vmatpush3.bf16.msra.mxu1 %v19736_v11 }
 0xa5a   : > { %19144 = vmatpush3.bf16.msra.mxu0 %v19737_v16  ;;  %19079 = vmatprep.subr.bf16.mxu1 %v19738_v47 }
 0xa5b   : > { %19145 = vmatprep.subr.bf16.mxu0 %v19739_v45 }
 0xa5d   : > { %19080 = vmatpush3.bf16.msra.mxu1 %v19740_v55 }
 0xa5e   : > { %19146 = vmatpush3.bf16.msra.mxu0 %v19741_v44  ;;  %19081 = vmatprep.subr.bf16.mxu1 %v19742_v8  ;;  %v19771_v44 = vld [vmem:[%s26262_s8 + $0xea8] sm:$0xff]  }
 0xa5f   : > { %19147 = vmatprep.subr.bf16.mxu0 %v19743_v15 }
 0xa61   : > { %19082 = vmatpush3.bf16.msra.mxu1 %v19744_v4  ;;  %v19772_v4 = vld [vmem:[%s26262_s8 + $0xee0] sm:$0xff]  }
 0xa62   : > { %19148 = vmatpush3.bf16.msra.mxu0 %v19745_v60  ;;  %19083 = vmatprep.subr.bf16.mxu1 %v19746_v0  ;;  %v19774_v0 = vld [vmem:[%s26262_s8 + $0xed8] sm:$0xff]  }
 0xa63   : > { %19149 = vmatprep.subr.bf16.mxu0 %v19747_v48  ;;  %v19776_v48 = vld [vmem:[%s26262_s8 + $0xed0] sm:$0xff]  }
 0xa65   : > { %19084 = vmatpush3.bf16.msra.mxu1 %v19748_v13  ;;  %v19777_v13 = vld [vmem:[%s26262_s8 + $0xe90] sm:$0xff]  }
 0xa66   : > { %19150 = vmatpush3.bf16.msra.mxu0 %v19749_v61  ;;  %19113 = vmatprep.subr.bf16.mxu1 %v19750_v6  ;;  %v19778_v61 = vld [vmem:[%s26262_s8 + $0xec8] sm:$0xff]  }
 0xa67   : > { %19188 = vmatprep.subr.mxu0 %v26518_v3  ;;  %v19779_v6 = vld [vmem:[%s26262_s8 + $0xe88] sm:$0xff]  }
 0xa68   : > { %v18821_v20 = vpop.f32.mrf.mxu1  ;;  %14789 = vmatmul.mubr.bf16.vlgmr.msra.gmra.mxu1 %v14518_v40  ;;  %v19781_v40 = vld [vmem:[%s26262_s8 + $0xe80] sm:$0xff]  }
 0xa69   : > { %v18887_v41 = vpop.f32.mrf.mxu0  ;;  %15309 = vmatmul.mubr.bf16.vlgmr.msra.gmra.mxu0 %v15076_v18  ;;  %19114 = vmatpush3.bf16.msra.mxu1 %v19751_v38  ;;  %v19780_v38 = vld [vmem:[%s26262_s8 + $0xec0] sm:$0xff]  }
 0xa6a   : > { %15068 = vmatprep.mubr.bf16.mxu1 %v14799_v17  ;;  %v18822_v62 = vpop.f32.mrf.mxu1  ;;  %19115 = vmatprep.subr.bf16.mxu1 %v19752_v53  ;;  %v15078_v53 = vrot.slane %v25110_v25, 3 }
 0xa6b   : > { %v18823_v59 = vadd.f32 %v18822_v62, %v18821_v20  ;;  %v18888_v51 = vpop.f32.mrf.mxu0  ;;  %19204 = vmatprep.mubr.msk.f32.mxu0 %vm19878_vm4, %v26518_v3 }
 0xa6c   : > { %v18889_v37 = vadd.f32 %v18888_v51, %v18887_v41  ;;  %v18824_v33 = vpop.f32.mrf.mxu1 }
 0xa6d   : > { %v26078_v42 = vadd.f32 %v18823_v59, %v25881_v2  ;;  %v18890_v1 = vpop.f32.mrf.mxu0  ;;  %19116 = vmatpush3.bf16.msra.mxu1 %v19753_v57  ;;  %v19757_v2 = vld [vmem:[%s26262_s8 + $0xca0] sm:$0xff]  }
 0xa6e   : > { %v26084_v52 = vadd.f32 %v18889_v37, %v25464_v19  ;;  %v18825_v23 = vpop.f32.mrf.mxu1  ;;  %19117 = vmatprep.subr.bf16.mxu1 %v19754_v35  ;;  %v19759_v19 = vld [vmem:[%s26262_s8 + $0xc98] sm:$0xff]  }
 0xa6f   : > { %v18891_v56 = vpop.f32.mrf.mxu0 }
 0xa71   : > { %19118 = vmatpush3.bf16.msra.mxu1 %v19755_v28 }
 0xa72   : > { %19119 = vmatprep.subr.bf16.mxu1 %v19756_v30 }
 0xa75   : > { %19120 = vmatpush3.bf16.msra.mxu1 %v19757_v2 }
 0xa76   : > { %19121 = vmatprep.subr.bf16.mxu1 %v19758_v29 }
 0xa79   : > { %19122 = vmatpush3.bf16.msra.mxu1 %v19759_v19 }
 0xa7a   : > { %19123 = vmatprep.subr.bf16.mxu1 %v19760_v49 }
 0xa7d   : > { %19124 = vmatpush3.bf16.msra.mxu1 %v19761_v39 }
 0xa7e   : > { %19125 = vmatprep.subr.bf16.mxu1 %v19762_v27 }
 0xa81   : > { %19126 = vmatpush3.bf16.msra.mxu1 %v19763_v34 }
 0xa82   : > { %19127 = vmatprep.subr.bf16.mxu1 %v19764_v12 }
 0xa85   : > { %19128 = vmatpush3.bf16.msra.mxu1 %v19765_v9 }
 0xa86   : > { %19157 = vmatprep.subr.bf16.mxu1 %v19766_v54 }
 0xa88   : > { %v18865_v22 = vpop.f32.mrf.mxu1  ;;  %15069 = vmatmul.mubr.bf16.vlgmr.msra.gmra.mxu1 %v14798_v7  ;;  %v15373_v7 = vld [vmem:[%s26264_s10 + $0x38] sm:$0xff] }
 0xa89   : > { %v18931_v46 = vpop.f32.mrf.mxu0  ;;  %19158 = vmatpush3.bf16.msra.mxu1 %v19767_v50  ;;  %15348 = vmatprep.mubr.bf16.mxu1 %v15079_v31 }
 0xa8a   : > { %v18866_v24 = vpop.f32.mrf.mxu1  ;;  %19159 = vmatprep.subr.bf16.mxu1 %v19768_v14  ;;  %19189 = vmatpush3.msra.mxu0 %v15373_v7 }
 0xa8b   : > { %v18867_v11 = vadd.f32 %v18866_v24, %v18865_v22  ;;  %v18932_v16 = vpop.f32.mrf.mxu0  ;;  %19190 = vmatprep.subr.mxu0 %v26518_v3 }
 0xa8c   : > { %v18933_v47 = vadd.f32 %v18932_v16, %v18931_v46  ;;  %v18868_v45 = vpop.f32.mrf.mxu1  ;;  %v15371_v16 = vld [vmem:[%s26264_s10 + $0x28] sm:$0xff] }
 0xa8d   : > { %v13391_v26 = vadd.f32 %v18867_v11, %v25993_v32  ;;  %v18934_v55 = vpop.f32.mrf.mxu0  ;;  %19160 = vmatpush3.bf16.msra.mxu1 %v19769_v10  ;;  %v19773_v32 = vld [vmem:[%s26262_s8 + $0xea0] sm:$0xff]  }
 0xa8e   : > { %v13915_v8 = vadd.f32 %v18933_v47, %v25569_v21  ;;  %v18869_v15 = vpop.f32.mrf.mxu1  ;;  %19161 = vmatprep.subr.bf16.mxu1 %v19770_v5  ;;  %v19775_v21 = vld [vmem:[%s26262_s8 + $0xe98] sm:$0xff]   ;;  %v15370_v45 = vld [vmem:[%s26264_s10 + $0x20] sm:$0xff]  ;;  %v15367_v55 = vld [vmem:[%s26264_s10 + $0x8] sm:$0xff] }
 0xa8f   : > { %v18935_v60 = vpop.f32.mrf.mxu0 }
 0xa91   : > { %19162 = vmatpush3.bf16.msra.mxu1 %v19771_v44  ;;  %v15366_v44 = vld [vmem:[%s26264_s10] sm:$0xff] }
 0xa92   : > { %19163 = vmatprep.subr.bf16.mxu1 %v19772_v4 }
 0xa95   : > { %19164 = vmatpush3.bf16.msra.mxu1 %v19773_v32 }
 0xa96   : > { %19165 = vmatprep.subr.bf16.mxu1 %v19774_v0 }
 0xa99   : > { %19166 = vmatpush3.bf16.msra.mxu1 %v19775_v21 }
 0xa9a   : > { %19167 = vmatprep.subr.bf16.mxu1 %v19776_v48 }
 0xa9d   : > { %19168 = vmatpush3.bf16.msra.mxu1 %v19777_v13 }
 0xa9e   : > { %19169 = vmatprep.subr.bf16.mxu1 %v19778_v61 }
 0xaa1   : > { %19170 = vmatpush3.bf16.msra.mxu1 %v19779_v6 }
 0xaa2   : > { %19171 = vmatprep.subr.bf16.mxu1 %v19780_v38 }
 0xaa5   : > { %19172 = vmatpush3.bf16.msra.mxu1 %v19781_v40 }
 0xaa8   : > { %v18909_v18 = vpop.f32.mrf.mxu1  ;;  %15349 = vmatmul.mubr.bf16.vlgmr.msra.gmra.mxu1 %v15078_v53 }
 0xaa9   : > { %v18975_v20 = vpop.f32.mrf.mxu0 }
 0xaaa   : > { %v18910_v17 = vpop.f32.mrf.mxu1 }
 0xaab   : > { %v18911_v41 = vadd.f32 %v18910_v17, %v18909_v18  ;;  %v18976_v57 = vpop.f32.mrf.mxu0 }
 0xaac   : > { %v18977_v62 = vadd.f32 %v18976_v57, %v18975_v20  ;;  %v18912_v35 = vpop.f32.mrf.mxu1 }
 0xaad   : > { %v13675_v59 = vadd.f32 %v18911_v41, %v26084_v52  ;;  %v18978_v51 = vpop.f32.mrf.mxu0 }
 0xaae   : > { %v14195_v37 = vadd.f32 %v18977_v62, %v25674_v63  ;;  %v18913_v33 = vpop.f32.mrf.mxu1 }
 0xaaf   : > { %v15356_v1 = vadd.f32 %v13675_v59, %v13391_v26  ;;  %v18979_v28 = vpop.f32.mrf.mxu0  ;;  %v15368_v26 = vld [vmem:[%s26264_s10 + $0x10] sm:$0xff] }
 0xac8   : > { %v18953_v23 = vpop.f32.mrf.mxu1 }
 0xac9   : > { %v19019_v30 = vpop.f32.mrf.mxu0 }
 0xaca   : > { %v18954_v56 = vpop.f32.mrf.mxu1 }
 0xacb   : > { %v18955_v25 = vadd.f32 %v18954_v56, %v18953_v23  ;;  %v19020_v2 = vpop.f32.mrf.mxu0 }
 0xacc   : > { %v19021_v29 = vadd.f32 %v19020_v2, %v19019_v30  ;;  %v18956_v19 = vpop.f32.mrf.mxu1 }
 0xacd   : > { %v13955_v49 = vadd.f32 %v18955_v25, %v13915_v8  ;;  %v19022_v39 = vpop.f32.mrf.mxu0 }
 0xace   : > { %v14467_v27 = vadd.f32 %v19021_v29, %v25779_v58  ;;  %v18957_v34 = vpop.f32.mrf.mxu1  ;;  %v15372_v58 = vld [vmem:[%s26264_s10 + $0x30] sm:$0xff] }
 0xacf   : > { %v19023_v12 = vpop.f32.mrf.mxu0  ;;  %19191 = vmatpush3.msra.mxu0 %v15372_v58  ;;  %v15363_v34 = vld [vmem:[%s26263_s9] sm:$0x1] }
 0xad0   : > { %19192 = vmatprep.subr.mxu0 %v26518_v3 }
 0xad1   : > { %19193 = vmatpush3.msra.mxu0 %v15371_v16 }
 0xad2   : > { %19194 = vmatprep.subr.mxu0 %v26518_v3 }
 0xad3   : > { %19195 = vmatpush3.msra.mxu0 %v15370_v45 }
 0xad4   : > { %19196 = vmatprep.subr.mxu0 %v26518_v3 }
 0xae8   : > { %v18997_v52 = vpop.f32.mrf.mxu1 }
 0xae9   : > { %v19063_v9 = vpop.f32.mrf.mxu0 }
 0xaea   : > { %v18998_v54 = vpop.f32.mrf.mxu1 }
 0xaeb   : > { %v18999_v63 = vadd.f32 %v18998_v54, %v18997_v52  ;;  %v19064_v50 = vpop.f32.mrf.mxu0 }
 0xaec   : > { %v19065_v14 = vadd.f32 %v19064_v50, %v19063_v9  ;;  %v19000_v31 = vpop.f32.mrf.mxu1 }
 0xaed   : > { %v14235_v22 = vadd.f32 %v18999_v63, %v14195_v37  ;;  %v19066_v46 = vpop.f32.mrf.mxu0 }
 0xaee   : > { %v14751_v10 = vadd.f32 %v19065_v14, %v25884_v36  ;;  %v19001_v24 = vpop.f32.mrf.mxu1  ;;  %v15369_v36 = vld [vmem:[%s26264_s10 + $0x18] sm:$0xff] }
 0xaef   : > { %v15357_v5 = vadd.f32 %v14235_v22, %v13955_v49  ;;  %v19067_v11 = vpop.f32.mrf.mxu0  ;;  %19197 = vmatpush3.msra.mxu0 %v15369_v36 }
 0xaf0   : > { %19198 = vmatprep.subr.mxu0 %v26518_v3 }
 0xaf1   : > { %v15360_v47 = vadd.f32 %v15357_v5, %v15356_v1  ;;  %19199 = vmatpush3.msra.mxu0 %v15368_v26 }
 0xaf2   : > { %19200 = vmatprep.subr.mxu0 %v26518_v3 }
 0xaf3   : > { %19201 = vmatpush3.msra.mxu0 %v15367_v55 }
 0xaf4   : > { %19202 = vmatprep.subr.mxu0 %v26518_v3 }
 0xaf5   : > { %19203 = vmatpush3.msra.mxu0 %v15366_v44 }
 0xb08   : > { %v19041_v8 = vpop.f32.mrf.mxu1 }
 0xb09   : > { %v19107_v15 = vpop.f32.mrf.mxu0 }
 0xb0a   : > { %v19042_v4 = vpop.f32.mrf.mxu1 }
 0xb0b   : > { %v19043_v60 = vadd.f32 %v19042_v4, %v19041_v8  ;;  %v19108_v32 = vpop.f32.mrf.mxu0 }
 0xb0c   : > { %v19109_v0 = vadd.f32 %v19108_v32, %v19107_v15  ;;  %v19044_v21 = vpop.f32.mrf.mxu1 }
 0xb0d   : > { %v14507_v48 = vadd.f32 %v19043_v60, %v14467_v27  ;;  %v19110_v13 = vpop.f32.mrf.mxu0 }
 0xb0e   : > { %v15031_v61 = vadd.f32 %v19109_v0, %v25987_v43  ;;  %v19045_v6 = vpop.f32.mrf.mxu1 }
 0xb0f   : > { %v19111_v38 = vpop.f32.mrf.mxu0 }
 0xb28   : > { %v19085_v40 = vpop.f32.mrf.mxu1 }
 0xb29   : > { %v19151_v53 = vpop.f32.mrf.mxu0 }
 0xb2a   : > { %v19086_v18 = vpop.f32.mrf.mxu1 }
 0xb2b   : > { %v19087_v20 = vadd.f32 %v19086_v18, %v19085_v40  ;;  %v19152_v17 = vpop.f32.mrf.mxu0 }
 0xb2c   : > { %v19088_v3 = vpop.f32.mrf.mxu1  ;;  %v19153_v28 = vadd.f32 %v19152_v17, %v19151_v53 }
 0xb2d   : > { %v14791_v41 = vadd.f32 %v19087_v20, %v14751_v10  ;;  %v19154_v57 = vpop.f32.mrf.mxu0 }
 0xb2e   : > { %v19089_v62 = vpop.f32.mrf.mxu1  ;;  %v15311_v56 = vadd.f32 %v19153_v28, %v26078_v42  ;;  %v15374_v42 = vld [vmem:[%s26265_s11] sm:$0x1] }
 0xb2f   : > { %v15358_v35 = vadd.f32 %v14791_v41, %v14507_v48  ;;  %v19155_v59 = vpop.f32.mrf.mxu0 }
 0xb48   : > { %v19129_v51 = vpop.f32.mrf.mxu1 }
 0xb4a   : > { %v19130_v37 = vpop.f32.mrf.mxu1 }
 0xb4b   : > { %v19131_v43 = vadd.f32 %v19130_v37, %v19129_v51 }
 0xb4c   : > { %v19132_v33 = vpop.f32.mrf.mxu1 }
 0xb4d   : > { %v15071_v29 = vadd.f32 %v19131_v43, %v15031_v61 }
 0xb4e   : > { %v19133_v1 = vpop.f32.mrf.mxu1 }
 0xb68   : > { %v19173_v23 = vpop.f32.mrf.mxu1 }
 0xb6a   : > { %v19174_v30 = vpop.f32.mrf.mxu1 }
 0xb6b   : > { %v19175_v25 = vadd.f32 %v19174_v30, %v19173_v23 }
 0xb6c   : > { %v19176_v2 = vpop.f32.mrf.mxu1 }
 0xb6d   : > { %v15351_v19 = vadd.f32 %v19175_v25, %v15311_v56 }
 0xb6e   : > { %v19177_v49 = vpop.f32.mrf.mxu1 }
 0xb6f   : > { %v15359_v39 = vadd.f32 %v15351_v19, %v15071_v29 }
 0xb71   : > { %v15361_v27 = vadd.f32 %v15359_v39, %v15358_v35 }
 0xb73   : > { %v15362_v12 = vadd.f32 %v15361_v27, %v15360_v47 }
 0xb75   : > { %v15364_v52 = vadd.f32 %v15363_v34, %v15362_v12 }
 0xb77   : > { %v15365_v9 = vmax.f32 %v15364_v52, 0.0 }
 0xb79   : > { %19205 = vmatmul.mubr.msk.f32.vlgmr.msra.gmra.mxu0 %vm2441_vm2, %v15365_v9 }
 0xc39   : > { %v15444_v54 = vpop.f32.mrf.mxu0 }
 0xc3a   : > { %v15445_v63 = vadd.f32 %v15444_v54, %v15374_v42 }
 0xc3b   : > { %v19206_v50 = vpop.f32.mrf.mxu0 }
 0xc3c   : > { %15449 = vst.msk [vmem:[%s420_s28] sm:$0x1] %vm15448_vm5, %v15445_v63 }
 0xc3d   : > { %19821 = shalt.err (!%p19818_p0)
}
 0xc3e   : > { %s19822_s26 = scalar_lea.hbm %s26219_s17, 16  ;;  %s19826_s15 = scalar_lea.hbm %s26266_s12, 32 }
 0xc3f   : > { %p19823_p1 = scmp.ne.s32.totalorder %s26219_s17, %s19822_s26  ;;  %p19827_p4 = scmp.lt.s32.totalorder %s26219_s17, %s26266_s12 }
 0xc40   : > { %p19828_p7 = scmp.lt.s32.totalorder %s19826_s15, %s19822_s26 }
 0xc41   : > { %p19824_p2 = pnand %p19823_p1, %p19983_p5 }
 0xc42   : > { %p19829_p6 = por %p19828_p7, %p19827_p4 }
 0xc43   : > { %p19825_p3 = pneg %p19824_p2 }
 0xc45   : > { %p19830_p8 = pnand %p19829_p6, %p19825_p3 }
 0xc47   : > { %19833 = shalt.err (!%p19830_p8)
}
 0xc48   : > { %19220 = dma.vmem_to_hbm [thread:$0]  (%p19983_p5), %s15464_s29, 16, %s26219_s17, %s15451_s18  }
 0xc49 PF: > { %p19232_p9 = scmp.ge.s32.totalorder %s19872_s24, 2  ;;  %s15475_s1 = sand.u32 1, %s19860_s21  }
 0xc4a   : > { %p26601_p10 = scmp.ne.s32.totalorder %s26287_s14, 0  ;;  %s15476_s19 = scalar_lea.sflag [#allocation4], %s15475_s1 }
 0xc4c   : > { %p19227_p11 = pnand %p19232_p9, %p26601_p10 }
 0xc4e   : > { %p19228_p12 = pneg %p19227_p11 }
 0xc50   : > { %19855 = dma.done.wait (%p19228_p12), %s15476_s19, 16  }
 0xc51   : > { %19857 = vsyncadd (%p19228_p12), %s15476_s19, 4294967280  ;;  %p23_p13 = scmp.ge.s32.totalorder %s19970_s27, 4   ;;  %s26602_s21 = smov %s19864_s22 }
 0xc52   : > { %s26603_s22 = smov %s19868_s23  ;;  %s26604_s23 = smov %s19981_s30 }
 0xc53   : > { %s26605_s24 = smov %s19970_s27  ;;  %25 = sbr.rel (!%p23_p13) target bundleno = 7 (0x7), region = 131 }
 0xc58   :  { %15480 = vsyncpa [#allocation3], 1 }
 0xc59   :  { %15482 = vsyncpa [#allocation3 + $0x1], 1 }
 0xc5a   :  { %15483 = vsyncpa [#allocation4], 1 }
 0xc5b   :  { %15485 = vsyncpa [#allocation4 + $0x1], 1 }

</bundles_post_ra>
